<compile_context>
chip_gen: v7x
topology: tpu7x:2x2x1
jax: 0.10.0
libtpu: 0.0.40
codegen_flags: <defaults>
</compile_context>

<pallas_src>
import functools

import jax
import jax.numpy as jnp
from jax.experimental import pallas as pl
from jax.experimental.pallas import tpu as pltpu

H1 = 128   # hidden width of both MLPs
H2 = 256   # output width of both MLPs (the 'i' einsum axis)


def _deeponet_kernel(
    # inputs (order must match the call below)
    x_ref, l_ref, bparam_ref,
    bw1, bb1, bw2, bb2, bw3, bb3, bw4, bb4,   # branch weights [in,out] / (1,out)
    tw1, tb1, tw2, tb2, tw3, tb3, tw4, tb4,   # trunk  weights [in,out] / (1,out)
    # output
    out_ref,
    *, batch_tile, n_points, compute_dtype,
):
    TB, K = batch_tile, n_points
    cdt = compute_dtype
    f32 = jnp.float32

    def dense(h, w_ref, b_ref, act):
        # MXU matmul with f32 accumulation; tanh on the EUP in compute dtype.
        z = jnp.dot(h, w_ref[...], preferred_element_type=f32) + b_ref[...].astype(f32)
        if act:
            return jnp.tanh(z.astype(cdt))
        return z                               # final layer: keep f32 accumulator

    # ---- branch MLP: (TB, b_dim) -> (TB, 256) on the MXU ----
    h = x_ref[...]
    h = dense(h, bw1, bb1, act=True)
    h = dense(h, bw2, bb2, act=True)
    h = dense(h, bw3, bb3, act=True)
    br = dense(h, bw4, bb4, act=False)                           # (TB, 256) f32

    # ---- trunk MLP on the collapsed view: (TB*K, t_dim) -> (TB*K, 256) ----
    # First layer contracts over t_dim (=2): VPU outer-product FMAs instead of
    # pushing a K=2 contraction through the MXU.
    t_dim = l_ref.shape[-1]
    w1 = tw1[...].astype(f32)                                    # (t_dim, 128)
    z = l_ref[:, 0:1].astype(f32) * w1[0:1, :]
    for j in range(1, t_dim):                                    # static unroll
        z = z + l_ref[:, j:j + 1].astype(f32) * w1[j:j + 1, :]
    z = z + tb1[...].astype(f32)
    t = jnp.tanh(z.astype(cdt))
    t = dense(t, tw2, tb2, act=True)
    t = dense(t, tw3, tb3, act=True)
    tr = dense(t, tw4, tb4, act=False)                           # (TB*K, 256) f32

    # ---- einsum('bi,bki->bk') + scalar bias for this batch tile ----
    tr3 = tr.reshape(TB, K, H2)                                  # lane dim preserved
    res = jnp.sum(tr3 * br[:, None, :], axis=-1)                 # VPU mul + XLU reduce
    out_ref[...] = res + bparam_ref[0]                           # lane-dense (TB, K)


def _pick_batch_tile(B, K, vmem_budget_bytes=8 << 20):
    """Largest TB dividing B with (8,128)-legal blocks (TB and TB*K multiples
    of 8, or full-array), a VMEM footprint sized for v7x's 64 MiB, and (when
    possible) >= 2 grid steps so both v7x TensorCores get work."""
    max_tile = max(8, min(256, vmem_budget_bytes // (K * H2 * 4)))
    cand = []
    for tb in range(1, min(B, max_tile) + 1):
        if B % tb != 0:
            continue
        rows_ok = (tb % 8 == 0) or (tb == B)            # x / out sublane legality
        trunk_ok = ((tb * K) % 8 == 0) or (tb == B)     # collapsed-l sublane legality
        if rows_ok and trunk_ok:
            cand.append(tb)
    if not cand:
        return B
    multi = [tb for tb in cand if B // tb >= 2]
    return max(multi) if multi else max(cand)


def deeponet_forward(x, l, b_param, branch_params, trunk_params,
                     *, batch_tile=None, compute_dtype=jnp.float32):
    """x: (B, b_dim); l: (B, K, t_dim); returns (B, K, 1) float32."""
    B, b_dim = x.shape
    _, K, t_dim = l.shape

    TB = batch_tile if batch_tile is not None else _pick_batch_tile(B, K)
    assert B % TB == 0, "batch_tile must divide B"
    grid = (B // TB,)

    cdt = compute_dtype
    xw = x.astype(cdt)
    lw = l.reshape(B * K, t_dim).astype(cdt)        # collapse (B, K) -> rows
    weights = [w.astype(cdt) for w in (*branch_params, *trunk_params)]

    def const_spec(shape):
        # full-array weight block; constant index map -> VMEM-resident, no re-DMA
        return pl.BlockSpec(shape, lambda i: (0,) * len(shape))

    in_specs = [
        pl.BlockSpec((TB, b_dim), lambda i: (i, 0)),             # x tile
        pl.BlockSpec((TB * K, t_dim), lambda i: (i, 0)),         # collapsed l tile
        pl.BlockSpec(memory_space=pltpu.MemorySpace.SMEM),       # scalar bias b
    ] + [const_spec(w.shape) for w in weights]

    out_spec = pl.BlockSpec((TB, K), lambda i: (i, 0))           # lane-dense output

    # Advisory cost hint for XLA's scheduler around the custom call.
    def mlp_flops(d_in):
        return 2 * (d_in * H1 + 2 * H1 * H1 + H1 * H2)
    flops = B * mlp_flops(b_dim) + B * K * mlp_flops(t_dim) + 2 * B * K * H2
    transcendentals = 3 * H1 * (B + B * K)
    bytes_accessed = 4 * (x.size + l.size + B * K) + sum(
        w.size * w.dtype.itemsize for w in weights)

    kernel = functools.partial(_deeponet_kernel, batch_tile=TB, n_points=K,
                               compute_dtype=cdt)

    out2d = pl.pallas_call(
        kernel,
        out_shape=jax.ShapeDtypeStruct((B, K), jnp.float32),
        grid=grid,
        in_specs=in_specs,
        out_specs=out_spec,
        compiler_params=pltpu.CompilerParams(
            dimension_semantics=("parallel",),
            vmem_limit_bytes=32 * 1024 * 1024,
        ),
        cost_estimate=pl.CostEstimate(flops=int(flops),
                                      transcendentals=int(transcendentals),
                                      bytes_accessed=int(bytes_accessed)),
    )(xw, lw, b_param.astype(jnp.float32), *weights)

    return out2d[..., None]                         # (B, K, 1): res.unsqueeze(-1)+b


def _init_linear(key, fan_in, fan_out):
    """Deterministic PyTorch-style init; W stored [in, out] (transposed)."""
    kw, kb = jax.random.split(key)
    bound = 1.0 / jnp.sqrt(float(fan_in))
    W = jax.random.uniform(kw, (fan_in, fan_out), jnp.float32, -bound, bound)
    b = jax.random.uniform(kb, (1, fan_out), jnp.float32, -bound, bound)
    return W, b


def _init_mlp(key, in_dim):
    dims = [(in_dim, H1), (H1, H1), (H1, H1), (H1, H2)]
    keys = jax.random.split(key, len(dims))
    params = []
    for k, (fi, fo) in zip(keys, dims):
        W, b = _init_linear(k, fi, fo)
        params += [W, b]
    return tuple(params)


def _reference(x, l, b_param, branch_params, trunk_params):
    """Plain-JAX reference replicating the PyTorch forward."""
    def mlp(h, params):
        w1, b1, w2, b2, w3, b3, w4, b4 = params
        h = jnp.tanh(h @ w1 + b1)
        h = jnp.tanh(h @ w2 + b2)
        h = jnp.tanh(h @ w3 + b3)
        return h @ w4 + b4

    xb = mlp(x, branch_params)                              # (B, 256)
    B, K, t_dim = l.shape
    lt = mlp(l.reshape(B * K, t_dim), trunk_params).reshape(B, K, H2)
    res = jnp.einsum("bi,bki->bk", xb, lt)
    return res[..., None] + b_param[0]


if __name__ == "__main__":
    B, b_dim, t_dim, K = 32, 32, 2, 64   # small; gives TB=16 -> 2 grid steps

    key = jax.random.PRNGKey(0)
    kx, kl, kbr, ktr = jax.random.split(key, 4)

    x = jax.random.normal(kx, (B, b_dim), jnp.float32)
    l = jax.random.normal(kl, (B, K, t_dim), jnp.float32)

    branch_params = _init_mlp(kbr, b_dim)
    trunk_params = _init_mlp(ktr, t_dim)
    b_param = jnp.zeros((1,), jnp.float32)                  # Parameter(torch.zeros(1))

    ref = _reference(x, l, b_param, branch_params, trunk_params)

    # f32 path (v5e-friendly default). Tolerance accounts for XLA's default
    # TPU matmul precision in the reference vs. the exact-f32 VPU first layer.
    out = deeponet_forward(x, l, b_param, branch_params, trunk_params)
    out = jax.block_until_ready(out)
    assert out.shape == (B, K, 1)
    assert jnp.allclose(out, ref, atol=2e-2, rtol=2e-2)

    # bf16 MXU/EUP path (v6e/v7x recommendation), f32 accumulation; loose check.
    out_bf16 = deeponet_forward(x, l, b_param, branch_params, trunk_params,
                                compute_dtype=jnp.bfloat16)
    out_bf16 = jax.block_until_ready(out_bf16)
    assert out_bf16.shape == (B, K, 1)
    assert jnp.allclose(out_bf16, ref, atol=2e-1, rtol=1e-1)

    print("KERNEL_OK")
</pallas_src>

<mosaic_0001>
module attributes {stable_mosaic.version = 11 : i64} {
  func.func @_deeponet_kernel(%arg0: i32, %arg1: memref<16x32xf32, #tpu.memory_space<vmem>>, %arg2: memref<1024x2xf32, #tpu.memory_space<vmem>>, %arg3: memref<1xf32, #tpu.memory_space<smem>>, %arg4: memref<32x128xf32, #tpu.memory_space<vmem>>, %arg5: memref<1x128xf32, #tpu.memory_space<vmem>>, %arg6: memref<128x128xf32, #tpu.memory_space<vmem>>, %arg7: memref<1x128xf32, #tpu.memory_space<vmem>>, %arg8: memref<128x128xf32, #tpu.memory_space<vmem>>, %arg9: memref<1x128xf32, #tpu.memory_space<vmem>>, %arg10: memref<128x256xf32, #tpu.memory_space<vmem>>, %arg11: memref<1x256xf32, #tpu.memory_space<vmem>>, %arg12: memref<2x128xf32, #tpu.memory_space<vmem>>, %arg13: memref<1x128xf32, #tpu.memory_space<vmem>>, %arg14: memref<128x128xf32, #tpu.memory_space<vmem>>, %arg15: memref<1x128xf32, #tpu.memory_space<vmem>>, %arg16: memref<128x128xf32, #tpu.memory_space<vmem>>, %arg17: memref<1x128xf32, #tpu.memory_space<vmem>>, %arg18: memref<128x256xf32, #tpu.memory_space<vmem>>, %arg19: memref<1x256xf32, #tpu.memory_space<vmem>>, %arg20: memref<16x64xf32, #tpu.memory_space<vmem>>) attributes {dimension_semantics = [#tpu.dimension_semantics<parallel>], iteration_bounds = array<i64: 2>, scalar_prefetch = 0 : i64, scratch_operands = 0 : i64, tpu.core_type = #tpu.core_type<tc>, window_params = [{transform_indices = @transform_0, window_bounds = array<i64: 16, 32>}, {transform_indices = @transform_1, window_bounds = array<i64: 1024, 2>}, {transform_indices = @transform_2, window_bounds = array<i64: 1>}, {pipeline_mode = #tpu.pipeline_mode<synchronous>, transform_indices = @transform_3, window_bounds = array<i64: 32, 128>}, {pipeline_mode = #tpu.pipeline_mode<synchronous>, transform_indices = @transform_4, window_bounds = array<i64: 1, 128>}, {pipeline_mode = #tpu.pipeline_mode<synchronous>, transform_indices = @transform_5, window_bounds = array<i64: 128, 128>}, {pipeline_mode = #tpu.pipeline_mode<synchronous>, transform_indices = @transform_6, window_bounds = array<i64: 1, 128>}, {pipeline_mode = #tpu.pipeline_mode<synchronous>, transform_indices = @transform_7, window_bounds = array<i64: 128, 128>}, {pipeline_mode = #tpu.pipeline_mode<synchronous>, transform_indices = @transform_8, window_bounds = array<i64: 1, 128>}, {pipeline_mode = #tpu.pipeline_mode<synchronous>, transform_indices = @transform_9, window_bounds = array<i64: 128, 256>}, {pipeline_mode = #tpu.pipeline_mode<synchronous>, transform_indices = @transform_10, window_bounds = array<i64: 1, 256>}, {pipeline_mode = #tpu.pipeline_mode<synchronous>, transform_indices = @transform_11, window_bounds = array<i64: 2, 128>}, {pipeline_mode = #tpu.pipeline_mode<synchronous>, transform_indices = @transform_12, window_bounds = array<i64: 1, 128>}, {pipeline_mode = #tpu.pipeline_mode<synchronous>, transform_indices = @transform_13, window_bounds = array<i64: 128, 128>}, {pipeline_mode = #tpu.pipeline_mode<synchronous>, transform_indices = @transform_14, window_bounds = array<i64: 1, 128>}, {pipeline_mode = #tpu.pipeline_mode<synchronous>, transform_indices = @transform_15, window_bounds = array<i64: 128, 128>}, {pipeline_mode = #tpu.pipeline_mode<synchronous>, transform_indices = @transform_16, window_bounds = array<i64: 1, 128>}, {pipeline_mode = #tpu.pipeline_mode<synchronous>, transform_indices = @transform_17, window_bounds = array<i64: 128, 256>}, {pipeline_mode = #tpu.pipeline_mode<synchronous>, transform_indices = @transform_18, window_bounds = array<i64: 1, 256>}, {transform_indices = @transform_19, window_bounds = array<i64: 16, 64>}]} {
    %c0 = arith.constant 0 : index
    %c0_0 = arith.constant 0 : index
    %0 = vector.load %arg1[%c0, %c0_0] : memref<16x32xf32, #tpu.memory_space<vmem>>, vector<16x32xf32>
    %c0_1 = arith.constant 0 : index
    %c0_2 = arith.constant 0 : index
    %1 = vector.load %arg4[%c0_1, %c0_2] : memref<32x128xf32, #tpu.memory_space<vmem>>, vector<32x128xf32>
    %cst = arith.constant dense<0.000000e+00> : vector<16x128xf32>
    %2 = tpu.matmul %0, %1, %cst {dimension_numbers = #tpu.dot_dimension_numbers<[1], [0], [0], [1], [0, 0, 1, 1], [], []>} : vector<16x32xf32>, vector<32x128xf32>, vector<16x128xf32> -> vector<16x128xf32>
    %c0_3 = arith.constant 0 : index
    %c0_4 = arith.constant 0 : index
    %3 = vector.load %arg5[%c0_3, %c0_4] : memref<1x128xf32, #tpu.memory_space<vmem>>, vector<1x128xf32>
    %4 = vector.broadcast %3 : vector<1x128xf32> to vector<16x128xf32>
    %5 = arith.addf %2, %4 : vector<16x128xf32>
    %6 = math.tanh %5 : vector<16x128xf32>
    %c0_5 = arith.constant 0 : index
    %c0_6 = arith.constant 0 : index
    %7 = vector.load %arg6[%c0_5, %c0_6] : memref<128x128xf32, #tpu.memory_space<vmem>>, vector<128x128xf32>
    %cst_7 = arith.constant dense<0.000000e+00> : vector<16x128xf32>
    %8 = tpu.matmul %6, %7, %cst_7 {dimension_numbers = #tpu.dot_dimension_numbers<[1], [0], [0], [1], [0, 0, 1, 1], [], []>} : vector<16x128xf32>, vector<128x128xf32>, vector<16x128xf32> -> vector<16x128xf32>
    %c0_8 = arith.constant 0 : index
    %c0_9 = arith.constant 0 : index
    %9 = vector.load %arg7[%c0_8, %c0_9] : memref<1x128xf32, #tpu.memory_space<vmem>>, vector<1x128xf32>
    %10 = vector.broadcast %9 : vector<1x128xf32> to vector<16x128xf32>
    %11 = arith.addf %8, %10 : vector<16x128xf32>
    %12 = math.tanh %11 : vector<16x128xf32>
    %c0_10 = arith.constant 0 : index
    %c0_11 = arith.constant 0 : index
    %13 = vector.load %arg8[%c0_10, %c0_11] : memref<128x128xf32, #tpu.memory_space<vmem>>, vector<128x128xf32>
    %cst_12 = arith.constant dense<0.000000e+00> : vector<16x128xf32>
    %14 = tpu.matmul %12, %13, %cst_12 {dimension_numbers = #tpu.dot_dimension_numbers<[1], [0], [0], [1], [0, 0, 1, 1], [], []>} : vector<16x128xf32>, vector<128x128xf32>, vector<16x128xf32> -> vector<16x128xf32>
    %c0_13 = arith.constant 0 : index
    %c0_14 = arith.constant 0 : index
    %15 = vector.load %arg9[%c0_13, %c0_14] : memref<1x128xf32, #tpu.memory_space<vmem>>, vector<1x128xf32>
    %16 = vector.broadcast %15 : vector<1x128xf32> to vector<16x128xf32>
    %17 = arith.addf %14, %16 : vector<16x128xf32>
    %18 = math.tanh %17 : vector<16x128xf32>
    %c0_15 = arith.constant 0 : index
    %c0_16 = arith.constant 0 : index
    %19 = vector.load %arg10[%c0_15, %c0_16] : memref<128x256xf32, #tpu.memory_space<vmem>>, vector<128x256xf32>
    %cst_17 = arith.constant dense<0.000000e+00> : vector<16x256xf32>
    %20 = tpu.matmul %18, %19, %cst_17 {dimension_numbers = #tpu.dot_dimension_numbers<[1], [0], [0], [1], [0, 0, 1, 1], [], []>} : vector<16x128xf32>, vector<128x256xf32>, vector<16x256xf32> -> vector<16x256xf32>
    %c0_18 = arith.constant 0 : index
    %c0_19 = arith.constant 0 : index
    %21 = vector.load %arg11[%c0_18, %c0_19] : memref<1x256xf32, #tpu.memory_space<vmem>>, vector<1x256xf32>
    %22 = vector.broadcast %21 : vector<1x256xf32> to vector<16x256xf32>
    %23 = arith.addf %20, %22 : vector<16x256xf32>
    %c0_20 = arith.constant 0 : index
    %c0_21 = arith.constant 0 : index
    %24 = vector.load %arg12[%c0_20, %c0_21] : memref<2x128xf32, #tpu.memory_space<vmem>>, vector<2x128xf32>
    %c0_22 = arith.constant 0 : index
    %c0_23 = arith.constant 0 : index
    %25 = vector.load %arg2[%c0_22, %c0_23] : memref<1024x2xf32, #tpu.memory_space<vmem>>, vector<1024x1xf32>
    %26 = vector.extract_strided_slice %24 {offsets = [0, 0], sizes = [1, 128], strides = [1, 1]} : vector<2x128xf32> to vector<1x128xf32>
    %27 = vector.broadcast %25 : vector<1024x1xf32> to vector<1024x128xf32>
    %28 = vector.broadcast %26 : vector<1x128xf32> to vector<1024x128xf32>
    %29 = arith.mulf %27, %28 : vector<1024x128xf32>
    %c0_24 = arith.constant 0 : index
    %c1 = arith.constant 1 : index
    %30 = vector.load %arg2[%c0_24, %c1] : memref<1024x2xf32, #tpu.memory_space<vmem>>, vector<1024x1xf32>
    %31 = vector.extract_strided_slice %24 {offsets = [1, 0], sizes = [1, 128], strides = [1, 1]} : vector<2x128xf32> to vector<1x128xf32>
    %32 = vector.broadcast %30 : vector<1024x1xf32> to vector<1024x128xf32>
    %33 = vector.broadcast %31 : vector<1x128xf32> to vector<1024x128xf32>
    %34 = arith.mulf %32, %33 : vector<1024x128xf32>
    %35 = arith.addf %29, %34 : vector<1024x128xf32>
    %c0_25 = arith.constant 0 : index
    %c0_26 = arith.constant 0 : index
    %36 = vector.load %arg13[%c0_25, %c0_26] : memref<1x128xf32, #tpu.memory_space<vmem>>, vector<1x128xf32>
    %37 = vector.broadcast %36 : vector<1x128xf32> to vector<1024x128xf32>
    %38 = arith.addf %35, %37 : vector<1024x128xf32>
    %39 = math.tanh %38 : vector<1024x128xf32>
    %c0_27 = arith.constant 0 : index
    %c0_28 = arith.constant 0 : index
    %40 = vector.load %arg14[%c0_27, %c0_28] : memref<128x128xf32, #tpu.memory_space<vmem>>, vector<128x128xf32>
    %cst_29 = arith.constant dense<0.000000e+00> : vector<1024x128xf32>
    %41 = tpu.matmul %39, %40, %cst_29 {dimension_numbers = #tpu.dot_dimension_numbers<[1], [0], [0], [1], [0, 0, 1, 1], [], []>} : vector<1024x128xf32>, vector<128x128xf32>, vector<1024x128xf32> -> vector<1024x128xf32>
    %c0_30 = arith.constant 0 : index
    %c0_31 = arith.constant 0 : index
    %42 = vector.load %arg15[%c0_30, %c0_31] : memref<1x128xf32, #tpu.memory_space<vmem>>, vector<1x128xf32>
    %43 = vector.broadcast %42 : vector<1x128xf32> to vector<1024x128xf32>
    %44 = arith.addf %41, %43 : vector<1024x128xf32>
    %45 = math.tanh %44 : vector<1024x128xf32>
    %c0_32 = arith.constant 0 : index
    %c0_33 = arith.constant 0 : index
    %46 = vector.load %arg16[%c0_32, %c0_33] : memref<128x128xf32, #tpu.memory_space<vmem>>, vector<128x128xf32>
    %cst_34 = arith.constant dense<0.000000e+00> : vector<1024x128xf32>
    %47 = tpu.matmul %45, %46, %cst_34 {dimension_numbers = #tpu.dot_dimension_numbers<[1], [0], [0], [1], [0, 0, 1, 1], [], []>} : vector<1024x128xf32>, vector<128x128xf32>, vector<1024x128xf32> -> vector<1024x128xf32>
    %c0_35 = arith.constant 0 : index
    %c0_36 = arith.constant 0 : index
    %48 = vector.load %arg17[%c0_35, %c0_36] : memref<1x128xf32, #tpu.memory_space<vmem>>, vector<1x128xf32>
    %49 = vector.broadcast %48 : vector<1x128xf32> to vector<1024x128xf32>
    %50 = arith.addf %47, %49 : vector<1024x128xf32>
    %51 = math.tanh %50 : vector<1024x128xf32>
    %c0_37 = arith.constant 0 : index
    %c0_38 = arith.constant 0 : index
    %52 = vector.load %arg18[%c0_37, %c0_38] : memref<128x256xf32, #tpu.memory_space<vmem>>, vector<128x256xf32>
    %cst_39 = arith.constant dense<0.000000e+00> : vector<1024x256xf32>
    %53 = tpu.matmul %51, %52, %cst_39 {dimension_numbers = #tpu.dot_dimension_numbers<[1], [0], [0], [1], [0, 0, 1, 1], [], []>} : vector<1024x128xf32>, vector<128x256xf32>, vector<1024x256xf32> -> vector<1024x256xf32>
    %c0_40 = arith.constant 0 : index
    %c0_41 = arith.constant 0 : index
    %54 = vector.load %arg19[%c0_40, %c0_41] : memref<1x256xf32, #tpu.memory_space<vmem>>, vector<1x256xf32>
    %55 = vector.broadcast %54 : vector<1x256xf32> to vector<1024x256xf32>
    %56 = arith.addf %53, %55 : vector<1024x256xf32>
    %57 = vector.shape_cast %56 : vector<1024x256xf32> to vector<16x64x256xf32>
    %58 = vector.shape_cast %23 : vector<16x256xf32> to vector<16x1x256xf32>
    %59 = vector.broadcast %58 : vector<16x1x256xf32> to vector<16x64x256xf32>
    %60 = arith.mulf %57, %59 : vector<16x64x256xf32>
    %cst_42 = arith.constant dense<0.000000e+00> : vector<16x64xf32>
    %61 = vector.multi_reduction <add>, %60, %cst_42 [2] : vector<16x64x256xf32> to vector<16x64xf32>
    %c0_43 = arith.constant 0 : index
    %62 = memref.load %arg3[%c0_43] : memref<1xf32, #tpu.memory_space<smem>>
    %63 = vector.broadcast %62 : f32 to vector<16x64xf32>
    %64 = arith.addf %61, %63 : vector<16x64xf32>
    %c0_44 = arith.constant 0 : index
    %c0_45 = arith.constant 0 : index
    %65 = vector.load %arg20[%c0_44, %c0_45] : memref<16x64xf32, #tpu.memory_space<vmem>>, vector<16x64xf32>
    tpu.vector_store %arg20[%c0_44, %c0_45], %64 {strides = array<i32>} : memref<16x64xf32, #tpu.memory_space<vmem>>, vector<16x64xf32>,
    return
  }
  func.func @transform_0(%arg0: i32) -> (i32, i32) {
    %c0_i32 = arith.constant 0 : i32
    %c0_i32_0 = arith.constant 0 : i32
    return %arg0, %c0_i32 : i32, i32
  }
  func.func @transform_1(%arg0: i32) -> (i32, i32) {
    %c0_i32 = arith.constant 0 : i32
    %c0_i32_0 = arith.constant 0 : i32
    return %arg0, %c0_i32 : i32, i32
  }
  func.func @transform_2(%arg0: i32) -> i32 {
    %c0_i32 = arith.constant 0 : i32
    %c0_i32_0 = arith.constant 0 : i32
    return %c0_i32 : i32
  }
  func.func @transform_3(%arg0: i32) -> (i32, i32) {
    %c0_i32 = arith.constant 0 : i32
    %c0_i32_0 = arith.constant 0 : i32
    %c0_i32_1 = arith.constant 0 : i32
    return %c0_i32, %c0_i32_0 : i32, i32
  }
  func.func @transform_4(%arg0: i32) -> (i32, i32) {
    %c0_i32 = arith.constant 0 : i32
    %c0_i32_0 = arith.constant 0 : i32
    %c0_i32_1 = arith.constant 0 : i32
    return %c0_i32, %c0_i32_0 : i32, i32
  }
  func.func @transform_5(%arg0: i32) -> (i32, i32) {
    %c0_i32 = arith.constant 0 : i32
    %c0_i32_0 = arith.constant 0 : i32
    %c0_i32_1 = arith.constant 0 : i32
    return %c0_i32, %c0_i32_0 : i32, i32
  }
  func.func @transform_6(%arg0: i32) -> (i32, i32) {
    %c0_i32 = arith.constant 0 : i32
    %c0_i32_0 = arith.constant 0 : i32
    %c0_i32_1 = arith.constant 0 : i32
    return %c0_i32, %c0_i32_0 : i32, i32
  }
  func.func @transform_7(%arg0: i32) -> (i32, i32) {
    %c0_i32 = arith.constant 0 : i32
    %c0_i32_0 = arith.constant 0 : i32
    %c0_i32_1 = arith.constant 0 : i32
    return %c0_i32, %c0_i32_0 : i32, i32
  }
  func.func @transform_8(%arg0: i32) -> (i32, i32) {
    %c0_i32 = arith.constant 0 : i32
    %c0_i32_0 = arith.constant 0 : i32
    %c0_i32_1 = arith.constant 0 : i32
    return %c0_i32, %c0_i32_0 : i32, i32
  }
  func.func @transform_9(%arg0: i32) -> (i32, i32) {
    %c0_i32 = arith.constant 0 : i32
    %c0_i32_0 = arith.constant 0 : i32
    %c0_i32_1 = arith.constant 0 : i32
    return %c0_i32, %c0_i32_0 : i32, i32
  }
  func.func @transform_10(%arg0: i32) -> (i32, i32) {
    %c0_i32 = arith.constant 0 : i32
    %c0_i32_0 = arith.constant 0 : i32
    %c0_i32_1 = arith.constant 0 : i32
    return %c0_i32, %c0_i32_0 : i32, i32
  }
  func.func @transform_11(%arg0: i32) -> (i32, i32) {
    %c0_i32 = arith.constant 0 : i32
    %c0_i32_0 = arith.constant 0 : i32
    %c0_i32_1 = arith.constant 0 : i32
    return %c0_i32, %c0_i32_0 : i32, i32
  }
  func.func @transform_12(%arg0: i32) -> (i32, i32) {
    %c0_i32 = arith.constant 0 : i32
    %c0_i32_0 = arith.constant 0 : i32
    %c0_i32_1 = arith.constant 0 : i32
    return %c0_i32, %c0_i32_0 : i32, i32
  }
  func.func @transform_13(%arg0: i32) -> (i32, i32) {
    %c0_i32 = arith.constant 0 : i32
    %c0_i32_0 = arith.constant 0 : i32
    %c0_i32_1 = arith.constant 0 : i32
    return %c0_i32, %c0_i32_0 : i32, i32
  }
  func.func @transform_14(%arg0: i32) -> (i32, i32) {
    %c0_i32 = arith.constant 0 : i32
    %c0_i32_0 = arith.constant 0 : i32
    %c0_i32_1 = arith.constant 0 : i32
    return %c0_i32, %c0_i32_0 : i32, i32
  }
  func.func @transform_15(%arg0: i32) -> (i32, i32) {
    %c0_i32 = arith.constant 0 : i32
    %c0_i32_0 = arith.constant 0 : i32
    %c0_i32_1 = arith.constant 0 : i32
    return %c0_i32, %c0_i32_0 : i32, i32
  }
  func.func @transform_16(%arg0: i32) -> (i32, i32) {
    %c0_i32 = arith.constant 0 : i32
    %c0_i32_0 = arith.constant 0 : i32
    %c0_i32_1 = arith.constant 0 : i32
    return %c0_i32, %c0_i32_0 : i32, i32
  }
  func.func @transform_17(%arg0: i32) -> (i32, i32) {
    %c0_i32 = arith.constant 0 : i32
    %c0_i32_0 = arith.constant 0 : i32
    %c0_i32_1 = arith.constant 0 : i32
    return %c0_i32, %c0_i32_0 : i32, i32
  }
  func.func @transform_18(%arg0: i32) -> (i32, i32) {
    %c0_i32 = arith.constant 0 : i32
    %c0_i32_0 = arith.constant 0 : i32
    %c0_i32_1 = arith.constant 0 : i32
    return %c0_i32, %c0_i32_0 : i32, i32
  }
  func.func @transform_19(%arg0: i32) -> (i32, i32) {
    %c0_i32 = arith.constant 0 : i32
    %c0_i32_0 = arith.constant 0 : i32
    return %arg0, %c0_i32 : i32, i32
  }
}

</mosaic_0001>

<bundles_post_ra>
// kernel: tpu_custom_call.1
= control target key start
LH: loop header
LB: loop body
LE: loop exit
PB: predicated region body
PF: predicated region fallthrough
CT: control target
= control target key end

     0   :  { %s13485_s0 = inlined_call_operand.vmem [shape: f32[32,32], index: 0, kind: input, shape index: {}]   ;;  %s13486_s1 = inlined_call_operand.vmem [shape: f32[2048,2], index: 1, kind: input, shape index: {}]   ;;  %s13487_s2 = inlined_call_operand.<no memory space> [shape: f32[1], index: 2, kind: input, shape index: {}]   ;;  %s13488_s3 = inlined_call_operand.vmem [shape: f32[32,128], index: 3, kind: input, shape index: {}]   ;;  %s13489_s4 = inlined_call_operand.vmem [shape: f32[1,128], index: 4, kind: input, shape index: {}]   ;;  %s13490_s5 = inlined_call_operand.vmem [shape: f32[128,128], index: 5, kind: input, shape index: {}]   ;;  %s13491_s6 = inlined_call_operand.vmem [shape: f32[1,128], index: 6, kind: input, shape index: {}]   ;;  %s13492_s7 = inlined_call_operand.vmem [shape: f32[128,128], index: 7, kind: input, shape index: {}]   ;;  %s13493_s8 = inlined_call_operand.vmem [shape: f32[1,128], index: 8, kind: input, shape index: {}]   ;;  %s13494_s9 = inlined_call_operand.vmem [shape: f32[128,256], index: 9, kind: input, shape index: {}]   ;;  %s13495_s10 = inlined_call_operand.vmem [shape: f32[1,256], index: 10, kind: input, shape index: {}]   ;;  %s13496_s11 = inlined_call_operand.vmem [shape: f32[2,128], index: 11, kind: input, shape index: {}]   ;;  %s13497_s12 = inlined_call_operand.vmem [shape: f32[1,128], index: 12, kind: input, shape index: {}]   ;;  %s13498_s13 = inlined_call_operand.vmem [shape: f32[128,128], index: 13, kind: input, shape index: {}]   ;;  %s13499_s14 = inlined_call_operand.vmem [shape: f32[1,128], index: 14, kind: input, shape index: {}]   ;;  %s13500_s15 = inlined_call_operand.vmem [shape: f32[128,128], index: 15, kind: input, shape index: {}]   ;;  %s13501_s16 = inlined_call_operand.vmem [shape: f32[1,128], index: 16, kind: input, shape index: {}]   ;;  %s13502_s17 = inlined_call_operand.vmem [shape: f32[128,256], index: 17, kind: input, shape index: {}]   ;;  %s13503_s18 = inlined_call_operand.vmem [shape: f32[1,256], index: 18, kind: input, shape index: {}]   ;;  %s13504_s19 = inlined_call_operand.hbm [shape: f32[32,64], index: 19, kind: output, shape index: {}]  }
   0x1   :  { %13526 = sst [smem:[#allocation138_spill]] %s13485_s0 }
   0x2   :  { %13527 = sst [smem:[#allocation139_spill]] %s13486_s1 }
   0x3   :  { %13528 = sst [smem:[#allocation140_spill]] %s13487_s2 }
   0x4   :  { %13529 = sst [smem:[#allocation141_spill]] %s13488_s3  ;;  %s13530_s20 = sld [smem:[#allocation140_spill]] }
   0xa   :  { %24 = sst [smem:[#allocation2]] %s13530_s20 }
   0xb   :  { %25 = vsyncpa [#allocation4], 0 }
   0xc   :  { %27 = vsyncpa [#allocation4 + $0x1], 0  ;;  %s9593_s21 = smov 0   ;;  %s9595_s1 = smov 0  }
   0xd   :  { %s9597_s22 = smov 0   ;;  %s9599_s2 = smov 0  }
   0xe LB: > { %13531 = sst [smem:[#allocation6_spill]] %s9469_s21  ;;  %s9614_s23 = sadd.s32 4294967295, %s9481_s2   ;;  %s9481_s2 = sphi %s9599_s2, %s13845_s2   ;;  %s9477_s22 = sphi %s9597_s22, %s13847_s22   ;;  %s9473_s1 = sphi %s9595_s1, %s13849_s1   ;;  %s9469_s21 = sphi %s9593_s21, %s13848_s21  }
   0xf   : > { %13532 = sst [smem:[#allocation7_spill]] %s9477_s22  ;;  %s7486_s24 = sadd.s32 4294967294, %s9481_s2  }
  0x10   : > { %13533 = sst [smem:[#allocation8_spill]] %s9481_s2  ;;  %s9618_s25 = sadd.s32 1, %s9481_s2  }
  0x11   : > { %13534 = sst [smem:[#allocation9_spill]] %s9618_s25  ;;  %s449_s3 = sadd.s32 1, %s9477_s22 }
  0x12   : > { %s446_s26 = ssub.s32 %s9481_s2, %s9618_s25  ;;  %p459_p0 = scmp.ne.s32.totalorder %s9477_s22, %s9473_s1 }
  0x13   : > { %p447_p1 = scmp.eq.s32.totalorder %s446_s26, 0  ;;  %p460_p2 = scmp.eq.s32.totalorder %s9614_s23, 1 }
  0x14   : > { %p465_p3 = scmp.ne.s32.totalorder %s9473_s1, %s9469_s21  ;;  %p466_p4 = scmp.eq.s32.totalorder %s7486_s24, 1 }
  0x15   : > { %s9629_s27 = scalar_select %p447_p1, %s9477_s22, %s449_s3  }
  0x16   : > { %p9631_p5 = por %p460_p2, %p459_p0  ;;  %p9635_p6 = por %p466_p4, %p465_p3 }
  0x17   : > { %13535 = sst [smem:[#allocation10_spill]] %s9629_s27  ;;  %p7489_p7 = scmp.ge.s32.totalorder %s9481_s2, 1 }
  0x18   : > { %s13537_s29 = scalar_select %p9635_p6, 1, 0 }
  0x19   : > { %p553_p8 = scmp.lt.s32.totalorder %s9481_s2, 3 }
  0x1a   : > { %13538 = sst [smem:[#allocation11_spill]] %s13537_s29 }
  0x1b   : > { %p554_p9 = pnand %p7489_p7, %p553_p8 }
  0x1d   : > { %557 = sbr.rel (%p554_p9) target bundleno = 1747 (0x6d3), region = 96 }
  0x24   : > { %s13539_s20 = sld [smem:[#allocation141_spill]]  ;;  %s7493_s22 = sshll.u32 %s9614_s23, 7  ;;  %v9483_v4 = vmov 0   ;;  %vm640_vm0 = vcmask 261120   ;;  %v9484_v31 = vmov 1   ;;  %v724_v32 = vld [vmem:[%s13490_s5] sm:$0xff] }
  0x25   : > { %s7491_s25 = sshll.u32 %s9614_s23, 1  ;;  %8630 = vset.pattern.permute.xlu1 %v9483_v4  ;;  %8629 = vset.pattern.permute.xlu0 %v9483_v4  ;;  %p621_p10 = scmp.lt.s32.totalorder %s7493_s22, 255  ;;  %v725_v33 = vld [vmem:[%s13490_s5 + $0x8] sm:$0xff]  ;;  %v726_v35 = vld [vmem:[%s13490_s5 + $0x10] sm:$0xff]  ;;  %v727_v36 = vld [vmem:[%s13490_s5 + $0x18] sm:$0xff]  ;;  %vm6743_vm1 = vcmask 130112  }
  0x26   : > { %p615_p11 = scmp.lt.s32.totalorder %s7491_s25, 3  ;;  %s13540_s26 = sld [smem:[#allocation139_spill]]  ;;  %v8376_v34 = vpack.c.bf16 %v725_v33, %v724_v32  ;;  %v8380_v37 = vpack.c.bf16 %v727_v36, %v726_v35  ;;  %v728_v38 = vld [vmem:[%s13490_s5 + $0x20] sm:$0xff]  ;;  %v729_v39 = vld [vmem:[%s13490_s5 + $0x28] sm:$0xff]  ;;  %v730_v41 = vld [vmem:[%s13490_s5 + $0x30] sm:$0xff]  ;;  %vm6750_vm2 = vcmask 195712  }
  0x27   : > { %s13851_s22 = smov (!%p621_p10, %s7493_s22), 255  ;;  %s13541_s21 = sld [smem:[#allocation138_spill]]  ;;  %v8384_v40 = vpack.c.bf16 %v729_v39, %v728_v38  ;;  %v731_v42 = vld [vmem:[%s13490_s5 + $0x38] sm:$0xff]  ;;  %v732_v44 = vld [vmem:[%s13490_s5 + $0x40] sm:$0xff]  ;;  %v733_v45 = vld [vmem:[%s13490_s5 + $0x48] sm:$0xff]  ;;  %vm6757_vm3 = vcmask 261312  }
  0x28   : > { %s13853_s25 = smov (!%p615_p11, %s7491_s25), 3  ;;  %s7494_s27 = sshll.u32 %s13851_s22, 3  ;;  %8377 = vmatprep.subr.bf16.mxu1 %v8376_v34  ;;  %v8388_v43 = vpack.c.bf16 %v731_v42, %v730_v41  ;;  %v8392_v46 = vpack.c.bf16 %v733_v45, %v732_v44  ;;  %v734_v48 = vld [vmem:[%s13490_s5 + $0x50] sm:$0xff]  ;;  %v735_v49 = vld [vmem:[%s13490_s5 + $0x58] sm:$0xff]  ;;  %v736_v52 = vld [vmem:[%s13490_s5 + $0x60] sm:$0xff]  ;;  %vm6764_vm4 = vcmask 326912  }
  0x29   : > { %s7492_s0 = sshll.u32 %s13853_s25, 3  ;;  %8379 = vmatpush3.bf16.msra.mxu1 %v8376_v34  ;;  %v8396_v50 = vpack.c.bf16 %v735_v49, %v734_v48  ;;  %v737_v53 = vld [vmem:[%s13490_s5 + $0x68] sm:$0xff]  ;;  %v738_v56 = vld [vmem:[%s13490_s5 + $0x70] sm:$0xff]  ;;  %v739_v57 = vld [vmem:[%s13490_s5 + $0x78] sm:$0xff]  ;;  %vm6771_vm5 = vcmask 392512   ;;  %vm6778_vm6 = vcmask 458112  }
  0x2a   : > { %v629_v0 = vld [vmem:[%s13539_s20] sm:$0xff]  ;;  %v630_v1 = vld [vmem:[%s13539_s20 + $0x8] sm:$0xff]  ;;  %v631_v2 = vld [vmem:[%s13539_s20 + $0x10] sm:$0xff]  ;;  %8381 = vmatprep.subr.bf16.mxu1 %v8380_v37  ;;  %v8400_v54 = vpack.c.bf16 %v737_v53, %v736_v52  ;;  %v8404_v58 = vpack.c.bf16 %v739_v57, %v738_v56  ;;  %vm6785_vm7 = vcmask 523712   ;;  %vm7372_vm8 = vcmask 1041409   ;;  %s9487_s25 = smov [#allocation3]  }
  0x2b   : > { %v8368_v3 = vpack.c.bf16 %v630_v1, %v629_v0  ;;  %v632_v5 = vld [vmem:[%s13539_s20 + $0x18] sm:$0xff]  ;;  %vm7374_vm9 = vcmask 1042434   ;;  %vm7376_vm10 = vcmask 1043459   ;;  %vm7378_vm11 = vcmask 1044484   ;;  %s9423_s20 = sshll.u32 %s9487_s25, 4  ;;  %s9424_s20 = int_to_ptr.vmem [resolvable:$false] %s9423_s20 }
  0x2c   : > { %v8372_v6 = vpack.c.bf16 %v632_v5, %v631_v2  ;;  %s9660_s29 = scalar_lea.vmem %s13540_s26, %s7494_s27  ;;  %vm7380_vm12 = vcmask 1045509   ;;  %s611_s27 = sand.u32 1, %s9473_s1   ;;  %vm7382_vm13 = vcmask 1046534   ;;  %vm7384_vm14 = vcmask 1047559  }
  0x2d   : > { %8369 = vmatprep.subr.bf16.mxu0 %v8368_v3  ;;  %v1048_v7 = vld [vmem:[%s9660_s29 + $0x10] sm:$0xff]  ;;  %v1046_v8 = vld [vmem:[%s9660_s29] sm:$0xff]  ;;  %s618_s2 = scalar_lea.vmem %s13541_s21, %s7492_s0  ;;  %v1049_v11 = vld [vmem:[%s9660_s29 + $0x18] sm:$0xff]  ;;  %8383 = vmatpush3.bf16.msra.mxu1 %v8380_v37  ;;  %s7490_s24 = sshll.u32 %s611_s27, 4  ;;  %vm7395_vm15 = vcmask 523264  }
  0x2e   : > { %8371 = vmatpush3.bf16.msra.mxu0 %v8368_v3  ;;  %1186 = vperm.xlu1 %8630, %v1048_v7   ;;  %v627_v9 = vld [vmem:[%s618_s2] sm:$0xff]  ;;  %v628_v10 = vld [vmem:[%s618_s2 + $0x8] sm:$0xff]  ;;  %v1053_v15 = vld [vmem:[%s9660_s29 + $0x38] sm:$0xff]  ;;  %s13296_s3 = scalar_lea.vmem [#allocation3], %s7490_s24  ;;  %s7508_s26 = sshll.u32 %s9614_s23, 8 }
  0x2f   : > { %8373 = vmatprep.subr.bf16.mxu0 %v8372_v6  ;;  %1176 = vperm.xlu0 %8629, %v1046_v8   ;;  %v1047_v12 = vld [vmem:[%s9660_s29 + $0x8] sm:$0xff]  ;;  %v1050_v14 = vld [vmem:[%s9660_s29 + $0x20] sm:$0xff]  ;;  %v1052_v16 = vld [vmem:[%s9660_s29 + $0x30] sm:$0xff]  ;;  %s7412_s0 = sshll.u32 %s13296_s3, 4  ;;  %s13433_s22 = scalar_lea.hbm %s13504_s19, %s7508_s26  ;;  %s13435_s0 = int_to_ptr.vmem [resolvable:$true] %s7412_s0 }
  0x30   : > { %7847 = vmatprep.mubr.msk.f32.mxu0 %vm640_vm0, %v627_v9  ;;  %v1051_v13 = vld [vmem:[%s9660_s29 + $0x28] sm:$0xff]  ;;  %v1054_v18 = vld [vmem:[%s9660_s29 + $0x40] sm:$0xff]  ;;  %v1057_v19 = vld [vmem:[%s9660_s29 + $0x58] sm:$0xff]  ;;  %8385 = vmatprep.subr.bf16.mxu1 %v8384_v40  ;;  %s13444_s23 = scalar_lea.sflag [#allocation4], %s611_s27  ;;  %s9419_s2 = scalar_lea.vmem %s13435_s0, 256 }
  0x31   : > { %v1055_v17 = vld [vmem:[%s9660_s29 + $0x48] sm:$0xff]  ;;  %v1056_v20 = vld [vmem:[%s9660_s29 + $0x50] sm:$0xff]  ;;  %v1058_v22 = vld [vmem:[%s9660_s29 + $0x60] sm:$0xff]  ;;  %8387 = vmatpush3.bf16.msra.mxu1 %v8384_v40  ;;  %p9420_p12 = scmp.ne.s32.totalorder %s13435_s0, %s9419_s2  ;;  %p9426_p1 = scmp.lt.s32.totalorder %s13435_s0, %s9424_s20 }
  0x32   : > { %8375 = vmatpush3.bf16.msra.mxu0 %v8372_v6  ;;  %1191 = vperm.xlu1 %8630, %v1049_v11   ;;  %v1059_v21 = vld [vmem:[%s9660_s29 + $0x68] sm:$0xff]  ;;  %v1061_v23 = vld [vmem:[%s9660_s29 + $0x78] sm:$0xff]  ;;  %v1060_v24 = vld [vmem:[%s9660_s29 + $0x70] sm:$0xff] }
  0x33   : > { %1181 = vperm.xlu0 %8629, %v1047_v12   ;;  %v1063_v25 = vld [vmem:[%s9660_s29 + $0x88] sm:$0xff]  ;;  %v1062_v26 = vld [vmem:[%s9660_s29 + $0x80] sm:$0xff]  ;;  %v1065_v27 = vld [vmem:[%s9660_s29 + $0x98] sm:$0xff]  ;;  %8389 = vmatprep.subr.bf16.mxu1 %v8388_v43  ;;  %p9421_p13 = pnand %p9420_p12, %p9631_p5 }
  0x34   : > { %v1064_v28 = vld [vmem:[%s9660_s29 + $0x90] sm:$0xff]  ;;  %v1067_v29 = vld [vmem:[%s9660_s29 + $0xa8] sm:$0xff]  ;;  %v1066_v30 = vld [vmem:[%s9660_s29 + $0xa0] sm:$0xff] }
  0x35   : > { %7848 = vmatmul.mubr.msk.f32.vlgmr.msra.gmra.mrb[0].mxu0 %vm640_vm0, %v628_v10  ;;  %8391 = vmatpush3.bf16.msra.mxu1 %v8388_v43  ;;  %v1068_v47 = vld [vmem:[%s9660_s29 + $0xb0] sm:$0xff]  ;;  %v1069_v51 = vld [vmem:[%s9660_s29 + $0xb8] sm:$0xff]  ;;  %v1070_v55 = vld [vmem:[%s9660_s29 + $0xc0] sm:$0xff]  ;;  %p9422_p0 = pneg %p9421_p13 }
  0x36   : > { %1201 = vperm.xlu1 %8630, %v1051_v13   ;;  %8393 = vmatprep.subr.bf16.mxu1 %v8392_v46  ;;  %v1071_v59 = vld [vmem:[%s9660_s29 + $0xc8] sm:$0xff]  ;;  %v1072_v60 = vld [vmem:[%s9660_s29 + $0xd0] sm:$0xff]  ;;  %v1073_v61 = vld [vmem:[%s9660_s29 + $0xd8] sm:$0xff] }
  0x37   : > { %1196 = vperm.xlu0 %8629, %v1050_v14   ;;  %v1074_v62 = vld [vmem:[%s9660_s29 + $0xe0] sm:$0xff]  ;;  %v1075_v63 = vld [vmem:[%s9660_s29 + $0xe8] sm:$0xff]  ;;  %v1076_v0 = vld [vmem:[%s9660_s29 + $0xf0] sm:$0xff] }
  0x38   : > { %v1077_v1 = vld [vmem:[%s9660_s29 + $0xf8] sm:$0xff]  ;;  %v1078_v3 = vld [vmem:[%s9660_s29 + $0x100] sm:$0xff]  ;;  %v1079_v6 = vld [vmem:[%s9660_s29 + $0x108] sm:$0xff] }
  0x39   : > { %8395 = vmatpush3.bf16.msra.mxu1 %v8392_v46  ;;  %v1080_v9 = vld [vmem:[%s9660_s29 + $0x110] sm:$0xff]  ;;  %v1089_v35 = vld [vmem:[%s9660_s29 + $0x158] sm:$0xff]  ;;  %v1090_v38 = vld [vmem:[%s9660_s29 + $0x160] sm:$0xff] }
  0x3a   : > { %1211 = vperm.xlu1 %8630, %v1053_v15   ;;  %8397 = vmatprep.subr.bf16.mxu1 %v8396_v50  ;;  %v1088_v33 = vld [vmem:[%s9660_s29 + $0x150] sm:$0xff]  ;;  %v1091_v41 = vld [vmem:[%s9660_s29 + $0x168] sm:$0xff] }
  0x3b   : > { %1206 = vperm.xlu0 %8629, %v1052_v16   ;;  %v1092_v44 = vld [vmem:[%s9660_s29 + $0x170] sm:$0xff]  ;;  %v1095_v53 = vld [vmem:[%s9660_s29 + $0x188] sm:$0xff] }
  0x3c   : > { %v1096_v56 = vld [vmem:[%s9660_s29 + $0x190] sm:$0xff] }
  0x3d   : > { %8399 = vmatpush3.bf16.msra.mxu1 %v8396_v50  ;;  %v1094_v50 = vld [vmem:[%s9660_s29 + $0x180] sm:$0xff] }
  0x3e   : > { %1221 = vperm.xlu1 %8630, %v1055_v17   ;;  %8401 = vmatprep.subr.bf16.mxu1 %v8400_v54 }
  0x3f   : > { %1216 = vperm.xlu0 %8629, %v1054_v18  }
  0x41   : > { %8403 = vmatpush3.bf16.msra.mxu1 %v8400_v54 }
  0x42   : > { %1231 = vperm.xlu1 %8630, %v1057_v19   ;;  %8405 = vmatprep.subr.bf16.mxu1 %v8404_v58 }
  0x43   : > { %1226 = vperm.xlu0 %8629, %v1056_v20  }
  0x45   : > { %8407 = vmatpush3.bf16.msra.mxu1 %v8404_v58 }
  0x46   : > { %1241 = vperm.xlu1 %8630, %v1059_v21  }
  0x47   : > { %1236 = vperm.xlu0 %8629, %v1058_v22  }
  0x4a   : > { %1251 = vperm.xlu1 %8630, %v1061_v23  }
  0x4b   : > { %1246 = vperm.xlu0 %8629, %v1060_v24  }
  0x4e   : > { %1261 = vperm.xlu1 %8630, %v1063_v25  }
  0x4f   : > { %1256 = vperm.xlu0 %8629, %v1062_v26  }
  0x52   : > { %1271 = vperm.xlu1 %8630, %v1065_v27  }
  0x53   : > { %1266 = vperm.xlu0 %8629, %v1064_v28  }
  0x56   : > { %1281 = vperm.xlu1 %8630, %v1067_v29  }
  0x57   : > { %1276 = vperm.xlu0 %8629, %v1066_v30  }
  0x5a   : > { %8632 = vset.pattern.permute.xlu1 %v9484_v31 }
  0x5b   : > { %8631 = vset.pattern.permute.xlu0 %v9484_v31  ;;  %1951 = vperm.xlu1 %8632, %v1047_v12   ;;  %v1081_v12 = vld [vmem:[%s9660_s29 + $0x118] sm:$0xff] }
  0x5c   : > { %1947 = vperm.xlu0 %8631, %v1046_v8  }
  0x5f   : > { %1955 = vperm.xlu1 %8632, %v1048_v7  }
  0x60   : > { %1959 = vperm.xlu0 %8631, %v1049_v11  }
  0x63   : > { %1963 = vperm.xlu1 %8632, %v1050_v14  }
  0x64   : > { %1967 = vperm.xlu0 %8631, %v1051_v13  }
  0x67   : > { %1971 = vperm.xlu1 %8632, %v1052_v16  }
  0x68   : > { %1975 = vperm.xlu0 %8631, %v1053_v15   ;;  %v1082_v15 = vld [vmem:[%s9660_s29 + $0x120] sm:$0xff] }
  0x6b   : > { %1979 = vperm.xlu1 %8632, %v1054_v18   ;;  %v1083_v18 = vld [vmem:[%s9660_s29 + $0x128] sm:$0xff] }
  0x6c   : > { %1983 = vperm.xlu0 %8631, %v1055_v17  }
  0x6f   : > { %1987 = vperm.xlu1 %8632, %v1056_v20  }
  0x70   : > { %1991 = vperm.xlu0 %8631, %v1057_v19  }
  0x73   : > { %1995 = vperm.xlu1 %8632, %v1058_v22  }
  0x74   : > { %1999 = vperm.xlu0 %8631, %v1059_v21   ;;  %v1084_v21 = vld [vmem:[%s9660_s29 + $0x130] sm:$0xff] }
  0x77   : > { %2003 = vperm.xlu1 %8632, %v1060_v24   ;;  %v1085_v24 = vld [vmem:[%s9660_s29 + $0x138] sm:$0xff] }
  0x78   : > { %2007 = vperm.xlu0 %8631, %v1061_v23  }
  0x7b   : > { %2011 = vperm.xlu1 %8632, %v1062_v26  }
  0x7c   : > { %2015 = vperm.xlu0 %8631, %v1063_v25  }
  0x7f   : > { %2019 = vperm.xlu1 %8632, %v1064_v28  }
  0x80   : > { %2023 = vperm.xlu0 %8631, %v1065_v27   ;;  %v1086_v27 = vld [vmem:[%s9660_s29 + $0x140] sm:$0xff] }
  0x83   : > { %2027 = vperm.xlu1 %8632, %v1066_v30   ;;  %v1087_v30 = vld [vmem:[%s9660_s29 + $0x148] sm:$0xff] }
  0x84   : > { %2031 = vperm.xlu0 %8631, %v1067_v29  }
  0x87   : > { %8633 = vset.pattern.permute.xlu1 %v9483_v4 }
  0x88   : > { %2035 = vperm.xlu0 %8631, %v1068_v47   ;;  %1286 = vperm.xlu1 %8633, %v1068_v47   ;;  %v1093_v47 = vld [vmem:[%s9660_s29 + $0x178] sm:$0xff] }
  0x8c   : > { %2039 = vperm.xlu0 %8631, %v1069_v51   ;;  %1291 = vperm.xlu1 %8633, %v1069_v51  }
  0x90   : > { %2043 = vperm.xlu0 %8631, %v1070_v55   ;;  %1296 = vperm.xlu1 %8633, %v1070_v55  }
  0x94   : > { %2047 = vperm.xlu0 %8631, %v1071_v59   ;;  %1301 = vperm.xlu1 %8633, %v1071_v59   ;;  %v1097_v59 = vld [vmem:[%s9660_s29 + $0x198] sm:$0xff] }
  0x98   : > { %2051 = vperm.xlu0 %8631, %v1072_v60   ;;  %1306 = vperm.xlu1 %8633, %v1072_v60  }
  0x9c   : > { %2055 = vperm.xlu0 %8631, %v1073_v61   ;;  %1311 = vperm.xlu1 %8633, %v1073_v61  }
  0xa0   : > { %2059 = vperm.xlu0 %8631, %v1074_v62   ;;  %1316 = vperm.xlu1 %8633, %v1074_v62   ;;  %v1098_v62 = vld [vmem:[%s9660_s29 + $0x1a0] sm:$0xff] }
  0xa4   : > { %2063 = vperm.xlu0 %8631, %v1075_v63   ;;  %1321 = vperm.xlu1 %8633, %v1075_v63  }
  0xa8   : > { %2067 = vperm.xlu0 %8631, %v1076_v0   ;;  %1326 = vperm.xlu1 %8633, %v1076_v0  }
  0xac   : > { %2071 = vperm.xlu0 %8631, %v1077_v1   ;;  %1331 = vperm.xlu1 %8633, %v1077_v1   ;;  %v1099_v1 = vld [vmem:[%s9660_s29 + $0x1a8] sm:$0xff] }
  0xad   : > { %v9746_v2 = vpop.permute.xlu1 %1186 }
  0xae   : > { %v9749_v4 = vpop.permute.xlu0 %1176 }
  0xb0   : > { %2075 = vperm.xlu0 %8631, %v1078_v3   ;;  %1336 = vperm.xlu1 %8633, %v1078_v3  }
  0xb1   : > { %v9751_v5 = vpop.permute.xlu1 %1191 }
  0xb2   : > { %v9754_v7 = vpop.permute.xlu0 %1181 }
  0xb4   : > { %2079 = vperm.xlu0 %8631, %v1079_v6   ;;  %1341 = vperm.xlu1 %8633, %v1079_v6  }
  0xb5   : > { %v9756_v8 = vpop.permute.xlu1 %1201 }
  0xb6   : > { %v9759_v10 = vpop.permute.xlu0 %1196 }
  0xb8   : > { %2083 = vperm.xlu0 %8631, %v1080_v9   ;;  %1346 = vperm.xlu1 %8633, %v1080_v9   ;;  %v7495_v9 = vld [vmem:[%s13489_s4] ss:$0 sm:$0xff] }
  0xb9   : > { %v9761_v11 = vpop.permute.xlu1 %1211 }
  0xba   : > { %v9764_v13 = vpop.permute.xlu0 %1206 }
  0xbc   : > { %2087 = vperm.xlu0 %8631, %v1081_v12   ;;  %1351 = vperm.xlu1 %8633, %v1081_v12  }
  0xbd   : > { %v9766_v14 = vpop.permute.xlu1 %1221 }
  0xbe   : > { %v9769_v16 = vpop.permute.xlu0 %1216 }
  0xc0   : > { %2091 = vperm.xlu0 %8631, %v1082_v15   ;;  %1356 = vperm.xlu1 %8633, %v1082_v15  }
  0xc1   : > { %v9771_v17 = vpop.permute.xlu1 %1231 }
  0xc2   : > { %v9774_v19 = vpop.permute.xlu0 %1226 }
  0xc4   : > { %2095 = vperm.xlu0 %8631, %v1083_v18   ;;  %1361 = vperm.xlu1 %8633, %v1083_v18   ;;  %v1100_v18 = vld [vmem:[%s9660_s29 + $0x1b0] sm:$0xff] }
  0xc5   : > { %v9776_v20 = vpop.permute.xlu1 %1241 }
  0xc6   : > { %v9779_v22 = vpop.permute.xlu0 %1236 }
  0xc8   : > { %2099 = vperm.xlu0 %8631, %v1084_v21   ;;  %1366 = vperm.xlu1 %8633, %v1084_v21  }
  0xc9   : > { %v9781_v23 = vpop.permute.xlu1 %1251 }
  0xca   : > { %v9784_v25 = vpop.permute.xlu0 %1246 }
  0xcc   : > { %2103 = vperm.xlu0 %8631, %v1085_v24   ;;  %1371 = vperm.xlu1 %8633, %v1085_v24  }
  0xcd   : > { %v9786_v26 = vpop.permute.xlu1 %1261 }
  0xce   : > { %v9789_v28 = vpop.permute.xlu0 %1256 }
  0xd0   : > { %2107 = vperm.xlu0 %8631, %v1086_v27   ;;  %1376 = vperm.xlu1 %8633, %v1086_v27  }
  0xd1   : > { %v9791_v29 = vpop.permute.xlu1 %1271 }
  0xd2   : > { %v9794_v31 = vpop.permute.xlu0 %1266 }
  0xd4   : > { %2111 = vperm.xlu0 %8631, %v1087_v30   ;;  %1381 = vperm.xlu1 %8633, %v1087_v30  }
  0xd5   : > { %v9796_v32 = vpop.permute.xlu1 %1281 }
  0xd6   : > { %v9799_v34 = vpop.permute.xlu0 %1276 }
  0xd8   : > { %2115 = vperm.xlu0 %8631, %v1088_v33   ;;  %1386 = vperm.xlu1 %8633, %v1088_v33   ;;  %v1101_v33 = vld [vmem:[%s9660_s29 + $0x1b8] sm:$0xff] }
  0xda   : > { %v9802_v36 = vpop.permute.xlu1 %1951 }
  0xdb   : > { %v9804_v37 = vpop.permute.xlu0 %1947 }
  0xdc   : > { %2119 = vperm.xlu0 %8631, %v1089_v35   ;;  %1391 = vperm.xlu1 %8633, %v1089_v35  }
  0xde   : > { %v9807_v39 = vpop.permute.xlu1 %1955 }
  0xdf   : > { %v9809_v40 = vpop.permute.xlu0 %1959 }
  0xe0   : > { %2123 = vperm.xlu0 %8631, %v1090_v38   ;;  %1396 = vperm.xlu1 %8633, %v1090_v38  }
  0xe2   : > { %v9812_v42 = vpop.permute.xlu1 %1963 }
  0xe3   : > { %v9814_v43 = vpop.permute.xlu0 %1967 }
  0xe4   : > { %2127 = vperm.xlu0 %8631, %v1091_v41   ;;  %1401 = vperm.xlu1 %8633, %v1091_v41   ;;  %v1102_v41 = vld [vmem:[%s9660_s29 + $0x1c0] sm:$0xff] }
  0xe6   : > { %v9817_v45 = vpop.permute.xlu1 %1971 }
  0xe7   : > { %v9819_v46 = vpop.permute.xlu0 %1975 }
  0xe8   : > { %2131 = vperm.xlu0 %8631, %v1092_v44   ;;  %1406 = vperm.xlu1 %8633, %v1092_v44  }
  0xea   : > { %v9822_v48 = vpop.permute.xlu1 %1979 }
  0xeb   : > { %v9824_v49 = vpop.permute.xlu0 %1983 }
  0xec   : > { %2135 = vperm.xlu0 %8631, %v1093_v47   ;;  %1411 = vperm.xlu1 %8633, %v1093_v47  }
  0xee   : > { %v9827_v51 = vpop.permute.xlu1 %1987 }
  0xef   : > { %v9829_v52 = vpop.permute.xlu0 %1991 }
  0xf0   : > { %2139 = vperm.xlu0 %8631, %v1094_v50   ;;  %1416 = vperm.xlu1 %8633, %v1094_v50   ;;  %v1103_v50 = vld [vmem:[%s9660_s29 + $0x1c8] sm:$0xff] }
  0xf2   : > { %v9832_v54 = vpop.permute.xlu1 %1995 }
  0xf3   : > { %v9834_v55 = vpop.permute.xlu0 %1999 }
  0xf4   : > { %2143 = vperm.xlu0 %8631, %v1095_v53   ;;  %1421 = vperm.xlu1 %8633, %v1095_v53  }
  0xf6   : > { %v9837_v57 = vpop.permute.xlu1 %2003 }
  0xf7   : > { %v9839_v58 = vpop.permute.xlu0 %2007 }
  0xf8   : > { %2147 = vperm.xlu0 %8631, %v1096_v56   ;;  %1426 = vperm.xlu1 %8633, %v1096_v56  }
  0xfa   : > { %v9842_v60 = vpop.permute.xlu1 %2011 }
  0xfb   : > { %v9844_v61 = vpop.permute.xlu0 %2015 }
  0xfc   : > { %2151 = vperm.xlu0 %8631, %v1097_v59   ;;  %1431 = vperm.xlu1 %8633, %v1097_v59  }
  0xfe   : > { %v9847_v63 = vpop.permute.xlu1 %2019 }
  0xff   : > { %v9849_v0 = vpop.permute.xlu0 %2023 }
 0x100   : > { %2155 = vperm.xlu0 %8631, %v1098_v62   ;;  %1436 = vperm.xlu1 %8633, %v1098_v62  }
 0x102   : > { %v9852_v3 = vpop.permute.xlu1 %2027 }
 0x103   : > { %v9854_v6 = vpop.permute.xlu0 %2031 }
 0x104   : > { %2159 = vperm.xlu0 %8631, %v1099_v1   ;;  %1441 = vperm.xlu1 %8633, %v1099_v1   ;;  %v1104_v1 = vld [vmem:[%s9660_s29 + $0x1d0] sm:$0xff] }
 0x107   : > { %v9860_v27 = vpop.permute.xlu0 %2035  ;;  %v9862_v30 = vpop.permute.xlu1 %1286 }
 0x108   : > { %v7849_v12 = vpop.f32.mrb[0].mxu0  ;;  %2163 = vperm.xlu0 %8631, %v1100_v18   ;;  %1446 = vperm.xlu1 %8633, %v1100_v18  }
 0x109   : > { %v713_v15 = vpop.f32.mrb[1].mxu0  ;;  %v719_v21 = vadd.f32 %v7849_v12, %v7495_v9 }
 0x10a   : > { %v714_v24 = vadd.f32 %v7495_v9, %v713_v15  ;;  %v1105_v15 = vld [vmem:[%s9660_s29 + $0x1d8] sm:$0xff] }
 0x10b   : > { %v9865_v35 = vpop.permute.xlu0 %2039  ;;  %v9867_v38 = vpop.permute.xlu1 %1291 }
 0x10c   : > { %8634 = vtanh.f32 %v714_v24  ;;  %2167 = vperm.xlu0 %8631, %v1101_v33   ;;  %1451 = vperm.xlu1 %8633, %v1101_v33   ;;  %v1106_v24 = vld [vmem:[%s9660_s29 + $0x1e0] sm:$0xff] }
 0x10d   : > { %8636 = vtanh.f32 %v719_v21 }
 0x10f   : > { %v9870_v44 = vpop.permute.xlu0 %2043  ;;  %v9872_v47 = vpop.permute.xlu1 %1296 }
 0x110   : > { %13542 = vst [vmem:[#allocation12_spill] sm:$0xff] %v9872_v47  ;;  %2171 = vperm.xlu0 %8631, %v1102_v41   ;;  %1456 = vperm.xlu1 %8633, %v1102_v41  }
 0x113   : > { %v9875_v56 = vpop.permute.xlu0 %2047  ;;  %v9877_v59 = vpop.permute.xlu1 %1301 }
 0x114   : > { %13543 = vst [vmem:[#allocation13_spill] sm:$0xff] %v9875_v56  ;;  %13544 = vst [vmem:[#allocation14_spill] sm:$0xff] %v9877_v59  ;;  %2175 = vperm.xlu0 %8631, %v1103_v50   ;;  %1461 = vperm.xlu1 %8633, %v1103_v50   ;;  %v1107_v50 = vld [vmem:[%s9660_s29 + $0x1e8] sm:$0xff] }
 0x116   : > { %v8635_v53 = vpop.eup %8634 }
 0x117   : > { %7882 = vmatprep.mubr.f32.mxu1 %v8635_v53  ;;  %v8637_v62 = vpop.eup %8636  ;;  %v9880_v9 = vpop.permute.xlu0 %2051 }
 0x118   : > { %7883 = vmatmul.mubr.f32.vlgmr.msra.gmra.mrb[0].mxu1 %v8637_v62  ;;  %13545 = vst [vmem:[#allocation15_spill] sm:$0xff] %v9880_v9  ;;  %v9882_v12 = vpop.permute.xlu1 %1306  ;;  %2179 = vperm.xlu0 %8631, %v1104_v1  }
 0x119   : > { %13546 = vst [vmem:[#allocation16_spill] sm:$0xff] %v9882_v12  ;;  %1466 = vperm.xlu1 %8633, %v1104_v1   ;;  %v1108_v1 = vld [vmem:[%s9660_s29 + $0x1f0] sm:$0xff] }
 0x11b   : > { %v9885_v18 = vpop.permute.xlu0 %2055 }
 0x11c   : > { %13547 = vst [vmem:[#allocation17_spill] sm:$0xff] %v9885_v18  ;;  %v9887_v21 = vpop.permute.xlu1 %1311  ;;  %2183 = vperm.xlu0 %8631, %v1105_v15  }
 0x11d   : > { %13548 = vst [vmem:[#allocation18_spill] sm:$0xff] %v9887_v21  ;;  %1471 = vperm.xlu1 %8633, %v1105_v15  }
 0x11f   : > { %v9890_v33 = vpop.permute.xlu0 %2059 }
 0x120   : > { %13549 = vst [vmem:[#allocation19_spill] sm:$0xff] %v9890_v33  ;;  %v9892_v41 = vpop.permute.xlu1 %1316  ;;  %2187 = vperm.xlu0 %8631, %v1106_v24  }
 0x121   : > { %13550 = vst [vmem:[#allocation20_spill] sm:$0xff] %v9892_v41  ;;  %1476 = vperm.xlu1 %8633, %v1106_v24   ;;  %v1109_v41 = vld [vmem:[%s9660_s29 + $0x1f8] sm:$0xff] }
 0x123   : > { %v9895_v53 = vpop.permute.xlu0 %2063 }
 0x124   : > { %13551 = vst [vmem:[#allocation21_spill] sm:$0xff] %v9895_v53  ;;  %v9897_v62 = vpop.permute.xlu1 %1321  ;;  %2191 = vperm.xlu0 %8631, %v1107_v50  }
 0x125   : > { %13552 = vst [vmem:[#allocation22_spill] sm:$0xff] %v9897_v62  ;;  %1481 = vperm.xlu1 %8633, %v1107_v50   ;;  %v1110_v62 = vld [vmem:[%s9660_s29 + $0x200] sm:$0xff] }
 0x127   : > { %v9900_v21 = vpop.permute.xlu0 %2067 }
 0x128   : > { %13553 = vst [vmem:[#allocation23_spill] sm:$0xff] %v9900_v21  ;;  %v9902_v15 = vpop.permute.xlu1 %1326  ;;  %2195 = vperm.xlu0 %8631, %v1108_v1  }
 0x129   : > { %13554 = vst [vmem:[#allocation24_spill] sm:$0xff] %v9902_v15  ;;  %1486 = vperm.xlu1 %8633, %v1108_v1   ;;  %v1111_v15 = vld [vmem:[%s9660_s29 + $0x208] sm:$0xff] }
 0x12b   : > { %v9905_v33 = vpop.permute.xlu0 %2071 }
 0x12c   : > { %13555 = vst [vmem:[#allocation25_spill] sm:$0xff] %v9905_v33  ;;  %v9907_v24 = vpop.permute.xlu1 %1331  ;;  %2199 = vperm.xlu0 %8631, %v1109_v41  }
 0x12d   : > { %13556 = vst [vmem:[#allocation26_spill] sm:$0xff] %v9907_v24  ;;  %1491 = vperm.xlu1 %8633, %v1109_v41   ;;  %v1112_v24 = vld [vmem:[%s9660_s29 + $0x210] sm:$0xff] }
 0x12f   : > { %v9910_v53 = vpop.permute.xlu0 %2075 }
 0x130   : > { %13557 = vst [vmem:[#allocation27_spill] sm:$0xff] %v9910_v53  ;;  %v9912_v50 = vpop.permute.xlu1 %1336  ;;  %2203 = vperm.xlu0 %8631, %v1110_v62  }
 0x131   : > { %13558 = vst [vmem:[#allocation28_spill] sm:$0xff] %v9912_v50  ;;  %1496 = vperm.xlu1 %8633, %v1110_v62   ;;  %v1113_v50 = vld [vmem:[%s9660_s29 + $0x218] sm:$0xff] }
 0x133   : > { %v9915_v21 = vpop.permute.xlu0 %2079 }
 0x134   : > { %13559 = vst [vmem:[#allocation29_spill] sm:$0xff] %v9915_v21  ;;  %v9917_v1 = vpop.permute.xlu1 %1341  ;;  %2207 = vperm.xlu0 %8631, %v1111_v15  }
 0x135   : > { %13560 = vst [vmem:[#allocation30_spill] sm:$0xff] %v9917_v1  ;;  %1501 = vperm.xlu1 %8633, %v1111_v15   ;;  %v1114_v1 = vld [vmem:[%s9660_s29 + $0x220] sm:$0xff] }
 0x137   : > { %v9920_v33 = vpop.permute.xlu0 %2083 }
 0x138   : > { %13561 = vst [vmem:[#allocation31_spill] sm:$0xff] %v9920_v33  ;;  %v9922_v41 = vpop.permute.xlu1 %1346  ;;  %2211 = vperm.xlu0 %8631, %v1112_v24  }
 0x139   : > { %13562 = vst [vmem:[#allocation32_spill] sm:$0xff] %v9922_v41  ;;  %1506 = vperm.xlu1 %8633, %v1112_v24   ;;  %v1115_v41 = vld [vmem:[%s9660_s29 + $0x228] sm:$0xff] }
 0x13b   : > { %v9925_v53 = vpop.permute.xlu0 %2087 }
 0x13c   : > { %13563 = vst [vmem:[#allocation33_spill] sm:$0xff] %v9925_v53  ;;  %v9927_v62 = vpop.permute.xlu1 %1351  ;;  %2215 = vperm.xlu0 %8631, %v1113_v50  }
 0x13d   : > { %13564 = vst [vmem:[#allocation34_spill] sm:$0xff] %v9927_v62  ;;  %1511 = vperm.xlu1 %8633, %v1113_v50   ;;  %v1116_v62 = vld [vmem:[%s9660_s29 + $0x230] sm:$0xff] }
 0x13f   : > { %v9930_v21 = vpop.permute.xlu0 %2091 }
 0x140   : > { %13565 = vst [vmem:[#allocation35_spill] sm:$0xff] %v9930_v21  ;;  %v9932_v15 = vpop.permute.xlu1 %1356  ;;  %2219 = vperm.xlu0 %8631, %v1114_v1   ;;  %v1117_v21 = vld [vmem:[%s9660_s29 + $0x238] sm:$0xff] }
 0x141   : > { %13566 = vst [vmem:[#allocation36_spill] sm:$0xff] %v9932_v15  ;;  %1516 = vperm.xlu1 %8633, %v1114_v1  }
 0x143   : > { %v9935_v33 = vpop.permute.xlu0 %2095 }
 0x144   : > { %13567 = vst [vmem:[#allocation37_spill] sm:$0xff] %v9935_v33  ;;  %v9937_v24 = vpop.permute.xlu1 %1361  ;;  %2223 = vperm.xlu0 %8631, %v1115_v41   ;;  %v1118_v33 = vld [vmem:[%s9660_s29 + $0x240] sm:$0xff] }
 0x145   : > { %13568 = vst [vmem:[#allocation38_spill] sm:$0xff] %v9937_v24  ;;  %1521 = vperm.xlu1 %8633, %v1115_v41  }
 0x147   : > { %v9940_v53 = vpop.permute.xlu0 %2099 }
 0x148   : > { %13569 = vst [vmem:[#allocation39_spill] sm:$0xff] %v9940_v53  ;;  %v9942_v50 = vpop.permute.xlu1 %1366  ;;  %2227 = vperm.xlu0 %8631, %v1116_v62   ;;  %v1119_v53 = vld [vmem:[%s9660_s29 + $0x248] sm:$0xff] }
 0x149   : > { %13570 = vst [vmem:[#allocation40_spill] sm:$0xff] %v9942_v50  ;;  %1526 = vperm.xlu1 %8633, %v1116_v62  }
 0x14b   : > { %v9945_v15 = vpop.permute.xlu0 %2103 }
 0x14c   : > { %13571 = vst [vmem:[#allocation41_spill] sm:$0xff] %v9945_v15  ;;  %v9947_v1 = vpop.permute.xlu1 %1371  ;;  %2231 = vperm.xlu0 %8631, %v1117_v21  }
 0x14d   : > { %13572 = vst [vmem:[#allocation42_spill] sm:$0xff] %v9947_v1  ;;  %1531 = vperm.xlu1 %8633, %v1117_v21   ;;  %v824_v1 = vld [vmem:[%s13492_s7] sm:$0xff]  ;;  %v825_v21 = vld [vmem:[%s13492_s7 + $0x8] sm:$0xff] }
 0x14f   : > { %v9950_v24 = vpop.permute.xlu0 %2107 }
 0x150   : > { %13573 = vst [vmem:[#allocation43_spill] sm:$0xff] %v9950_v24  ;;  %v9952_v41 = vpop.permute.xlu1 %1376  ;;  %2235 = vperm.xlu0 %8631, %v1118_v33   ;;  %v1120_v24 = vld [vmem:[%s9660_s29 + $0x250] sm:$0xff] }
 0x151   : > { %13574 = vst [vmem:[#allocation44_spill] sm:$0xff] %v9952_v41  ;;  %1536 = vperm.xlu1 %8633, %v1118_v33   ;;  %v8408_v41 = vpack.c.bf16 %v825_v21, %v824_v1 }
 0x153   : > { %v9955_v50 = vpop.permute.xlu0 %2111  ;;  %8409 = vmatprep.subr.bf16.mxu0 %v8408_v41 }
 0x154   : > { %13575 = vst [vmem:[#allocation45_spill] sm:$0xff] %v9955_v50  ;;  %v9957_v62 = vpop.permute.xlu1 %1381  ;;  %2239 = vperm.xlu0 %8631, %v1119_v53   ;;  %v1121_v50 = vld [vmem:[%s9660_s29 + $0x258] sm:$0xff]  ;;  %8411 = vmatpush3.bf16.msra.mxu0 %v8408_v41 }
 0x155   : > { %13576 = vst [vmem:[#allocation46_spill] sm:$0xff] %v9957_v62  ;;  %1541 = vperm.xlu1 %8633, %v1119_v53   ;;  %v826_v53 = vld [vmem:[%s13492_s7 + $0x10] sm:$0xff]  ;;  %v827_v62 = vld [vmem:[%s13492_s7 + $0x18] sm:$0xff] }
 0x156   : > { %v8412_v18 = vpack.c.bf16 %v827_v62, %v826_v53 }
 0x157   : > { %v9966_v15 = vpop.permute.xlu0 %2115 }
 0x158   : > { %13577 = vst [vmem:[#allocation47_spill] sm:$0xff] %v9966_v15  ;;  %v9968_v33 = vpop.permute.xlu1 %1386  ;;  %2243 = vperm.xlu0 %8631, %v1120_v24   ;;  %8413 = vmatprep.subr.bf16.mxu0 %v8412_v18  ;;  %v1122_v15 = vld [vmem:[%s9660_s29 + $0x260] sm:$0xff] }
 0x159   : > { %13578 = vst [vmem:[#allocation48_spill] sm:$0xff] %v9968_v33  ;;  %1546 = vperm.xlu1 %8633, %v1120_v24   ;;  %v828_v24 = vld [vmem:[%s13492_s7 + $0x20] sm:$0xff]  ;;  %v829_v33 = vld [vmem:[%s13492_s7 + $0x28] sm:$0xff]  ;;  %8415 = vmatpush3.bf16.msra.mxu0 %v8412_v18 }
 0x15a   : > { %v8416_v41 = vpack.c.bf16 %v829_v33, %v828_v24 }
 0x15b   : > { %v9977_v1 = vpop.permute.xlu0 %2119 }
 0x15c   : > { %13579 = vst [vmem:[#allocation49_spill] sm:$0xff] %v9977_v1  ;;  %v9979_v21 = vpop.permute.xlu1 %1391  ;;  %2247 = vperm.xlu0 %8631, %v1121_v50   ;;  %8417 = vmatprep.subr.bf16.mxu0 %v8416_v41  ;;  %v1123_v1 = vld [vmem:[%s9660_s29 + $0x268] sm:$0xff] }
 0x15d   : > { %13580 = vst [vmem:[#allocation50_spill] sm:$0xff] %v9979_v21  ;;  %1551 = vperm.xlu1 %8633, %v1121_v50   ;;  %v830_v50 = vld [vmem:[%s13492_s7 + $0x30] sm:$0xff]  ;;  %v831_v21 = vld [vmem:[%s13492_s7 + $0x38] sm:$0xff]  ;;  %8419 = vmatpush3.bf16.msra.mxu0 %v8416_v41 }
 0x15e   : > { %v8420_v18 = vpack.c.bf16 %v831_v21, %v830_v50 }
 0x15f   : > { %v9988_v62 = vpop.permute.xlu0 %2123 }
 0x160   : > { %13581 = vst [vmem:[#allocation51_spill] sm:$0xff] %v9988_v62  ;;  %v9990_v53 = vpop.permute.xlu1 %1396  ;;  %2251 = vperm.xlu0 %8631, %v1122_v15   ;;  %8421 = vmatprep.subr.bf16.mxu0 %v8420_v18  ;;  %v1124_v62 = vld [vmem:[%s9660_s29 + $0x270] sm:$0xff] }
 0x161   : > { %13582 = vst [vmem:[#allocation52_spill] sm:$0xff] %v9990_v53  ;;  %1556 = vperm.xlu1 %8633, %v1122_v15   ;;  %v832_v15 = vld [vmem:[%s13492_s7 + $0x40] sm:$0xff]  ;;  %v833_v53 = vld [vmem:[%s13492_s7 + $0x48] sm:$0xff]  ;;  %8423 = vmatpush3.bf16.msra.mxu0 %v8420_v18 }
 0x162   : > { %v8424_v41 = vpack.c.bf16 %v833_v53, %v832_v15 }
 0x163   : > { %v9999_v33 = vpop.permute.xlu0 %2127 }
 0x164   : > { %13583 = vst [vmem:[#allocation53_spill] sm:$0xff] %v9999_v33  ;;  %v10001_v24 = vpop.permute.xlu1 %1401  ;;  %2255 = vperm.xlu0 %8631, %v1123_v1   ;;  %8425 = vmatprep.subr.bf16.mxu0 %v8424_v41  ;;  %v1125_v33 = vld [vmem:[%s9660_s29 + $0x278] sm:$0xff] }
 0x165   : > { %13584 = vst [vmem:[#allocation54_spill] sm:$0xff] %v10001_v24  ;;  %1561 = vperm.xlu1 %8633, %v1123_v1   ;;  %v834_v1 = vld [vmem:[%s13492_s7 + $0x50] sm:$0xff]  ;;  %v835_v24 = vld [vmem:[%s13492_s7 + $0x58] sm:$0xff]  ;;  %8427 = vmatpush3.bf16.msra.mxu0 %v8424_v41 }
 0x166   : > { %v8428_v18 = vpack.c.bf16 %v835_v24, %v834_v1 }
 0x167   : > { %v10010_v21 = vpop.permute.xlu0 %2131 }
 0x168   : > { %13585 = vst [vmem:[#allocation55_spill] sm:$0xff] %v10010_v21  ;;  %v10012_v50 = vpop.permute.xlu1 %1406  ;;  %2259 = vperm.xlu0 %8631, %v1124_v62   ;;  %8429 = vmatprep.subr.bf16.mxu0 %v8428_v18  ;;  %v1126_v21 = vld [vmem:[%s9660_s29 + $0x280] sm:$0xff] }
 0x169   : > { %13586 = vst [vmem:[#allocation56_spill] sm:$0xff] %v10012_v50  ;;  %1566 = vperm.xlu1 %8633, %v1124_v62   ;;  %v836_v62 = vld [vmem:[%s13492_s7 + $0x60] sm:$0xff]  ;;  %v837_v50 = vld [vmem:[%s13492_s7 + $0x68] sm:$0xff]  ;;  %8431 = vmatpush3.bf16.msra.mxu0 %v8428_v18 }
 0x16a   : > { %v8432_v41 = vpack.c.bf16 %v837_v50, %v836_v62 }
 0x16b   : > { %v10021_v53 = vpop.permute.xlu0 %2135 }
 0x16c   : > { %13587 = vst [vmem:[#allocation57_spill] sm:$0xff] %v10021_v53  ;;  %v10023_v15 = vpop.permute.xlu1 %1411  ;;  %2263 = vperm.xlu0 %8631, %v1125_v33   ;;  %8433 = vmatprep.subr.bf16.mxu0 %v8432_v41  ;;  %v1127_v53 = vld [vmem:[%s9660_s29 + $0x288] sm:$0xff] }
 0x16d   : > { %13588 = vst [vmem:[#allocation58_spill] sm:$0xff] %v10023_v15  ;;  %1571 = vperm.xlu1 %8633, %v1125_v33   ;;  %v838_v33 = vld [vmem:[%s13492_s7 + $0x70] sm:$0xff]  ;;  %v839_v15 = vld [vmem:[%s13492_s7 + $0x78] sm:$0xff]  ;;  %8435 = vmatpush3.bf16.msra.mxu0 %v8432_v41 }
 0x16e   : > { %v8436_v18 = vpack.c.bf16 %v839_v15, %v838_v33 }
 0x16f   : > { %v10032_v24 = vpop.permute.xlu0 %2139 }
 0x170   : > { %13589 = vst [vmem:[#allocation59_spill] sm:$0xff] %v10032_v24  ;;  %v10034_v1 = vpop.permute.xlu1 %1416  ;;  %2267 = vperm.xlu0 %8631, %v1126_v21   ;;  %8437 = vmatprep.subr.bf16.mxu0 %v8436_v18  ;;  %v1128_v24 = vld [vmem:[%s9660_s29 + $0x290] sm:$0xff] }
 0x171   : > { %13590 = vst [vmem:[#allocation60_spill] sm:$0xff] %v10034_v1  ;;  %1576 = vperm.xlu1 %8633, %v1126_v21   ;;  %v2981_v21 = vld [vmem:[%s13498_s13] sm:$0xff]  ;;  %v2982_v1 = vld [vmem:[%s13498_s13 + $0x8] sm:$0xff]  ;;  %8439 = vmatpush3.bf16.msra.mxu0 %v8436_v18 }
 0x172   : > { %v10054_v15 = vpack.c.bf16 %v2982_v1, %v2981_v21  ;;  %v1130_v1 = vld [vmem:[%s9660_s29 + $0x2a0] sm:$0xff] }
 0x173   : > { %v10043_v50 = vpop.permute.xlu0 %2143 }
 0x174   : > { %13591 = vst [vmem:[#allocation61_spill] sm:$0xff] %v10043_v50  ;;  %v10045_v62 = vpop.permute.xlu1 %1421  ;;  %2271 = vperm.xlu0 %8631, %v1127_v53   ;;  %8473 = vmatprep.subr.bf16.mxu0 %v10054_v15 }
 0x175   : > { %13592 = vst [vmem:[#allocation62_spill] sm:$0xff] %v10045_v62  ;;  %1581 = vperm.xlu1 %8633, %v1127_v53   ;;  %v1129_v53 = vld [vmem:[%s9660_s29 + $0x298] sm:$0xff] }
 0x177   : > { %v10056_v41 = vpop.permute.xlu0 %2147 }
 0x178   : > { %13593 = vst [vmem:[#allocation63_spill] sm:$0xff] %v10056_v41  ;;  %v10058_v33 = vpop.permute.xlu1 %1426  ;;  %2275 = vperm.xlu0 %8631, %v1128_v24  }
 0x179   : > { %13594 = vst [vmem:[#allocation64_spill] sm:$0xff] %v10058_v33  ;;  %1586 = vperm.xlu1 %8633, %v1128_v24   ;;  %v1131_v33 = vld [vmem:[%s9660_s29 + $0x2a8] sm:$0xff] }
 0x17b   : > { %v10062_v62 = vpop.permute.xlu0 %2151 }
 0x17c   : > { %13595 = vst [vmem:[#allocation65_spill] sm:$0xff] %v10062_v62  ;;  %v10064_v50 = vpop.permute.xlu1 %1431  ;;  %2279 = vperm.xlu0 %8631, %v1129_v53  }
 0x17d   : > { %13596 = vst [vmem:[#allocation66_spill] sm:$0xff] %v10064_v50  ;;  %1591 = vperm.xlu1 %8633, %v1129_v53   ;;  %v1132_v50 = vld [vmem:[%s9660_s29 + $0x2b0] sm:$0xff] }
 0x17f   : > { %v10067_v18 = vpop.permute.xlu0 %2155 }
 0x180   : > { %13597 = vst [vmem:[#allocation67_spill] sm:$0xff] %v10067_v18  ;;  %v10069_v21 = vpop.permute.xlu1 %1436  ;;  %2283 = vperm.xlu0 %8631, %v1130_v1  }
 0x181   : > { %13598 = vst [vmem:[#allocation68_spill] sm:$0xff] %v10069_v21  ;;  %1596 = vperm.xlu1 %8633, %v1130_v1   ;;  %v1133_v21 = vld [vmem:[%s9660_s29 + $0x2b8] sm:$0xff] }
 0x183   : > { %v10072_v41 = vpop.permute.xlu0 %2159 }
 0x184   : > { %13599 = vst [vmem:[#allocation69_spill] sm:$0xff] %v10072_v41  ;;  %v10074_v24 = vpop.permute.xlu1 %1441  ;;  %2287 = vperm.xlu0 %8631, %v1131_v33  }
 0x185   : > { %13600 = vst [vmem:[#allocation70_spill] sm:$0xff] %v10074_v24  ;;  %1601 = vperm.xlu1 %8633, %v1131_v33   ;;  %v1134_v24 = vld [vmem:[%s9660_s29 + $0x2c0] sm:$0xff] }
 0x187   : > { %v10077_v62 = vpop.permute.xlu0 %2163 }
 0x188   : > { %13601 = vst [vmem:[#allocation71_spill] sm:$0xff] %v10077_v62  ;;  %v10079_v53 = vpop.permute.xlu1 %1446  ;;  %2291 = vperm.xlu0 %8631, %v1132_v50  }
 0x189   : > { %13602 = vst [vmem:[#allocation72_spill] sm:$0xff] %v10079_v53  ;;  %1606 = vperm.xlu1 %8633, %v1132_v50   ;;  %v1135_v53 = vld [vmem:[%s9660_s29 + $0x2c8] sm:$0xff] }
 0x18b   : > { %v10082_v18 = vpop.permute.xlu0 %2167 }
 0x18c   : > { %13603 = vst [vmem:[#allocation73_spill] sm:$0xff] %v10082_v18  ;;  %v10084_v1 = vpop.permute.xlu1 %1451  ;;  %2295 = vperm.xlu0 %8631, %v1133_v21  }
 0x18d   : > { %13604 = vst [vmem:[#allocation74_spill] sm:$0xff] %v10084_v1  ;;  %1611 = vperm.xlu1 %8633, %v1133_v21   ;;  %v1136_v1 = vld [vmem:[%s9660_s29 + $0x2d0] sm:$0xff] }
 0x18f   : > { %v10087_v41 = vpop.permute.xlu0 %2171 }
 0x190   : > { %13605 = vst [vmem:[#allocation75_spill] sm:$0xff] %v10087_v41  ;;  %v10089_v33 = vpop.permute.xlu1 %1456  ;;  %2299 = vperm.xlu0 %8631, %v1134_v24  }
 0x191   : > { %13606 = vst [vmem:[#allocation76_spill] sm:$0xff] %v10089_v33  ;;  %1616 = vperm.xlu1 %8633, %v1134_v24   ;;  %v1137_v33 = vld [vmem:[%s9660_s29 + $0x2d8] sm:$0xff] }
 0x193   : > { %v10092_v62 = vpop.permute.xlu0 %2175 }
 0x194   : > { %13607 = vst [vmem:[#allocation77_spill] sm:$0xff] %v10092_v62  ;;  %v10094_v50 = vpop.permute.xlu1 %1461  ;;  %2303 = vperm.xlu0 %8631, %v1135_v53  }
 0x195   : > { %13608 = vst [vmem:[#allocation78_spill] sm:$0xff] %v10094_v50  ;;  %1621 = vperm.xlu1 %8633, %v1135_v53   ;;  %v1138_v50 = vld [vmem:[%s9660_s29 + $0x2e0] sm:$0xff] }
 0x197   : > { %v10097_v18 = vpop.permute.xlu0 %2179 }
 0x198   : > { %13609 = vst [vmem:[#allocation79_spill] sm:$0xff] %v10097_v18  ;;  %v10099_v21 = vpop.permute.xlu1 %1466  ;;  %2307 = vperm.xlu0 %8631, %v1136_v1  }
 0x199   : > { %13610 = vst [vmem:[#allocation80_spill] sm:$0xff] %v10099_v21  ;;  %1626 = vperm.xlu1 %8633, %v1136_v1   ;;  %v1139_v21 = vld [vmem:[%s9660_s29 + $0x2e8] sm:$0xff] }
 0x19b   : > { %v10102_v41 = vpop.permute.xlu0 %2183 }
 0x19c   : > { %13611 = vst [vmem:[#allocation81_spill] sm:$0xff] %v10102_v41  ;;  %v10104_v24 = vpop.permute.xlu1 %1471  ;;  %2311 = vperm.xlu0 %8631, %v1137_v33  }
 0x19d   : > { %13612 = vst [vmem:[#allocation82_spill] sm:$0xff] %v10104_v24  ;;  %1631 = vperm.xlu1 %8633, %v1137_v33   ;;  %v1140_v24 = vld [vmem:[%s9660_s29 + $0x2f0] sm:$0xff] }
 0x19f   : > { %v10107_v62 = vpop.permute.xlu0 %2187 }
 0x1a0   : > { %13613 = vst [vmem:[#allocation83_spill] sm:$0xff] %v10107_v62  ;;  %v10109_v53 = vpop.permute.xlu1 %1476  ;;  %2315 = vperm.xlu0 %8631, %v1138_v50  }
 0x1a1   : > { %13614 = vst [vmem:[#allocation84_spill] sm:$0xff] %v10109_v53  ;;  %1636 = vperm.xlu1 %8633, %v1138_v50   ;;  %v1141_v53 = vld [vmem:[%s9660_s29 + $0x2f8] sm:$0xff] }
 0x1a3   : > { %v10112_v18 = vpop.permute.xlu0 %2191 }
 0x1a4   : > { %13615 = vst [vmem:[#allocation85_spill] sm:$0xff] %v10112_v18  ;;  %v10114_v1 = vpop.permute.xlu1 %1481  ;;  %2319 = vperm.xlu0 %8631, %v1139_v21  }
 0x1a5   : > { %13616 = vst [vmem:[#allocation86_spill] sm:$0xff] %v10114_v1  ;;  %1641 = vperm.xlu1 %8633, %v1139_v21   ;;  %v1142_v1 = vld [vmem:[%s9660_s29 + $0x300] sm:$0xff] }
 0x1a7   : > { %v10117_v41 = vpop.permute.xlu0 %2195 }
 0x1a8   : > { %13617 = vst [vmem:[#allocation87_spill] sm:$0xff] %v10117_v41  ;;  %v10119_v33 = vpop.permute.xlu1 %1486  ;;  %2323 = vperm.xlu0 %8631, %v1140_v24  }
 0x1a9   : > { %13618 = vst [vmem:[#allocation88_spill] sm:$0xff] %v10119_v33  ;;  %1646 = vperm.xlu1 %8633, %v1140_v24   ;;  %v1143_v33 = vld [vmem:[%s9660_s29 + $0x308] sm:$0xff] }
 0x1ab   : > { %v10122_v62 = vpop.permute.xlu0 %2199 }
 0x1ac   : > { %13619 = vst [vmem:[#allocation89_spill] sm:$0xff] %v10122_v62  ;;  %v10124_v50 = vpop.permute.xlu1 %1491  ;;  %2327 = vperm.xlu0 %8631, %v1141_v53  }
 0x1ad   : > { %13620 = vst [vmem:[#allocation90_spill] sm:$0xff] %v10124_v50  ;;  %1651 = vperm.xlu1 %8633, %v1141_v53   ;;  %v1144_v50 = vld [vmem:[%s9660_s29 + $0x310] sm:$0xff] }
 0x1af   : > { %v10127_v18 = vpop.permute.xlu0 %2203 }
 0x1b0   : > { %13621 = vst [vmem:[#allocation91_spill] sm:$0xff] %v10127_v18  ;;  %v10129_v21 = vpop.permute.xlu1 %1496  ;;  %2331 = vperm.xlu0 %8631, %v1142_v1  }
 0x1b1   : > { %13622 = vst [vmem:[#allocation92_spill] sm:$0xff] %v10129_v21  ;;  %1656 = vperm.xlu1 %8633, %v1142_v1   ;;  %v1145_v21 = vld [vmem:[%s9660_s29 + $0x318] sm:$0xff] }
 0x1b3   : > { %v10132_v41 = vpop.permute.xlu0 %2207 }
 0x1b4   : > { %13623 = vst [vmem:[#allocation93_spill] sm:$0xff] %v10132_v41  ;;  %v10134_v24 = vpop.permute.xlu1 %1501  ;;  %2335 = vperm.xlu0 %8631, %v1143_v33  }
 0x1b5   : > { %13624 = vst [vmem:[#allocation94_spill] sm:$0xff] %v10134_v24  ;;  %1661 = vperm.xlu1 %8633, %v1143_v33   ;;  %v1146_v24 = vld [vmem:[%s9660_s29 + $0x320] sm:$0xff] }
 0x1b7   : > { %v10137_v62 = vpop.permute.xlu0 %2211 }
 0x1b8   : > { %13625 = vst [vmem:[#allocation95_spill] sm:$0xff] %v10137_v62  ;;  %v10139_v53 = vpop.permute.xlu1 %1506  ;;  %2339 = vperm.xlu0 %8631, %v1144_v50  }
 0x1b9   : > { %13626 = vst [vmem:[#allocation96_spill] sm:$0xff] %v10139_v53  ;;  %1666 = vperm.xlu1 %8633, %v1144_v50   ;;  %v1147_v53 = vld [vmem:[%s9660_s29 + $0x328] sm:$0xff] }
 0x1bb   : > { %v10142_v18 = vpop.permute.xlu0 %2215 }
 0x1bc   : > { %13627 = vst [vmem:[#allocation97_spill] sm:$0xff] %v10142_v18  ;;  %v10144_v1 = vpop.permute.xlu1 %1511  ;;  %2343 = vperm.xlu0 %8631, %v1145_v21  }
 0x1bd   : > { %13628 = vst [vmem:[#allocation98_spill] sm:$0xff] %v10144_v1  ;;  %1671 = vperm.xlu1 %8633, %v1145_v21   ;;  %v1148_v1 = vld [vmem:[%s9660_s29 + $0x330] sm:$0xff] }
 0x1bf   : > { %v10147_v41 = vpop.permute.xlu0 %2219 }
 0x1c0   : > { %13629 = vst [vmem:[#allocation99_spill] sm:$0xff] %v10147_v41  ;;  %v10149_v33 = vpop.permute.xlu1 %1516  ;;  %2347 = vperm.xlu0 %8631, %v1146_v24   ;;  %v1149_v41 = vld [vmem:[%s9660_s29 + $0x338] sm:$0xff] }
 0x1c1   : > { %13630 = vst [vmem:[#allocation100_spill] sm:$0xff] %v10149_v33  ;;  %1676 = vperm.xlu1 %8633, %v1146_v24  }
 0x1c3   : > { %v10152_v62 = vpop.permute.xlu0 %2223 }
 0x1c4   : > { %13631 = vst [vmem:[#allocation101_spill] sm:$0xff] %v10152_v62  ;;  %v10154_v50 = vpop.permute.xlu1 %1521  ;;  %2351 = vperm.xlu0 %8631, %v1147_v53   ;;  %v1150_v62 = vld [vmem:[%s9660_s29 + $0x340] sm:$0xff] }
 0x1c5   : > { %13632 = vst [vmem:[#allocation102_spill] sm:$0xff] %v10154_v50  ;;  %1681 = vperm.xlu1 %8633, %v1147_v53  }
 0x1c7   : > { %v10157_v18 = vpop.permute.xlu0 %2227 }
 0x1c8   : > { %13633 = vst [vmem:[#allocation103_spill] sm:$0xff] %v10157_v18  ;;  %v10159_v21 = vpop.permute.xlu1 %1526  ;;  %2355 = vperm.xlu0 %8631, %v1148_v1   ;;  %v1151_v18 = vld [vmem:[%s9660_s29 + $0x348] sm:$0xff] }
 0x1c9   : > { %13634 = vst [vmem:[#allocation104_spill] sm:$0xff] %v10159_v21  ;;  %1686 = vperm.xlu1 %8633, %v1148_v1   ;;  %v13513_v21 = vlaneseq }
 0x1cb   : > { %v10162_v33 = vpop.permute.xlu0 %2231 }
 0x1cc   : > { %13635 = vst [vmem:[#allocation105_spill] sm:$0xff] %v10162_v33  ;;  %v10164_v24 = vpop.permute.xlu1 %1531  ;;  %2359 = vperm.xlu0 %8631, %v1149_v41  }
 0x1cd   : > { %13636 = vst [vmem:[#allocation106_spill] sm:$0xff] %v10164_v24  ;;  %1691 = vperm.xlu1 %8633, %v1149_v41   ;;  %v1152_v24 = vld [vmem:[%s9660_s29 + $0x350] sm:$0xff]  ;;  %v10178_v41 = vshrl.u32 %v13513_v21, 7  ;;  %v1045_v21 = vld [vmem:[%s13496_s11] sm:$0x3] }
 0x1cf   : > { %v10167_v50 = vpop.permute.xlu0 %2235  ;;  %13641 = vst [vmem:[#allocation111_spill] sm:$0xff] %v10178_v41 }
 0x1d0   : > { %13637 = vst [vmem:[#allocation107_spill] sm:$0xff] %v10167_v50  ;;  %v10169_v53 = vpop.permute.xlu1 %1536  ;;  %2363 = vperm.xlu0 %8631, %v1150_v62  }
 0x1d1   : > { %13638 = vst [vmem:[#allocation108_spill] sm:$0xff] %v10169_v53  ;;  %1696 = vperm.xlu1 %8633, %v1150_v62   ;;  %v1153_v62 = vld [vmem:[%s9660_s29 + $0x358] sm:$0xff]  ;;  %v10186_v53 = vsub.s32 0, %v10178_v41 }
 0x1d3   : > { %v10172_v12 = vpop.permute.xlu0 %2239  ;;  %13644 = vst [vmem:[#allocation114_spill] sm:$0xff] %v10186_v53 }
 0x1d4   : > { %13639 = vst [vmem:[#allocation109_spill] sm:$0xff] %v10172_v12  ;;  %v10174_v1 = vpop.permute.xlu1 %1541  ;;  %2367 = vperm.xlu0 %8631, %v1151_v18  }
 0x1d5   : > { %13640 = vst [vmem:[#allocation110_spill] sm:$0xff] %v10174_v1  ;;  %1701 = vperm.xlu1 %8633, %v1151_v18   ;;  %v10189_v1 = vsub.s32 1, %v10178_v41 }
 0x1d7   : > { %v10180_v33 = vpop.permute.xlu0 %2243  ;;  %13645 = vst [vmem:[#allocation115_spill] sm:$0xff] %v10189_v1 }
 0x1d8   : > { %13642 = vst [vmem:[#allocation112_spill] sm:$0xff] %v10180_v33  ;;  %v10182_v50 = vpop.permute.xlu1 %1546  ;;  %2371 = vperm.xlu0 %8631, %v1152_v24   ;;  %v10203_v33 = vrot.slane %v1045_v21, %v10189_v1  ;;  %v7498_v1 = vld [vmem:[%s13491_s6] ss:$0 sm:$0xff] }
 0x1d9   : > { %13643 = vst [vmem:[#allocation113_spill] sm:$0xff] %v10182_v50  ;;  %1706 = vperm.xlu1 %8633, %v1152_v24   ;;  %v1154_v24 = vld [vmem:[%s9660_s29 + $0x360] sm:$0xff]  ;;  %v10200_v50 = vrot.slane %v1045_v21, %v10186_v53  ;;  %v1156_v21 = vld [vmem:[%s9660_s29 + $0x370] sm:$0xff] }
 0x1db   : > { %v10191_v12 = vpop.permute.xlu0 %2247 }
 0x1dc   : > { %13646 = vst [vmem:[#allocation116_spill] sm:$0xff] %v10191_v12  ;;  %v10193_v18 = vpop.permute.xlu1 %1551  ;;  %2375 = vperm.xlu0 %8631, %v1153_v62   ;;  %v1818_v12 = vmul.f32 %v10200_v50, %v9749_v4  ;;  %v10229_v4 = vld [vmem:[%s13497_s12] ss:$0 sm:$0xff] }
 0x1dd   : > { %13647 = vst [vmem:[#allocation117_spill] sm:$0xff] %v10193_v18  ;;  %1711 = vperm.xlu1 %8633, %v1153_v62   ;;  %v1155_v18 = vld [vmem:[%s9660_s29 + $0x368] sm:$0xff]  ;;  %v2462_v62 = vmul.f32 %v10203_v33, %v9804_v37 }
 0x1df   : > { %v10205_v41 = vpop.permute.xlu0 %2251 }
 0x1e0   : > { %13648 = vst [vmem:[#allocation118_spill] sm:$0xff] %v10205_v41  ;;  %v10207_v9 = vpop.permute.xlu1 %1556  ;;  %2379 = vperm.xlu0 %8631, %v1154_v24  }
 0x1e1   : > { %13649 = vst [vmem:[#allocation119_spill] sm:$0xff] %v10207_v9  ;;  %1716 = vperm.xlu1 %8633, %v1154_v24   ;;  %v2590_v24 = vadd.f32 %v2462_v62, %v1818_v12 }
 0x1e3   : > { %v10214_v59 = vpop.permute.xlu0 %2255  ;;  %v2725_v12 = vadd.f32 %v10229_v4, %v2590_v24 }
 0x1e4   : > { %13650 = vst [vmem:[#allocation120_spill] sm:$0xff] %v10214_v59  ;;  %v10216_v53 = vpop.permute.xlu1 %1561  ;;  %2383 = vperm.xlu0 %8631, %v1155_v18   ;;  %v1157_v59 = vld [vmem:[%s9660_s29 + $0x378] sm:$0xff] }
 0x1e5   : > { %13651 = vst [vmem:[#allocation121_spill] sm:$0xff] %v10216_v53  ;;  %1721 = vperm.xlu1 %8633, %v1155_v18  }
 0x1e7   : > { %v10222_v9 = vpop.permute.xlu0 %2259 }
 0x1e8   : > { %13652 = vst [vmem:[#allocation122_spill] sm:$0xff] %v10222_v9  ;;  %v10224_v41 = vpop.permute.xlu1 %1566  ;;  %2387 = vperm.xlu0 %8631, %v1156_v21  }
 0x1e9   : > { %13653 = vst [vmem:[#allocation123_spill] sm:$0xff] %v10224_v41  ;;  %1726 = vperm.xlu1 %8633, %v1156_v21   ;;  %v1158_v41 = vld [vmem:[%s9660_s29 + $0x380] sm:$0xff] }
 0x1eb   : > { %v7884_v37 = vpop.f32.mrb[0].mxu1  ;;  %v10233_v62 = vpop.permute.xlu0 %2263 }
 0x1ec   : > { %v819_v18 = vadd.f32 %v7884_v37, %v7498_v1  ;;  %v813_v53 = vpop.f32.mrb[1].mxu1  ;;  %v10235_v9 = vpop.permute.xlu1 %1571  ;;  %2391 = vperm.xlu0 %8631, %v1157_v59   ;;  %v1160_v37 = vld [vmem:[%s9660_s29 + $0x390] sm:$0xff] }
 0x1ed   : > { %v814_v56 = vadd.f32 %v7498_v1, %v813_v53  ;;  %13654 = vst [vmem:[#allocation124_spill] sm:$0xff] %v10235_v9  ;;  %1731 = vperm.xlu1 %8633, %v1157_v59   ;;  %v1159_v53 = vld [vmem:[%s9660_s29 + $0x388] sm:$0xff]  ;;  %v2984_v59 = vld [vmem:[%s13498_s13 + $0x18] sm:$0xff] }
 0x1ef   : > { %8638 = vtanh.f32 %v814_v56  ;;  %v10238_v47 = vpop.permute.xlu0 %2267  ;;  %v2983_v56 = vld [vmem:[%s13498_s13 + $0x10] sm:$0xff] }
 0x1f0   : > { %8640 = vtanh.f32 %v819_v18  ;;  %13655 = vst [vmem:[#allocation125_spill] sm:$0xff] %v10238_v47  ;;  %v10240_v21 = vpop.permute.xlu1 %1576  ;;  %2395 = vperm.xlu0 %8631, %v1158_v41   ;;  %v2986_v47 = vld [vmem:[%s13498_s13 + $0x28] sm:$0xff] }
 0x1f1   : > { %8642 = vtanh.f32 %v2725_v12  ;;  %13656 = vst [vmem:[#allocation126_spill] sm:$0xff] %v10240_v21  ;;  %1736 = vperm.xlu1 %8633, %v1158_v41   ;;  %v8476_v12 = vpack.c.bf16 %v2984_v59, %v2983_v56  ;;  %v1161_v56 = vld [vmem:[%s9660_s29 + $0x398] sm:$0xff] }
 0x1f3   : > { %v10243_v1 = vpop.permute.xlu0 %2271 }
 0x1f4   : > { %13657 = vst [vmem:[#allocation127_spill] sm:$0xff] %v10243_v1  ;;  %v10245_v24 = vpop.permute.xlu1 %1581  ;;  %2399 = vperm.xlu0 %8631, %v1159_v53  }
 0x1f5   : > { %13658 = vst [vmem:[#allocation128_spill] sm:$0xff] %v10245_v24  ;;  %1741 = vperm.xlu1 %8633, %v1159_v53   ;;  %v2985_v24 = vld [vmem:[%s13498_s13 + $0x20] sm:$0xff] }
 0x1f6   : > { %v8480_v59 = vpack.c.bf16 %v2986_v47, %v2985_v24 }
 0x1f7   : > { %v10254_v21 = vpop.permute.xlu0 %2275 }
 0x1f8   : > { %13659 = vst [vmem:[#allocation129_spill] sm:$0xff] %v10254_v21  ;;  %v10256_v1 = vpop.permute.xlu1 %1586  ;;  %2403 = vperm.xlu0 %8631, %v1160_v37   ;;  %v2987_v21 = vld [vmem:[%s13498_s13 + $0x30] sm:$0xff] }
 0x1f9   : > { %v8639_v18 = vpop.eup %8638  ;;  %13660 = vst [vmem:[#allocation130_spill] sm:$0xff] %v10256_v1  ;;  %1746 = vperm.xlu1 %8633, %v1160_v37  }
 0x1fa   : > { %v8641_v41 = vpop.eup %8640  ;;  %7917 = vmatprep.mubr.f32.mxu0 %v8639_v18 }
 0x1fb   : > { %7918 = vmatmul.mubr.f32.vlgmr.msra.gmra.mrb[2].mxu0 %v8641_v41  ;;  %v8643_v53 = vpop.eup %8642  ;;  %v10266_v18 = vpop.permute.xlu0 %2279  ;;  %v2988_v41 = vld [vmem:[%s13498_s13 + $0x38] sm:$0xff] }
 0x1fc   : > { %8475 = vmatpush3.bf16.msra.mxu0 %v10054_v15  ;;  %7952 = vmatprep.mubr.f32.mxu0 %v8643_v53  ;;  %13661 = vst [vmem:[#allocation131_spill] sm:$0xff] %v10266_v18  ;;  %v10268_v1 = vpop.permute.xlu1 %1591  ;;  %v1162_v15 = vld [vmem:[%s9660_s29 + $0x3a0] sm:$0xff]  ;;  %v8484_v37 = vpack.c.bf16 %v2988_v41, %v2987_v21  ;;  %v1820_v21 = vmul.f32 %v10200_v50, %v9746_v2  ;;  %v2992_v2 = vld [vmem:[%s13498_s13 + $0x58] sm:$0xff] }
 0x1fd   : > { %8477 = vmatprep.subr.bf16.mxu0 %v8476_v12  ;;  %13662 = vst [vmem:[#allocation132_spill] sm:$0xff] %v10268_v1  ;;  %2407 = vperm.xlu0 %8631, %v1161_v56   ;;  %v2989_v53 = vld [vmem:[%s13498_s13 + $0x40] sm:$0xff]  ;;  %v2990_v1 = vld [vmem:[%s13498_s13 + $0x48] sm:$0xff]  ;;  %v2464_v41 = vmul.f32 %v10203_v33, %v9807_v39  ;;  %v1821_v39 = vmul.f32 %v10200_v50, %v9751_v5 }
 0x1fe   : > { %1751 = vperm.xlu1 %8633, %v1161_v56   ;;  %v2463_v56 = vmul.f32 %v10203_v33, %v9802_v36  ;;  %v2993_v5 = vld [vmem:[%s13498_s13 + $0x60] sm:$0xff] }
 0x1ff   : > { %v10277_v47 = vpop.permute.xlu0 %2283 }
 0x200   : > { %8479 = vmatpush3.bf16.msra.mxu0 %v8476_v12  ;;  %13663 = vst [vmem:[#allocation133_spill] sm:$0xff] %v10277_v47  ;;  %v10279_v24 = vpop.permute.xlu1 %1596  ;;  %v1819_v12 = vmul.f32 %v10200_v50, %v9754_v7  ;;  %v8488_v47 = vpack.c.bf16 %v2990_v1, %v2989_v53  ;;  %v2991_v7 = vld [vmem:[%s13498_s13 + $0x50] sm:$0xff]  ;;  %v2465_v1 = vmul.f32 %v10203_v33, %v9809_v40  ;;  %v2994_v40 = vld [vmem:[%s13498_s13 + $0x68] sm:$0xff] }
 0x201   : > { %8481 = vmatprep.subr.bf16.mxu0 %v8480_v59  ;;  %13664 = vst [vmem:[#allocation134_spill] sm:$0xff] %v10279_v24  ;;  %2411 = vperm.xlu0 %8631, %v1162_v15   ;;  %v1163_v24 = vld [vmem:[%s9660_s29 + $0x3a8] sm:$0xff]  ;;  %v1822_v53 = vmul.f32 %v10200_v50, %v9759_v10  ;;  %v1823_v10 = vmul.f32 %v10200_v50, %v9756_v8 }
 0x202   : > { %1756 = vperm.xlu1 %8633, %v1162_v15   ;;  %v2591_v36 = vadd.f32 %v2463_v56, %v1819_v12  ;;  %v1164_v15 = vld [vmem:[%s9660_s29 + $0x3b0] sm:$0xff]  ;;  %v8492_v12 = vpack.c.bf16 %v2992_v2, %v2991_v7  ;;  %v1824_v7 = vmul.f32 %v10200_v50, %v9764_v13  ;;  %v8496_v8 = vpack.c.bf16 %v2994_v40, %v2993_v5 }
 0x203   : > { %v10296_v18 = vpop.permute.xlu0 %2287  ;;  %v1825_v13 = vmul.f32 %v10200_v50, %v9761_v11  ;;  %v2470_v11 = vmul.f32 %v10203_v33, %v9822_v48  ;;  %v2471_v48 = vmul.f32 %v10203_v33, %v9824_v49 }
 0x204   : > { %8483 = vmatpush3.bf16.msra.mxu0 %v8480_v59  ;;  %13665 = vst [vmem:[#allocation135_spill] sm:$0xff] %v10296_v18  ;;  %v10298_v9 = vpop.permute.xlu1 %1601  ;;  %v2592_v59 = vadd.f32 %v2464_v41, %v1820_v21  ;;  %v2467_v21 = vmul.f32 %v10203_v33, %v9814_v43  ;;  %v1165_v41 = vld [vmem:[%s9660_s29 + $0x3b8] sm:$0xff]  ;;  %v2995_v43 = vld [vmem:[%s13498_s13 + $0x70] sm:$0xff] }
 0x205   : > { %8485 = vmatprep.subr.bf16.mxu0 %v8484_v37  ;;  %13666 = vst [vmem:[#allocation136_spill] sm:$0xff] %v10298_v9  ;;  %2415 = vperm.xlu0 %8631, %v1163_v24   ;;  %v2466_v9 = vmul.f32 %v10203_v33, %v9812_v42  ;;  %v2593_v42 = vadd.f32 %v2465_v1, %v1821_v39 }
 0x206   : > { %1761 = vperm.xlu1 %8633, %v1163_v24   ;;  %v2727_v24 = vadd.f32 %v10229_v4, %v2592_v59  ;;  %v2595_v1 = vadd.f32 %v2467_v21, %v1823_v10  ;;  %v2469_v59 = vmul.f32 %v10203_v33, %v9819_v46  ;;  %v1827_v10 = vmul.f32 %v10200_v50, %v9766_v14 }
 0x207   : > { %v10315_v56 = vpop.permute.xlu0 %2291  ;;  %v2594_v2 = vadd.f32 %v2466_v9, %v1822_v53  ;;  %v2728_v9 = vadd.f32 %v10229_v4, %v2593_v42  ;;  %v1828_v46 = vmul.f32 %v10200_v50, %v9774_v19  ;;  %v1167_v42 = vld [vmem:[%s9660_s29 + $0x3c8] sm:$0xff]  ;;  %v2472_v19 = vmul.f32 %v10203_v33, %v9827_v51  ;;  %v1168_v51 = vld [vmem:[%s9660_s29 + $0x3d0] sm:$0xff] }
 0x208   : > { %8487 = vmatpush3.bf16.msra.mxu0 %v8484_v37  ;;  %v10317_v18 = vpop.permute.xlu1 %1606  ;;  %v2726_v37 = vadd.f32 %v10229_v4, %v2591_v36  ;;  %v1829_v21 = vmul.f32 %v10200_v50, %v9771_v17 }
 0x209   : > { %8489 = vmatprep.subr.bf16.mxu0 %v8488_v47  ;;  %13667 = vst [vmem:[#allocation137_spill] sm:$0xff] %v10317_v18  ;;  %2419 = vperm.xlu0 %8631, %v1164_v15   ;;  %v2468_v18 = vmul.f32 %v10203_v33, %v9817_v45  ;;  %v1826_v45 = vmul.f32 %v10200_v50, %v9769_v16 }
 0x20a   : > { %1766 = vperm.xlu1 %8633, %v1164_v15   ;;  %8644 = vtanh.f32 %v2726_v37  ;;  %v1166_v15 = vld [vmem:[%s9660_s29 + $0x3c0] sm:$0xff]  ;;  %v2729_v53 = vadd.f32 %v10229_v4, %v2594_v2  ;;  %v2730_v37 = vadd.f32 %v10229_v4, %v2595_v1  ;;  %v2473_v2 = vmul.f32 %v10203_v33, %v9829_v52 }
 0x20b   : > { %v10336_v36 = vpop.permute.xlu0 %2295  ;;  %8646 = vtanh.f32 %v2727_v24  ;;  %v2596_v5 = vadd.f32 %v2468_v18, %v1824_v7  ;;  %v2597_v18 = vadd.f32 %v2469_v59, %v1825_v13  ;;  %v2598_v24 = vadd.f32 %v2470_v11, %v1826_v45 }
 0x20c   : > { %8491 = vmatpush3.bf16.msra.mxu0 %v8488_v47  ;;  %v10338_v39 = vpop.permute.xlu1 %1611  ;;  %v2996_v47 = vld [vmem:[%s13498_s13 + $0x78] sm:$0xff]  ;;  %8648 = vtanh.f32 %v2728_v9  ;;  %v2599_v7 = vadd.f32 %v2471_v48, %v1827_v10  ;;  %v1831_v52 = vmul.f32 %v10200_v50, %v9776_v20  ;;  %v1832_v9 = vmul.f32 %v10200_v50, %v9784_v25  ;;  %v1170_v48 = vld [vmem:[%s9660_s29 + $0x3e0] sm:$0xff] }
 0x20d   : > { %8493 = vmatprep.subr.bf16.mxu0 %v8492_v12  ;;  %2423 = vperm.xlu0 %8631, %v1165_v41   ;;  %v8500_v16 = vpack.c.bf16 %v2996_v47, %v2995_v43  ;;  %8650 = vtanh.f32 %v2729_v53  ;;  %v2731_v14 = vadd.f32 %v10229_v4, %v2596_v5  ;;  %v2732_v49 = vadd.f32 %v10229_v4, %v2597_v18 }
 0x20e   : > { %1771 = vperm.xlu1 %8633, %v1165_v41   ;;  %v1830_v41 = vmul.f32 %v10200_v50, %v9779_v22  ;;  %8652 = vtanh.f32 %v2730_v37  ;;  %v2733_v17 = vadd.f32 %v10229_v4, %v2598_v24  ;;  %v2600_v47 = vadd.f32 %v2472_v19, %v1828_v46 }
 0x20f   : > { %v10357_v40 = vpop.permute.xlu0 %2299  ;;  %8654 = vtanh.f32 %v2731_v14  ;;  %v2474_v22 = vmul.f32 %v10203_v33, %v9832_v54  ;;  %v2734_v1 = vadd.f32 %v10229_v4, %v2599_v7  ;;  %v2601_v59 = vadd.f32 %v2473_v2, %v1829_v21  ;;  %v1169_v54 = vld [vmem:[%s9660_s29 + $0x3d8] sm:$0xff] }
 0x210   : > { %8495 = vmatpush3.bf16.msra.mxu0 %v8492_v12  ;;  %v10363_v12 = vpop.permute.xlu1 %1616  ;;  %8656 = vtanh.f32 %v2732_v49  ;;  %v2735_v53 = vadd.f32 %v10229_v4, %v2600_v47  ;;  %v2476_v20 = vmul.f32 %v10203_v33, %v9837_v57  ;;  %v1833_v10 = vmul.f32 %v10200_v50, %v9781_v23 }
 0x211   : > { %8497 = vmatprep.subr.bf16.mxu0 %v8496_v8  ;;  %2427 = vperm.xlu0 %8631, %v1166_v15   ;;  %8658 = vtanh.f32 %v2733_v17  ;;  %v2602_v5 = vadd.f32 %v2474_v22, %v1830_v41  ;;  %v2736_v37 = vadd.f32 %v10229_v4, %v2601_v59  ;;  %v2477_v57 = vmul.f32 %v10203_v33, %v9839_v58 }
 0x212   : > { %1776 = vperm.xlu1 %8633, %v1166_v15   ;;  %v2475_v15 = vmul.f32 %v10203_v33, %v9834_v55  ;;  %v1834_v55 = vmul.f32 %v10200_v50, %v9789_v28  ;;  %8660 = vtanh.f32 %v2734_v1  ;;  %v2478_v28 = vmul.f32 %v10203_v33, %v9842_v60  ;;  %v1171_v60 = vld [vmem:[%s9660_s29 + $0x3e8] sm:$0xff] }
 0x213   : > { %8662 = vtanh.f32 %v2735_v53  ;;  %v2737_v23 = vadd.f32 %v10229_v4, %v2602_v5  ;;  %v1835_v19 = vmul.f32 %v10200_v50, %v9786_v26  ;;  %v1836_v21 = vmul.f32 %v10200_v50, %v9794_v31 }
 0x214   : > { %8499 = vmatpush3.bf16.msra.mxu0 %v8496_v8  ;;  %v10379_v8 = vpop.permute.xlu0 %2303  ;;  %v8645_v43 = vpop.eup %8644  ;;  %v2603_v18 = vadd.f32 %v2475_v15, %v1831_v52  ;;  %8664 = vtanh.f32 %v2736_v37  ;;  %v2605_v41 = vadd.f32 %v2477_v57, %v1833_v10  ;;  %v2479_v49 = vmul.f32 %v10203_v33, %v9844_v61 }
 0x215   : > { %8501 = vmatprep.subr.bf16.mxu0 %v8500_v16  ;;  %2431 = vperm.xlu0 %8631, %v1167_v42   ;;  %v10385_v13 = vpop.permute.xlu1 %1621  ;;  %v8647_v45 = vpop.eup %8646  ;;  %8666 = vtanh.f32 %v2737_v23  ;;  %v2606_v2 = vadd.f32 %v2478_v28, %v1834_v55  ;;  %v2480_v31 = vmul.f32 %v10203_v33, %v9847_v63  ;;  %v1837_v61 = vmul.f32 %v10200_v50, %v9791_v29  ;;  %v1172_v63 = vld [vmem:[%s9660_s29 + $0x3f0] sm:$0xff]  ;;  %v13668_v28 = vld [vmem:[#allocation12_spill] sm:$0xff] }
 0x216   : > { %1781 = vperm.xlu1 %8633, %v1167_v42   ;;  %v8649_v25 = vpop.eup %8648  ;;  %v2604_v42 = vadd.f32 %v2476_v20, %v1832_v9  ;;  %v2738_v58 = vadd.f32 %v10229_v4, %v2603_v18  ;;  %v2481_v47 = vmul.f32 %v10203_v33, %v9849_v0  ;;  %v1838_v22 = vmul.f32 %v10200_v50, %v9799_v34 }
 0x217   : > { %v2607_v52 = vadd.f32 %v2479_v49, %v1835_v19  ;;  %v2741_v9 = vadd.f32 %v10229_v4, %v2606_v2  ;;  %v2608_v1 = vadd.f32 %v2480_v31, %v1836_v21  ;;  %v2482_v29 = vmul.f32 %v10203_v33, %v9852_v3  ;;  %v13671_v2 = vld [vmem:[#allocation15_spill] sm:$0xff] }
 0x218   : > { %8503 = vmatpush3.bf16.msra.mxu0 %v8500_v16  ;;  %v10398_v11 = vpop.permute.xlu0 %2307  ;;  %v8651_v16 = vpop.eup %8650  ;;  %v2739_v26 = vadd.f32 %v10229_v4, %v2604_v42  ;;  %8668 = vtanh.f32 %v2738_v58  ;;  %v1839_v34 = vmul.f32 %v10200_v50, %v9796_v32  ;;  %v2483_v53 = vmul.f32 %v10203_v33, %v9854_v6  ;;  %v1173_v32 = vld [vmem:[%s9660_s29 + $0x3f8] sm:$0xff]  ;;  %s12691_s29 = sld [smem:[#allocation2]] }
 0x219   : > { %2435 = vperm.xlu0 %8631, %v1168_v51   ;;  %v10404_v46 = vpop.permute.xlu1 %1626  ;;  %v8653_v14 = vpop.eup %8652  ;;  %v2742_v20 = vadd.f32 %v10229_v4, %v2607_v52  ;;  %v2484_v3 = vmul.f32 %v10203_v33, %v9860_v27  ;;  %v2610_v6 = vadd.f32 %v2482_v29, %v1838_v22  ;;  %v2485_v27 = vmul.f32 %v10203_v33, %v9865_v35  ;;  %v13674_v29 = vld [vmem:[#allocation18_spill] sm:$0xff] }
 0x21a   : > { %1786 = vperm.xlu1 %8633, %v1168_v51   ;;  %v8655_v24 = vpop.eup %8654  ;;  %8670 = vtanh.f32 %v2739_v26  ;;  %v2611_v18 = vadd.f32 %v2483_v53, %v1839_v34  ;;  %v2486_v42 = vmul.f32 %v10203_v33, %v9870_v44  ;;  %v2488_v31 = vmul.f32 %v10203_v33, %v13671_v2 }
 0x21b   : > { %7953 = vmatmul.mubr.f32.vlgmr.msra.gmra.mrb[4].mxu0 %v8645_v43  ;;  %v8657_v43 = vpop.eup %8656  ;;  %v2745_v23 = vadd.f32 %v10229_v4, %v2610_v6  ;;  %v13678_v6 = vld [vmem:[#allocation22_spill] sm:$0xff] }
 0x21c   : > { %7955 = vmatprep.mubr.f32.mxu0 %v8647_v45  ;;  %v10420_v7 = vpop.permute.xlu0 %2311  ;;  %v8659_v17 = vpop.eup %8658  ;;  %v2740_v45 = vadd.f32 %v10229_v4, %v2605_v41  ;;  %v2746_v21 = vadd.f32 %v10229_v4, %v2611_v18  ;;  %v13670_v41 = vld [vmem:[#allocation14_spill] sm:$0xff]  ;;  %v13680_v18 = vld [vmem:[#allocation24_spill] sm:$0xff] }
 0x21d   : > { %2439 = vperm.xlu0 %8631, %v1169_v54   ;;  %v10426_v51 = vpop.permute.xlu1 %1631  ;;  %v8661_v0 = vpop.eup %8660  ;;  %v1843_v49 = vmul.f32 %v10200_v50, %v13670_v41 }
 0x21e   : > { %1791 = vperm.xlu1 %8633, %v1169_v54   ;;  %v8663_v15 = vpop.eup %8662  ;;  %v2609_v54 = vadd.f32 %v2481_v47, %v1837_v61  ;;  %8672 = vtanh.f32 %v2740_v45 }
 0x21f   : > { %7956 = vmatmul.mubr.f32.gmra.mrb[6].mxu0 %v8649_v25  ;;  %v1840_v25 = vmul.f32 %v10200_v50, %v9862_v30  ;;  %8674 = vtanh.f32 %v2741_v9  ;;  %v8665_v10 = vpop.eup %8664  ;;  %v1841_v30 = vmul.f32 %v10200_v50, %v9867_v38  ;;  %v13669_v38 = vld [vmem:[#allocation13_spill] sm:$0xff] }
 0x220   : > { %7958 = vmatprep.mubr.f32.mxu0 %v8651_v16  ;;  %v10439_v59 = vpop.permute.xlu0 %2315  ;;  %v2743_v16 = vadd.f32 %v10229_v4, %v2608_v1  ;;  %v8667_v55 = vpop.eup %8666  ;;  %v2744_v37 = vadd.f32 %v10229_v4, %v2609_v54  ;;  %8676 = vtanh.f32 %v2742_v20  ;;  %v2487_v58 = vmul.f32 %v10203_v33, %v13669_v38  ;;  %v13673_v9 = vld [vmem:[#allocation17_spill] sm:$0xff]  ;;  %v13675_v54 = vld [vmem:[#allocation19_spill] sm:$0xff]  ;;  %v13676_v20 = vld [vmem:[#allocation20_spill] sm:$0xff] }
 0x221   : > { %2443 = vperm.xlu0 %8631, %v1170_v48   ;;  %v10445_v5 = vpop.permute.xlu1 %1636  ;;  %v2612_v57 = vadd.f32 %v2484_v3, %v1840_v25  ;;  %v2613_v44 = vadd.f32 %v2485_v27, %v1841_v30  ;;  %v2489_v1 = vmul.f32 %v10203_v33, %v13673_v9  ;;  %v2490_v53 = vmul.f32 %v10203_v33, %v13675_v54  ;;  %v13683_v9 = vld [vmem:[#allocation27_spill] sm:$0xff]  ;;  %v930_v54 = vld [vmem:[%s13494_s9 + $0x30] sm:$0xff] }
 0x222   : > { %1796 = vperm.xlu1 %8633, %v1170_v48   ;;  %8678 = vtanh.f32 %v2743_v16  ;;  %v8669_v19 = vpop.eup %8668  ;;  %v2615_v45 = vadd.f32 %v2487_v58, %v1843_v49  ;;  %v1846_v3 = vmul.f32 %v10200_v50, %v13676_v20 }
 0x223   : > { %7959 = vmatmul.mubr.f32.gmra.mrb[8].mxu0 %v8653_v14  ;;  %v1842_v14 = vmul.f32 %v10200_v50, %v13668_v28  ;;  %8680 = vtanh.f32 %v2744_v37 }
 0x224   : > { %7961 = vmatprep.mubr.f32.mxu0 %v8655_v24  ;;  %v10459_v48 = vpop.permute.xlu0 %2319  ;;  %v8671_v35 = vpop.eup %8670  ;;  %8682 = vtanh.f32 %v2745_v23  ;;  %v2750_v30 = vadd.f32 %v10229_v4, %v2615_v45  ;;  %v925_v23 = vld [vmem:[%s13494_s9 + $0x8] sm:$0xff]  ;;  %v2618_v58 = vadd.f32 %v2490_v53, %v1846_v3  ;;  %v931_v45 = vld [vmem:[%s13494_s9 + $0x38] sm:$0xff] }
 0x225   : > { %2447 = vperm.xlu0 %8631, %v1171_v60   ;;  %v10466_v24 = vpop.permute.xlu1 %1641  ;;  %v2614_v26 = vadd.f32 %v2486_v42, %v1842_v14  ;;  %8684 = vtanh.f32 %v2746_v21  ;;  %v927_v42 = vld [vmem:[%s13494_s9 + $0x18] sm:$0xff]  ;;  %v926_v21 = vld [vmem:[%s13494_s9 + $0x10] sm:$0xff] }
 0x226   : > { %1801 = vperm.xlu1 %8633, %v1171_v60   ;;  %v2747_v60 = vadd.f32 %v10229_v4, %v2612_v57  ;;  %v1848_v57 = vmul.f32 %v10200_v50, %v13680_v18  ;;  %v2753_v20 = vadd.f32 %v10229_v4, %v2618_v58  ;;  %v13686_v18 = vld [vmem:[#allocation30_spill] sm:$0xff]  ;;  %v13688_v58 = vld [vmem:[#allocation32_spill] sm:$0xff] }
 0x227   : > { %7962 = vmatmul.mubr.f32.gmra.mrb[10].mxu0 %v8657_v43  ;;  %v13672_v43 = vld [vmem:[#allocation16_spill] sm:$0xff] }
 0x228   : > { %7964 = vmatprep.mubr.f32.mxu0 %v8659_v17  ;;  %v1844_v17 = vmul.f32 %v10200_v50, %v13672_v43  ;;  %v8673_v61 = vpop.eup %8672  ;;  %v10478_v47 = vpop.permute.xlu0 %2323  ;;  %8686 = vtanh.f32 %v2747_v60 }
 0x229   : > { %2451 = vperm.xlu0 %8631, %v1172_v63   ;;  %v8675_v22 = vpop.eup %8674  ;;  %v10480_v52 = vpop.permute.xlu1 %1646 }
 0x22a   : > { %1806 = vperm.xlu1 %8633, %v1172_v63   ;;  %v2748_v63 = vadd.f32 %v10229_v4, %v2613_v44  ;;  %v2616_v34 = vadd.f32 %v2488_v31, %v1844_v17  ;;  %v8677_v25 = vpop.eup %8676  ;;  %v13681_v31 = vld [vmem:[#allocation25_spill] sm:$0xff]  ;;  %v13682_v17 = vld [vmem:[#allocation26_spill] sm:$0xff] }
 0x22b   : > { %7965 = vmatmul.mubr.f32.gmra.mrb[12].mxu0 %v8661_v0  ;;  %v1845_v0 = vmul.f32 %v10200_v50, %v13674_v29  ;;  %v2493_v43 = vmul.f32 %v10203_v33, %v13681_v31  ;;  %v13684_v29 = vld [vmem:[#allocation28_spill] sm:$0xff] }
 0x22c   : > { %7967 = vmatprep.mubr.f32.mxu0 %v8663_v15  ;;  %v2749_v15 = vadd.f32 %v10229_v4, %v2614_v26  ;;  %v8679_v27 = vpop.eup %8678  ;;  %8688 = vtanh.f32 %v2748_v63  ;;  %v10507_v14 = vpop.permute.xlu0 %2327  ;;  %v2751_v38 = vadd.f32 %v10229_v4, %v2616_v34  ;;  %v928_v34 = vld [vmem:[%s13494_s9 + $0x20] sm:$0xff] }
 0x22d   : > { %2455 = vperm.xlu0 %8631, %v1173_v32   ;;  %v2617_v28 = vadd.f32 %v2489_v1, %v1845_v0  ;;  %v10516_v41 = vpop.permute.xlu1 %1651  ;;  %v8681_v60 = vpop.eup %8680  ;;  %v2494_v1 = vmul.f32 %v10203_v33, %v13683_v9  ;;  %v1850_v0 = vmul.f32 %v10200_v50, %v13684_v29  ;;  %v8446_v3 = vpack.c.bf16 %v930_v54, %v928_v34 }
 0x22e   : > { %1811 = vperm.xlu1 %8633, %v1173_v32   ;;  %v13677_v32 = vld [vmem:[#allocation21_spill] sm:$0xff]  ;;  %8690 = vtanh.f32 %v2749_v15  ;;  %v8683_v2 = vpop.eup %8682 }
 0x22f   : > { %7968 = vmatmul.mubr.f32.gmra.mrb[14].mxu0 %v8665_v10  ;;  %v2491_v16 = vmul.f32 %v10203_v33, %v13677_v32  ;;  %v1847_v10 = vmul.f32 %v10200_v50, %v13678_v6  ;;  %8692 = vtanh.f32 %v2750_v30  ;;  %v2752_v63 = vadd.f32 %v10229_v4, %v2617_v28  ;;  %v8685_v53 = vpop.eup %8684  ;;  %v933_v30 = vld [vmem:[%s13494_s9 + $0x48] sm:$0xff] }
 0x230   : > { %7970 = vmatprep.mubr.f32.mxu0 %v8667_v55  ;;  %v13679_v55 = vld [vmem:[#allocation23_spill] sm:$0xff]  ;;  %8694 = vtanh.f32 %v2751_v38  ;;  %v10542_v6 = vpop.permute.xlu0 %2331 }
 0x231   : > { %v2492_v37 = vmul.f32 %v10203_v33, %v13679_v55  ;;  %v2619_v44 = vadd.f32 %v2491_v16, %v1847_v10  ;;  %v13685_v55 = vld [vmem:[#allocation29_spill] sm:$0xff]  ;;  %8696 = vtanh.f32 %v2752_v63  ;;  %v13690_v63 = vld [vmem:[#allocation34_spill] sm:$0xff] }
 0x232   : > { %8698 = vtanh.f32 %v2753_v20  ;;  %v1853_v9 = vmul.f32 %v10200_v50, %v13690_v63  ;;  %v13699_v63 = vld [vmem:[#allocation43_spill] sm:$0xff] }
 0x233   : > { %7971 = vmatmul.mubr.f32.gmra.mrb[16].mxu0 %v8669_v19  ;;  %v8440_v19 = vpack.c.bf16 %v927_v42, %v925_v23  ;;  %v2620_v26 = vadd.f32 %v2492_v37, %v1848_v57  ;;  %v2754_v32 = vadd.f32 %v10229_v4, %v2619_v44  ;;  %v2495_v37 = vmul.f32 %v10203_v33, %v13685_v55  ;;  %v935_v23 = vld [vmem:[%s13494_s9 + $0x58] sm:$0xff] }
 0x234   : > { %7973 = vmatprep.mubr.f32.mxu0 %v8671_v35  ;;  %v924_v35 = vld [vmem:[%s13494_s9] sm:$0xff]  ;;  %v1851_v57 = vmul.f32 %v10200_v50, %v13686_v18  ;;  %v2622_v42 = vadd.f32 %v2494_v1, %v1850_v0  ;;  %v8448_v28 = vpack.c.bf16 %v935_v23, %v933_v30  ;;  %v10578_v1 = vpop.permute.xlu0 %2335  ;;  %v941_v23 = vld [vmem:[%s13494_s9 + $0x88] sm:$0xff] }
 0x235   : > { %v8442_v49 = vpack.c.bf16 %v926_v21, %v924_v35  ;;  %8441 = vmatprep.subr.bf16.mxu1 %v8440_v19  ;;  %v2755_v16 = vadd.f32 %v10229_v4, %v2620_v26  ;;  %v932_v19 = vld [vmem:[%s13494_s9 + $0x40] sm:$0xff]  ;;  %v934_v35 = vld [vmem:[%s13494_s9 + $0x50] sm:$0xff]  ;;  %v13687_v21 = vld [vmem:[#allocation31_spill] sm:$0xff]  ;;  %8700 = vtanh.f32 %v2754_v32 }
 0x236   : > { %v2496_v38 = vmul.f32 %v10203_v33, %v13687_v21  ;;  %v2623_v31 = vadd.f32 %v2495_v37, %v1851_v57  ;;  %v936_v0 = vld [vmem:[%s13494_s9 + $0x60] sm:$0xff]  ;;  %v13693_v37 = vld [vmem:[#allocation37_spill] sm:$0xff]  ;;  %v13694_v57 = vld [vmem:[#allocation38_spill] sm:$0xff] }
 0x237   : > { %7974 = vmatmul.mubr.f32.gmra.mrb[18].mxu0 %v8673_v61  ;;  %v1849_v61 = vmul.f32 %v10200_v50, %v13682_v17  ;;  %8443 = vmatpush1.bf16.msra.mxu1 %v8442_v49  ;;  %v1852_v49 = vmul.f32 %v10200_v50, %v13688_v58  ;;  %8702 = vtanh.f32 %v2755_v16  ;;  %v939_v17 = vld [vmem:[%s13494_s9 + $0x78] sm:$0xff]  ;;  %v2499_v18 = vmul.f32 %v10203_v33, %v13693_v37  ;;  %v13696_v21 = vld [vmem:[#allocation40_spill] sm:$0xff] }
 0x238   : > { %7976 = vmatprep.mubr.f32.mxu0 %v8675_v22  ;;  %v929_v22 = vld [vmem:[%s13494_s9 + $0x28] sm:$0xff]  ;;  %v2758_v55 = vadd.f32 %v10229_v4, %v2623_v31  ;;  %v1855_v30 = vmul.f32 %v10200_v50, %v13694_v57  ;;  %v944_v37 = vld [vmem:[%s13494_s9 + $0xa0] sm:$0xff] }
 0x239   : > { %v8444_v15 = vpack.c.bf16 %v931_v45, %v929_v22  ;;  %v2621_v10 = vadd.f32 %v2493_v43, %v1849_v61  ;;  %v937_v43 = vld [vmem:[%s13494_s9 + $0x68] sm:$0xff]  ;;  %v2757_v61 = vadd.f32 %v10229_v4, %v2622_v42  ;;  %v2624_v54 = vadd.f32 %v2496_v38, %v1852_v49  ;;  %v943_v42 = vld [vmem:[%s13494_s9 + $0x98] sm:$0xff]  ;;  %v940_v49 = vld [vmem:[%s13494_s9 + $0x80] sm:$0xff] }
 0x23a   : > { %v13689_v22 = vld [vmem:[#allocation33_spill] sm:$0xff]  ;;  %v8452_v29 = vpack.c.bf16 %v939_v17, %v937_v43  ;;  %v1856_v38 = vmul.f32 %v10200_v50, %v13696_v21  ;;  %v8456_v58 = vpack.c.bf16 %v943_v42, %v941_v23  ;;  %v13702_v21 = vld [vmem:[#allocation46_spill] sm:$0xff] }
 0x23b   : > { %7977 = vmatmul.mubr.f32.gmra.mrb[20].mxu0 %v8677_v25  ;;  %v8687_v25 = vpop.eup %8686  ;;  %8445 = vmatprep.subr.bf16.mxu1 %v8444_v15  ;;  %v2497_v45 = vmul.f32 %v10203_v33, %v13689_v22  ;;  %v938_v15 = vld [vmem:[%s13494_s9 + $0x70] sm:$0xff]  ;;  %v13697_v43 = vld [vmem:[#allocation41_spill] sm:$0xff] }
 0x23c   : > { %7979 = vmatprep.mubr.f32.mxu0 %v8679_v27  ;;  %v10548_v27 = vpop.permute.xlu1 %1656  ;;  %8447 = vmatpush1.bf16.msra.mxu1 %v8446_v3  ;;  %v8689_v44 = vpop.eup %8688  ;;  %v13692_v3 = vld [vmem:[#allocation36_spill] sm:$0xff]  ;;  %v8454_v16 = vpack.c.bf16 %v938_v15, %v936_v0  ;;  %v2501_v17 = vmul.f32 %v10203_v33, %v13697_v43  ;;  %v13698_v22 = vld [vmem:[#allocation42_spill] sm:$0xff] }
 0x23d   : > { %8449 = vmatprep.subr.bf16.mxu1 %v8448_v28  ;;  %v8691_v26 = vpop.eup %8690  ;;  %v2625_v28 = vadd.f32 %v2497_v45, %v1853_v9  ;;  %v1857_v45 = vmul.f32 %v10200_v50, %v13698_v22  ;;  %v2502_v9 = vmul.f32 %v10203_v33, %v13699_v63  ;;  %v10622_v15 = vpop.permute.xlu0 %2339 }
 0x23e   : > { %v8693_v34 = vpop.eup %8692 }
 0x23f   : > { %7980 = vmatmul.mubr.f32.gmra.mrb[22].mxu0 %v8681_v60  ;;  %v8450_v60 = vpack.c.bf16 %v934_v35, %v932_v19  ;;  %v13695_v19 = vld [vmem:[#allocation39_spill] sm:$0xff]  ;;  %v2629_v42 = vadd.f32 %v2501_v17, %v1857_v45  ;;  %v13704_v45 = vld [vmem:[#allocation48_spill] sm:$0xff] }
 0x240   : > { %7982 = vmatprep.mubr.f32.mxu0 %v8683_v2  ;;  %v2756_v2 = vadd.f32 %v10229_v4, %v2621_v10  ;;  %v10590_v32 = vpop.permute.xlu1 %1661  ;;  %v8695_v10 = vpop.eup %8694  ;;  %v2500_v35 = vmul.f32 %v10203_v33, %v13695_v19  ;;  %v13701_v19 = vld [vmem:[#allocation45_spill] sm:$0xff]  ;;  %v13703_v17 = vld [vmem:[#allocation47_spill] sm:$0xff]  ;;  %v1860_v63 = vmul.f32 %v10200_v50, %v13704_v45 }
 0x241   : > { %8451 = vmatpush1.bf16.msra.mxu1 %v8450_v60  ;;  %v942_v60 = vld [vmem:[%s13494_s9 + $0x90] sm:$0xff]  ;;  %v8697_v31 = vpop.eup %8696  ;;  %v2504_v22 = vmul.f32 %v10203_v33, %v13703_v17 }
 0x242   : > { %8453 = vmatprep.subr.bf16.mxu1 %v8452_v29  ;;  %8704 = vtanh.f32 %v2756_v2  ;;  %v8458_v2 = vpack.c.bf16 %v942_v60, %v940_v49  ;;  %v13700_v29 = vld [vmem:[#allocation44_spill] sm:$0xff]  ;;  %v951_v49 = vld [vmem:[%s13494_s9 + $0xd8] sm:$0xff] }
 0x243   : > { %7983 = vmatmul.mubr.f32.gmra.mrb[24].mxu0 %v8685_v53  ;;  %v13691_v53 = vld [vmem:[#allocation35_spill] sm:$0xff]  ;;  %8706 = vtanh.f32 %v2757_v61  ;;  %v1858_v0 = vmul.f32 %v10200_v50, %v13700_v29  ;;  %v8699_v61 = vpop.eup %8698 }
 0x244   : > { %7985 = vmatprep.mubr.f32.mxu0 %v8687_v25  ;;  %v2498_v20 = vmul.f32 %v10203_v33, %v13691_v53  ;;  %v1854_v25 = vmul.f32 %v10200_v50, %v13692_v3  ;;  %v945_v53 = vld [vmem:[%s13494_s9 + $0xa8] sm:$0xff]  ;;  %v8701_v3 = vpop.eup %8700  ;;  %8708 = vtanh.f32 %v2758_v55 }
 0x245   : > { %8455 = vmatpush1.bf16.msra.mxu1 %v8454_v16  ;;  %v2628_v16 = vadd.f32 %v2500_v35, %v1856_v38  ;;  %v8703_v57 = vpop.eup %8702  ;;  %v2630_v55 = vadd.f32 %v2502_v9, %v1858_v0  ;;  %v2503_v35 = vmul.f32 %v10203_v33, %v13701_v19  ;;  %v1859_v38 = vmul.f32 %v10200_v50, %v13702_v21 }
 0x246   : > { %8457 = vmatprep.subr.bf16.mxu1 %v8456_v58  ;;  %v949_v58 = vld [vmem:[%s13494_s9 + $0xc8] sm:$0xff]  ;;  %v2764_v0 = vadd.f32 %v10229_v4, %v2629_v42  ;;  %v13707_v42 = vld [vmem:[#allocation51_spill] sm:$0xff] }
 0x247   : > { %7986 = vmatmul.mubr.f32.gmra.mrb[26].mxu0 %v8689_v44  ;;  %v2759_v44 = vadd.f32 %v10229_v4, %v2624_v54  ;;  %v10624_v54 = vpop.permute.xlu1 %1666  ;;  %v2763_v60 = vadd.f32 %v10229_v4, %v2628_v16 }
 0x248   : > { %7988 = vmatprep.mubr.f32.mxu0 %v8691_v26  ;;  %v2626_v26 = vadd.f32 %v2498_v20, %v1854_v25  ;;  %v947_v20 = vld [vmem:[%s13494_s9 + $0xb8] sm:$0xff]  ;;  %v2760_v25 = vadd.f32 %v10229_v4, %v2625_v28 }
 0x249   : > { %8459 = vmatpush1.bf16.msra.mxu1 %v8458_v2  ;;  %8710 = vtanh.f32 %v2759_v44  ;;  %v10652_v44 = vpop.permute.xlu0 %2343  ;;  %v948_v2 = vld [vmem:[%s13494_s9 + $0xc0] sm:$0xff] }
 0x24a   : > { %8712 = vtanh.f32 %v2760_v25  ;;  %v13706_v25 = vld [vmem:[#allocation50_spill] sm:$0xff] }
 0x24b   : > { %7989 = vmatmul.mubr.f32.gmra.mrb[28].mxu0 %v8693_v34  ;;  %v2627_v34 = vadd.f32 %v2499_v18, %v1855_v30  ;;  %v946_v18 = vld [vmem:[%s13494_s9 + $0xb0] sm:$0xff]  ;;  %v2761_v30 = vadd.f32 %v10229_v4, %v2626_v26  ;;  %v8464_v26 = vpack.c.bf16 %v951_v49, %v949_v58  ;;  %v10664_v9 = vpop.permute.xlu1 %1671  ;;  %v1861_v16 = vmul.f32 %v10200_v50, %v13706_v25 }
 0x24c   : > { %7991 = vmatprep.mubr.f32.mxu0 %v8695_v10  ;;  %v8460_v10 = vpack.c.bf16 %v947_v20, %v945_v53  ;;  %v8462_v23 = vpack.c.bf16 %v946_v18, %v944_v37  ;;  %v8705_v43 = vpop.eup %8704  ;;  %v2631_v53 = vadd.f32 %v2503_v35, %v1859_v38  ;;  %v13705_v20 = vld [vmem:[#allocation49_spill] sm:$0xff]  ;;  %v955_v37 = vld [vmem:[%s13494_s9 + $0xf8] sm:$0xff] }
 0x24d   : > { %v2762_v28 = vadd.f32 %v10229_v4, %v2627_v34  ;;  %8714 = vtanh.f32 %v2761_v30  ;;  %v8707_v34 = vpop.eup %8706  ;;  %v954_v30 = vld [vmem:[%s13494_s9 + $0xf0] sm:$0xff]  ;;  %v10688_v38 = vpop.permute.xlu0 %2347 }
 0x24e   : > { %8461 = vmatprep.subr.bf16.mxu1 %v8460_v10  ;;  %v953_v10 = vld [vmem:[%s13494_s9 + $0xe8] sm:$0xff]  ;;  %v8709_v21 = vpop.eup %8708  ;;  %v2766_v49 = vadd.f32 %v10229_v4, %v2631_v53  ;;  %v13713_v53 = vld [vmem:[#allocation56_spill] sm:$0xff] }
 0x24f   : > { %7992 = vmatmul.mubr.f32.gmra.mrb[30].mxu0 %v8697_v31  ;;  %8463 = vmatpush1.bf16.msra.mxu1 %v8462_v23  ;;  %v950_v31 = vld [vmem:[%s13494_s9 + $0xd0] sm:$0xff]  ;;  %8716 = vtanh.f32 %v2762_v28  ;;  %v8468_v18 = vpack.c.bf16 %v955_v37, %v953_v10  ;;  %v2632_v23 = vadd.f32 %v2504_v22, %v1860_v63  ;;  %v13708_v28 = vld [vmem:[#allocation52_spill] sm:$0xff]  ;;  %v13714_v10 = vld [vmem:[#allocation57_spill] sm:$0xff] }
 0x250   : > { %7994 = vmatprep.mubr.f32.mxu0 %v8699_v61  ;;  %v8466_v29 = vpack.c.bf16 %v950_v31, %v948_v2  ;;  %v2765_v61 = vadd.f32 %v10229_v4, %v2630_v55  ;;  %8465 = vmatprep.subr.bf16.mxu1 %v8464_v26  ;;  %8718 = vtanh.f32 %v2763_v60  ;;  %v2506_v55 = vmul.f32 %v10203_v33, %v13707_v42  ;;  %v10691_v26 = vpop.permute.xlu1 %1676  ;;  %v3837_v2 = vld [vmem:[%s13500_s15] sm:$0xff]  ;;  %v3838_v31 = vld [vmem:[%s13500_s15 + $0x8] sm:$0xff]  ;;  %v13710_v22 = vld [vmem:[#allocation54_spill] sm:$0xff] }
 0x251   : > { %v1862_v19 = vmul.f32 %v10200_v50, %v13708_v28  ;;  %8720 = vtanh.f32 %v2764_v0  ;;  %v1863_v45 = vmul.f32 %v10200_v50, %v13710_v22  ;;  %v10703_v63 = vpack.c.bf16 %v3838_v31, %v3837_v2  ;;  %v13716_v42 = vld [vmem:[#allocation59_spill] sm:$0xff]  ;;  %v13717_v28 = vld [vmem:[#allocation60_spill] sm:$0xff]  ;;  %v13719_v22 = vld [vmem:[#allocation62_spill] sm:$0xff] }
 0x252   : > { %8722 = vtanh.f32 %v2765_v61  ;;  %v13712_v61 = vld [vmem:[#allocation55_spill] sm:$0xff]  ;;  %v2509_v37 = vmul.f32 %v10203_v33, %v13714_v10 }
 0x253   : > { %7995 = vmatmul.mubr.f32.gmra.mrb[32].mxu0 %v8701_v3  ;;  %v2505_v3 = vmul.f32 %v10203_v33, %v13705_v20  ;;  %8467 = vmatpush1.bf16.msra.mxu1 %v8466_v29  ;;  %v8711_v58 = vpop.eup %8710  ;;  %13711 = vst [vmem:[#allocation12_spill] sm:$0xff] %v10703_v63  ;;  %v2767_v29 = vadd.f32 %v10229_v4, %v2632_v23  ;;  %8724 = vtanh.f32 %v2766_v49 }
 0x254   : > { %7997 = vmatprep.mubr.f32.mxu0 %v8703_v57  ;;  %v952_v57 = vld [vmem:[%s13494_s9 + $0xe0] sm:$0xff]  ;;  %8469 = vmatprep.subr.bf16.mxu1 %v8468_v18  ;;  %v2634_v0 = vadd.f32 %v2506_v55, %v1862_v19  ;;  %v1864_v20 = vmul.f32 %v10200_v50, %v13713_v53  ;;  %v8713_v25 = vpop.eup %8712  ;;  %v13715_v18 = vld [vmem:[#allocation58_spill] sm:$0xff]  ;;  %v2510_v55 = vmul.f32 %v10203_v33, %v13716_v42  ;;  %v13722_v42 = vld [vmem:[#allocation65_spill] sm:$0xff] }
 0x255   : > { %v8470_v35 = vpack.c.bf16 %v954_v30, %v952_v57  ;;  %v2633_v60 = vadd.f32 %v2505_v3, %v1861_v16  ;;  %v13520_v3 = vmov 0.0   ;;  %v1865_v57 = vmul.f32 %v10200_v50, %v13715_v18 }
 0x256   : > { %1032 = vmatprep.mubr.f32.mxu1 %v13520_v3  ;;  %v1866_v19 = vmul.f32 %v10200_v50, %v13717_v28  ;;  %8726 = vtanh.f32 %v2767_v29  ;;  %v13723_v28 = vld [vmem:[#allocation66_spill] sm:$0xff] }
 0x257   : > { %7998 = vmatmul.mubr.f32.gmra.mrb[34].mxu0 %v8705_v43  ;;  %8471 = vmatpush1.bf16.msra.mxu1 %v8470_v35  ;;  %v13709_v43 = vld [vmem:[#allocation53_spill] sm:$0xff]  ;;  %v8715_v16 = vpop.eup %8714  ;;  %v2768_v30 = vadd.f32 %v10229_v4, %v2633_v60  ;;  %v10721_v35 = vpop.permute.xlu0 %2351  ;;  %v2637_v31 = vadd.f32 %v2509_v37, %v1865_v57 }
 0x258   : > { %8000 = vmatprep.mubr.f32.mxu0 %v8707_v34  ;;  %v2507_v17 = vmul.f32 %v10203_v33, %v13709_v43  ;;  %v2508_v34 = vmul.f32 %v10203_v33, %v13712_v61  ;;  %8505 = vmatprep.subr.bf16.mxu1 %v10703_v63  ;;  %v10729_v60 = vpop.permute.xlu1 %1681  ;;  %v13718_v43 = vld [vmem:[#allocation61_spill] sm:$0xff]  ;;  %v2638_v53 = vadd.f32 %v2510_v55, %v1866_v19  ;;  %v13748_v63 = vld [vmem:[#allocation88_spill] sm:$0xff] }
 0x259   : > { %8728 = vtanh.f32 %v2768_v30  ;;  %v2513_v55 = vmul.f32 %v10203_v33, %v13722_v42  ;;  %v1869_v19 = vmul.f32 %v10200_v50, %v13723_v28  ;;  %v13730_v28 = vld [vmem:[#allocation73_spill] sm:$0xff] }
 0x25a   : > { %v2635_v23 = vadd.f32 %v2507_v17, %v1863_v45  ;;  %v2636_v4 = vadd.f32 %v2508_v34, %v1864_v20  ;;  %v2511_v17 = vmul.f32 %v10203_v33, %v13718_v43  ;;  %v1867_v45 = vmul.f32 %v10200_v50, %v13719_v22  ;;  %v13720_v34 = vld [vmem:[#allocation63_spill] sm:$0xff] }
 0x25b   : > { %8001 = vmatmul.mubr.f32.gmra.mrb[36].mxu0 %v8709_v21  ;;  %v8717_v21 = vpop.eup %8716  ;;  %v2512_v20 = vmul.f32 %v10203_v33, %v13720_v34  ;;  %v10741_v37 = vpop.permute.xlu0 %2355 }
 0x25c   : > { %8003 = vmatprep.mubr.f32.mxu0 %v8711_v58  ;;  %v10726_v58 = vld [vmem:[%s13497_s12] ss:$0 sm:$0xff]  ;;  %v8719_v2 = vpop.eup %8718  ;;  %v2639_v57 = vadd.f32 %v2511_v17, %v1867_v45  ;;  %v10744_v30 = vpop.permute.xlu1 %1686  ;;  %v2641_v45 = vadd.f32 %v2513_v55, %v1869_v19  ;;  %v2517_v19 = vmul.f32 %v10203_v33, %v13730_v28 }
 0x25d   : > { %v2769_v49 = vadd.f32 %v10726_v58, %v2634_v0  ;;  %v8721_v29 = vpop.eup %8720  ;;  %v2770_v61 = vadd.f32 %v10726_v58, %v2635_v23  ;;  %v2771_v0 = vadd.f32 %v10726_v58, %v2636_v4  ;;  %v2772_v18 = vadd.f32 %v10726_v58, %v2637_v31  ;;  %v13724_v4 = vld [vmem:[#allocation67_spill] sm:$0xff]  ;;  %v13725_v31 = vld [vmem:[#allocation68_spill] sm:$0xff] }
 0x25e   : > { %v2773_v23 = vadd.f32 %v10726_v58, %v2638_v53  ;;  %v1870_v43 = vmul.f32 %v10200_v50, %v13725_v31  ;;  %v2774_v22 = vadd.f32 %v10726_v58, %v2639_v57  ;;  %v13727_v53 = vld [vmem:[#allocation70_spill] sm:$0xff]  ;;  %v13732_v31 = vld [vmem:[#allocation75_spill] sm:$0xff] }
 0x25f   : > { %8004 = vmatmul.mubr.f32.gmra.mrb[38].mxu0 %v8713_v25  ;;  %v8723_v25 = vpop.eup %8722  ;;  %8730 = vtanh.f32 %v2769_v49 }
 0x260   : > { %8006 = vmatprep.mubr.f32.mxu0 %v8715_v16  ;;  %v13721_v16 = vld [vmem:[#allocation64_spill] sm:$0xff]  ;;  %8732 = vtanh.f32 %v2770_v61 }
 0x261   : > { %v1868_v10 = vmul.f32 %v10200_v50, %v13721_v16  ;;  %8734 = vtanh.f32 %v2771_v0  ;;  %v10760_v0 = vpop.permute.xlu0 %2359  ;;  %v13728_v16 = vld [vmem:[#allocation71_spill] sm:$0xff] }
 0x262   : > { %8736 = vtanh.f32 %v2772_v18  ;;  %v13729_v18 = vld [vmem:[#allocation72_spill] sm:$0xff] }
 0x263   : > { %8007 = vmatmul.mubr.f32.gmra.mrb[40].mxu0 %v8717_v21  ;;  %v8725_v21 = vpop.eup %8724  ;;  %v2640_v49 = vadd.f32 %v2512_v20, %v1868_v10  ;;  %8738 = vtanh.f32 %v2773_v23  ;;  %v2516_v10 = vmul.f32 %v10203_v33, %v13728_v16  ;;  %v1872_v57 = vmul.f32 %v10200_v50, %v13729_v18  ;;  %v10767_v23 = vpop.permute.xlu1 %1691 }
 0x264   : > { %8009 = vmatprep.mubr.f32.mxu0 %v8719_v2  ;;  %v2514_v2 = vmul.f32 %v10203_v33, %v13724_v4  ;;  %v8727_v17 = vpop.eup %8726  ;;  %8740 = vtanh.f32 %v2774_v22 }
 0x265   : > { %v2775_v34 = vadd.f32 %v10726_v58, %v2640_v49  ;;  %v8729_v42 = vpop.eup %8728  ;;  %v2776_v49 = vadd.f32 %v10726_v58, %v2641_v45  ;;  %v10779_v18 = vpop.permute.xlu0 %2363 }
 0x266   : > { %v2642_v20 = vadd.f32 %v2514_v2, %v1870_v43  ;;  %v2518_v43 = vmul.f32 %v10203_v33, %v13732_v31 }
 0x267   : > { %8010 = vmatmul.mubr.f32.gmra.mrb[42].mxu0 %v8721_v29  ;;  %v13726_v29 = vld [vmem:[#allocation69_spill] sm:$0xff]  ;;  %8742 = vtanh.f32 %v2775_v34  ;;  %v10785_v31 = vpop.permute.xlu1 %1696 }
 0x268   : > { %8012 = vmatprep.mubr.f32.mxu0 %v8723_v25  ;;  %v2515_v61 = vmul.f32 %v10203_v33, %v13726_v29  ;;  %v1871_v25 = vmul.f32 %v10200_v50, %v13727_v53  ;;  %v2777_v22 = vadd.f32 %v10726_v58, %v2642_v20  ;;  %v2644_v53 = vadd.f32 %v2516_v10, %v1872_v57  ;;  %v13737_v57 = vld [vmem:[#allocation79_spill] sm:$0xff] }
 0x269   : > { %v8731_v55 = vpop.eup %8730  ;;  %13736 = vst [vmem:[#allocation13_spill] sm:$0xff] %v10785_v31  ;;  %8744 = vtanh.f32 %v2776_v49  ;;  %v13755_v31 = vld [vmem:[#allocation93_spill] sm:$0xff] }
 0x26a   : > { %v2643_v2 = vadd.f32 %v2515_v61, %v1871_v25  ;;  %v8733_v16 = vpop.eup %8732  ;;  %v13735_v61 = vld [vmem:[#allocation78_spill] sm:$0xff]  ;;  %8746 = vtanh.f32 %v2777_v22  ;;  %v2779_v10 = vadd.f32 %v10726_v58, %v2644_v53  ;;  %v10799_v53 = vpop.permute.xlu0 %2367 }
 0x26b   : > { %8013 = vmatmul.mubr.f32.gmra.mrb[44].mxu0 %v8725_v21  ;;  %v13731_v21 = vld [vmem:[#allocation74_spill] sm:$0xff]  ;;  %v8735_v28 = vpop.eup %8734  ;;  %v1875_v25 = vmul.f32 %v10200_v50, %v13735_v61  ;;  %13741 = vst [vmem:[#allocation14_spill] sm:$0xff] %v10799_v53 }
 0x26c   : > { %8015 = vmatprep.mubr.f32.mxu0 %v8727_v17  ;;  %v1873_v4 = vmul.f32 %v10200_v50, %v13731_v21  ;;  %v13733_v17 = vld [vmem:[#allocation76_spill] sm:$0xff]  ;;  %v2778_v34 = vadd.f32 %v10726_v58, %v2643_v2  ;;  %v8737_v20 = vpop.eup %8736  ;;  %v13739_v2 = vld [vmem:[#allocation81_spill] sm:$0xff] }
 0x26d   : > { %v1874_v29 = vmul.f32 %v10200_v50, %v13733_v17 }
 0x26e   : > { %v2645_v21 = vadd.f32 %v2517_v19, %v1873_v4  ;;  %v2520_v19 = vmul.f32 %v10203_v33, %v13737_v57  ;;  %v13738_v4 = vld [vmem:[#allocation80_spill] sm:$0xff]  ;;  %8748 = vtanh.f32 %v2778_v34  ;;  %v13742_v57 = vld [vmem:[#allocation83_spill] sm:$0xff]  ;;  %v10805_v34 = vpop.permute.xlu1 %1701 }
 0x26f   : > { %8016 = vmatmul.mubr.f32.gmra.mrb[46].mxu0 %v8729_v42  ;;  %v13734_v42 = vld [vmem:[#allocation77_spill] sm:$0xff]  ;;  %v1876_v17 = vmul.f32 %v10200_v50, %v13738_v4  ;;  %8750 = vtanh.f32 %v2779_v10  ;;  %13744 = vst [vmem:[#allocation15_spill] sm:$0xff] %v10805_v34  ;;  %v13746_v10 = vld [vmem:[#allocation86_spill] sm:$0xff] }
 0x270   : > { %8018 = vmatprep.mubr.f32.mxu0 %v8731_v55  ;;  %v2519_v45 = vmul.f32 %v10203_v33, %v13734_v42  ;;  %v2646_v55 = vadd.f32 %v2518_v43, %v1874_v29  ;;  %v8739_v42 = vpop.eup %8738  ;;  %v2780_v61 = vadd.f32 %v10726_v58, %v2645_v21  ;;  %v2521_v43 = vmul.f32 %v10203_v33, %v13739_v2  ;;  %v13740_v29 = vld [vmem:[#allocation82_spill] sm:$0xff]  ;;  %v13745_v2 = vld [vmem:[#allocation85_spill] sm:$0xff] }
 0x271   : > { %v1877_v22 = vmul.f32 %v10200_v50, %v13740_v29  ;;  %v2522_v21 = vmul.f32 %v10203_v33, %v13742_v57  ;;  %v13747_v57 = vld [vmem:[#allocation87_spill] sm:$0xff] }
 0x272   : > { %v2647_v3 = vadd.f32 %v2519_v45, %v1875_v25  ;;  %v2781_v49 = vadd.f32 %v10726_v58, %v2646_v55  ;;  %v13743_v45 = vld [vmem:[#allocation84_spill] sm:$0xff]  ;;  %8752 = vtanh.f32 %v2780_v61  ;;  %v1880_v61 = vmul.f32 %v10200_v50, %v13748_v63 }
 0x273   : > { %8019 = vmatmul.mubr.f32.gmra.mrb[48].mxu0 %v8733_v16  ;;  %v8741_v16 = vpop.eup %8740  ;;  %v1878_v25 = vmul.f32 %v10200_v50, %v13743_v45  ;;  %v2649_v4 = vadd.f32 %v2521_v43, %v1877_v22  ;;  %v2524_v45 = vmul.f32 %v10203_v33, %v13747_v57  ;;  %v13750_v43 = vld [vmem:[#allocation89_spill] sm:$0xff]  ;;  %v13754_v57 = vld [vmem:[#allocation92_spill] sm:$0xff] }
 0x274   : > { %8021 = vmatprep.mubr.f32.mxu0 %v8735_v28  ;;  %v2648_v28 = vadd.f32 %v2520_v19, %v1876_v17  ;;  %v8743_v55 = vpop.eup %8742  ;;  %8754 = vtanh.f32 %v2781_v49  ;;  %v1879_v19 = vmul.f32 %v10200_v50, %v13746_v10  ;;  %v2525_v22 = vmul.f32 %v10203_v33, %v13750_v43  ;;  %v10823_v10 = vpop.permute.xlu1 %1706 }
 0x275   : > { %v2650_v29 = vadd.f32 %v2522_v21, %v1878_v25  ;;  %13752 = vst [vmem:[#allocation17_spill] sm:$0xff] %v10823_v10  ;;  %v13753_v25 = vld [vmem:[#allocation91_spill] sm:$0xff]  ;;  %v2652_v43 = vadd.f32 %v2524_v45, %v1880_v61  ;;  %v13756_v10 = vld [vmem:[#allocation94_spill] sm:$0xff] }
 0x276   : > { %v2783_v17 = vadd.f32 %v10726_v58, %v2648_v28  ;;  %v2784_v28 = vadd.f32 %v10726_v58, %v2649_v4  ;;  %v2526_v63 = vmul.f32 %v10203_v33, %v13753_v25  ;;  %v1883_v4 = vmul.f32 %v10200_v50, %v13756_v10  ;;  %v13757_v45 = vld [vmem:[#allocation95_spill] sm:$0xff] }
 0x277   : > { %8022 = vmatmul.mubr.f32.gmra.mrb[50].mxu0 %v8737_v20  ;;  %v2782_v20 = vadd.f32 %v10726_v58, %v2647_v3  ;;  %v8745_v3 = vpop.eup %8744  ;;  %v2528_v61 = vmul.f32 %v10203_v33, %v13757_v45 }
 0x278   : > { %8024 = vmatprep.mubr.f32.mxu0 %v8739_v42  ;;  %v2523_v42 = vmul.f32 %v10203_v33, %v13745_v2  ;;  %v8747_v49 = vpop.eup %8746  ;;  %v13751_v2 = vld [vmem:[#allocation90_spill] sm:$0xff] }
 0x279   : > { %8756 = vtanh.f32 %v2782_v20  ;;  %v2785_v20 = vadd.f32 %v10726_v58, %v2650_v29  ;;  %v8749_v34 = vpop.eup %8748  ;;  %v2787_v29 = vadd.f32 %v10726_v58, %v2652_v43  ;;  %v13762_v43 = vld [vmem:[#allocation99_spill] sm:$0xff] }
 0x27a   : > { %v2651_v21 = vadd.f32 %v2523_v42, %v1879_v19  ;;  %8758 = vtanh.f32 %v2783_v17  ;;  %v8751_v53 = vpop.eup %8750  ;;  %v2530_v45 = vmul.f32 %v10203_v33, %v13762_v43  ;;  %v13768_v43 = vld [vmem:[#allocation103_spill] sm:$0xff] }
 0x27b   : > { %8025 = vmatmul.mubr.f32.gmra.mrb[52].mxu0 %v8741_v16  ;;  %v10817_v16 = vpop.permute.xlu0 %2371  ;;  %8760 = vtanh.f32 %v2784_v28 }
 0x27c   : > { %8027 = vmatprep.mubr.f32.mxu0 %v8743_v55  ;;  %13749 = vst [vmem:[#allocation16_spill] sm:$0xff] %v10817_v16  ;;  %v1881_v55 = vmul.f32 %v10200_v50, %v13751_v2  ;;  %v1882_v16 = vmul.f32 %v10200_v50, %v13754_v57  ;;  %v2786_v42 = vadd.f32 %v10726_v58, %v2651_v21  ;;  %v8753_v17 = vpop.eup %8752  ;;  %8762 = vtanh.f32 %v2785_v20  ;;  %v13761_v21 = vld [vmem:[#allocation98_spill] sm:$0xff] }
 0x27e   : > { %v2653_v2 = vadd.f32 %v2525_v22, %v1881_v55  ;;  %v2654_v19 = vadd.f32 %v2526_v63, %v1882_v16  ;;  %v10843_v22 = vpop.permute.xlu1 %1711  ;;  %8764 = vtanh.f32 %v2786_v42  ;;  %v13760_v16 = vld [vmem:[#allocation97_spill] sm:$0xff]  ;;  %v1885_v63 = vmul.f32 %v10200_v50, %v13761_v21 }
 0x27f   : > { %8028 = vmatmul.mubr.f32.gmra.mrb[54].mxu0 %v8745_v3  ;;  %v2527_v3 = vmul.f32 %v10203_v33, %v13755_v31  ;;  %v10836_v25 = vpop.permute.xlu0 %2375  ;;  %13759 = vst [vmem:[#allocation18_spill] sm:$0xff] %v10843_v22  ;;  %v2529_v28 = vmul.f32 %v10203_v33, %v13760_v16  ;;  %8766 = vtanh.f32 %v2787_v29 }
 0x280   : > { %8030 = vmatprep.mubr.f32.mxu0 %v8747_v49  ;;  %v13758_v49 = vld [vmem:[#allocation96_spill] sm:$0xff]  ;;  %v2788_v55 = vadd.f32 %v10726_v58, %v2653_v2 }
 0x281   : > { %v1884_v31 = vmul.f32 %v10200_v50, %v13758_v49  ;;  %v2655_v10 = vadd.f32 %v2527_v3, %v1883_v4  ;;  %v13763_v49 = vld [vmem:[#allocation100_spill] sm:$0xff] }
 0x282   : > { %v1886_v2 = vmul.f32 %v10200_v50, %v13763_v49  ;;  %8768 = vtanh.f32 %v2788_v55  ;;  %v2532_v55 = vmul.f32 %v10203_v33, %v13768_v43  ;;  %v13769_v49 = vld [vmem:[#allocation104_spill] sm:$0xff] }
 0x283   : > { %8031 = vmatmul.mubr.f32.gmra.mrb[56].mxu0 %v8749_v34  ;;  %v8755_v34 = vpop.eup %8754  ;;  %v2656_v20 = vadd.f32 %v2528_v61, %v1884_v31  ;;  %v10855_v3 = vpop.permute.xlu0 %2379  ;;  %v2790_v42 = vadd.f32 %v10726_v58, %v2655_v10  ;;  %v13767_v61 = vld [vmem:[#allocation102_spill] sm:$0xff]  ;;  %v1888_v10 = vmul.f32 %v10200_v50, %v13769_v49 }
 0x284   : > { %8033 = vmatprep.mubr.f32.mxu0 %v8751_v53  ;;  %v2789_v53 = vadd.f32 %v10726_v58, %v2654_v19  ;;  %v8757_v57 = vpop.eup %8756  ;;  %13764 = vst [vmem:[#allocation19_spill] sm:$0xff] %v10855_v3  ;;  %v10858_v19 = vpop.permute.xlu1 %1716  ;;  %v1887_v31 = vmul.f32 %v10200_v50, %v13767_v61  ;;  %v2658_v21 = vadd.f32 %v2530_v45, %v1886_v2  ;;  %v13772_v45 = vld [vmem:[#allocation107_spill] sm:$0xff]  ;;  %v13773_v61 = vld [vmem:[#allocation108_spill] sm:$0xff] }
 0x285   : > { %v8759_v4 = vpop.eup %8758  ;;  %13765 = vst [vmem:[#allocation20_spill] sm:$0xff] %v10858_v19  ;;  %v2791_v16 = vadd.f32 %v10726_v58, %v2656_v20  ;;  %v2534_v2 = vmul.f32 %v10203_v33, %v13772_v45  ;;  %v1890_v43 = vmul.f32 %v10200_v50, %v13773_v61 }
 0x286   : > { %8770 = vtanh.f32 %v2789_v53  ;;  %v8761_v19 = vpop.eup %8760  ;;  %v13770_v53 = vld [vmem:[#allocation105_spill] sm:$0xff] }
 0x287   : > { %8034 = vmatmul.mubr.f32.gmra.mrb[58].mxu0 %v8753_v17  ;;  %v2657_v17 = vadd.f32 %v2529_v28, %v1885_v63  ;;  %8772 = vtanh.f32 %v2790_v42  ;;  %v2533_v28 = vmul.f32 %v10203_v33, %v13770_v53  ;;  %v13771_v63 = vld [vmem:[#allocation106_spill] sm:$0xff]  ;;  %v10878_v49 = vpop.permute.xlu0 %2383  ;;  %v2793_v42 = vadd.f32 %v10726_v58, %v2658_v21 }
 0x288   : > { %8036 = vmatprep.mubr.f32.mxu0 %v8755_v34  ;;  %v13766_v34 = vld [vmem:[#allocation101_spill] sm:$0xff]  ;;  %13774 = vst [vmem:[#allocation21_spill] sm:$0xff] %v10878_v49  ;;  %8774 = vtanh.f32 %v2791_v16  ;;  %v2660_v53 = vadd.f32 %v2532_v55, %v1888_v10  ;;  %v10881_v3 = vpop.permute.xlu1 %1721  ;;  %v13778_v55 = vld [vmem:[#allocation112_spill] sm:$0xff] }
 0x289   : > { %v2531_v29 = vmul.f32 %v10203_v33, %v13766_v34  ;;  %v1889_v34 = vmul.f32 %v10200_v50, %v13771_v63  ;;  %13775 = vst [vmem:[#allocation22_spill] sm:$0xff] %v10881_v3  ;;  %v2536_v10 = vmul.f32 %v10203_v33, %v13778_v55 }
 0x28a   : > { %v2795_v21 = vadd.f32 %v10726_v58, %v2660_v53  ;;  %v4695_v53 = vld [vmem:[%s13502_s17 + $0x10] sm:$0xff] }
 0x28b   : > { %8037 = vmatmul.mubr.f32.gmra.mrb[60].mxu0 %v8757_v57  ;;  %v8763_v57 = vpop.eup %8762  ;;  %v2659_v20 = vadd.f32 %v2531_v29, %v1887_v31  ;;  %v2661_v22 = vadd.f32 %v2533_v28, %v1889_v34  ;;  %v13777_v31 = vld [vmem:[#allocation110_spill] sm:$0xff]  ;;  %v13779_v28 = vld [vmem:[#allocation113_spill] sm:$0xff] }
 0x28c   : > { %8039 = vmatprep.mubr.f32.mxu0 %v8759_v4  ;;  %v2792_v4 = vadd.f32 %v10726_v58, %v2657_v17  ;;  %v8765_v63 = vpop.eup %8764  ;;  %v13776_v17 = vld [vmem:[#allocation109_spill] sm:$0xff]  ;;  %v1891_v45 = vmul.f32 %v10200_v50, %v13777_v31  ;;  %v1892_v34 = vmul.f32 %v10200_v50, %v13779_v28  ;;  %v10910_v31 = vpop.permute.xlu1 %1726 }
 0x28d   : > { %v2535_v29 = vmul.f32 %v10203_v33, %v13776_v17  ;;  %v2794_v61 = vadd.f32 %v10726_v58, %v2659_v20  ;;  %v4694_v17 = vld [vmem:[%s13502_s17 + $0x8] sm:$0xff] }
 0x28e   : > { %8776 = vtanh.f32 %v2792_v4  ;;  %v4696_v4 = vld [vmem:[%s13502_s17 + $0x18] sm:$0xff] }
 0x28f   : > { %8040 = vmatmul.mubr.f32.gmra.mrb[62].mxu0 %v8761_v19  ;;  %v8767_v19 = vpop.eup %8766  ;;  %8778 = vtanh.f32 %v2793_v42  ;;  %v4693_v42 = vld [vmem:[%s13502_s17] sm:$0xff] }
 0x290   : > { %8042 = vmatprep.mubr.f32.mxu0 %v8763_v57  ;;  %v2662_v57 = vadd.f32 %v2534_v2, %v1890_v43  ;;  %v8769_v16 = vpop.eup %8768  ;;  %v10899_v2 = vpop.permute.xlu0 %2387  ;;  %v10901_v43 = vpack.c.bf16 %v4696_v4, %v4694_v17  ;;  %v10912_v55 = vpack.c.bf16 %v4695_v53, %v4693_v42  ;;  %8780 = vtanh.f32 %v2794_v61  ;;  %v13783_v17 = vld [vmem:[#allocation116_spill] sm:$0xff] }
 0x291   : > { %v8771_v20 = vpop.eup %8770  ;;  %13780 = vst [vmem:[#allocation23_spill] sm:$0xff] %v10899_v2  ;;  %v2537_v4 = vmul.f32 %v10203_v33, %v13783_v17  ;;  %v13784_v2 = vld [vmem:[#allocation117_spill] sm:$0xff]  ;;  %8782 = vtanh.f32 %v2795_v21 }
 0x292   : > { %13781 = vst [vmem:[#allocation24_spill] sm:$0xff] %v10901_v43  ;;  %13782 = vst [vmem:[#allocation25_spill] sm:$0xff] %v10912_v55  ;;  %v2797_v28 = vadd.f32 %v10726_v58, %v2662_v57  ;;  %v1893_v3 = vmul.f32 %v10200_v50, %v13784_v2  ;;  %8537 = vmatprep.subr.bf16.mxu0 %v10901_v43  ;;  %v8773_v49 = vpop.eup %8772  ;;  %v13787_v2 = vld [vmem:[#allocation120_spill] sm:$0xff]  ;;  %v13788_v21 = vld [vmem:[#allocation121_spill] sm:$0xff] }
 0x293   : > { %8043 = vmatmul.mubr.f32.gmra.mrb[64].mxu0 %v8765_v63  ;;  %v2796_v63 = vadd.f32 %v10726_v58, %v2661_v22  ;;  %v2664_v22 = vadd.f32 %v2536_v10, %v1892_v34  ;;  %v8775_v57 = vpop.eup %8774  ;;  %v2539_v53 = vmul.f32 %v10203_v33, %v13787_v2  ;;  %v1895_v10 = vmul.f32 %v10200_v50, %v13788_v21  ;;  %v13793_v2 = vld [vmem:[#allocation124_spill] sm:$0xff] }
 0x294   : > { %8045 = vmatprep.mubr.f32.mxu0 %v8767_v19  ;;  %v2663_v19 = vadd.f32 %v2535_v29, %v1891_v45  ;;  %v13785_v29 = vld [vmem:[#allocation118_spill] sm:$0xff]  ;;  %8539 = vmatpush1.bf16.msra.mxu0 %v10912_v55  ;;  %v10930_v34 = vpop.permute.xlu0 %2391  ;;  %v13791_v55 = vld [vmem:[#allocation123_spill] sm:$0xff] }
 0x295   : > { %v2538_v45 = vmul.f32 %v10203_v33, %v13785_v29  ;;  %8784 = vtanh.f32 %v2796_v63  ;;  %13789 = vst [vmem:[#allocation26_spill] sm:$0xff] %v10930_v34  ;;  %v2799_v17 = vadd.f32 %v10726_v58, %v2664_v22 }
 0x296   : > { %v2798_v42 = vadd.f32 %v10726_v58, %v2663_v19  ;;  %8786 = vtanh.f32 %v2797_v28  ;;  %v10937_v19 = vpop.permute.xlu1 %1731 }
 0x297   : > { %8046 = vmatmul.mubr.f32.gmra.mrb[66].mxu0 %v8769_v16  ;;  %v13786_v16 = vld [vmem:[#allocation119_spill] sm:$0xff]  ;;  %13792 = vst [vmem:[#allocation27_spill] sm:$0xff] %v10937_v19 }
 0x298   : > { %8048 = vmatprep.mubr.f32.mxu0 %v8771_v20  ;;  %v1894_v61 = vmul.f32 %v10200_v50, %v13786_v16  ;;  %v2665_v20 = vadd.f32 %v2537_v4, %v1893_v3  ;;  %v13790_v16 = vld [vmem:[#allocation122_spill] sm:$0xff]  ;;  %v8777_v3 = vpop.eup %8776  ;;  %8788 = vtanh.f32 %v2798_v42  ;;  %v2541_v4 = vmul.f32 %v10203_v33, %v10233_v62  ;;  %v10949_v62 = vpop.permute.xlu0 %2395 }
 0x299   : > { %v2540_v63 = vmul.f32 %v10203_v33, %v13790_v16  ;;  %v8779_v28 = vpop.eup %8778  ;;  %v13795_v16 = vld [vmem:[#allocation126_spill] sm:$0xff]  ;;  %8790 = vtanh.f32 %v2799_v17 }
 0x29a   : > { %v2666_v29 = vadd.f32 %v2538_v45, %v1894_v61  ;;  %v2800_v22 = vadd.f32 %v10726_v58, %v2665_v20  ;;  %v2667_v45 = vadd.f32 %v2539_v53, %v1895_v10  ;;  %v13794_v61 = vld [vmem:[#allocation125_spill] sm:$0xff]  ;;  %v8781_v19 = vpop.eup %8780  ;;  %v13797_v53 = vld [vmem:[#allocation128_spill] sm:$0xff] }
 0x29b   : > { %8049 = vmatmul.mubr.f32.gmra.mrb[68].mxu0 %v8773_v49  ;;  %v1896_v49 = vmul.f32 %v10200_v50, %v13791_v55  ;;  %v2542_v21 = vmul.f32 %v10203_v33, %v13794_v61  ;;  %v1898_v55 = vmul.f32 %v10200_v50, %v13795_v16  ;;  %v8783_v34 = vpop.eup %8782  ;;  %v1899_v10 = vmul.f32 %v10200_v50, %v13797_v53  ;;  %v10955_v61 = vpop.permute.xlu1 %1736 }
 0x29c   : > { %8051 = vmatprep.mubr.f32.mxu0 %v8775_v57  ;;  %v1897_v57 = vmul.f32 %v10200_v50, %v13793_v2  ;;  %v2801_v42 = vadd.f32 %v10726_v58, %v2666_v29  ;;  %13798 = vst [vmem:[#allocation28_spill] sm:$0xff] %v10955_v61  ;;  %8792 = vtanh.f32 %v2800_v22  ;;  %v2802_v17 = vadd.f32 %v10726_v58, %v2667_v45  ;;  %v13801_v22 = vld [vmem:[#allocation131_spill] sm:$0xff]  ;;  %v13802_v45 = vld [vmem:[#allocation132_spill] sm:$0xff] }
 0x29d   : > { %v2668_v43 = vadd.f32 %v2540_v63, %v1896_v49  ;;  %v13799_v49 = vld [vmem:[#allocation129_spill] sm:$0xff] }
 0x29e   : > { %v2669_v2 = vadd.f32 %v2541_v4, %v1897_v57  ;;  %8794 = vtanh.f32 %v2801_v42  ;;  %v2544_v4 = vmul.f32 %v10203_v33, %v13799_v49  ;;  %v13800_v57 = vld [vmem:[#allocation130_spill] sm:$0xff]  ;;  %v13803_v49 = vld [vmem:[#allocation133_spill] sm:$0xff] }
 0x29f   : > { %8052 = vmatmul.mubr.f32.gmra.mrb[70].mxu0 %v8777_v3  ;;  %v13796_v3 = vld [vmem:[#allocation127_spill] sm:$0xff]  ;;  %v8785_v29 = vpop.eup %8784  ;;  %v2803_v63 = vadd.f32 %v10726_v58, %v2668_v43  ;;  %v1900_v16 = vmul.f32 %v10200_v50, %v13800_v57  ;;  %8796 = vtanh.f32 %v2802_v17  ;;  %v1901_v43 = vmul.f32 %v10200_v50, %v13802_v45  ;;  %v10975_v17 = vpop.permute.xlu1 %1741 }
 0x2a0   : > { %8054 = vmatprep.mubr.f32.mxu0 %v8779_v28  ;;  %v2543_v20 = vmul.f32 %v10203_v33, %v13796_v3  ;;  %v2670_v28 = vadd.f32 %v2542_v21, %v1898_v55  ;;  %v8787_v3 = vpop.eup %8786  ;;  %v2804_v53 = vadd.f32 %v10726_v58, %v2669_v2  ;;  %v10969_v21 = vpop.permute.xlu0 %2399  ;;  %v2546_v2 = vmul.f32 %v10203_v33, %v13803_v49 }
 0x2a1   : > { %8798 = vtanh.f32 %v2803_v63  ;;  %v2672_v42 = vadd.f32 %v2544_v4, %v1900_v16  ;;  %v13806_v63 = vld [vmem:[#allocation136_spill] sm:$0xff]  ;;  %v2548_v49 = vmul.f32 %v10203_v33, %v10315_v56 }
 0x2a2   : > { %v2671_v61 = vadd.f32 %v2543_v20, %v1899_v10  ;;  %v8789_v55 = vpop.eup %8788  ;;  %v13804_v20 = vld [vmem:[#allocation134_spill] sm:$0xff]  ;;  %8800 = vtanh.f32 %v2804_v53  ;;  %v1903_v4 = vmul.f32 %v10200_v50, %v13806_v63 }
 0x2a3   : > { %8055 = vmatmul.mubr.f32.gmra.mrb[72].mxu0 %v8781_v19  ;;  %v2805_v19 = vadd.f32 %v10726_v58, %v2670_v28  ;;  %v1902_v10 = vmul.f32 %v10200_v50, %v13804_v20  ;;  %v8791_v28 = vpop.eup %8790  ;;  %v2807_v16 = vadd.f32 %v10726_v58, %v2672_v42  ;;  %v13807_v20 = vld [vmem:[#allocation137_spill] sm:$0xff] }
 0x2a4   : > { %8057 = vmatprep.mubr.f32.mxu0 %v8783_v34  ;;  %v2545_v34 = vmul.f32 %v10203_v33, %v13801_v22  ;;  %v13805_v22 = vld [vmem:[#allocation135_spill] sm:$0xff]  ;;  %v1904_v53 = vmul.f32 %v10200_v50, %v13807_v20  ;;  %v2551_v20 = vmul.f32 %v10203_v33, %v10379_v8  ;;  %v1908_v8 = vmul.f32 %v10200_v50, %v10404_v46  ;;  %v4699_v46 = vld [vmem:[%s13502_s17 + $0x30] sm:$0xff] }
 0x2a5   : > { %8802 = vtanh.f32 %v2805_v19  ;;  %v2674_v45 = vadd.f32 %v2546_v2, %v1902_v10  ;;  %v2550_v2 = vmul.f32 %v10203_v33, %v10357_v40  ;;  %v1906_v10 = vmul.f32 %v10200_v50, %v10363_v12 }
 0x2a6   : > { %v2673_v57 = vadd.f32 %v2545_v34, %v1901_v43  ;;  %v2549_v34 = vmul.f32 %v10203_v33, %v10336_v36  ;;  %v1905_v43 = vmul.f32 %v10200_v50, %v10338_v39  ;;  %v2676_v36 = vadd.f32 %v2548_v49, %v1904_v53  ;;  %v4700_v53 = vld [vmem:[%s13502_s17 + $0x38] sm:$0xff] }
 0x2a7   : > { %8058 = vmatmul.mubr.f32.gmra.mrb[74].mxu0 %v8785_v29  ;;  %v2806_v29 = vadd.f32 %v10726_v58, %v2671_v61  ;;  %v8793_v61 = vpop.eup %8792 }
 0x2a8   : > { %8060 = vmatprep.mubr.f32.mxu0 %v8787_v3  ;;  %v2547_v3 = vmul.f32 %v10203_v33, %v13805_v22  ;;  %v8795_v19 = vpop.eup %8794  ;;  %v2808_v42 = vadd.f32 %v10726_v58, %v2673_v57  ;;  %v2677_v39 = vadd.f32 %v2549_v34, %v1905_v43  ;;  %v1907_v57 = vmul.f32 %v10200_v50, %v10385_v13  ;;  %v4698_v13 = vld [vmem:[%s13502_s17 + $0x28] sm:$0xff] }
 0x2a9   : > { %8804 = vtanh.f32 %v2806_v29  ;;  %v2809_v29 = vadd.f32 %v10726_v58, %v2674_v45  ;;  %v8797_v22 = vpop.eup %8796  ;;  %v2552_v45 = vmul.f32 %v10203_v33, %v10398_v11  ;;  %v4697_v11 = vld [vmem:[%s13502_s17 + $0x20] sm:$0xff] }
 0x2aa   : > { %v2675_v56 = vadd.f32 %v2547_v3, %v1903_v4  ;;  %8806 = vtanh.f32 %v2807_v16  ;;  %v2678_v3 = vadd.f32 %v2550_v2, %v1906_v10  ;;  %v2811_v16 = vadd.f32 %v10726_v58, %v2676_v36 }
 0x2ab   : > { %8061 = vmatmul.mubr.f32.gmra.mrb[76].mxu0 %v8789_v55  ;;  %v10987_v55 = vpop.permute.xlu0 %2403  ;;  %v8799_v63 = vpop.eup %8798  ;;  %8808 = vtanh.f32 %v2808_v42  ;;  %v2812_v34 = vadd.f32 %v10726_v58, %v2677_v39  ;;  %v2679_v43 = vadd.f32 %v2551_v20, %v1907_v57  ;;  %v11030_v42 = vpack.c.bf16 %v4699_v46, %v4697_v11 }
 0x2ac   : > { %8063 = vmatprep.mubr.f32.mxu0 %v8791_v28  ;;  %v10993_v28 = vpop.permute.xlu1 %1746  ;;  %v2810_v40 = vadd.f32 %v10726_v58, %v2675_v56  ;;  %v8801_v4 = vpop.eup %8800  ;;  %8810 = vtanh.f32 %v2809_v29  ;;  %v2813_v56 = vadd.f32 %v10726_v58, %v2678_v3  ;;  %v2553_v2 = vmul.f32 %v10203_v33, %v10420_v7 }
 0x2ad   : > { %v1909_v10 = vmul.f32 %v10200_v50, %v10426_v51  ;;  %v2680_v36 = vadd.f32 %v2552_v45, %v1908_v8  ;;  %v2814_v51 = vadd.f32 %v10726_v58, %v2679_v43 }
 0x2ae   : > { %8812 = vtanh.f32 %v2810_v40  ;;  %v2555_v40 = vmul.f32 %v10203_v33, %v10459_v48  ;;  %v1913_v48 = vmul.f32 %v10200_v50, %v10516_v41 }
 0x2af   : > { %8064 = vmatmul.mubr.f32.gmra.mrb[78].mxu0 %v8793_v61  ;;  %v11006_v12 = vpop.permute.xlu0 %2407  ;;  %v8803_v61 = vpop.eup %8802  ;;  %8814 = vtanh.f32 %v2811_v16  ;;  %v2681_v57 = vadd.f32 %v2553_v2, %v1909_v10  ;;  %v1912_v16 = vmul.f32 %v10200_v50, %v10480_v52 }
 0x2b0   : > { %8066 = vmatprep.mubr.f32.mxu0 %v8795_v19  ;;  %v11013_v49 = vpop.permute.xlu1 %1751  ;;  %v11021_v19 = vpack.c.bf16 %v4700_v53, %v4698_v13  ;;  %8816 = vtanh.f32 %v2812_v34  ;;  %v2557_v13 = vmul.f32 %v10203_v33, %v10507_v14 }
 0x2b1   : > { %8818 = vtanh.f32 %v2813_v56  ;;  %v2559_v56 = vmul.f32 %v10203_v33, %v10578_v1 }
 0x2b2   : > { %8541 = vmatprep.subr.bf16.mxu0 %v11021_v19  ;;  %8820 = vtanh.f32 %v2814_v51  ;;  %v2685_v43 = vadd.f32 %v2557_v13, %v1913_v48  ;;  %v2561_v51 = vmul.f32 %v10203_v33, %v10652_v44  ;;  %v1920_v48 = vmul.f32 %v10200_v50, %v10744_v30 }
 0x2b3   : > { %8067 = vmatmul.mubr.f32.gmra.mrb[80].mxu0 %v8797_v22  ;;  %v8805_v29 = vpop.eup %8804  ;;  %v2554_v22 = vmul.f32 %v10203_v33, %v10439_v59  ;;  %v11043_v39 = vpop.permute.xlu0 %2411  ;;  %v1911_v59 = vmul.f32 %v10200_v50, %v10466_v24  ;;  %v2816_v24 = vadd.f32 %v10726_v58, %v2681_v57  ;;  %v1917_v57 = vmul.f32 %v10200_v50, %v10664_v9 }
 0x2b4   : > { %8069 = vmatprep.mubr.f32.mxu0 %v8799_v63  ;;  %v1910_v63 = vmul.f32 %v10200_v50, %v10445_v5  ;;  %8543 = vmatpush1.bf16.msra.mxu0 %v11030_v42  ;;  %v8807_v7 = vpop.eup %8806  ;;  %v11046_v20 = vpop.permute.xlu1 %1756  ;;  %v2815_v5 = vadd.f32 %v10726_v58, %v2680_v36  ;;  %v2560_v36 = vmul.f32 %v10203_v33, %v10622_v15 }
 0x2b5   : > { %v8809_v45 = vpop.eup %8808  ;;  %v2683_v53 = vadd.f32 %v2555_v40, %v1911_v59 }
 0x2b6   : > { %v2682_v3 = vadd.f32 %v2554_v22, %v1910_v63  ;;  %v8811_v8 = vpop.eup %8810  ;;  %8822 = vtanh.f32 %v2815_v5  ;;  %v1916_v22 = vmul.f32 %v10200_v50, %v10624_v54  ;;  %v2562_v5 = vmul.f32 %v10203_v33, %v10688_v38 }
 0x2b7   : > { %8070 = vmatmul.mubr.f32.gmra.mrb[82].mxu0 %v8801_v4  ;;  %v2556_v4 = vmul.f32 %v10203_v33, %v10478_v47  ;;  %v1914_v47 = vmul.f32 %v10200_v50, %v10548_v27  ;;  %v11066_v52 = vpop.permute.xlu0 %2415  ;;  %8824 = vtanh.f32 %v2816_v24  ;;  %v2818_v27 = vadd.f32 %v10726_v58, %v2683_v53 }
 0x2b8   : > { %8072 = vmatprep.mubr.f32.mxu0 %v8803_v61  ;;  %v2558_v61 = vmul.f32 %v10203_v33, %v10542_v6  ;;  %v2817_v11 = vadd.f32 %v10726_v58, %v2682_v3  ;;  %v11069_v46 = vpop.permute.xlu1 %1761  ;;  %v8813_v41 = vpop.eup %8812  ;;  %v1915_v6 = vmul.f32 %v10200_v50, %v10590_v32  ;;  %v2820_v32 = vadd.f32 %v10726_v58, %v2685_v43 }
 0x2b9   : > { %v2684_v14 = vadd.f32 %v2556_v4, %v1912_v16  ;;  %v8815_v34 = vpop.eup %8814  ;;  %v2688_v59 = vadd.f32 %v2560_v36, %v1916_v22  ;;  %v1918_v3 = vmul.f32 %v10200_v50, %v10691_v26  ;;  %v2689_v4 = vadd.f32 %v2561_v51, %v1917_v57 }
 0x2ba   : > { %v2686_v2 = vadd.f32 %v2558_v61, %v1914_v47  ;;  %v8817_v10 = vpop.eup %8816  ;;  %8826 = vtanh.f32 %v2817_v11  ;;  %v2563_v16 = vmul.f32 %v10203_v33, %v10721_v35  ;;  %v2564_v26 = vmul.f32 %v10203_v33, %v10741_v37  ;;  %v7499_v35 = vld [vmem:[%s13493_s8] ss:$0 sm:$0xff] }
 0x2bb   : > { %8073 = vmatmul.mubr.f32.gmra.mrb[84].mxu0 %v8805_v29  ;;  %v2819_v29 = vadd.f32 %v10726_v58, %v2684_v14  ;;  %v8819_v1 = vpop.eup %8818  ;;  %v11081_v63 = vpop.permute.xlu0 %2419  ;;  %8828 = vtanh.f32 %v2818_v27  ;;  %v2823_v38 = vadd.f32 %v10726_v58, %v2688_v59  ;;  %v2690_v13 = vadd.f32 %v2562_v5, %v1918_v3  ;;  %v13812_v5 = vld [vmem:[#allocation17_spill] sm:$0xff] }
 0x2bc   : > { %8075 = vmatprep.mubr.f32.mxu0 %v8807_v7  ;;  %v2687_v7 = vadd.f32 %v2559_v56, %v1915_v6  ;;  %v11088_v40 = vpop.permute.xlu1 %1766  ;;  %v2821_v15 = vadd.f32 %v10726_v58, %v2686_v2  ;;  %v8821_v54 = vpop.eup %8820  ;;  %v2824_v47 = vadd.f32 %v10726_v58, %v2689_v4  ;;  %v2565_v11 = vmul.f32 %v10203_v33, %v10760_v0 }
 0x2bd   : > { %8830 = vtanh.f32 %v2819_v29  ;;  %v1921_v37 = vmul.f32 %v10200_v50, %v10767_v23  ;;  %v2825_v6 = vadd.f32 %v10726_v58, %v2690_v13  ;;  %v2692_v27 = vadd.f32 %v2564_v26, %v1920_v48  ;;  %v4701_v26 = vld [vmem:[%s13502_s17 + $0x40] sm:$0xff]  ;;  %v4703_v48 = vld [vmem:[%s13502_s17 + $0x50] sm:$0xff] }
 0x2be   : > { %8832 = vtanh.f32 %v2820_v32  ;;  %v2822_v9 = vadd.f32 %v10726_v58, %v2687_v7  ;;  %v13810_v7 = vld [vmem:[#allocation15_spill] sm:$0xff]  ;;  %v1924_v3 = vmul.f32 %v10200_v50, %v13812_v5  ;;  %v1928_v5 = vmul.f32 %v10200_v50, %v10910_v31 }
 0x2bf   : > { %8076 = vmatmul.mubr.f32.gmra.mrb[86].mxu0 %v8809_v45  ;;  %8834 = vtanh.f32 %v2821_v15  ;;  %v1919_v45 = vmul.f32 %v10200_v50, %v10729_v60  ;;  %v2693_v29 = vadd.f32 %v2565_v11, %v1921_v37  ;;  %v1923_v51 = vmul.f32 %v10200_v50, %v13810_v7  ;;  %v3840_v11 = vld [vmem:[%s13500_s15 + $0x18] sm:$0xff]  ;;  %v3842_v7 = vld [vmem:[%s13500_s15 + $0x28] sm:$0xff] }
 0x2c0   : > { %8078 = vmatprep.mubr.f32.mxu0 %v8811_v8  ;;  %v8823_v44 = vpop.eup %8822  ;;  %v11100_v8 = vpop.permute.xlu0 %2423  ;;  %8836 = vtanh.f32 %v2822_v9  ;;  %v2827_v15 = vadd.f32 %v10726_v58, %v2692_v27  ;;  %v4704_v9 = vld [vmem:[%s13502_s17 + $0x58] sm:$0xff] }
 0x2c1   : > { %v11107_v24 = vpop.permute.xlu1 %1771  ;;  %v8825_v53 = vpop.eup %8824  ;;  %v2691_v14 = vadd.f32 %v2563_v16, %v1919_v45  ;;  %8838 = vtanh.f32 %v2823_v38  ;;  %v2569_v16 = vmul.f32 %v10203_v33, %v10836_v25  ;;  %v13813_v45 = vld [vmem:[#allocation18_spill] sm:$0xff] }
 0x2c2   : > { %v1925_v38 = vmul.f32 %v10200_v50, %v13813_v45  ;;  %v13821_v45 = vld [vmem:[#allocation26_spill] sm:$0xff] }
 0x2c3   : > { %8079 = vmatmul.mubr.f32.gmra.mrb[88].mxu0 %v8813_v41  ;;  %v2566_v41 = vmul.f32 %v10203_v33, %v10779_v18  ;;  %v2826_v18 = vadd.f32 %v10726_v58, %v2691_v14  ;;  %v13814_v14 = vld [vmem:[#allocation19_spill] sm:$0xff] }
 0x2c4   : > { %8081 = vmatprep.mubr.f32.mxu0 %v8815_v34  ;;  %v8827_v61 = vpop.eup %8826  ;;  %v13808_v34 = vld [vmem:[#allocation13_spill] sm:$0xff]  ;;  %v11122_v0 = vpop.permute.xlu0 %2427 }
 0x2c5   : > { %v1922_v43 = vmul.f32 %v10200_v50, %v13808_v34  ;;  %v8829_v2 = vpop.eup %8828  ;;  %v11124_v36 = vpop.permute.xlu1 %1776  ;;  %v13815_v34 = vld [vmem:[#allocation20_spill] sm:$0xff] }
 0x2c7   : > { %8082 = vmatmul.mubr.f32.gmra.mrb[90].mxu0 %v8817_v10  ;;  %v8831_v23 = vpop.eup %8830  ;;  %v2694_v22 = vadd.f32 %v2566_v41, %v1922_v43  ;;  %v2570_v41 = vmul.f32 %v10203_v33, %v13814_v14  ;;  %v1926_v43 = vmul.f32 %v10200_v50, %v13815_v34 }
 0x2c8   : > { %8084 = vmatprep.mubr.f32.mxu0 %v8819_v1  ;;  %v13809_v1 = vld [vmem:[#allocation14_spill] sm:$0xff]  ;;  %v8833_v57 = vpop.eup %8832 }
 0x2c9   : > { %v2567_v32 = vmul.f32 %v10203_v33, %v13809_v1  ;;  %v8835_v4 = vpop.eup %8834  ;;  %v2829_v25 = vadd.f32 %v10726_v58, %v2694_v22  ;;  %v13817_v22 = vld [vmem:[#allocation22_spill] sm:$0xff] }
 0x2ca   : > { %v8837_v37 = vpop.eup %8836  ;;  %v1927_v1 = vmul.f32 %v10200_v50, %v13817_v22 }
 0x2cb   : > { %8085 = vmatmul.mubr.f32.gmra.mrb[92].mxu0 %v8821_v54  ;;  %v13811_v54 = vld [vmem:[#allocation16_spill] sm:$0xff]  ;;  %v8839_v27 = vpop.eup %8838 }
 0x2cc   : > { %8087 = vmatprep.mubr.f32.mxu0 %v8823_v44  ;;  %v2568_v59 = vmul.f32 %v10203_v33, %v13811_v54  ;;  %v4702_v44 = vld [vmem:[%s13502_s17 + $0x48] sm:$0xff]  ;;  %v13818_v54 = vld [vmem:[#allocation23_spill] sm:$0xff] }
 0x2cd   : > { %v11146_v13 = vpack.c.bf16 %v4704_v9, %v4702_v44 }
 0x2ce   : > { %v7919_v60 = vpop.f32.mrb[2].mxu0 }
 0x2cf   : > { %8088 = vmatmul.mubr.f32.gmra.mrb[94].mxu0 %v8825_v53  ;;  %v913_v30 = vpop.f32.mrb[3].mxu0  ;;  %v919_v10 = vadd.f32 %v7919_v60, %v7499_v35  ;;  %v11155_v53 = vpack.c.bf16 %v4703_v48, %v4701_v26  ;;  %v2695_v60 = vadd.f32 %v2567_v32, %v1923_v51  ;;  %8545 = vmatprep.subr.bf16.mxu0 %v11146_v13  ;;  %v3841_v32 = vld [vmem:[%s13500_s15 + $0x20] sm:$0xff]  ;;  %v13822_v26 = vld [vmem:[#allocation27_spill] sm:$0xff] }
 0x2d0   : > { %v914_v56 = vadd.f32 %v7499_v35, %v913_v30  ;;  %8090 = vmatprep.mubr.f32.mxu0 %v8827_v61  ;;  %v2828_v35 = vadd.f32 %v10726_v58, %v2693_v29  ;;  %v11158_v61 = vpop.permute.xlu0 %2431  ;;  %v2696_v30 = vadd.f32 %v2568_v59, %v1924_v3  ;;  %v13816_v29 = vld [vmem:[#allocation21_spill] sm:$0xff]  ;;  %v2572_v59 = vmul.f32 %v10203_v33, %v13818_v54  ;;  %v11193_v3 = vld [vmem:[%s13497_s12] ss:$0 sm:$0xff] }
 0x2d1   : > { %8547 = vmatpush1.bf16.msra.mxu0 %v11155_v53  ;;  %v1929_v31 = vmul.f32 %v10200_v50, %v13822_v26 }
 0x2d2   : > { %8840 = vtanh.f32 %v914_v56  ;;  %v11171_v56 = vpop.permute.xlu1 %1781  ;;  %v2700_v34 = vadd.f32 %v2572_v59, %v1928_v5 }
 0x2d3   : > { %8842 = vtanh.f32 %v2824_v47  ;;  %8091 = vmatmul.mubr.f32.gmra.mrb[96].mxu0 %v8829_v2  ;;  %v3839_v47 = vld [vmem:[%s13500_s15 + $0x10] sm:$0xff] }
 0x2d4   : > { %8093 = vmatprep.mubr.f32.mxu0 %v8831_v23  ;;  %8844 = vtanh.f32 %v2825_v6  ;;  %v2697_v6 = vadd.f32 %v2569_v16, %v1925_v38  ;;  %v8508_v2 = vpack.c.bf16 %v3840_v11, %v3839_v47  ;;  %v2830_v23 = vadd.f32 %v10726_v58, %v2695_v60  ;;  %v11196_v9 = vpop.permute.xlu0 %2435  ;;  %v3844_v60 = vld [vmem:[%s13500_s15 + $0x38] sm:$0xff] }
 0x2d5   : > { %8846 = vtanh.f32 %v919_v10  ;;  %v2573_v38 = vmul.f32 %v10203_v33, %v13821_v45  ;;  %v2579_v45 = vmul.f32 %v10203_v33, %v11066_v52  ;;  %v1936_v52 = vmul.f32 %v10200_v50, %v11088_v40  ;;  %v3850_v40 = vld [vmem:[%s13500_s15 + $0x68] sm:$0xff] }
 0x2d6   : > { %8848 = vtanh.f32 %v2826_v18  ;;  %v2571_v18 = vmul.f32 %v10203_v33, %v13816_v29  ;;  %v2832_v44 = vadd.f32 %v11193_v3, %v2697_v6  ;;  %v11204_v48 = vpop.permute.xlu1 %1786  ;;  %v2575_v6 = vmul.f32 %v10203_v33, %v10969_v21 }
 0x2d7   : > { %8094 = vmatmul.mubr.f32.gmra.mrb[98].mxu0 %v8833_v57  ;;  %8850 = vtanh.f32 %v2827_v15  ;;  %v2831_v57 = vadd.f32 %v10726_v58, %v2696_v30  ;;  %v2698_v15 = vadd.f32 %v2570_v41, %v1926_v43  ;;  %v13820_v58 = vmov 0.0   ;;  %v13823_v30 = vld [vmem:[#allocation28_spill] sm:$0xff] }
 0x2d8   : > { %8096 = vmatprep.mubr.f32.mxu0 %v8835_v4  ;;  %8852 = vtanh.f32 %v2828_v35  ;;  %v13819_v4 = vld [vmem:[#allocation12_spill] sm:$0xff]  ;;  %v8512_v35 = vpack.c.bf16 %v3842_v7, %v3841_v32  ;;  %v2699_v11 = vadd.f32 %v2571_v18, %v1927_v1  ;;  %v1930_v14 = vmul.f32 %v10200_v50, %v13823_v30 }
 0x2d9   : > { %8854 = vtanh.f32 %v2829_v25  ;;  %v3843_v25 = vld [vmem:[%s13500_s15 + $0x30] sm:$0xff]  ;;  %v2833_v41 = vadd.f32 %v11193_v3, %v2698_v15  ;;  %v2576_v29 = vmul.f32 %v10203_v33, %v10987_v55  ;;  %v1932_v18 = vmul.f32 %v10200_v50, %v10993_v28  ;;  %v3845_v55 = vld [vmem:[%s13500_s15 + $0x40] sm:$0xff]  ;;  %v3846_v28 = vld [vmem:[%s13500_s15 + $0x48] sm:$0xff] }
 0x2da   : > { %8856 = vtanh.f32 %v2830_v23  ;;  %v2834_v22 = vadd.f32 %v11193_v3, %v2699_v11  ;;  %v2577_v21 = vmul.f32 %v10203_v33, %v11006_v12  ;;  %v2835_v7 = vadd.f32 %v11193_v3, %v2700_v34  ;;  %v11271_v30 = vld [vmem:[%s13499_s14] ss:$0 sm:$0xff] }
 0x2db   : > { %8097 = vmatmul.mubr.f32.gmra.mrb[100].mxu0 %v8837_v37  ;;  %v2574_v37 = vmul.f32 %v10203_v33, %v10949_v62  ;;  %8858 = vtanh.f32 %v2831_v57  ;;  %v2701_v62 = vadd.f32 %v2573_v38, %v1929_v31  ;;  %v2578_v12 = vmul.f32 %v10203_v33, %v11043_v39  ;;  %v3848_v39 = vld [vmem:[%s13500_s15 + $0x58] sm:$0xff] }
 0x2dc   : > { %v8841_v10 = vpop.eup %8840  ;;  %8099 = vmatprep.mubr.f32.mxu0 %v8839_v27  ;;  %v1931_v27 = vmul.f32 %v10200_v50, %v10975_v17  ;;  %8860 = vtanh.f32 %v2832_v44  ;;  %v1933_v17 = vmul.f32 %v10200_v50, %v11013_v49  ;;  %v1934_v49 = vmul.f32 %v10200_v50, %v11046_v20  ;;  %v3847_v44 = vld [vmem:[%s13500_s15 + $0x50] sm:$0xff] }
 0x2dd   : > { %v8843_v51 = vpop.eup %8842  ;;  %1033 = vmatmul.mubr.f32.vlgmr.msra.gmra.mrb[2].mxu1 %v8841_v10  ;;  %v8516_v10 = vpack.c.bf16 %v3844_v60, %v3843_v25  ;;  %v2702_v1 = vadd.f32 %v2574_v37, %v1930_v14  ;;  %8862 = vtanh.f32 %v2833_v41  ;;  %v2836_v54 = vadd.f32 %v11193_v3, %v2701_v62 }
 0x2de   : > { %8507 = vmatpush3.bf16.msra.mxu1 %v13819_v4  ;;  %1038 = vmatprep.mubr.f32.mxu1 %v13820_v58  ;;  %v8845_v16 = vpop.eup %8844  ;;  %v2703_v15 = vadd.f32 %v2575_v6, %v1931_v27  ;;  %v2704_v59 = vadd.f32 %v2576_v29, %v1932_v18  ;;  %v8520_v5 = vpack.c.bf16 %v3846_v28, %v3845_v55  ;;  %8864 = vtanh.f32 %v2834_v22 }
 0x2df   : > { %8100 = vmatmul.mubr.f32.gmra.mrb[102].mxu0 %v8843_v51  ;;  %8509 = vmatprep.subr.bf16.mxu1 %v8508_v2  ;;  %v8847_v47 = vpop.eup %8846  ;;  %v11243_v51 = vpop.permute.xlu1 %1791  ;;  %v2837_v20 = vadd.f32 %v11193_v3, %v2702_v1  ;;  %v2705_v4 = vadd.f32 %v2577_v21, %v1933_v17  ;;  %8866 = vtanh.f32 %v2835_v7  ;;  %v1935_v38 = vmul.f32 %v10200_v50, %v11069_v46  ;;  %v3851_v21 = vld [vmem:[%s13500_s15 + $0x70] sm:$0xff]  ;;  %v3852_v17 = vld [vmem:[%s13500_s15 + $0x78] sm:$0xff] }
 0x2e0   : > { %8102 = vmatprep.mubr.f32.mxu0 %v8845_v16  ;;  %v8849_v43 = vpop.eup %8848  ;;  %v2706_v16 = vadd.f32 %v2578_v12, %v1934_v49  ;;  %v2838_v31 = vadd.f32 %v11193_v3, %v2703_v15  ;;  %v8524_v25 = vpack.c.bf16 %v3848_v39, %v3847_v44  ;;  %8868 = vtanh.f32 %v2836_v54 }
 0x2e1   : > { %1039 = vmatmul.mubr.f32.gmra.mrb[4].mxu1 %v8847_v47  ;;  %v8851_v23 = vpop.eup %8850  ;;  %v2839_v47 = vadd.f32 %v11193_v3, %v2704_v59  ;;  %v2580_v11 = vmul.f32 %v10203_v33, %v11081_v63  ;;  %8870 = vtanh.f32 %v2837_v20  ;;  %v2840_v46 = vadd.f32 %v11193_v3, %v2705_v4  ;;  %v3849_v63 = vld [vmem:[%s13500_s15 + $0x60] sm:$0xff] }
 0x2e2   : > { %8511 = vmatpush3.bf16.msra.mxu1 %v8508_v2  ;;  %v11230_v2 = vpop.permute.xlu0 %2439  ;;  %v8853_v32 = vpop.eup %8852  ;;  %v2841_v41 = vadd.f32 %v11193_v3, %v2706_v16  ;;  %v2707_v34 = vadd.f32 %v2579_v45, %v1935_v38  ;;  %v1937_v6 = vmul.f32 %v10200_v50, %v11107_v24  ;;  %8872 = vtanh.f32 %v2838_v31 }
 0x2e3   : > { %8103 = vmatmul.mubr.f32.gmra.mrb[104].mxu0 %v8849_v43  ;;  %8513 = vmatprep.subr.bf16.mxu1 %v8512_v35  ;;  %v8855_v57 = vpop.eup %8854  ;;  %v11265_v37 = vpop.permute.xlu1 %1796  ;;  %v2581_v43 = vmul.f32 %v10203_v33, %v11100_v8  ;;  %8874 = vtanh.f32 %v2839_v47  ;;  %v8528_v18 = vpack.c.bf16 %v3850_v40, %v3849_v63  ;;  %v2582_v22 = vmul.f32 %v10203_v33, %v11122_v0 }
 0x2e4   : > { %8105 = vmatprep.mubr.f32.mxu0 %v8851_v23  ;;  %v8857_v26 = vpop.eup %8856  ;;  %v2708_v23 = vadd.f32 %v2580_v11, %v1936_v52  ;;  %8876 = vtanh.f32 %v2840_v46  ;;  %v1938_v8 = vmul.f32 %v10200_v50, %v11124_v36  ;;  %v2842_v55 = vadd.f32 %v11193_v3, %v2707_v34 }
 0x2e5   : > { %v8859_v60 = vpop.eup %8858  ;;  %8878 = vtanh.f32 %v2841_v41  ;;  %v2709_v0 = vadd.f32 %v2581_v43, %v1937_v6  ;;  %v8532_v15 = vpack.c.bf16 %v3852_v17, %v3851_v21  ;;  %v2583_v59 = vmul.f32 %v10203_v33, %v11158_v61  ;;  %v4706_v61 = vld [vmem:[%s13502_s17 + $0x68] sm:$0xff] }
 0x2e6   : > { %8515 = vmatpush3.bf16.msra.mxu1 %v8512_v35  ;;  %v11258_v35 = vpop.permute.xlu0 %2443  ;;  %v8861_v14 = vpop.eup %8860  ;;  %v2843_v12 = vadd.f32 %v11193_v3, %v2708_v23  ;;  %v2710_v54 = vadd.f32 %v2582_v22, %v1938_v8  ;;  %v2584_v4 = vmul.f32 %v10203_v33, %v11196_v9  ;;  %v1940_v16 = vmul.f32 %v10200_v50, %v11204_v48  ;;  %v13824_v22 = vld [vmem:[#allocation24_spill] sm:$0xff] }
 0x2e7   : > { %8106 = vmatmul.mubr.f32.gmra.mrb[106].mxu0 %v8853_v32  ;;  %8517 = vmatprep.subr.bf16.mxu1 %v8516_v10  ;;  %v1802_v28 = vpop.permute.xlu1 %1801  ;;  %v2844_v20 = vadd.f32 %v11193_v3, %v2709_v0  ;;  %v2585_v38 = vmul.f32 %v10203_v33, %v11230_v2  ;;  %v2586_v34 = vmul.f32 %v10203_v33, %v11258_v35 }
 0x2e8   : > { %8108 = vmatprep.mubr.f32.mxu0 %v8855_v57  ;;  %v2845_v46 = vadd.f32 %v11193_v3, %v2710_v54  ;;  %v2712_v41 = vadd.f32 %v2584_v4, %v1940_v16  ;;  %v1942_v43 = vmul.f32 %v10200_v50, %v11265_v37  ;;  %v13825_v54 = vld [vmem:[#allocation25_spill] sm:$0xff] }
 0x2ea   : > { %8519 = vmatpush3.bf16.msra.mxu1 %v8516_v10  ;;  %v8863_v10 = vpop.eup %8862  ;;  %v11289_v24 = vpop.permute.xlu0 %2447  ;;  %v2847_v17 = vadd.f32 %v11193_v3, %v2712_v41 }
 0x2eb   : > { %8109 = vmatmul.mubr.f32.gmra.mrb[108].mxu0 %v8857_v26  ;;  %8521 = vmatprep.subr.bf16.mxu1 %v8520_v5  ;;  %v8865_v32 = vpop.eup %8864  ;;  %v1941_v26 = vmul.f32 %v10200_v50, %v11243_v51  ;;  %v1807_v47 = vpop.permute.xlu1 %1806 }
 0x2ec   : > { %8111 = vmatprep.mubr.f32.mxu0 %v8859_v60  ;;  %v8867_v7 = vpop.eup %8866  ;;  %v4707_v60 = vld [vmem:[%s13502_s17 + $0x70] sm:$0xff]  ;;  %v1944_v0 = vmul.f32 %v10200_v50, %v1807_v47 }
 0x2ed   : > { %v8869_v39 = vpop.eup %8868 }
 0x2ee   : > { %v7954_v27 = vpop.f32.mrb[4].mxu0  ;;  %8523 = vmatpush3.bf16.msra.mxu1 %v8520_v5  ;;  %v1939_v5 = vmul.f32 %v10200_v50, %v11171_v56  ;;  %v4708_v56 = vld [vmem:[%s13502_s17 + $0x78] sm:$0xff]  ;;  %v8871_v45 = vpop.eup %8870 }
 0x2ef   : > { %v3076_v62 = vadd.f32 %v7954_v27, %v11271_v30  ;;  %v3070_v29 = vpop.f32.mrb[5].mxu0  ;;  %8112 = vmatmul.mubr.f32.gmra.mrb[110].mxu0 %v8861_v14  ;;  %8525 = vmatprep.subr.bf16.mxu1 %v8524_v25  ;;  %v2452_v31 = vpop.permute.xlu0 %2451  ;;  %v11321_v48 = vpack.c.bf16 %v4708_v56, %v4706_v61  ;;  %v2713_v27 = vadd.f32 %v2585_v38, %v1941_v26 }
 0x2f0   : > { %v3071_v1 = vadd.f32 %v11271_v30, %v3070_v29  ;;  %8114 = vmatprep.mubr.f32.mxu0 %v8863_v10  ;;  %v8873_v52 = vpop.eup %8872  ;;  %v2711_v63 = vadd.f32 %v2583_v59, %v1939_v5  ;;  %v1943_v29 = vmul.f32 %v10200_v50, %v1802_v28 }
 0x2f1   : > { %8549 = vmatprep.subr.bf16.mxu0 %v11321_v48  ;;  %v8875_v14 = vpop.eup %8874 }
 0x2f2   : > { %8880 = vtanh.f32 %v3071_v1  ;;  %v7957_v36 = vpop.f32.mrb[6].mxu0  ;;  %8527 = vmatpush3.bf16.msra.mxu1 %v8524_v25  ;;  %v4705_v25 = vld [vmem:[%s13502_s17 + $0x60] sm:$0xff]  ;;  %v8877_v6 = vpop.eup %8876  ;;  %v2846_v8 = vadd.f32 %v11193_v3, %v2711_v63 }
 0x2f3   : > { %8882 = vtanh.f32 %v3076_v62  ;;  %v3086_v49 = vadd.f32 %v7957_v36, %v11271_v30  ;;  %v3080_v57 = vpop.f32.mrb[7].mxu0  ;;  %8115 = vmatmul.mubr.f32.gmra.mrb[112].mxu0 %v8865_v32  ;;  %8529 = vmatprep.subr.bf16.mxu1 %v8528_v18  ;;  %v11330_v51 = vpack.c.bf16 %v4707_v60, %v4705_v25  ;;  %v8879_v23 = vpop.eup %8878  ;;  %v2587_v62 = vmul.f32 %v10203_v33, %v11289_v24 }
 0x2f4   : > { %v3081_v44 = vadd.f32 %v11271_v30, %v3080_v57  ;;  %8117 = vmatprep.mubr.f32.mxu0 %v8867_v7  ;;  %8884 = vtanh.f32 %v2842_v55  ;;  %v2714_v24 = vadd.f32 %v2586_v34, %v1942_v43  ;;  %v2588_v55 = vmul.f32 %v10203_v33, %v2452_v31  ;;  %v2456_v28 = vpop.permute.xlu0 %2455  ;;  %v1812_v32 = vpop.permute.xlu1 %1811 }
 0x2f5   : > { %8551 = vmatpush1.bf16.msra.mxu0 %v11330_v51  ;;  %v2589_v5 = vmul.f32 %v10203_v33, %v2456_v28 }
 0x2f6   : > { %8886 = vtanh.f32 %v3081_v44  ;;  %v7960_v9 = vpop.f32.mrb[8].mxu0  ;;  %8531 = vmatpush3.bf16.msra.mxu1 %v8528_v18  ;;  %v1945_v44 = vmul.f32 %v10200_v50, %v1812_v32  ;;  %v2849_v4 = vadd.f32 %v11193_v3, %v2714_v24  ;;  %v2716_v16 = vadd.f32 %v2588_v55, %v1944_v0  ;;  %v4710_v24 = vld [vmem:[%s13502_s17 + $0x88] sm:$0xff]  ;;  %v4712_v55 = vld [vmem:[%s13502_s17 + $0x98] sm:$0xff] }
 0x2f7   : > { %8888 = vtanh.f32 %v3086_v49  ;;  %v3096_v2 = vadd.f32 %v7960_v9, %v11271_v30  ;;  %v3090_v11 = vpop.f32.mrb[9].mxu0  ;;  %8118 = vmatmul.mubr.f32.gmra.mrb[114].mxu0 %v8869_v39  ;;  %8533 = vmatprep.subr.bf16.mxu1 %v8532_v15  ;;  %v2715_v49 = vadd.f32 %v2587_v62, %v1943_v29  ;;  %v8552_v32 = vpack.c.bf16 %v4712_v55, %v4710_v24 }
 0x2f8   : > { %8890 = vtanh.f32 %v2843_v12  ;;  %v3091_v40 = vadd.f32 %v11271_v30, %v3090_v11  ;;  %8120 = vmatprep.mubr.f32.mxu0 %v8871_v45  ;;  %v2848_v12 = vadd.f32 %v11193_v3, %v2713_v27  ;;  %v2717_v26 = vadd.f32 %v2589_v5, %v1945_v44 }
 0x2f9   : > { %8892 = vtanh.f32 %v2844_v20  ;;  %v2851_v25 = vadd.f32 %v11193_v3, %v2716_v16  ;;  %8553 = vmatprep.subr.bf16.mxu0 %v8552_v32 }
 0x2fa   : > { %8894 = vtanh.f32 %v3091_v40  ;;  %v7963_v10 = vpop.f32.mrb[10].mxu0  ;;  %8535 = vmatpush3.bf16.msra.mxu1 %v8532_v15 }
 0x2fb   : > { %8896 = vtanh.f32 %v3096_v2  ;;  %v3106_v18 = vadd.f32 %v7963_v10, %v11271_v30  ;;  %v3100_v35 = vpop.f32.mrb[11].mxu0  ;;  %8121 = vmatmul.mubr.f32.gmra.mrb[116].mxu0 %v8873_v52  ;;  %8568 = vmatprep.subr.bf16.mxu1 %v13824_v22 }
 0x2fc   : > { %v8881_v37 = vpop.eup %8880  ;;  %8898 = vtanh.f32 %v2845_v46  ;;  %v3101_v1 = vadd.f32 %v11271_v30, %v3100_v35  ;;  %8123 = vmatprep.mubr.f32.mxu0 %v8875_v14 }
 0x2fd   : > { %v8883_v21 = vpop.eup %8882  ;;  %8176 = vmatprep.mubr.f32.mxu1 %v8881_v37 }
 0x2fe   : > { %8900 = vtanh.f32 %v3101_v1  ;;  %v7966_v36 = vpop.f32.mrb[12].mxu0  ;;  %8177 = vmatmul.mubr.f32.vlgmr.msra.gmra.mrb[6].mxu1 %v8883_v21  ;;  %v8885_v7 = vpop.eup %8884 }
 0x2ff   : > { %8902 = vtanh.f32 %v3106_v18  ;;  %v3116_v57 = vadd.f32 %v7966_v36, %v11271_v30  ;;  %v3110_v15 = vpop.f32.mrb[13].mxu0  ;;  %8124 = vmatmul.mubr.f32.gmra.mrb[118].mxu0 %v8877_v6  ;;  %8576 = vmatpush1.bf16.msra.mxu1 %v13825_v54  ;;  %v4709_v36 = vld [vmem:[%s13502_s17 + $0x80] sm:$0xff] }
 0x300   : > { %v8887_v59 = vpop.eup %8886  ;;  %8904 = vtanh.f32 %v2846_v8  ;;  %v3111_v39 = vadd.f32 %v11271_v30, %v3110_v15  ;;  %8126 = vmatprep.mubr.f32.mxu0 %v8879_v23  ;;  %8569 = vmatprep.subr.bf16.mxu1 %v11021_v19  ;;  %v2850_v19 = vadd.f32 %v11193_v3, %v2715_v49 }
 0x301   : > { %v8889_v20 = vpop.eup %8888  ;;  %8906 = vtanh.f32 %v2847_v17  ;;  %8179 = vmatprep.mubr.f32.mxu1 %v8887_v59 }
 0x302   : > { %v8891_v61 = vpop.eup %8890  ;;  %8908 = vtanh.f32 %v3111_v39  ;;  %v7969_v56 = vpop.f32.mrb[14].mxu0  ;;  %8180 = vmatmul.mubr.f32.gmra.mrb[8].mxu1 %v8889_v20 }
 0x303   : > { %v8893_v45 = vpop.eup %8892  ;;  %8910 = vtanh.f32 %v3116_v57  ;;  %v3126_v33 = vadd.f32 %v7969_v56, %v11271_v30  ;;  %v3120_v50 = vpop.f32.mrb[15].mxu0  ;;  %8127 = vmatmul.mubr.f32.gmra.mrb[120].mxu0 %v8885_v7  ;;  %8577 = vmatpush1.bf16.msra.mxu1 %v11030_v42  ;;  %v4711_v7 = vld [vmem:[%s13502_s17 + $0x90] sm:$0xff] }
 0x304   : > { %v8895_v38 = vpop.eup %8894  ;;  %8912 = vtanh.f32 %v2848_v12  ;;  %v3121_v31 = vadd.f32 %v11271_v30, %v3120_v50  ;;  %8129 = vmatprep.mubr.f32.mxu0 %v8891_v61  ;;  %8570 = vmatprep.subr.bf16.mxu1 %v11146_v13  ;;  %v2852_v13 = vadd.f32 %v11193_v3, %v2717_v26  ;;  %v8554_v57 = vpack.c.bf16 %v4711_v7, %v4709_v36 }
 0x305   : > { %v8897_v9 = vpop.eup %8896  ;;  %8914 = vtanh.f32 %v2849_v4  ;;  %8182 = vmatprep.mubr.f32.mxu1 %v8895_v38 }
 0x306   : > { %v8899_v60 = vpop.eup %8898  ;;  %8916 = vtanh.f32 %v3121_v31  ;;  %v7972_v47 = vpop.f32.mrb[16].mxu0  ;;  %8183 = vmatmul.mubr.f32.gmra.mrb[10].mxu1 %v8897_v9  ;;  %8555 = vmatpush1.bf16.msra.mxu0 %v8554_v57 }
 0x307   : > { %8918 = vtanh.f32 %v3126_v33  ;;  %v3136_v42 = vadd.f32 %v7972_v47, %v11271_v30  ;;  %v3130_v2 = vpop.f32.mrb[17].mxu0  ;;  %8130 = vmatmul.mubr.f32.gmra.mrb[122].mxu0 %v8893_v45  ;;  %8578 = vmatpush1.bf16.msra.mxu1 %v11155_v53 }
 0x308   : > { %v8901_v11 = vpop.eup %8900  ;;  %8920 = vtanh.f32 %v2850_v19  ;;  %v3131_v52 = vadd.f32 %v11271_v30, %v3130_v2  ;;  %8132 = vmatprep.mubr.f32.mxu0 %v8899_v60  ;;  %8571 = vmatprep.subr.bf16.mxu1 %v11321_v48 }
 0x309   : > { %v8903_v46 = vpop.eup %8902  ;;  %8922 = vtanh.f32 %v2851_v25  ;;  %8185 = vmatprep.mubr.f32.mxu1 %v8901_v11 }
 0x30a   : > { %v8905_v63 = vpop.eup %8904  ;;  %8924 = vtanh.f32 %v3131_v52  ;;  %v7975_v40 = vpop.f32.mrb[18].mxu0  ;;  %8186 = vmatmul.mubr.f32.gmra.mrb[12].mxu1 %v8903_v46 }
 0x30b   : > { %v8907_v14 = vpop.eup %8906  ;;  %8926 = vtanh.f32 %v3136_v42  ;;  %v3146_v53 = vadd.f32 %v7975_v40, %v11271_v30  ;;  %v3140_v41 = vpop.f32.mrb[19].mxu0  ;;  %8133 = vmatmul.mubr.f32.gmra.mrb[124].mxu0 %v8905_v63  ;;  %8579 = vmatpush1.bf16.msra.mxu1 %v11330_v51 }
 0x30c   : > { %v8909_v3 = vpop.eup %8908  ;;  %8928 = vtanh.f32 %v2852_v13  ;;  %v3141_v34 = vadd.f32 %v11271_v30, %v3140_v41  ;;  %8135 = vmatprep.mubr.f32.mxu0 %v8907_v14  ;;  %8572 = vmatprep.subr.bf16.mxu1 %v8552_v32 }
 0x30d   : > { %v8911_v48 = vpop.eup %8910  ;;  %8188 = vmatprep.mubr.f32.mxu1 %v8909_v3 }
 0x30e   : > { %v8913_v43 = vpop.eup %8912  ;;  %8930 = vtanh.f32 %v3141_v34  ;;  %v7978_v6 = vpop.f32.mrb[20].mxu0  ;;  %8189 = vmatmul.mubr.f32.gmra.mrb[14].mxu1 %v8911_v48 }
 0x30f   : > { %v8915_v27 = vpop.eup %8914  ;;  %8932 = vtanh.f32 %v3146_v53  ;;  %v3156_v10 = vadd.f32 %v7978_v6, %v11271_v30  ;;  %v3150_v23 = vpop.f32.mrb[21].mxu0  ;;  %8136 = vmatmul.mubr.f32.gmra.mrb[126].mxu0 %v8913_v43  ;;  %8580 = vmatpush1.bf16.msra.mxu1 %v8554_v57  ;;  %v4716_v57 = vld [vmem:[%s13502_s17 + $0xb8] sm:$0xff] }
 0x310   : > { %v8917_v62 = vpop.eup %8916  ;;  %v3151_v51 = vadd.f32 %v11271_v30, %v3150_v23  ;;  %8138 = vmatprep.mubr.f32.mxu0 %v8915_v27 }
 0x311   : > { %v8919_v29 = vpop.eup %8918  ;;  %8191 = vmatprep.mubr.f32.mxu1 %v8917_v62 }
 0x312   : > { %v8921_v18 = vpop.eup %8920  ;;  %8934 = vtanh.f32 %v3151_v51  ;;  %v7981_v35 = vpop.f32.mrb[22].mxu0  ;;  %8192 = vmatmul.mubr.f32.gmra.mrb[16].mxu1 %v8919_v29 }
 0x313   : > { %v8923_v22 = vpop.eup %8922  ;;  %8936 = vtanh.f32 %v3156_v10  ;;  %v3166_v37 = vadd.f32 %v7981_v35, %v11271_v30  ;;  %v3160_v8 = vpop.f32.mrb[23].mxu0  ;;  %8139 = vmatmul.mubr.f32.gmra.mrb[128].mxu0 %v8921_v18 }
 0x314   : > { %v8925_v1 = vpop.eup %8924  ;;  %v3161_v21 = vadd.f32 %v11271_v30, %v3160_v8  ;;  %8141 = vmatprep.mubr.f32.mxu0 %v8923_v22 }
 0x315   : > { %v8927_v17 = vpop.eup %8926  ;;  %8194 = vmatprep.mubr.f32.mxu1 %v8925_v1 }
 0x316   : > { %v8929_v0 = vpop.eup %8928  ;;  %8938 = vtanh.f32 %v3161_v21  ;;  %v7984_v28 = vpop.f32.mrb[24].mxu0  ;;  %8195 = vmatmul.mubr.f32.gmra.mrb[18].mxu1 %v8927_v17 }
 0x317   : > { %8940 = vtanh.f32 %v3166_v37  ;;  %v3176_v12 = vadd.f32 %v7984_v28, %v11271_v30  ;;  %v3170_v49 = vpop.f32.mrb[25].mxu0  ;;  %8142 = vmatmul.mubr.f32.gmra.mrb[130].mxu0 %v8929_v0 }
 0x318   : > { %v8931_v15 = vpop.eup %8930  ;;  %v3171_v54 = vadd.f32 %v11271_v30, %v3170_v49  ;;  %4801 = vmatprep.mubr.f32.mxu0 %v13820_v58  ;;  %v4714_v49 = vld [vmem:[%s13502_s17 + $0xa8] sm:$0xff] }
 0x319   : > { %v8933_v59 = vpop.eup %8932  ;;  %8197 = vmatprep.mubr.f32.mxu1 %v8931_v15  ;;  %v4713_v15 = vld [vmem:[%s13502_s17 + $0xa0] sm:$0xff] }
 0x31a   : > { %8942 = vtanh.f32 %v3171_v54  ;;  %v7987_v5 = vpop.f32.mrb[26].mxu0  ;;  %8198 = vmatmul.mubr.f32.gmra.mrb[20].mxu1 %v8933_v59 }
 0x31b   : > { %8944 = vtanh.f32 %v3176_v12  ;;  %v3186_v44 = vadd.f32 %v7987_v5, %v11271_v30  ;;  %v3180_v39 = vpop.f32.mrb[27].mxu0  ;;  %v8556_v5 = vpack.c.bf16 %v4716_v57, %v4714_v49 }
 0x31c   : > { %v8935_v20 = vpop.eup %8934  ;;  %v3181_v4 = vadd.f32 %v11271_v30, %v3180_v39 }
 0x31d   : > { %v8937_v16 = vpop.eup %8936  ;;  %8200 = vmatprep.mubr.f32.mxu1 %v8935_v20  ;;  %8557 = vmatprep.subr.bf16.mxu0 %v8556_v5 }
 0x31e   : > { %8946 = vtanh.f32 %v3181_v4  ;;  %v7990_v61 = vpop.f32.mrb[28].mxu0  ;;  %8201 = vmatmul.mubr.f32.gmra.mrb[22].mxu1 %v8937_v16  ;;  %8573 = vmatprep.subr.bf16.mxu1 %v8556_v5  ;;  %v4724_v5 = vld [vmem:[%s13502_s17 + $0xf8] sm:$0xff] }
 0x31f   : > { %8948 = vtanh.f32 %v3186_v44  ;;  %v3196_v56 = vadd.f32 %v7990_v61, %v11271_v30  ;;  %v3190_v45 = vpop.f32.mrb[29].mxu0  ;;  %v4715_v44 = vld [vmem:[%s13502_s17 + $0xb0] sm:$0xff] }
 0x320   : > { %v8939_v33 = vpop.eup %8938  ;;  %v3191_v50 = vadd.f32 %v11271_v30, %v3190_v45  ;;  %v8558_v20 = vpack.c.bf16 %v4715_v44, %v4713_v15 }
 0x321   : > { %v8941_v38 = vpop.eup %8940  ;;  %8203 = vmatprep.mubr.f32.mxu1 %v8939_v33 }
 0x322   : > { %8950 = vtanh.f32 %v3191_v50  ;;  %v7993_v19 = vpop.f32.mrb[30].mxu0  ;;  %8204 = vmatmul.mubr.f32.gmra.mrb[24].mxu1 %v8941_v38  ;;  %8559 = vmatpush1.bf16.msra.mxu0 %v8558_v20 }
 0x323   : > { %8952 = vtanh.f32 %v3196_v56  ;;  %v3206_v26 = vadd.f32 %v7993_v19, %v11271_v30  ;;  %v3200_v31 = vpop.f32.mrb[31].mxu0  ;;  %8581 = vmatpush1.bf16.msra.mxu1 %v8558_v20 }
 0x324   : > { %v8943_v9 = vpop.eup %8942  ;;  %v3201_v25 = vadd.f32 %v11271_v30, %v3200_v31 }
 0x325   : > { %v8945_v60 = vpop.eup %8944  ;;  %8206 = vmatprep.mubr.f32.mxu1 %v8943_v9 }
 0x326   : > { %8954 = vtanh.f32 %v3201_v25  ;;  %v7996_v47 = vpop.f32.mrb[32].mxu0  ;;  %8207 = vmatmul.mubr.f32.gmra.mrb[26].mxu1 %v8945_v60 }
 0x327   : > { %8956 = vtanh.f32 %v3206_v26  ;;  %v3216_v42 = vadd.f32 %v7996_v47, %v11271_v30  ;;  %v3210_v2 = vpop.f32.mrb[33].mxu0 }
 0x328   : > { %v8947_v11 = vpop.eup %8946  ;;  %v3211_v13 = vadd.f32 %v11271_v30, %v3210_v2 }
 0x329   : > { %v8949_v52 = vpop.eup %8948  ;;  %8209 = vmatprep.mubr.f32.mxu1 %v8947_v11 }
 0x32a   : > { %8958 = vtanh.f32 %v3211_v13  ;;  %v7999_v46 = vpop.f32.mrb[34].mxu0  ;;  %8210 = vmatmul.mubr.f32.gmra.mrb[28].mxu1 %v8949_v52 }
 0x32b   : > { %8960 = vtanh.f32 %v3216_v42  ;;  %v3226_v63 = vadd.f32 %v7999_v46, %v11271_v30  ;;  %v3220_v40 = vpop.f32.mrb[35].mxu0 }
 0x32c   : > { %v8951_v14 = vpop.eup %8950  ;;  %v3221_v53 = vadd.f32 %v11271_v30, %v3220_v40 }
 0x32d   : > { %v8953_v41 = vpop.eup %8952  ;;  %8212 = vmatprep.mubr.f32.mxu1 %v8951_v14 }
 0x32e   : > { %8962 = vtanh.f32 %v3221_v53  ;;  %v8002_v3 = vpop.f32.mrb[36].mxu0  ;;  %8213 = vmatmul.mubr.f32.gmra.mrb[30].mxu1 %v8953_v41 }
 0x32f   : > { %8964 = vtanh.f32 %v3226_v63  ;;  %v3236_v34 = vadd.f32 %v8002_v3, %v11271_v30  ;;  %v3230_v48 = vpop.f32.mrb[37].mxu0 }
 0x330   : > { %v8955_v43 = vpop.eup %8954  ;;  %v3231_v6 = vadd.f32 %v11271_v30, %v3230_v48 }
 0x331   : > { %v8957_v27 = vpop.eup %8956  ;;  %8215 = vmatprep.mubr.f32.mxu1 %v8955_v43 }
 0x332   : > { %8966 = vtanh.f32 %v3231_v6  ;;  %v8005_v10 = vpop.f32.mrb[38].mxu0  ;;  %8216 = vmatmul.mubr.f32.gmra.mrb[32].mxu1 %v8957_v27 }
 0x333   : > { %8968 = vtanh.f32 %v3236_v34  ;;  %v3246_v23 = vadd.f32 %v8005_v10, %v11271_v30  ;;  %v3240_v62 = vpop.f32.mrb[39].mxu0 }
 0x334   : > { %v8959_v51 = vpop.eup %8958  ;;  %v3241_v29 = vadd.f32 %v11271_v30, %v3240_v62 }
 0x335   : > { %v8961_v18 = vpop.eup %8960  ;;  %8218 = vmatprep.mubr.f32.mxu1 %v8959_v51 }
 0x336   : > { %8970 = vtanh.f32 %v3241_v29  ;;  %v8008_v35 = vpop.f32.mrb[40].mxu0  ;;  %8219 = vmatmul.mubr.f32.gmra.mrb[34].mxu1 %v8961_v18 }
 0x337   : > { %8972 = vtanh.f32 %v3246_v23  ;;  %v3256_v22 = vadd.f32 %v8008_v35, %v11271_v30  ;;  %v3250_v37 = vpop.f32.mrb[41].mxu0 }
 0x338   : > { %v8963_v8 = vpop.eup %8962  ;;  %v3251_v1 = vadd.f32 %v11271_v30, %v3250_v37 }
 0x339   : > { %v8965_v21 = vpop.eup %8964  ;;  %8221 = vmatprep.mubr.f32.mxu1 %v8963_v8  ;;  %v4718_v8 = vld [vmem:[%s13502_s17 + $0xc8] sm:$0xff] }
 0x33a   : > { %8974 = vtanh.f32 %v3251_v1  ;;  %v8011_v17 = vpop.f32.mrb[42].mxu0  ;;  %8222 = vmatmul.mubr.f32.gmra.mrb[36].mxu1 %v8965_v21  ;;  %v4720_v1 = vld [vmem:[%s13502_s17 + $0xd8] sm:$0xff]  ;;  %v4717_v21 = vld [vmem:[%s13502_s17 + $0xc0] sm:$0xff] }
 0x33b   : > { %8976 = vtanh.f32 %v3256_v22  ;;  %v3266_v24 = vadd.f32 %v8011_v17, %v11271_v30  ;;  %v3260_v55 = vpop.f32.mrb[43].mxu0 }
 0x33c   : > { %v8967_v0 = vpop.eup %8966  ;;  %v3261_v28 = vadd.f32 %v11271_v30, %v3260_v55  ;;  %v4719_v55 = vld [vmem:[%s13502_s17 + $0xd0] sm:$0xff] }
 0x33d   : > { %v8969_v32 = vpop.eup %8968  ;;  %8224 = vmatprep.mubr.f32.mxu1 %v8967_v0 }
 0x33e   : > { %8978 = vtanh.f32 %v3261_v28  ;;  %v8014_v36 = vpop.f32.mrb[44].mxu0  ;;  %8225 = vmatmul.mubr.f32.gmra.mrb[38].mxu1 %v8969_v32  ;;  %v8562_v28 = vpack.c.bf16 %v4719_v55, %v4717_v21 }
 0x33f   : > { %8980 = vtanh.f32 %v3266_v24  ;;  %v3276_v7 = vadd.f32 %v8014_v36, %v11271_v30  ;;  %v3270_v12 = vpop.f32.mrb[45].mxu0  ;;  %v8560_v24 = vpack.c.bf16 %v4720_v1, %v4718_v8 }
 0x340   : > { %v8971_v54 = vpop.eup %8970  ;;  %v3271_v59 = vadd.f32 %v11271_v30, %v3270_v12 }
 0x341   : > { %v8973_v39 = vpop.eup %8972  ;;  %8227 = vmatprep.mubr.f32.mxu1 %v8971_v54  ;;  %8561 = vmatprep.subr.bf16.mxu0 %v8560_v24 }
 0x342   : > { %8982 = vtanh.f32 %v3271_v59  ;;  %v8017_v4 = vpop.f32.mrb[46].mxu0  ;;  %8228 = vmatmul.mubr.f32.gmra.mrb[40].mxu1 %v8973_v39  ;;  %8574 = vmatprep.subr.bf16.mxu1 %v8560_v24  ;;  %v4722_v59 = vld [vmem:[%s13502_s17 + $0xe8] sm:$0xff] }
 0x343   : > { %8984 = vtanh.f32 %v3276_v7  ;;  %v3286_v16 = vadd.f32 %v8017_v4, %v11271_v30  ;;  %v3280_v61 = vpop.f32.mrb[47].mxu0  ;;  %8563 = vmatpush1.bf16.msra.mxu0 %v8562_v28  ;;  %8582 = vmatpush1.bf16.msra.mxu1 %v8562_v28  ;;  %v8564_v20 = vpack.c.bf16 %v4724_v5, %v4722_v59  ;;  %v4721_v4 = vld [vmem:[%s13502_s17 + $0xe0] sm:$0xff] }
 0x344   : > { %v8975_v56 = vpop.eup %8974  ;;  %v3281_v45 = vadd.f32 %v11271_v30, %v3280_v61 }
 0x345   : > { %v8977_v33 = vpop.eup %8976  ;;  %8230 = vmatprep.mubr.f32.mxu1 %v8975_v56  ;;  %8565 = vmatprep.subr.bf16.mxu0 %v8564_v20 }
 0x346   : > { %8986 = vtanh.f32 %v3281_v45  ;;  %v8020_v50 = vpop.f32.mrb[48].mxu0  ;;  %8231 = vmatmul.mubr.f32.gmra.mrb[42].mxu1 %v8977_v33  ;;  %8575 = vmatprep.subr.bf16.mxu1 %v8564_v20 }
 0x347   : > { %8988 = vtanh.f32 %v3286_v16  ;;  %v3296_v38 = vadd.f32 %v8020_v50, %v11271_v30  ;;  %v3290_v19 = vpop.f32.mrb[49].mxu0  ;;  %v4723_v16 = vld [vmem:[%s13502_s17 + $0xf0] sm:$0xff] }
 0x348   : > { %v8979_v26 = vpop.eup %8978  ;;  %v3291_v31 = vadd.f32 %v11271_v30, %v3290_v19  ;;  %v8566_v56 = vpack.c.bf16 %v4723_v16, %v4721_v4 }
 0x349   : > { %v8981_v9 = vpop.eup %8980  ;;  %8233 = vmatprep.mubr.f32.mxu1 %v8979_v26 }
 0x34a   : > { %8990 = vtanh.f32 %v3291_v31  ;;  %v8023_v25 = vpop.f32.mrb[50].mxu0  ;;  %8234 = vmatmul.mubr.f32.gmra.mrb[44].mxu1 %v8981_v9  ;;  %8567 = vmatpush1.bf16.msra.mxu0 %v8566_v56 }
 0x34b   : > { %8992 = vtanh.f32 %v3296_v38  ;;  %v3306_v60 = vadd.f32 %v8023_v25, %v11271_v30  ;;  %v3300_v47 = vpop.f32.mrb[51].mxu0  ;;  %8583 = vmatpush1.bf16.msra.mxu1 %v8566_v56 }
 0x34c   : > { %v8983_v42 = vpop.eup %8982  ;;  %v3301_v2 = vadd.f32 %v11271_v30, %v3300_v47 }
 0x34d   : > { %v8985_v11 = vpop.eup %8984  ;;  %8236 = vmatprep.mubr.f32.mxu1 %v8983_v42 }
 0x34e   : > { %8994 = vtanh.f32 %v3301_v2  ;;  %v8026_v13 = vpop.f32.mrb[52].mxu0  ;;  %8237 = vmatmul.mubr.f32.gmra.mrb[46].mxu1 %v8985_v11 }
 0x34f   : > { %8996 = vtanh.f32 %v3306_v60  ;;  %v3316_v52 = vadd.f32 %v8026_v13, %v11271_v30  ;;  %v3310_v46 = vpop.f32.mrb[53].mxu0 }
 0x350   : > { %v8987_v63 = vpop.eup %8986  ;;  %v3311_v40 = vadd.f32 %v11271_v30, %v3310_v46 }
 0x351   : > { %v8989_v14 = vpop.eup %8988  ;;  %8239 = vmatprep.mubr.f32.mxu1 %v8987_v63 }
 0x352   : > { %8998 = vtanh.f32 %v3311_v40  ;;  %v8029_v53 = vpop.f32.mrb[54].mxu0  ;;  %8240 = vmatmul.mubr.f32.gmra.mrb[48].mxu1 %v8989_v14 }
 0x353   : > { %9000 = vtanh.f32 %v3316_v52  ;;  %v3326_v41 = vadd.f32 %v8029_v53, %v11271_v30  ;;  %v3320_v3 = vpop.f32.mrb[55].mxu0 }
 0x354   : > { %v8991_v34 = vpop.eup %8990  ;;  %v3321_v48 = vadd.f32 %v11271_v30, %v3320_v3 }
 0x355   : > { %v8993_v43 = vpop.eup %8992  ;;  %8242 = vmatprep.mubr.f32.mxu1 %v8991_v34 }
 0x356   : > { %9002 = vtanh.f32 %v3321_v48  ;;  %v8032_v6 = vpop.f32.mrb[56].mxu0  ;;  %8243 = vmatmul.mubr.f32.gmra.mrb[50].mxu1 %v8993_v43 }
 0x357   : > { %9004 = vtanh.f32 %v3326_v41  ;;  %v3336_v27 = vadd.f32 %v8032_v6, %v11271_v30  ;;  %v3330_v10 = vpop.f32.mrb[57].mxu0 }
 0x358   : > { %v8995_v23 = vpop.eup %8994  ;;  %v3331_v62 = vadd.f32 %v11271_v30, %v3330_v10 }
 0x359   : > { %v8997_v51 = vpop.eup %8996  ;;  %8245 = vmatprep.mubr.f32.mxu1 %v8995_v23 }
 0x35a   : > { %9006 = vtanh.f32 %v3331_v62  ;;  %v8035_v29 = vpop.f32.mrb[58].mxu0  ;;  %8246 = vmatmul.mubr.f32.gmra.mrb[52].mxu1 %v8997_v51  ;;  %v11478_v51 = vld [vmem:[%s13499_s14] ss:$0 sm:$0xff] }
 0x35b   : > { %9008 = vtanh.f32 %v3336_v27  ;;  %v3346_v18 = vadd.f32 %v8035_v29, %v11271_v30  ;;  %v3340_v35 = vpop.f32.mrb[59].mxu0 }
 0x35c   : > { %v8999_v22 = vpop.eup %8998  ;;  %v3341_v37 = vadd.f32 %v11271_v30, %v3340_v35 }
 0x35d   : > { %v9001_v17 = vpop.eup %9000  ;;  %8248 = vmatprep.mubr.f32.mxu1 %v8999_v22 }
 0x35e   : > { %9010 = vtanh.f32 %v3341_v37  ;;  %v8038_v0 = vpop.f32.mrb[60].mxu0  ;;  %8249 = vmatmul.mubr.f32.gmra.mrb[54].mxu1 %v9001_v17 }
 0x35f   : > { %9012 = vtanh.f32 %v3346_v18  ;;  %v3356_v32 = vadd.f32 %v8038_v0, %v11271_v30  ;;  %v3350_v36 = vpop.f32.mrb[61].mxu0 }
 0x360   : > { %v9003_v7 = vpop.eup %9002  ;;  %v3351_v12 = vadd.f32 %v11271_v30, %v3350_v36 }
 0x361   : > { %v9005_v49 = vpop.eup %9004  ;;  %8251 = vmatprep.mubr.f32.mxu1 %v9003_v7 }
 0x362   : > { %9014 = vtanh.f32 %v3351_v12  ;;  %v8041_v57 = vpop.f32.mrb[62].mxu0  ;;  %8252 = vmatmul.mubr.f32.gmra.mrb[56].mxu1 %v9005_v49 }
 0x363   : > { %9016 = vtanh.f32 %v3356_v32  ;;  %v3366_v15 = vadd.f32 %v8041_v57, %v11271_v30  ;;  %v3360_v54 = vpop.f32.mrb[63].mxu0 }
 0x364   : > { %v9007_v44 = vpop.eup %9006  ;;  %v3361_v39 = vadd.f32 %v11271_v30, %v3360_v54 }
 0x365   : > { %v9009_v61 = vpop.eup %9008  ;;  %8254 = vmatprep.mubr.f32.mxu1 %v9007_v44 }
 0x366   : > { %9018 = vtanh.f32 %v3361_v39  ;;  %v8044_v45 = vpop.f32.mrb[64].mxu0  ;;  %8255 = vmatmul.mubr.f32.gmra.mrb[58].mxu1 %v9009_v61 }
 0x367   : > { %9020 = vtanh.f32 %v3366_v15  ;;  %v3376_v33 = vadd.f32 %v8044_v45, %v11271_v30  ;;  %v3370_v50 = vpop.f32.mrb[65].mxu0 }
 0x368   : > { %v9011_v38 = vpop.eup %9010  ;;  %v3371_v19 = vadd.f32 %v11271_v30, %v3370_v50 }
 0x369   : > { %v9013_v26 = vpop.eup %9012  ;;  %8257 = vmatprep.mubr.f32.mxu1 %v9011_v38 }
 0x36a   : > { %9022 = vtanh.f32 %v3371_v19  ;;  %v8047_v31 = vpop.f32.mrb[66].mxu0  ;;  %8258 = vmatmul.mubr.f32.gmra.mrb[60].mxu1 %v9013_v26 }
 0x36b   : > { %9024 = vtanh.f32 %v3376_v33  ;;  %v3386_v9 = vadd.f32 %v8047_v31, %v11271_v30  ;;  %v3380_v25 = vpop.f32.mrb[67].mxu0 }
 0x36c   : > { %v9015_v60 = vpop.eup %9014  ;;  %v3381_v47 = vadd.f32 %v11271_v30, %v3380_v25 }
 0x36d   : > { %v9017_v42 = vpop.eup %9016  ;;  %8260 = vmatprep.mubr.f32.mxu1 %v9015_v60 }
 0x36e   : > { %9026 = vtanh.f32 %v3381_v47  ;;  %v8050_v2 = vpop.f32.mrb[68].mxu0  ;;  %8261 = vmatmul.mubr.f32.gmra.mrb[62].mxu1 %v9017_v42 }
 0x36f   : > { %9028 = vtanh.f32 %v3386_v9  ;;  %v3396_v11 = vadd.f32 %v8050_v2, %v11271_v30  ;;  %v3390_v13 = vpop.f32.mrb[69].mxu0 }
 0x370   : > { %v9019_v52 = vpop.eup %9018  ;;  %v3391_v46 = vadd.f32 %v11271_v30, %v3390_v13 }
 0x371   : > { %v9021_v63 = vpop.eup %9020  ;;  %8263 = vmatprep.mubr.f32.mxu1 %v9019_v52 }
 0x372   : > { %9030 = vtanh.f32 %v3391_v46  ;;  %v8053_v40 = vpop.f32.mrb[70].mxu0  ;;  %8264 = vmatmul.mubr.f32.gmra.mrb[64].mxu1 %v9021_v63 }
 0x373   : > { %9032 = vtanh.f32 %v3396_v11  ;;  %v3406_v14 = vadd.f32 %v8053_v40, %v11271_v30  ;;  %v3400_v53 = vpop.f32.mrb[71].mxu0 }
 0x374   : > { %v9023_v41 = vpop.eup %9022  ;;  %v3401_v3 = vadd.f32 %v11271_v30, %v3400_v53 }
 0x375   : > { %v9025_v34 = vpop.eup %9024  ;;  %8266 = vmatprep.mubr.f32.mxu1 %v9023_v41 }
 0x376   : > { %9034 = vtanh.f32 %v3401_v3  ;;  %v8056_v48 = vpop.f32.mrb[72].mxu0  ;;  %8267 = vmatmul.mubr.f32.gmra.mrb[66].mxu1 %v9025_v34 }
 0x377   : > { %9036 = vtanh.f32 %v3406_v14  ;;  %v3416_v43 = vadd.f32 %v8056_v48, %v11271_v30  ;;  %v3410_v6 = vpop.f32.mrb[73].mxu0 }
 0x378   : > { %v9027_v27 = vpop.eup %9026  ;;  %v3411_v10 = vadd.f32 %v11271_v30, %v3410_v6 }
 0x379   : > { %v9029_v23 = vpop.eup %9028  ;;  %8269 = vmatprep.mubr.f32.mxu1 %v9027_v27 }
 0x37a   : > { %9038 = vtanh.f32 %v3411_v10  ;;  %v8059_v62 = vpop.f32.mrb[74].mxu0  ;;  %8270 = vmatmul.mubr.f32.gmra.mrb[68].mxu1 %v9029_v23 }
 0x37b   : > { %9040 = vtanh.f32 %v3416_v43  ;;  %v3426_v29 = vadd.f32 %v11478_v51, %v8059_v62  ;;  %v3420_v18 = vpop.f32.mrb[75].mxu0 }
 0x37c   : > { %v9031_v35 = vpop.eup %9030  ;;  %v3421_v22 = vadd.f32 %v11478_v51, %v3420_v18 }
 0x37d   : > { %v9033_v37 = vpop.eup %9032  ;;  %8272 = vmatprep.mubr.f32.mxu1 %v9031_v35 }
 0x37e   : > { %9042 = vtanh.f32 %v3421_v22  ;;  %v8062_v30 = vpop.f32.mrb[76].mxu0  ;;  %8273 = vmatmul.mubr.f32.gmra.mrb[70].mxu1 %v9033_v37 }
 0x37f   : > { %9044 = vtanh.f32 %v3426_v29  ;;  %v3436_v8 = vadd.f32 %v11478_v51, %v8062_v30  ;;  %v3430_v1 = vpop.f32.mrb[77].mxu0 }
 0x380   : > { %v9035_v21 = vpop.eup %9034  ;;  %v3431_v17 = vadd.f32 %v11478_v51, %v3430_v1 }
 0x381   : > { %v9037_v24 = vpop.eup %9036  ;;  %8275 = vmatprep.mubr.f32.mxu1 %v9035_v21 }
 0x382   : > { %9046 = vtanh.f32 %v3431_v17  ;;  %v8065_v55 = vpop.f32.mrb[78].mxu0  ;;  %8276 = vmatmul.mubr.f32.gmra.mrb[72].mxu1 %v9037_v24  ;;  %v956_v24 = vld [vmem:[%s13495_s10] sm:$0x3] }
 0x383   : > { %9048 = vtanh.f32 %v3436_v8  ;;  %v3446_v0 = vadd.f32 %v11478_v51, %v8065_v55  ;;  %v3440_v28 = vpop.f32.mrb[79].mxu0  ;;  %v9486_v55 = vmov 1966171168  }
 0x384   : > { %v9039_v32 = vpop.eup %9038  ;;  %v3441_v36 = vadd.f32 %v11478_v51, %v3440_v28 }
 0x385   : > { %v9041_v7 = vpop.eup %9040  ;;  %8278 = vmatprep.mubr.f32.mxu1 %v9039_v32 }
 0x386   : > { %9050 = vtanh.f32 %v3441_v36  ;;  %v8068_v12 = vpop.f32.mrb[80].mxu0  ;;  %8279 = vmatmul.mubr.f32.gmra.mrb[74].mxu1 %v9041_v7 }
 0x387   : > { %9052 = vtanh.f32 %v3446_v0  ;;  %v3456_v49 = vadd.f32 %v11478_v51, %v8068_v12  ;;  %v3450_v57 = vpop.f32.mrb[81].mxu0  ;;  %v5577_v0 = vunpack.c.l.s4 %v9486_v55 }
 0x388   : > { %v9043_v15 = vpop.eup %9042  ;;  %v3451_v54 = vadd.f32 %v11478_v51, %v3450_v57 }
 0x389   : > { %v9045_v59 = vpop.eup %9044  ;;  %8281 = vmatprep.mubr.f32.mxu1 %v9043_v15 }
 0x38a   : > { %9054 = vtanh.f32 %v3451_v54  ;;  %v8071_v5 = vpop.f32.mrb[82].mxu0  ;;  %8282 = vmatmul.mubr.f32.gmra.mrb[76].mxu1 %v9045_v59  ;;  %v13827_v54 = vld [vmem:[#allocation115_spill] sm:$0xff] }
 0x38b   : > { %9056 = vtanh.f32 %v3456_v49  ;;  %v3466_v44 = vadd.f32 %v11478_v51, %v8071_v5  ;;  %v3460_v39 = vpop.f32.mrb[83].mxu0  ;;  %v13826_v49 = vld [vmem:[#allocation114_spill] sm:$0xff]  ;;  %v965_v59 = vrot.slane %v956_v24, %v13827_v54  ;;  %v5578_v5 = vunpack.c.0.s8 %v5577_v0 }
 0x38c   : > { %v9047_v20 = vpop.eup %9046  ;;  %v3461_v4 = vadd.f32 %v11478_v51, %v3460_v39  ;;  %v961_v57 = vrot.slane %v956_v24, %v13826_v49 }
 0x38d   : > { %v9049_v16 = vpop.eup %9048  ;;  %8284 = vmatprep.mubr.f32.mxu1 %v9047_v20 }
 0x38e   : > { %9058 = vtanh.f32 %v3461_v4  ;;  %v8074_v61 = vpop.f32.mrb[84].mxu0  ;;  %8285 = vmatmul.mubr.f32.gmra.mrb[78].mxu1 %v9049_v16 }
 0x38f   : > { %9060 = vtanh.f32 %v3466_v44  ;;  %v3476_v56 = vadd.f32 %v11478_v51, %v8074_v61  ;;  %v3470_v45 = vpop.f32.mrb[85].mxu0 }
 0x390   : > { %v9051_v33 = vpop.eup %9050  ;;  %v3471_v50 = vadd.f32 %v11478_v51, %v3470_v45 }
 0x391   : > { %v9053_v38 = vpop.eup %9052  ;;  %8287 = vmatprep.mubr.f32.mxu1 %v9051_v33 }
 0x392   : > { %9062 = vtanh.f32 %v3471_v50  ;;  %v8077_v19 = vpop.f32.mrb[86].mxu0  ;;  %8288 = vmatmul.mubr.f32.gmra.mrb[80].mxu1 %v9053_v38  ;;  %v13828_v50 = vld [vmem:[#allocation111_spill] sm:$0xff] }
 0x393   : > { %9064 = vtanh.f32 %v3476_v56  ;;  %v3486_v26 = vadd.f32 %v11478_v51, %v8077_v19  ;;  %v3480_v31 = vpop.f32.mrb[87].mxu0  ;;  %v11518_v38 = vsub.s32 %v5578_v5, %v13828_v50 }
 0x394   : > { %v9055_v9 = vpop.eup %9054  ;;  %v3481_v25 = vadd.f32 %v11478_v51, %v3480_v31 }
 0x395   : > { %v9057_v60 = vpop.eup %9056  ;;  %8290 = vmatprep.mubr.f32.mxu1 %v9055_v9 }
 0x396   : > { %9066 = vtanh.f32 %v3481_v25  ;;  %v8080_v47 = vpop.f32.mrb[88].mxu0  ;;  %8291 = vmatmul.mubr.f32.gmra.mrb[82].mxu1 %v9057_v60 }
 0x397   : > { %9068 = vtanh.f32 %v3486_v26  ;;  %v3496_v42 = vadd.f32 %v11478_v51, %v8080_v47  ;;  %v3490_v2 = vpop.f32.mrb[89].mxu0 }
 0x398   : > { %v9059_v11 = vpop.eup %9058  ;;  %v3491_v13 = vadd.f32 %v11478_v51, %v3490_v2 }
 0x399   : > { %v9061_v52 = vpop.eup %9060  ;;  %8293 = vmatprep.mubr.f32.mxu1 %v9059_v11 }
 0x39a   : > { %9070 = vtanh.f32 %v3491_v13  ;;  %v8083_v46 = vpop.f32.mrb[90].mxu0  ;;  %8294 = vmatmul.mubr.f32.gmra.mrb[84].mxu1 %v9061_v52 }
 0x39b   : > { %9072 = vtanh.f32 %v3496_v42  ;;  %v3506_v63 = vadd.f32 %v11478_v51, %v8083_v46  ;;  %v3500_v40 = vpop.f32.mrb[91].mxu0 }
 0x39c   : > { %v9063_v14 = vpop.eup %9062  ;;  %v3501_v53 = vadd.f32 %v11478_v51, %v3500_v40 }
 0x39d   : > { %v9065_v41 = vpop.eup %9064  ;;  %8296 = vmatprep.mubr.f32.mxu1 %v9063_v14 }
 0x39e   : > { %9074 = vtanh.f32 %v3501_v53  ;;  %v8086_v3 = vpop.f32.mrb[92].mxu0  ;;  %8297 = vmatmul.mubr.f32.gmra.mrb[86].mxu1 %v9065_v41 }
 0x39f   : > { %9076 = vtanh.f32 %v3506_v63  ;;  %v3516_v34 = vadd.f32 %v11478_v51, %v8086_v3  ;;  %v3510_v48 = vpop.f32.mrb[93].mxu0 }
 0x3a0   : > { %v9067_v43 = vpop.eup %9066  ;;  %v3511_v6 = vadd.f32 %v11478_v51, %v3510_v48 }
 0x3a1   : > { %v9069_v27 = vpop.eup %9068  ;;  %8299 = vmatprep.mubr.f32.mxu1 %v9067_v43 }
 0x3a2   : > { %9078 = vtanh.f32 %v3511_v6  ;;  %v8089_v10 = vpop.f32.mrb[94].mxu0  ;;  %8300 = vmatmul.mubr.f32.gmra.mrb[88].mxu1 %v9069_v27 }
 0x3a3   : > { %9080 = vtanh.f32 %v3516_v34  ;;  %v3526_v23 = vadd.f32 %v11478_v51, %v8089_v10  ;;  %v3520_v62 = vpop.f32.mrb[95].mxu0 }
 0x3a4   : > { %v9071_v29 = vpop.eup %9070  ;;  %v3521_v18 = vadd.f32 %v11478_v51, %v3520_v62 }
 0x3a5   : > { %v9073_v35 = vpop.eup %9072  ;;  %8302 = vmatprep.mubr.f32.mxu1 %v9071_v29 }
 0x3a6   : > { %9082 = vtanh.f32 %v3521_v18  ;;  %v8092_v22 = vpop.f32.mrb[96].mxu0  ;;  %8303 = vmatmul.mubr.f32.gmra.mrb[90].mxu1 %v9073_v35 }
 0x3a7   : > { %9084 = vtanh.f32 %v3526_v23  ;;  %v3536_v37 = vadd.f32 %v11478_v51, %v8092_v22  ;;  %v3530_v30 = vpop.f32.mrb[97].mxu0 }
 0x3a8   : > { %v9075_v8 = vpop.eup %9074  ;;  %v3531_v1 = vadd.f32 %v11478_v51, %v3530_v30 }
 0x3a9   : > { %v9077_v21 = vpop.eup %9076  ;;  %8305 = vmatprep.mubr.f32.mxu1 %v9075_v8 }
 0x3aa   : > { %9086 = vtanh.f32 %v3531_v1  ;;  %v8095_v17 = vpop.f32.mrb[98].mxu0  ;;  %8306 = vmatmul.mubr.f32.gmra.mrb[92].mxu1 %v9077_v21 }
 0x3ab   : > { %9088 = vtanh.f32 %v3536_v37  ;;  %v3546_v28 = vadd.f32 %v11478_v51, %v8095_v17  ;;  %v3540_v32 = vpop.f32.mrb[99].mxu0 }
 0x3ac   : > { %v9079_v36 = vpop.eup %9078  ;;  %v3541_v7 = vadd.f32 %v11478_v51, %v3540_v32 }
 0x3ad   : > { %v9081_v12 = vpop.eup %9080  ;;  %8308 = vmatprep.mubr.f32.mxu1 %v9079_v36 }
 0x3ae   : > { %9090 = vtanh.f32 %v3541_v7  ;;  %v8098_v15 = vpop.f32.mrb[100].mxu0  ;;  %8309 = vmatmul.mubr.f32.gmra.mrb[94].mxu1 %v9081_v12 }
 0x3af   : > { %9092 = vtanh.f32 %v3546_v28  ;;  %v3556_v44 = vadd.f32 %v11478_v51, %v8098_v15  ;;  %v3550_v39 = vpop.f32.mrb[101].mxu0 }
 0x3b0   : > { %v9083_v20 = vpop.eup %9082  ;;  %v3551_v4 = vadd.f32 %v11478_v51, %v3550_v39  ;;  %v1034_v16 = vpop.f32.mrb[2].mxu1 }
 0x3b1   : > { %v9085_v61 = vpop.eup %9084  ;;  %v11513_v56 = vadd.f32 %v1034_v16, %v961_v57  ;;  %8311 = vmatprep.mubr.f32.mxu1 %v9083_v20  ;;  %v1036_v45 = vpop.f32.mrb[3].mxu1 }
 0x3b2   : > { %9094 = vtanh.f32 %v3551_v4  ;;  %v11515_v33 = vadd.f32 %v1036_v45, %v965_v59  ;;  %v8101_v19 = vpop.f32.mrb[102].mxu0  ;;  %8312 = vmatmul.mubr.f32.gmra.mrb[96].mxu1 %v9085_v61 }
 0x3b3   : > { %9096 = vtanh.f32 %v3556_v44  ;;  %v3566_v26 = vadd.f32 %v11478_v51, %v8101_v19  ;;  %v3560_v31 = vpop.f32.mrb[103].mxu0 }
 0x3b4   : > { %v9087_v9 = vpop.eup %9086  ;;  %v5574_v25 = vcombine.low %v11513_v56, %v11515_v33  ;;  %v5575_v60 = vcombine.high %v11513_v56, %v11515_v33  ;;  %v3561_v47 = vadd.f32 %v11478_v51, %v3560_v31  ;;  %v1040_v42 = vpop.f32.mrb[4].mxu1  ;;  %v11560_v31 = vld [vmem:[%s13501_s16] ss:$0 sm:$0xff] }
 0x3b5   : > { %v9089_v2 = vpop.eup %9088  ;;  %v1041_v11 = vadd.f32 %v1040_v42, %v961_v57  ;;  %8314 = vmatprep.mubr.f32.mxu1 %v9087_v9  ;;  %v1042_v13 = vpop.f32.mrb[5].mxu1 }
 0x3b6   : > { %v5589_v52 = vrot.slane %v5575_v60, %v11518_v38  ;;  %9098 = vtanh.f32 %v3561_v47  ;;  %v1043_v46 = vadd.f32 %v1042_v13, %v965_v59  ;;  %v8104_v63 = vpop.f32.mrb[104].mxu0  ;;  %8315 = vmatmul.mubr.f32.gmra.mrb[98].mxu1 %v9089_v2 }
 0x3b7   : > { %9100 = vtanh.f32 %v3566_v26  ;;  %v3570_v40 = vpop.f32.mrb[105].mxu0  ;;  %v3576_v27 = vadd.f32 %v11478_v51, %v8104_v63 }
 0x3b8   : > { %v9091_v14 = vpop.eup %9090  ;;  %v5591_v53 = vcombine.high %v5589_v52, %v5589_v52  ;;  %v11528_v41 = vrot.slane %v5589_v52, %v11518_v38  ;;  %v5624_v34 = vcombine.low %v1041_v11, %v1043_v46  ;;  %v5625_v48 = vcombine.high %v1041_v11, %v1043_v46 }
 0x3b9   : > { %v9093_v3 = vpop.eup %9092  ;;  %8317 = vmatprep.mubr.f32.mxu1 %v9091_v14  ;;  %v3571_v62 = vadd.f32 %v11478_v51, %v3570_v40  ;;  %9102 = vtanh.f32 %v3576_v27 }
 0x3ba   : > { %v11531_v43 = vrot.slane %v5591_v53, %v11518_v38  ;;  %v8107_v6 = vpop.f32.mrb[106].mxu0  ;;  %8318 = vmatmul.mubr.f32.gmra.mrb[100].mxu1 %v9093_v3  ;;  %v5632_v35 = vrot.slane %v5624_v34, %v11518_v38  ;;  %v5639_v22 = vrot.slane %v5625_v48, %v11518_v38 }
 0x3bb   : > { %v3580_v10 = vpop.f32.mrb[107].mxu0  ;;  %9104 = vtanh.f32 %v3571_v62  ;;  %v3586_v7 = vadd.f32 %v11478_v51, %v8107_v6 }
 0x3bc   : > { %v9095_v23 = vpop.eup %9094  ;;  %v5640_v1 = vcombine.high %v5632_v35, %v5632_v35  ;;  %v5641_v21 = vcombine.high %v5639_v22, %v5639_v22  ;;  %v11538_v17 = vrot.slane %v5632_v35, %v11518_v38  ;;  %v11541_v24 = vrot.slane %v5639_v22, %v11518_v38 }
 0x3bd   : > { %v9097_v29 = vpop.eup %9096  ;;  %8320 = vmatprep.mubr.f32.mxu1 %v9095_v23  ;;  %v3581_v36 = vadd.f32 %v11478_v51, %v3580_v10 }
 0x3be   : > { %v8110_v18 = vpop.f32.mrb[108].mxu0  ;;  %8321 = vmatmul.mubr.f32.gmra.mrb[102].mxu1 %v9097_v29  ;;  %v11544_v0 = vrot.slane %v5640_v1, %v11518_v38  ;;  %v11547_v28 = vrot.slane %v5641_v21, %v11518_v38 }
 0x3bf   : > { %v3590_v37 = vpop.f32.mrb[109].mxu0  ;;  %9106 = vtanh.f32 %v3581_v36  ;;  %v3596_v5 = vadd.f32 %v11478_v51, %v8110_v18 }
 0x3c0   : > { %v9099_v30 = vpop.eup %9098  ;;  %v3591_v12 = vadd.f32 %v11478_v51, %v3590_v37  ;;  %9108 = vtanh.f32 %v3586_v7 }
 0x3c1   : > { %v9101_v8 = vpop.eup %9100  ;;  %8323 = vmatprep.mubr.f32.mxu1 %v9099_v30 }
 0x3c2   : > { %v8113_v55 = vpop.f32.mrb[110].mxu0  ;;  %8324 = vmatmul.mubr.f32.gmra.mrb[104].mxu1 %v9101_v8  ;;  %9110 = vtanh.f32 %v3591_v12 }
 0x3c3   : > { %v3600_v32 = vpop.f32.mrb[111].mxu0  ;;  %v9103_v59 = vpop.eup %9102  ;;  %v3606_v61 = vadd.f32 %v11478_v51, %v8113_v55 }
 0x3c4   : > { %v3601_v44 = vadd.f32 %v11478_v51, %v3600_v32 }
 0x3c5   : > { %v9105_v39 = vpop.eup %9104 }
 0x3c6   : > { %v8116_v57 = vpop.f32.mrb[112].mxu0  ;;  %8326 = vmatprep.mubr.f32.mxu1 %v9105_v39  ;;  %9112 = vtanh.f32 %v3601_v44 }
 0x3c7   : > { %v3610_v15 = vpop.f32.mrb[113].mxu0  ;;  %8327 = vmatmul.mubr.f32.gmra.mrb[106].mxu1 %v9103_v59  ;;  %9114 = vtanh.f32 %v3596_v5  ;;  %v3616_v9 = vadd.f32 %v11478_v51, %v8116_v57 }
 0x3c8   : > { %v3611_v16 = vadd.f32 %v11478_v51, %v3610_v15 }
 0x3c9   : > { %v9107_v47 = vpop.eup %9106 }
 0x3ca   : > { %v8119_v20 = vpop.f32.mrb[114].mxu0  ;;  %9116 = vtanh.f32 %v3611_v16  ;;  %v9109_v11 = vpop.eup %9108  ;;  %8329 = vmatprep.mubr.f32.mxu1 %v9107_v47 }
 0x3cb   : > { %v3620_v4 = vpop.f32.mrb[115].mxu0  ;;  %9118 = vtanh.f32 %v3606_v61  ;;  %8330 = vmatmul.mubr.f32.gmra.mrb[108].mxu1 %v9109_v11  ;;  %v3626_v40 = vadd.f32 %v11478_v51, %v8119_v20 }
 0x3cc   : > { %v3621_v26 = vadd.f32 %v11478_v51, %v3620_v4  ;;  %v9111_v46 = vpop.eup %9110 }
 0x3cd   : > { %8332 = vmatprep.mubr.f32.mxu1 %v9111_v46 }
 0x3ce   : > { %v8122_v45 = vpop.f32.mrb[116].mxu0  ;;  %9120 = vtanh.f32 %v3621_v26 }
 0x3cf   : > { %v3630_v19 = vpop.f32.mrb[117].mxu0  ;;  %9122 = vtanh.f32 %v3616_v9  ;;  %v3636_v23 = vadd.f32 %v11478_v51, %v8122_v45 }
 0x3d0   : > { %v3631_v63 = vadd.f32 %v11478_v51, %v3630_v19  ;;  %v9113_v53 = vpop.eup %9112 }
 0x3d1   : > { %v8178_v60 = vpop.f32.mrb[6].mxu1  ;;  %v9115_v6 = vpop.eup %9114 }
 0x3d2   : > { %v8125_v42 = vpop.f32.mrb[118].mxu0  ;;  %v3926_v2 = vpop.f32.mrb[7].mxu1  ;;  %v3932_v3 = vadd.f32 %v8178_v60, %v11560_v31  ;;  %8333 = vmatmul.mubr.f32.gmra.mrb[110].mxu1 %v9115_v6 }
 0x3d3   : > { %v3927_v13 = vadd.f32 %v11560_v31, %v3926_v2  ;;  %v3640_v52 = vpop.f32.mrb[119].mxu0  ;;  %8335 = vmatprep.mubr.f32.mxu1 %v9113_v53  ;;  %v3646_v1 = vadd.f32 %v11478_v51, %v8125_v42 }
 0x3d4   : > { %v3641_v10 = vadd.f32 %v11478_v51, %v3640_v52  ;;  %v9117_v29 = vpop.eup %9116 }
 0x3d5   : > { %v8181_v14 = vpop.f32.mrb[8].mxu1  ;;  %9124 = vtanh.f32 %v3927_v13  ;;  %v9119_v37 = vpop.eup %9118 }
 0x3d6   : > { %v8128_v34 = vpop.f32.mrb[120].mxu0  ;;  %v3936_v48 = vpop.f32.mrb[9].mxu1  ;;  %9126 = vtanh.f32 %v3631_v63  ;;  %8336 = vmatmul.mubr.f32.gmra.mrb[112].mxu1 %v9119_v37  ;;  %v3942_v32 = vadd.f32 %v8181_v14, %v11560_v31 }
 0x3d7   : > { %v3650_v27 = vpop.f32.mrb[121].mxu0  ;;  %9128 = vtanh.f32 %v3626_v40  ;;  %v3937_v18 = vadd.f32 %v11560_v31, %v3936_v48  ;;  %8338 = vmatprep.mubr.f32.mxu1 %v9117_v29  ;;  %v3656_v5 = vadd.f32 %v11478_v51, %v8128_v34 }
 0x3d8   : > { %9130 = vtanh.f32 %v3932_v3  ;;  %v3651_v8 = vadd.f32 %v11478_v51, %v3650_v27  ;;  %v9121_v55 = vpop.eup %9120 }
 0x3d9   : > { %v8184_v62 = vpop.f32.mrb[10].mxu1  ;;  %9132 = vtanh.f32 %v3641_v10  ;;  %v9123_v12 = vpop.eup %9122 }
 0x3da   : > { %v8131_v35 = vpop.f32.mrb[122].mxu0  ;;  %v3946_v22 = vpop.f32.mrb[11].mxu1  ;;  %9134 = vtanh.f32 %v3636_v23  ;;  %8339 = vmatmul.mubr.f32.gmra.mrb[114].mxu1 %v9123_v12  ;;  %v3952_v42 = vadd.f32 %v8184_v62, %v11560_v31 }
 0x3db   : > { %v3660_v30 = vpop.f32.mrb[123].mxu0  ;;  %9136 = vtanh.f32 %v3937_v18  ;;  %8341 = vmatprep.mubr.f32.mxu1 %v9121_v55  ;;  %v3947_v20 = vadd.f32 %v11560_v31, %v3946_v22  ;;  %v3666_v9 = vadd.f32 %v11478_v51, %v8131_v35 }
 0x3dc   : > { %9138 = vtanh.f32 %v3651_v8  ;;  %v3661_v59 = vadd.f32 %v11478_v51, %v3660_v30 }
 0x3dd   : > { %v11572_v21 = vpop.f32.mrb[12].mxu1  ;;  %9140 = vtanh.f32 %v3646_v1 }
 0x3de   : > { %v8134_v36 = vpop.f32.mrb[124].mxu0  ;;  %v3956_v7 = vpop.f32.mrb[13].mxu1  ;;  %9142 = vtanh.f32 %v3942_v32  ;;  %v3962_v35 = vadd.f32 %v11572_v21, %v11560_v31 }
 0x3df   : > { %v3670_v57 = vpop.f32.mrb[125].mxu0  ;;  %v9125_v15 = vpop.eup %9124  ;;  %9144 = vtanh.f32 %v3661_v59  ;;  %v3676_v40 = vadd.f32 %v11478_v51, %v8134_v36  ;;  %v3957_v3 = vadd.f32 %v11560_v31, %v3956_v7 }
 0x3e0   : > { %4802 = vmatmul.mubr.f32.vlgmr.msra.gmra.mrb[132].mxu0 %v9125_v15  ;;  %v9127_v39 = vpop.eup %9126  ;;  %v3671_v26 = vadd.f32 %v11478_v51, %v3670_v57  ;;  %9146 = vtanh.f32 %v3656_v5 }
 0x3e1   : > { %v11577_v44 = vpop.f32.mrb[14].mxu1  ;;  %4807 = vmatprep.mubr.f32.mxu0 %v13820_v58  ;;  %v9129_v61 = vpop.eup %9128  ;;  %9148 = vtanh.f32 %v3947_v20 }
 0x3e2   : > { %v8137_v4 = vpop.f32.mrb[126].mxu0  ;;  %v11580_v16 = vpop.f32.mrb[15].mxu1  ;;  %8342 = vmatmul.mubr.f32.gmra.mrb[116].mxu1 %v9129_v61  ;;  %9150 = vtanh.f32 %v3671_v26  ;;  %v3972_v5 = vadd.f32 %v11577_v44, %v11560_v31 }
 0x3e3   : > { %v3680_v45 = vpop.f32.mrb[127].mxu0  ;;  %v9131_v19 = vpop.eup %9130  ;;  %8344 = vmatprep.mubr.f32.mxu1 %v9127_v39  ;;  %9152 = vtanh.f32 %v3666_v9  ;;  %v3686_v62 = vadd.f32 %v11478_v51, %v8137_v4  ;;  %v3967_v21 = vadd.f32 %v11560_v31, %v11580_v16 }
 0x3e4   : > { %4808 = vmatmul.mubr.f32.gmra.mrb[134].mxu0 %v9131_v19  ;;  %v9133_v47 = vpop.eup %9132  ;;  %v3681_v63 = vadd.f32 %v11478_v51, %v3680_v45  ;;  %9154 = vtanh.f32 %v3952_v42 }
 0x3e5   : > { %v11585_v60 = vpop.f32.mrb[16].mxu1  ;;  %4813 = vmatprep.mubr.f32.mxu0 %v13820_v58  ;;  %v9135_v13 = vpop.eup %9134 }
 0x3e6   : > { %v8140_v2 = vpop.f32.mrb[128].mxu0  ;;  %v11588_v11 = vpop.f32.mrb[17].mxu1  ;;  %8345 = vmatmul.mubr.f32.gmra.mrb[118].mxu1 %v9135_v13  ;;  %9156 = vtanh.f32 %v3681_v63 }
 0x3e7   : > { %v3690_v52 = vpop.f32.mrb[129].mxu0  ;;  %v9137_v46 = vpop.eup %9136  ;;  %8347 = vmatprep.mubr.f32.mxu1 %v9133_v47  ;;  %9158 = vtanh.f32 %v3676_v40  ;;  %v3696_v1 = vadd.f32 %v11478_v51, %v8140_v2  ;;  %v3977_v61 = vadd.f32 %v11560_v31, %v11588_v11  ;;  %v3982_v47 = vadd.f32 %v11585_v60, %v11560_v31 }
 0x3e8   : > { %4814 = vmatmul.mubr.f32.gmra.mrb[136].mxu0 %v9137_v46  ;;  %v9139_v53 = vpop.eup %9138  ;;  %v3691_v23 = vadd.f32 %v11478_v51, %v3690_v52  ;;  %9160 = vtanh.f32 %v3957_v3 }
 0x3e9   : > { %v11593_v14 = vpop.f32.mrb[18].mxu1  ;;  %4819 = vmatprep.mubr.f32.mxu0 %v13820_v58  ;;  %v9141_v6 = vpop.eup %9140 }
 0x3ea   : > { %v8143_v34 = vpop.f32.mrb[130].mxu0  ;;  %v11596_v48 = vpop.f32.mrb[19].mxu1  ;;  %8348 = vmatmul.mubr.f32.gmra.mrb[120].mxu1 %v9141_v6  ;;  %9162 = vtanh.f32 %v3691_v23 }
 0x3eb   : > { %v3700_v27 = vpop.f32.mrb[131].mxu0  ;;  %v9143_v10 = vpop.eup %9142  ;;  %8350 = vmatprep.mubr.f32.mxu1 %v9139_v53  ;;  %9164 = vtanh.f32 %v3686_v62  ;;  %v3706_v57 = vadd.f32 %v11478_v51, %v8143_v34  ;;  %v3987_v52 = vadd.f32 %v11560_v31, %v11596_v48  ;;  %v3992_v53 = vadd.f32 %v11593_v14, %v11560_v31 }
 0x3ec   : > { %4820 = vmatmul.mubr.f32.gmra.mrb[138].mxu0 %v9143_v10  ;;  %v9145_v18 = vpop.eup %9144  ;;  %v3701_v8 = vadd.f32 %v11478_v51, %v3700_v27  ;;  %9166 = vtanh.f32 %v3962_v35 }
 0x3ed   : > { %v11601_v29 = vpop.f32.mrb[20].mxu1  ;;  %4825 = vmatprep.mubr.f32.mxu0 %v13820_v58  ;;  %v9147_v37 = vpop.eup %9146 }
 0x3ee   : > { %v11605_v22 = vpop.f32.mrb[21].mxu1  ;;  %v9149_v30 = vpop.eup %9148  ;;  %8351 = vmatmul.mubr.f32.gmra.mrb[122].mxu1 %v9147_v37  ;;  %9168 = vtanh.f32 %v3701_v8  ;;  %v4002_v23 = vadd.f32 %v11601_v29, %v11560_v31 }
 0x3ef   : > { %8353 = vmatprep.mubr.f32.mxu1 %v9145_v18  ;;  %v9151_v32 = vpop.eup %9150  ;;  %9170 = vtanh.f32 %v3696_v1  ;;  %v3997_v6 = vadd.f32 %v11560_v31, %v11605_v22 }
 0x3f0   : > { %4826 = vmatmul.mubr.f32.gmra.mrb[140].mxu0 %v9149_v30  ;;  %v9153_v7 = vpop.eup %9152  ;;  %9172 = vtanh.f32 %v3967_v21 }
 0x3f1   : > { %v11610_v55 = vpop.f32.mrb[22].mxu1  ;;  %4831 = vmatprep.mubr.f32.mxu0 %v13820_v58  ;;  %v9155_v12 = vpop.eup %9154  ;;  %9174 = vtanh.f32 %v3706_v57 }
 0x3f2   : > { %v11614_v36 = vpop.f32.mrb[23].mxu1  ;;  %8354 = vmatmul.mubr.f32.gmra.mrb[124].mxu1 %v9153_v7  ;;  %v9157_v59 = vpop.eup %9156  ;;  %9176 = vtanh.f32 %v3972_v5  ;;  %v4012_v8 = vadd.f32 %v11610_v55, %v11560_v31 }
 0x3f3   : > { %8356 = vmatprep.mubr.f32.mxu1 %v9151_v32  ;;  %v9159_v20 = vpop.eup %9158  ;;  %9178 = vtanh.f32 %v3977_v61  ;;  %v4007_v22 = vadd.f32 %v11560_v31, %v11614_v36 }
 0x3f4   : > { %4832 = vmatmul.mubr.f32.gmra.mrb[142].mxu0 %v9155_v12  ;;  %v9161_v4 = vpop.eup %9160  ;;  %9180 = vtanh.f32 %v3982_v47 }
 0x3f5   : > { %v11618_v15 = vpop.f32.mrb[24].mxu1  ;;  %4837 = vmatprep.mubr.f32.mxu0 %v13820_v58  ;;  %v9163_v16 = vpop.eup %9162  ;;  %9182 = vtanh.f32 %v3987_v52 }
 0x3f6   : > { %v11622_v39 = vpop.f32.mrb[25].mxu1  ;;  %8357 = vmatmul.mubr.f32.gmra.mrb[126].mxu1 %v9159_v20  ;;  %v9165_v44 = vpop.eup %9164  ;;  %9184 = vtanh.f32 %v3992_v53  ;;  %v4022_v57 = vadd.f32 %v11618_v15, %v11560_v31 }
 0x3f7   : > { %8359 = vmatprep.mubr.f32.mxu1 %v9157_v59  ;;  %v9167_v19 = vpop.eup %9166  ;;  %9186 = vtanh.f32 %v3997_v6  ;;  %v4017_v36 = vadd.f32 %v11560_v31, %v11622_v39 }
 0x3f8   : > { %4838 = vmatmul.mubr.f32.gmra.mrb[144].mxu0 %v9161_v4  ;;  %v9169_v9 = vpop.eup %9168  ;;  %9188 = vtanh.f32 %v4002_v23 }
 0x3f9   : > { %v11625_v51 = vpop.f32.mrb[26].mxu1  ;;  %4843 = vmatprep.mubr.f32.mxu0 %v13820_v58  ;;  %v9171_v2 = vpop.eup %9170  ;;  %9190 = vtanh.f32 %v4007_v22 }
 0x3fa   : > { %v11629_v45 = vpop.f32.mrb[27].mxu1  ;;  %8360 = vmatmul.mubr.f32.gmra.mrb[128].mxu1 %v9165_v44  ;;  %v9173_v11 = vpop.eup %9172  ;;  %9192 = vtanh.f32 %v4012_v8  ;;  %v4032_v61 = vadd.f32 %v11625_v51, %v11560_v31 }
 0x3fb   : > { %8362 = vmatprep.mubr.f32.mxu1 %v9163_v16  ;;  %v9175_v60 = vpop.eup %9174  ;;  %9194 = vtanh.f32 %v4017_v36  ;;  %v4027_v39 = vadd.f32 %v11560_v31, %v11629_v45 }
 0x3fc   : > { %4844 = vmatmul.mubr.f32.gmra.mrb[146].mxu0 %v9167_v19  ;;  %v9177_v63 = vpop.eup %9176  ;;  %9196 = vtanh.f32 %v4022_v57 }
 0x3fd   : > { %v11632_v26 = vpop.f32.mrb[28].mxu1  ;;  %4849 = vmatprep.mubr.f32.mxu0 %v13820_v58  ;;  %v9179_v34 = vpop.eup %9178  ;;  %9198 = vtanh.f32 %v4027_v39 }
 0x3fe   : > { %v11636_v42 = vpop.f32.mrb[29].mxu1  ;;  %8363 = vmatmul.mubr.f32.gmra.mrb[130].mxu1 %v9171_v2  ;;  %v9181_v10 = vpop.eup %9180  ;;  %9200 = vtanh.f32 %v4032_v61 }
 0x3ff   : > { %8365 = vmatprep.mubr.f32.mxu1 %v9169_v9  ;;  %v9183_v18 = vpop.eup %9182  ;;  %v4037_v45 = vadd.f32 %v11560_v31, %v11636_v42 }
 0x400   : > { %4850 = vmatmul.mubr.f32.gmra.mrb[148].mxu0 %v9173_v11  ;;  %v9185_v30 = vpop.eup %9184  ;;  %v4042_v11 = vadd.f32 %v11632_v26, %v11560_v31 }
 0x401   : > { %v11639_v13 = vpop.f32.mrb[30].mxu1  ;;  %4855 = vmatprep.mubr.f32.mxu0 %v13820_v58  ;;  %v9187_v32 = vpop.eup %9186  ;;  %9202 = vtanh.f32 %v4037_v45 }
 0x402   : > { %v11643_v46 = vpop.f32.mrb[31].mxu1  ;;  %8366 = vmatmul.mubr.f32.gmra.mrb[132].mxu1 %v9175_v60  ;;  %v9189_v12 = vpop.eup %9188  ;;  %9204 = vtanh.f32 %v4042_v11  ;;  %v4052_v6 = vadd.f32 %v11639_v13, %v11560_v31 }
 0x403   : > { %5203 = vmatprep.mubr.f32.mxu1 %v13820_v58  ;;  %v9191_v5 = vpop.eup %9190  ;;  %v4047_v42 = vadd.f32 %v11560_v31, %v11643_v46 }
 0x404   : > { %4856 = vmatmul.mubr.f32.gmra.mrb[150].mxu0 %v9177_v63  ;;  %v9193_v16 = vpop.eup %9192 }
 0x405   : > { %v11646_v40 = vpop.f32.mrb[32].mxu1  ;;  %4861 = vmatprep.mubr.f32.mxu0 %v13820_v58  ;;  %v9195_v19 = vpop.eup %9194  ;;  %9206 = vtanh.f32 %v4047_v42 }
 0x406   : > { %v11651_v3 = vpop.f32.mrb[33].mxu1  ;;  %v9197_v2 = vpop.eup %9196  ;;  %9208 = vtanh.f32 %v4052_v6  ;;  %v4062_v8 = vadd.f32 %v11646_v40, %v11560_v31 }
 0x407   : > { %v9199_v60 = vpop.eup %9198  ;;  %v4057_v46 = vadd.f32 %v11560_v31, %v11651_v3 }
 0x408   : > { %4862 = vmatmul.mubr.f32.gmra.mrb[152].mxu0 %v9179_v34  ;;  %v9201_v34 = vpop.eup %9200 }
 0x409   : > { %v11654_v48 = vpop.f32.mrb[34].mxu1  ;;  %4867 = vmatprep.mubr.f32.mxu0 %v13820_v58  ;;  %9210 = vtanh.f32 %v4057_v46 }
 0x40a   : > { %v11658_v27 = vpop.f32.mrb[35].mxu1  ;;  %9212 = vtanh.f32 %v4062_v8  ;;  %v4072_v39 = vadd.f32 %v11654_v48, %v11560_v31 }
 0x40b   : > { %v9203_v23 = vpop.eup %9202  ;;  %v4067_v3 = vadd.f32 %v11560_v31, %v11658_v27 }
 0x40c   : > { %4868 = vmatmul.mubr.f32.gmra.mrb[154].mxu0 %v9181_v10 }
 0x40d   : > { %v11661_v14 = vpop.f32.mrb[36].mxu1  ;;  %4873 = vmatprep.mubr.f32.mxu0 %v13820_v58  ;;  %9214 = vtanh.f32 %v4067_v3 }
 0x40e   : > { %v11665_v62 = vpop.f32.mrb[37].mxu1  ;;  %9216 = vtanh.f32 %v4072_v39  ;;  %v4082_v11 = vadd.f32 %v11661_v14, %v11560_v31 }
 0x40f   : > { %v4077_v27 = vadd.f32 %v11560_v31, %v11665_v62 }
 0x410   : > { %4874 = vmatmul.mubr.f32.gmra.mrb[156].mxu0 %v9183_v18 }
 0x411   : > { %v11668_v35 = vpop.f32.mrb[38].mxu1  ;;  %4879 = vmatprep.mubr.f32.mxu0 %v13820_v58  ;;  %9218 = vtanh.f32 %v4077_v27 }
 0x412   : > { %v11672_v37 = vpop.f32.mrb[39].mxu1  ;;  %9220 = vtanh.f32 %v4082_v11  ;;  %v4092_v46 = vadd.f32 %v11668_v35, %v11560_v31 }
 0x413   : > { %v4087_v62 = vadd.f32 %v11560_v31, %v11672_v37 }
 0x414   : > { %4880 = vmatmul.mubr.f32.gmra.mrb[158].mxu0 %v9185_v30  ;;  %v9205_v30 = vpop.eup %9204 }
 0x415   : > { %v11675_v29 = vpop.f32.mrb[40].mxu1  ;;  %4885 = vmatprep.mubr.f32.mxu0 %v13820_v58  ;;  %v9207_v36 = vpop.eup %9206  ;;  %9222 = vtanh.f32 %v4087_v62 }
 0x416   : > { %v11679_v1 = vpop.f32.mrb[41].mxu1 }
 0x417   : > { %v4097_v3 = vadd.f32 %v11560_v31, %v11679_v1 }
 0x418   : > { %4886 = vmatmul.mubr.f32.gmra.mrb[160].mxu0 %v9187_v32 }
 0x419   : > { %v11682_v21 = vpop.f32.mrb[42].mxu1  ;;  %4891 = vmatprep.mubr.f32.mxu0 %v13820_v58 }
 0x41a   : > { %v11686_v7 = vpop.f32.mrb[43].mxu1 }
 0x41c   : > { %4892 = vmatmul.mubr.f32.gmra.mrb[162].mxu0 %v9189_v12 }
 0x41d   : > { %v11689_v55 = vpop.f32.mrb[44].mxu1  ;;  %4897 = vmatprep.mubr.f32.mxu0 %v13820_v58 }
 0x41e   : > { %v11693_v59 = vpop.f32.mrb[45].mxu1 }
 0x420   : > { %4898 = vmatmul.mubr.f32.gmra.mrb[164].mxu0 %v9191_v5  ;;  %v9209_v5 = vpop.eup %9208 }
 0x421   : > { %v11696_v20 = vpop.f32.mrb[46].mxu1  ;;  %4903 = vmatprep.mubr.f32.mxu0 %v13820_v58  ;;  %v9211_v61 = vpop.eup %9210 }
 0x422   : > { %v11700_v4 = vpop.f32.mrb[47].mxu1 }
 0x424   : > { %4904 = vmatmul.mubr.f32.gmra.mrb[166].mxu0 %v9193_v16 }
 0x425   : > { %v11703_v15 = vpop.f32.mrb[48].mxu1  ;;  %4909 = vmatprep.mubr.f32.mxu0 %v13820_v58 }
 0x426   : > { %v11707_v44 = vpop.f32.mrb[49].mxu1 }
 0x428   : > { %4910 = vmatmul.mubr.f32.gmra.mrb[168].mxu0 %v9195_v19 }
 0x429   : > { %v11710_v9 = vpop.f32.mrb[50].mxu1  ;;  %4915 = vmatprep.mubr.f32.mxu0 %v13820_v58 }
 0x42a   : > { %v11714_v47 = vpop.f32.mrb[51].mxu1 }
 0x42c   : > { %4916 = vmatmul.mubr.f32.gmra.mrb[170].mxu0 %v9197_v2  ;;  %v9213_v2 = vpop.eup %9212 }
 0x42d   : > { %v11717_v51 = vpop.f32.mrb[52].mxu1  ;;  %4921 = vmatprep.mubr.f32.mxu0 %v13820_v58  ;;  %v9215_v42 = vpop.eup %9214 }
 0x42e   : > { %v11721_v52 = vpop.f32.mrb[53].mxu1 }
 0x430   : > { %4922 = vmatmul.mubr.f32.gmra.mrb[172].mxu0 %v9199_v60 }
 0x431   : > { %v11724_v63 = vpop.f32.mrb[54].mxu1  ;;  %4927 = vmatprep.mubr.f32.mxu0 %v13820_v58 }
 0x432   : > { %v11728_v53 = vpop.f32.mrb[55].mxu1 }
 0x434   : > { %4928 = vmatmul.mubr.f32.gmra.mrb[174].mxu0 %v9201_v34 }
 0x435   : > { %v11731_v26 = vpop.f32.mrb[56].mxu1  ;;  %4933 = vmatprep.mubr.f32.mxu0 %v13820_v58 }
 0x436   : > { %v11735_v10 = vpop.f32.mrb[57].mxu1 }
 0x438   : > { %4934 = vmatmul.mubr.f32.gmra.mrb[176].mxu0 %v9203_v23  ;;  %v9217_v23 = vpop.eup %9216 }
 0x439   : > { %v11738_v18 = vpop.f32.mrb[58].mxu1  ;;  %4939 = vmatprep.mubr.f32.mxu0 %v13820_v58 }
 0x43a   : > { %v11742_v22 = vpop.f32.mrb[59].mxu1 }
 0x43c   : > { %4940 = vmatmul.mubr.f32.gmra.mrb[178].mxu0 %v9205_v30 }
 0x43d   : > { %v11745_v13 = vpop.f32.mrb[60].mxu1  ;;  %4945 = vmatprep.mubr.f32.mxu0 %v13820_v58 }
 0x43e   : > { %v11749_v32 = vpop.f32.mrb[61].mxu1 }
 0x440   : > { %4946 = vmatmul.mubr.f32.gmra.mrb[180].mxu0 %v9207_v36  ;;  %v9219_v36 = vpop.eup %9218 }
 0x441   : > { %v11752_v12 = vpop.f32.mrb[62].mxu1  ;;  %4951 = vmatprep.mubr.f32.mxu0 %v13820_v58  ;;  %v9221_v39 = vpop.eup %9220 }
 0x442   : > { %v11756_v57 = vpop.f32.mrb[63].mxu1 }
 0x444   : > { %4952 = vmatmul.mubr.f32.gmra.mrb[182].mxu0 %v9209_v5 }
 0x445   : > { %v11759_v40 = vpop.f32.mrb[64].mxu1  ;;  %4957 = vmatprep.mubr.f32.mxu0 %v13820_v58 }
 0x446   : > { %v11763_v16 = vpop.f32.mrb[65].mxu1 }
 0x448   : > { %4958 = vmatmul.mubr.f32.gmra.mrb[184].mxu0 %v9211_v61 }
 0x449   : > { %v11766_v19 = vpop.f32.mrb[66].mxu1  ;;  %4963 = vmatprep.mubr.f32.mxu0 %v13820_v58 }
 0x44a   : > { %v11770_v45 = vpop.f32.mrb[67].mxu1 }
 0x44c   : > { %4964 = vmatmul.mubr.f32.gmra.mrb[186].mxu0 %v9213_v2  ;;  %v4102_v2 = vadd.f32 %v11675_v29, %v11560_v31 }
 0x44d   : > { %v11773_v48 = vpop.f32.mrb[68].mxu1  ;;  %4969 = vmatprep.mubr.f32.mxu0 %v13820_v58 }
 0x44e   : > { %v11777_v60 = vpop.f32.mrb[69].mxu1 }
 0x450   : > { %4970 = vmatmul.mubr.f32.gmra.mrb[188].mxu0 %v9215_v42  ;;  %v9223_v42 = vpop.eup %9222 }
 0x451   : > { %v11780_v34 = vpop.f32.mrb[70].mxu1  ;;  %4975 = vmatprep.mubr.f32.mxu0 %v13820_v58 }
 0x452   : > { %v11784_v6 = vpop.f32.mrb[71].mxu1 }
 0x454   : > { %4976 = vmatmul.mubr.f32.gmra.mrb[190].mxu0 %v9217_v23 }
 0x455   : > { %v8277_v14 = vpop.f32.mrb[72].mxu1  ;;  %4981 = vmatprep.mubr.f32.mxu0 %v13820_v58 }
 0x456   : > { %v4262_v30 = vadd.f32 %v8277_v14, %v11560_v31  ;;  %v11790_v8 = vpop.f32.mrb[73].mxu1  ;;  %v4107_v14 = vadd.f32 %v11560_v31, %v11686_v7 }
 0x458   : > { %9224 = vtanh.f32 %v4262_v30  ;;  %4982 = vmatmul.mubr.f32.gmra.mrb[192].mxu0 %v9219_v36 }
 0x459   : > { %v8280_v37 = vpop.f32.mrb[74].mxu1  ;;  %9226 = vtanh.f32 %v4092_v46  ;;  %4987 = vmatprep.mubr.f32.mxu0 %v13820_v58 }
 0x45a   : > { %v4266_v5 = vpop.f32.mrb[75].mxu1  ;;  %v4272_v61 = vadd.f32 %v8280_v37, %v11560_v31  ;;  %v4112_v37 = vadd.f32 %v11682_v21, %v11560_v31 }
 0x45b   : > { %v4267_v35 = vadd.f32 %v11560_v31, %v4266_v5 }
 0x45c   : > { %4988 = vmatmul.mubr.f32.gmra.mrb[194].mxu0 %v9221_v39 }
 0x45d   : > { %9228 = vtanh.f32 %v4267_v35  ;;  %v8283_v27 = vpop.f32.mrb[76].mxu1  ;;  %4993 = vmatprep.mubr.f32.mxu0 %v13820_v58 }
 0x45e   : > { %9230 = vtanh.f32 %v4097_v3  ;;  %v4276_v11 = vpop.f32.mrb[77].mxu1  ;;  %v4282_v30 = vadd.f32 %v8283_v27, %v11560_v31 }
 0x45f   : > { %9232 = vtanh.f32 %v4272_v61  ;;  %v4277_v1 = vadd.f32 %v11560_v31, %v4276_v11  ;;  %v4117_v61 = vadd.f32 %v11560_v31, %v11693_v59 }
 0x460   : > { %4994 = vmatmul.mubr.f32.gmra.mrb[196].mxu0 %v9223_v42  ;;  %9234 = vtanh.f32 %v4102_v2 }
 0x461   : > { %v8286_v62 = vpop.f32.mrb[78].mxu1  ;;  %4999 = vmatprep.mubr.f32.mxu0 %v13820_v58  ;;  %9236 = vtanh.f32 %v4277_v1  ;;  %v4122_v1 = vadd.f32 %v11689_v55, %v11560_v31 }
 0x462   : > { %v9225_v23 = vpop.eup %9224  ;;  %v4286_v46 = vpop.f32.mrb[79].mxu1  ;;  %9238 = vtanh.f32 %v4107_v14  ;;  %v4292_v11 = vadd.f32 %v8286_v62, %v11560_v31 }
 0x463   : > { %5204 = vmatmul.mubr.f32.vlgmr.msra.gmra.mrb[134].mxu1 %v9225_v23  ;;  %v9227_v29 = vpop.eup %9226  ;;  %9240 = vtanh.f32 %v4282_v30  ;;  %v4287_v35 = vadd.f32 %v11560_v31, %v4286_v46 }
 0x464   : > { %5209 = vmatprep.mubr.f32.mxu1 %v13820_v58  ;;  %5000 = vmatmul.mubr.f32.gmra.mrb[198].mxu0 %v9227_v29  ;;  %9242 = vtanh.f32 %v4112_v37  ;;  %v4127_v29 = vadd.f32 %v11560_v31, %v11700_v4 }
 0x465   : > { %v8289_v36 = vpop.f32.mrb[80].mxu1  ;;  %5005 = vmatprep.mubr.f32.mxu0 %v13820_v58  ;;  %9244 = vtanh.f32 %v4287_v35 }
 0x466   : > { %v4296_v3 = vpop.f32.mrb[81].mxu1  ;;  %9246 = vtanh.f32 %v4117_v61 }
 0x467   : > { %v9229_v7 = vpop.eup %9228  ;;  %9248 = vtanh.f32 %v4292_v11  ;;  %v4297_v46 = vadd.f32 %v11560_v31, %v4296_v3 }
 0x468   : > { %v9231_v5 = vpop.eup %9230  ;;  %5210 = vmatmul.mubr.f32.gmra.mrb[136].mxu1 %v9229_v7  ;;  %9250 = vtanh.f32 %v4122_v1  ;;  %v4302_v7 = vadd.f32 %v8289_v36, %v11560_v31 }
 0x469   : > { %5006 = vmatmul.mubr.f32.gmra.mrb[200].mxu0 %v9231_v5  ;;  %v8292_v39 = vpop.f32.mrb[82].mxu1  ;;  %5215 = vmatprep.mubr.f32.mxu1 %v13820_v58  ;;  %v9233_v21 = vpop.eup %9232  ;;  %9252 = vtanh.f32 %v4297_v46  ;;  %v4132_v5 = vadd.f32 %v11696_v20, %v11560_v31  ;;  %v4137_v20 = vadd.f32 %v11560_v31, %v11707_v44 }
 0x46a   : > { %v4306_v27 = vpop.f32.mrb[83].mxu1  ;;  %5011 = vmatprep.mubr.f32.mxu0 %v13820_v58  ;;  %v9235_v2 = vpop.eup %9234  ;;  %9254 = vtanh.f32 %v4127_v29 }
 0x46b   : > { %v9237_v59 = vpop.eup %9236  ;;  %9256 = vtanh.f32 %v4302_v7  ;;  %v4307_v36 = vadd.f32 %v11560_v31, %v4306_v27 }
 0x46c   : > { %5216 = vmatmul.mubr.f32.gmra.mrb[138].mxu1 %v9233_v21  ;;  %v9239_v14 = vpop.eup %9238  ;;  %9258 = vtanh.f32 %v4132_v5 }
 0x46d   : > { %5012 = vmatmul.mubr.f32.gmra.mrb[202].mxu0 %v9235_v2  ;;  %v11816_v42 = vpop.f32.mrb[84].mxu1  ;;  %5221 = vmatprep.mubr.f32.mxu1 %v13820_v58  ;;  %v9241_v30 = vpop.eup %9240  ;;  %9260 = vtanh.f32 %v4307_v36 }
 0x46e   : > { %v4316_v23 = vpop.f32.mrb[85].mxu1  ;;  %5017 = vmatprep.mubr.f32.mxu0 %v13820_v58  ;;  %v9243_v37 = vpop.eup %9242  ;;  %9262 = vtanh.f32 %v4137_v20 }
 0x46f   : > { %v9245_v35 = vpop.eup %9244 }
 0x470   : > { %5222 = vmatmul.mubr.f32.gmra.mrb[140].mxu1 %v9237_v59  ;;  %v9247_v61 = vpop.eup %9246  ;;  %v4312_v59 = vadd.f32 %v8292_v39, %v11560_v31  ;;  %v4317_v39 = vadd.f32 %v11560_v31, %v4316_v23 }
 0x471   : > { %5018 = vmatmul.mubr.f32.gmra.mrb[204].mxu0 %v9239_v14  ;;  %v11823_v62 = vpop.f32.mrb[86].mxu1  ;;  %5227 = vmatprep.mubr.f32.mxu1 %v13820_v58  ;;  %v9249_v11 = vpop.eup %9248  ;;  %v4142_v14 = vadd.f32 %v11703_v15, %v11560_v31  ;;  %v4147_v15 = vadd.f32 %v11560_v31, %v11714_v47 }
 0x472   : > { %v11828_v55 = vpop.f32.mrb[87].mxu1  ;;  %5023 = vmatprep.mubr.f32.mxu0 %v13820_v58  ;;  %v9251_v1 = vpop.eup %9250  ;;  %9264 = vtanh.f32 %v4312_v59 }
 0x473   : > { %v9253_v46 = vpop.eup %9252  ;;  %9266 = vtanh.f32 %v4142_v14 }
 0x474   : > { %5228 = vmatmul.mubr.f32.gmra.mrb[142].mxu1 %v9241_v30  ;;  %v9255_v29 = vpop.eup %9254  ;;  %9268 = vtanh.f32 %v4317_v39 }
 0x475   : > { %5024 = vmatmul.mubr.f32.gmra.mrb[206].mxu0 %v9243_v37  ;;  %v11832_v3 = vpop.f32.mrb[88].mxu1  ;;  %5233 = vmatprep.mubr.f32.mxu1 %v13820_v58  ;;  %v9257_v7 = vpop.eup %9256  ;;  %9270 = vtanh.f32 %v4147_v15 }
 0x476   : > { %v11837_v4 = vpop.f32.mrb[89].mxu1  ;;  %5029 = vmatprep.mubr.f32.mxu0 %v13820_v58  ;;  %v9259_v5 = vpop.eup %9258 }
 0x477   : > { %v9261_v36 = vpop.eup %9260 }
 0x478   : > { %5234 = vmatmul.mubr.f32.gmra.mrb[144].mxu1 %v9245_v35  ;;  %v4322_v35 = vadd.f32 %v11816_v42, %v11560_v31  ;;  %v9263_v20 = vpop.eup %9262  ;;  %v4327_v42 = vadd.f32 %v11560_v31, %v11828_v55 }
 0x479   : > { %5030 = vmatmul.mubr.f32.gmra.mrb[208].mxu0 %v9247_v61  ;;  %v11841_v21 = vpop.f32.mrb[90].mxu1  ;;  %5239 = vmatprep.mubr.f32.mxu1 %v13820_v58  ;;  %v4152_v61 = vadd.f32 %v11710_v9, %v11560_v31  ;;  %v4157_v9 = vadd.f32 %v11560_v31, %v11721_v52 }
 0x47a   : > { %v11846_v2 = vpop.f32.mrb[91].mxu1  ;;  %5035 = vmatprep.mubr.f32.mxu0 %v13820_v58  ;;  %9272 = vtanh.f32 %v4322_v35 }
 0x47b   : > { %9274 = vtanh.f32 %v4152_v61 }
 0x47c   : > { %5240 = vmatmul.mubr.f32.gmra.mrb[146].mxu1 %v9249_v11  ;;  %v9265_v59 = vpop.eup %9264  ;;  %9276 = vtanh.f32 %v4327_v42 }
 0x47d   : > { %5036 = vmatmul.mubr.f32.gmra.mrb[210].mxu0 %v9251_v1  ;;  %v11850_v27 = vpop.f32.mrb[92].mxu1  ;;  %5245 = vmatprep.mubr.f32.mxu1 %v13820_v58  ;;  %v9267_v14 = vpop.eup %9266  ;;  %9278 = vtanh.f32 %v4157_v9 }
 0x47e   : > { %v11855_v44 = vpop.f32.mrb[93].mxu1  ;;  %5041 = vmatprep.mubr.f32.mxu0 %v13820_v58  ;;  %v9269_v39 = vpop.eup %9268 }
 0x47f   : > { %v9271_v15 = vpop.eup %9270 }
 0x480   : > { %5246 = vmatmul.mubr.f32.gmra.mrb[148].mxu1 %v9253_v46  ;;  %v4332_v46 = vadd.f32 %v11823_v62, %v11560_v31  ;;  %v4337_v62 = vadd.f32 %v11560_v31, %v11837_v4 }
 0x481   : > { %5042 = vmatmul.mubr.f32.gmra.mrb[212].mxu0 %v9255_v29  ;;  %v11859_v30 = vpop.f32.mrb[94].mxu1  ;;  %5251 = vmatprep.mubr.f32.mxu1 %v13820_v58  ;;  %v4162_v29 = vadd.f32 %v11717_v51, %v11560_v31  ;;  %v4167_v51 = vadd.f32 %v11560_v31, %v11728_v53 }
 0x482   : > { %v11864_v37 = vpop.f32.mrb[95].mxu1  ;;  %5047 = vmatprep.mubr.f32.mxu0 %v13820_v58  ;;  %9280 = vtanh.f32 %v4332_v46 }
 0x483   : > { %9282 = vtanh.f32 %v4162_v29 }
 0x484   : > { %5252 = vmatmul.mubr.f32.gmra.mrb[150].mxu1 %v9257_v7  ;;  %v9273_v35 = vpop.eup %9272  ;;  %9284 = vtanh.f32 %v4337_v62 }
 0x485   : > { %5048 = vmatmul.mubr.f32.gmra.mrb[214].mxu0 %v9259_v5  ;;  %v11869_v23 = vpop.f32.mrb[96].mxu1  ;;  %5257 = vmatprep.mubr.f32.mxu1 %v13820_v58  ;;  %v9275_v61 = vpop.eup %9274  ;;  %9286 = vtanh.f32 %v4167_v51 }
 0x486   : > { %v11874_v47 = vpop.f32.mrb[97].mxu1  ;;  %5053 = vmatprep.mubr.f32.mxu0 %v13820_v58  ;;  %v9277_v42 = vpop.eup %9276 }
 0x487   : > { %v9279_v9 = vpop.eup %9278 }
 0x488   : > { %5258 = vmatmul.mubr.f32.gmra.mrb[152].mxu1 %v9261_v36  ;;  %v4342_v36 = vadd.f32 %v11832_v3, %v11560_v31  ;;  %v11920_v3 = vld [vmem:[%s13501_s16] ss:$0 sm:$0xff] }
 0x489   : > { %5054 = vmatmul.mubr.f32.gmra.mrb[216].mxu0 %v9263_v20  ;;  %v11879_v11 = vpop.f32.mrb[98].mxu1  ;;  %5263 = vmatprep.mubr.f32.mxu1 %v13820_v58  ;;  %v4172_v20 = vadd.f32 %v11724_v63, %v11560_v31  ;;  %v4177_v31 = vadd.f32 %v11920_v3, %v11735_v10  ;;  %v4352_v46 = vadd.f32 %v11920_v3, %v11841_v21 }
 0x48a   : > { %v11884_v1 = vpop.f32.mrb[99].mxu1  ;;  %5059 = vmatprep.mubr.f32.mxu0 %v13820_v58  ;;  %9288 = vtanh.f32 %v4342_v36  ;;  %v4357_v21 = vadd.f32 %v11920_v3, %v11855_v44  ;;  %v4192_v44 = vadd.f32 %v11920_v3, %v11738_v18  ;;  %v4197_v18 = vadd.f32 %v11920_v3, %v11749_v32 }
 0x48b   : > { %9290 = vtanh.f32 %v4172_v20  ;;  %v4202_v32 = vadd.f32 %v11920_v3, %v11745_v13  ;;  %v4377_v13 = vadd.f32 %v11920_v3, %v11874_v47 }
 0x48c   : > { %5264 = vmatmul.mubr.f32.gmra.mrb[154].mxu1 %v9265_v59  ;;  %v4347_v59 = vadd.f32 %v11920_v3, %v11846_v2  ;;  %v9281_v63 = vpop.eup %9280  ;;  %v4182_v2 = vadd.f32 %v11920_v3, %v11731_v26  ;;  %v4187_v26 = vadd.f32 %v11920_v3, %v11742_v22 }
 0x48d   : > { %5060 = vmatmul.mubr.f32.gmra.mrb[218].mxu0 %v9267_v14  ;;  %v11889_v55 = vpop.f32.mrb[100].mxu1  ;;  %5269 = vmatprep.mubr.f32.mxu1 %v13820_v58  ;;  %v9283_v14 = vpop.eup %9282 }
 0x48e   : > { %v11894_v52 = vpop.f32.mrb[101].mxu1  ;;  %5065 = vmatprep.mubr.f32.mxu0 %v13820_v58  ;;  %9292 = vtanh.f32 %v4347_v59  ;;  %v9285_v29 = vpop.eup %9284 }
 0x48f   : > { %9294 = vtanh.f32 %v4177_v31 }
 0x490   : > { %5270 = vmatmul.mubr.f32.gmra.mrb[156].mxu1 %v9269_v39  ;;  %v9287_v39 = vpop.eup %9286  ;;  %9296 = vtanh.f32 %v4352_v46 }
 0x491   : > { %5066 = vmatmul.mubr.f32.gmra.mrb[220].mxu0 %v9271_v15  ;;  %v11899_v7 = vpop.f32.mrb[102].mxu1  ;;  %5275 = vmatprep.mubr.f32.mxu1 %v13820_v58  ;;  %9298 = vtanh.f32 %v4182_v2 }
 0x492   : > { %v11904_v5 = vpop.f32.mrb[103].mxu1  ;;  %5071 = vmatprep.mubr.f32.mxu0 %v13820_v58  ;;  %9300 = vtanh.f32 %v4357_v21 }
 0x493   : > { %9302 = vtanh.f32 %v4187_v26 }
 0x494   : > { %5276 = vmatmul.mubr.f32.gmra.mrb[158].mxu1 %v9273_v35  ;;  %v9289_v62 = vpop.eup %9288  ;;  %v4362_v35 = vadd.f32 %v11920_v3, %v11850_v27  ;;  %v4367_v27 = vadd.f32 %v11920_v3, %v11864_v37  ;;  %v11968_v37 = vrot.slane %v5574_v25, %v11518_v38 }
 0x495   : > { %5072 = vmatmul.mubr.f32.gmra.mrb[222].mxu0 %v9275_v61  ;;  %v11909_v4 = vpop.f32.mrb[104].mxu1  ;;  %5281 = vmatprep.mubr.f32.mxu1 %v13820_v58  ;;  %v9291_v51 = vpop.eup %9290 }
 0x496   : > { %v11914_v53 = vpop.f32.mrb[105].mxu1  ;;  %5077 = vmatprep.mubr.f32.mxu0 %v13820_v58  ;;  %9304 = vtanh.f32 %v4362_v35 }
 0x497   : > { %9306 = vtanh.f32 %v4192_v44 }
 0x498   : > { %5282 = vmatmul.mubr.f32.gmra.mrb[160].mxu1 %v9277_v42  ;;  %v9293_v61 = vpop.eup %9292  ;;  %9308 = vtanh.f32 %v4367_v27  ;;  %v4212_v27 = vadd.f32 %v11920_v3, %v11752_v12  ;;  %v4387_v12 = vadd.f32 %v11920_v3, %v11884_v1 }
 0x499   : > { %5078 = vmatmul.mubr.f32.gmra.mrb[224].mxu0 %v9279_v9  ;;  %5287 = vmatprep.mubr.f32.mxu1 %v13820_v58  ;;  %v9295_v36 = vpop.eup %9294  ;;  %9310 = vtanh.f32 %v4197_v18 }
 0x49a   : > { %5083 = vmatprep.mubr.f32.mxu0 %v13820_v58  ;;  %v11934_v10 = vpop.f32.mrb[106].mxu1  ;;  %v9297_v42 = vpop.eup %9296 }
 0x49b   : > { %v11936_v15 = vpop.f32.mrb[107].mxu1  ;;  %v9299_v59 = vpop.eup %9298 }
 0x49c   : > { %5288 = vmatmul.mubr.f32.gmra.mrb[162].mxu1 %v9281_v63  ;;  %v4372_v63 = vadd.f32 %v11920_v3, %v11859_v30  ;;  %v9301_v56 = vpop.eup %9300  ;;  %v11985_v30 = vrot.slane %v11968_v37, %v11518_v38 }
 0x49d   : > { %5084 = vmatmul.mubr.f32.gmra.mrb[226].mxu0 %v9283_v14  ;;  %5293 = vmatprep.mubr.f32.mxu1 %v13820_v58  ;;  %v4725_v14 = vld [vmem:[%s13503_s18] sm:$0x3]  ;;  %v9303_v25 = vpop.eup %9302 }
 0x49e   : > { %5089 = vmatprep.mubr.f32.mxu0 %v13820_v58  ;;  %v11950_v22 = vpop.f32.mrb[108].mxu1  ;;  %9312 = vtanh.f32 %v4372_v63  ;;  %v11990_v2 = vrot.slane %v4725_v14, %v13826_v49  ;;  %v12005_v35 = vrot.slane %v11985_v30, %v13826_v49 }
 0x49f   : > { %v11952_v20 = vpop.f32.mrb[109].mxu1  ;;  %9314 = vtanh.f32 %v4202_v32 }
 0x4a0   : > { %5294 = vmatmul.mubr.f32.gmra.mrb[164].mxu1 %v9285_v29  ;;  %v4207_v29 = vadd.f32 %v11920_v3, %v11756_v57  ;;  %v9305_v21 = vpop.eup %9304  ;;  %v4382_v57 = vadd.f32 %v11920_v3, %v11869_v23  ;;  %9316 = vtanh.f32 %v4377_v13 }
 0x4a1   : > { %5090 = vmatmul.mubr.f32.gmra.mrb[228].mxu0 %v9287_v39  ;;  %5299 = vmatprep.mubr.f32.mxu1 %v13820_v58  ;;  %v11997_v39 = vrot.slane %v4725_v14, %v13827_v54 }
 0x4a2   : > { %5095 = vmatprep.mubr.f32.mxu0 %v13820_v58  ;;  %9318 = vtanh.f32 %v4207_v29  ;;  %v4217_v29 = vadd.f32 %v11920_v3, %v11763_v16  ;;  %v4392_v16 = vadd.f32 %v11920_v3, %v11879_v11 }
 0x4a3   : > { %9320 = vtanh.f32 %v4382_v57 }
 0x4a4   : > { %5300 = vmatmul.mubr.f32.gmra.mrb[166].mxu1 %v9289_v62  ;;  %v9307_v62 = vpop.eup %9306  ;;  %9322 = vtanh.f32 %v4212_v27 }
 0x4a5   : > { %5096 = vmatmul.mubr.f32.gmra.mrb[230].mxu0 %v9291_v51  ;;  %5305 = vmatprep.mubr.f32.mxu1 %v13820_v58  ;;  %v11960_v9 = vpop.f32.mrb[110].mxu1  ;;  %v9309_v23 = vpop.eup %9308  ;;  %9324 = vtanh.f32 %v4387_v12 }
 0x4a6   : > { %5101 = vmatprep.mubr.f32.mxu0 %v13820_v58  ;;  %v11962_v31 = vpop.f32.mrb[111].mxu1  ;;  %v9311_v63 = vpop.eup %9310  ;;  %9326 = vtanh.f32 %v4217_v29 }
 0x4a7   : > { %9328 = vtanh.f32 %v4392_v16 }
 0x4a8   : > { %5306 = vmatmul.mubr.f32.gmra.mrb[168].mxu1 %v9293_v61 }
 0x4a9   : > { %5102 = vmatmul.mubr.f32.gmra.mrb[232].mxu0 %v9295_v36  ;;  %5311 = vmatprep.mubr.f32.mxu1 %v13820_v58  ;;  %v11979_v33 = vpop.f32.mrb[112].mxu1  ;;  %v12013_v36 = vrot.slane %v11985_v30, %v13827_v54 }
 0x4aa   : > { %5107 = vmatprep.mubr.f32.mxu0 %v13820_v58  ;;  %v11981_v46 = vpop.f32.mrb[113].mxu1 }
 0x4ac   : > { %5312 = vmatmul.mubr.f32.gmra.mrb[170].mxu1 %v9297_v42 }
 0x4ad   : > { %5108 = vmatmul.mubr.f32.gmra.mrb[234].mxu0 %v9299_v59  ;;  %5317 = vmatprep.mubr.f32.mxu1 %v13820_v58  ;;  %v11999_v26 = vpop.f32.mrb[114].mxu1 }
 0x4ae   : > { %5113 = vmatprep.mubr.f32.mxu0 %v13820_v58  ;;  %v12001_v47 = vpop.f32.mrb[115].mxu1 }
 0x4b0   : > { %5318 = vmatmul.mubr.f32.gmra.mrb[172].mxu1 %v9301_v56 }
 0x4b1   : > { %5114 = vmatmul.mubr.f32.gmra.mrb[236].mxu0 %v9303_v25  ;;  %5323 = vmatprep.mubr.f32.mxu1 %v13820_v58 }
 0x4b2   : > { %5119 = vmatprep.mubr.f32.mxu0 %v13820_v58 }
 0x4b3   : > { %v4803_v51 = vpop.f32.mrb[132].mxu0 }
 0x4b4   : > { %5324 = vmatmul.mubr.f32.gmra.mrb[174].mxu1 %v9305_v21  ;;  %v4804_v44 = vadd.f32 %v4803_v51, %v11990_v2  ;;  %v4805_v61 = vpop.f32.mrb[133].mxu0  ;;  %v9313_v51 = vpop.eup %9312 }
 0x4b5   : > { %5120 = vmatmul.mubr.f32.gmra.mrb[238].mxu0 %v9307_v62  ;;  %5329 = vmatprep.mubr.f32.mxu1 %v13820_v58  ;;  %v4806_v18 = vadd.f32 %v4805_v61, %v11997_v39  ;;  %v12019_v42 = vpop.f32.mrb[116].mxu1 }
 0x4b6   : > { %5125 = vmatprep.mubr.f32.mxu0 %v13820_v58  ;;  %v5834_v59 = vmul.f32 %v12005_v35, %v4804_v44  ;;  %v12022_v32 = vpop.f32.mrb[117].mxu1  ;;  %v9315_v44 = vpop.eup %9314 }
 0x4b7   : > { %v5835_v14 = vmul.f32 %v12013_v36, %v4806_v18  ;;  %v4809_v56 = vpop.f32.mrb[134].mxu0 }
 0x4b8   : > { %5330 = vmatmul.mubr.f32.gmra.mrb[176].mxu1 %v9309_v23  ;;  %v4810_v25 = vadd.f32 %v4809_v56, %v11990_v2  ;;  %v4811_v13 = vpop.f32.mrb[135].mxu0 }
 0x4b9   : > { %5126 = vmatmul.mubr.f32.gmra.mrb[240].mxu0 %v9311_v63  ;;  %5335 = vmatprep.mubr.f32.mxu1 %v13820_v58  ;;  %v4812_v21 = vadd.f32 %v4811_v13, %v11997_v39  ;;  %v6090_v62 = vadd.f32 %v5835_v14, %v5834_v59  ;;  %v12033_v57 = vpop.f32.mrb[118].mxu1  ;;  %v4222_v63 = vadd.f32 %v11920_v3, %v11759_v40 }
 0x4ba   : > { %5131 = vmatprep.mubr.f32.mxu0 %v13820_v58  ;;  %v5836_v1 = vmul.f32 %v12005_v35, %v4810_v25  ;;  %v12036_v61 = vpop.f32.mrb[119].mxu1  ;;  %v9317_v25 = vpop.eup %9316  ;;  %v4397_v40 = vadd.f32 %v11920_v3, %v11894_v52 }
 0x4bb   : > { %v5837_v18 = vmul.f32 %v12013_v36, %v4812_v21  ;;  %v4815_v23 = vpop.f32.mrb[136].mxu0  ;;  %6091 = vadd.xlane.f32.xlu1 %v6090_v62  ;;  %v9319_v12 = vpop.eup %9318  ;;  %9330 = vtanh.f32 %v4222_v63 }
 0x4bc   : > { %5336 = vmatmul.mubr.f32.gmra.mrb[178].mxu1 %v9313_v51  ;;  %v4816_v27 = vadd.f32 %v4815_v23, %v11990_v2  ;;  %v4817_v59 = vpop.f32.mrb[137].mxu0  ;;  %9332 = vtanh.f32 %v4397_v40 }
 0x4bd   : > { %5132 = vmatmul.mubr.f32.gmra.mrb[242].mxu0 %v9315_v44  ;;  %5341 = vmatprep.mubr.f32.mxu1 %v13820_v58  ;;  %v4818_v14 = vadd.f32 %v4817_v59, %v11997_v39  ;;  %v6093_v56 = vadd.f32 %v5837_v18, %v5836_v1  ;;  %v12047_v13 = vpop.f32.mrb[120].mxu1  ;;  %v4227_v44 = vadd.f32 %v11920_v3, %v11770_v45 }
 0x4be   : > { %5137 = vmatprep.mubr.f32.mxu0 %v13820_v58  ;;  %v5838_v11 = vmul.f32 %v12005_v35, %v4816_v27  ;;  %v12050_v21 = vpop.f32.mrb[121].mxu1  ;;  %v9321_v27 = vpop.eup %9320  ;;  %v4402_v45 = vadd.f32 %v11920_v3, %v11889_v55 }
 0x4bf   : > { %v5839_v62 = vmul.f32 %v12013_v36, %v4818_v14  ;;  %v4821_v51 = vpop.f32.mrb[138].mxu0  ;;  %6094 = vadd.xlane.f32.xlu0 %v6093_v56  ;;  %v9323_v59 = vpop.eup %9322  ;;  %9334 = vtanh.f32 %v4227_v44 }
 0x4c0   : > { %5342 = vmatmul.mubr.f32.gmra.mrb[180].mxu1 %v9317_v25  ;;  %v4822_v29 = vadd.f32 %v4821_v51, %v11990_v2  ;;  %v4823_v1 = vpop.f32.mrb[139].mxu0  ;;  %9336 = vtanh.f32 %v4402_v45 }
 0x4c1   : > { %5138 = vmatmul.mubr.f32.gmra.mrb[244].mxu0 %v9319_v12  ;;  %5347 = vmatprep.mubr.f32.mxu1 %v13820_v58  ;;  %v4824_v18 = vadd.f32 %v4823_v1, %v11997_v39  ;;  %v6096_v23 = vadd.f32 %v5839_v62, %v5838_v11  ;;  %v12061_v16 = vpop.f32.mrb[122].mxu1  ;;  %v4232_v12 = vadd.f32 %v11920_v3, %v11766_v19 }
 0x4c2   : > { %5143 = vmatprep.mubr.f32.mxu0 %v13820_v58  ;;  %v5840_v52 = vmul.f32 %v12005_v35, %v4822_v29  ;;  %v12064_v14 = vpop.f32.mrb[123].mxu1  ;;  %v9325_v29 = vpop.eup %9324  ;;  %v4407_v19 = vadd.f32 %v11920_v3, %v11904_v5 }
 0x4c3   : > { %v5841_v56 = vmul.f32 %v12013_v36, %v4824_v18  ;;  %v4827_v25 = vpop.f32.mrb[140].mxu0  ;;  %6097 = vadd.xlane.f32.xlu0 %v6096_v23  ;;  %v9327_v40 = vpop.eup %9326  ;;  %9338 = vtanh.f32 %v4232_v12 }
 0x4c4   : > { %5348 = vmatmul.mubr.f32.gmra.mrb[182].mxu1 %v9321_v27  ;;  %v4828_v63 = vadd.f32 %v4827_v25, %v11990_v2  ;;  %v4829_v11 = vpop.f32.mrb[141].mxu0  ;;  %9340 = vtanh.f32 %v4407_v19 }
 0x4c5   : > { %5144 = vmatmul.mubr.f32.gmra.mrb[246].mxu0 %v9323_v59  ;;  %5353 = vmatprep.mubr.f32.mxu1 %v13820_v58  ;;  %v4830_v62 = vadd.f32 %v4829_v11, %v11997_v39  ;;  %v6099_v51 = vadd.f32 %v5841_v56, %v5840_v52  ;;  %v12075_v1 = vpop.f32.mrb[124].mxu1  ;;  %v4237_v59 = vadd.f32 %v11920_v3, %v11777_v60 }
 0x4c6   : > { %5149 = vmatprep.mubr.f32.mxu0 %v13820_v58  ;;  %v5842_v55 = vmul.f32 %v12005_v35, %v4828_v63  ;;  %v12078_v18 = vpop.f32.mrb[125].mxu1  ;;  %v9329_v63 = vpop.eup %9328  ;;  %v4412_v60 = vadd.f32 %v11920_v3, %v11899_v7 }
 0x4c7   : > { %v5843_v23 = vmul.f32 %v12013_v36, %v4830_v62  ;;  %v4833_v27 = vpop.f32.mrb[142].mxu0  ;;  %6100 = vadd.xlane.f32.xlu1 %v6099_v51  ;;  %v9331_v11 = vpop.eup %9330  ;;  %v5590_v62 = vcombine.high %v11968_v37, %v11968_v37  ;;  %v4242_v37 = vadd.f32 %v11920_v3, %v11773_v48  ;;  %9342 = vtanh.f32 %v4237_v59 }
 0x4c8   : > { %5354 = vmatmul.mubr.f32.gmra.mrb[184].mxu1 %v9325_v29  ;;  %v4834_v44 = vadd.f32 %v4833_v27, %v11990_v2  ;;  %v4835_v52 = vpop.f32.mrb[143].mxu0  ;;  %9344 = vtanh.f32 %v4412_v60  ;;  %v4417_v59 = vadd.f32 %v11920_v3, %v11914_v53 }
 0x4c9   : > { %5150 = vmatmul.mubr.f32.gmra.mrb[248].mxu0 %v9327_v40  ;;  %5359 = vmatprep.mubr.f32.mxu1 %v13820_v58  ;;  %v4836_v56 = vadd.f32 %v4835_v52, %v11997_v39  ;;  %v6102_v25 = vadd.f32 %v5843_v23, %v5842_v55  ;;  %v12089_v45 = vpop.f32.mrb[126].mxu1  ;;  %9346 = vtanh.f32 %v4242_v37 }
 0x4ca   : > { %5155 = vmatprep.mubr.f32.mxu0 %v13820_v58  ;;  %v5844_v5 = vmul.f32 %v12005_v35, %v4834_v44  ;;  %v12094_v51 = vpop.f32.mrb[127].mxu1  ;;  %v9333_v44 = vpop.eup %9332  ;;  %9348 = vtanh.f32 %v4417_v59 }
 0x4cb   : > { %v5845_v12 = vmul.f32 %v12013_v36, %v4836_v56  ;;  %v4839_v29 = vpop.f32.mrb[144].mxu0  ;;  %6103 = vadd.xlane.f32.xlu0 %v6102_v25  ;;  %v9335_v19 = vpop.eup %9334  ;;  %v12109_v56 = vrot.slane %v5590_v62, %v11518_v38  ;;  %v4247_v38 = vadd.f32 %v11920_v3, %v11784_v6 }
 0x4cc   : > { %5360 = vmatmul.mubr.f32.gmra.mrb[186].mxu1 %v9329_v63  ;;  %v4840_v55 = vadd.f32 %v4839_v29, %v11990_v2  ;;  %v4841_v40 = vpop.f32.mrb[145].mxu0  ;;  %v9337_v29 = vpop.eup %9336 }
 0x4cd   : > { %5156 = vmatmul.mubr.f32.gmra.mrb[250].mxu0 %v9331_v11  ;;  %5365 = vmatprep.mubr.f32.mxu1 %v13820_v58  ;;  %v4842_v23 = vadd.f32 %v4841_v40, %v11997_v39  ;;  %v6105_v27 = vadd.f32 %v5845_v12, %v5844_v5  ;;  %v12105_v52 = vpop.f32.mrb[128].mxu1  ;;  %v12127_v40 = vrot.slane %v12109_v56, %v13826_v49  ;;  %9350 = vtanh.f32 %v4247_v38 }
 0x4ce   : > { %5161 = vmatprep.mubr.f32.mxu0 %v13820_v58  ;;  %v5846_v7 = vmul.f32 %v12005_v35, %v4840_v55  ;;  %v12111_v25 = vpop.f32.mrb[129].mxu1  ;;  %v9339_v55 = vpop.eup %9338 }
 0x4cf   : > { %v5847_v63 = vmul.f32 %v12013_v36, %v4842_v23  ;;  %v4845_v48 = vpop.f32.mrb[146].mxu0  ;;  %6106 = vadd.xlane.f32.xlu1 %v6105_v27  ;;  %v12134_v27 = vrot.slane %v12109_v56, %v13827_v54 }
 0x4d0   : > { %5366 = vmatmul.mubr.f32.gmra.mrb[188].mxu1 %v9333_v44  ;;  %v4846_v5 = vadd.f32 %v4845_v48, %v11990_v2  ;;  %v4847_v11 = vpop.f32.mrb[147].mxu0  ;;  %v4422_v44 = vadd.f32 %v11920_v3, %v11909_v4  ;;  %v9341_v48 = vpop.eup %9340 }
 0x4d1   : > { %5162 = vmatmul.mubr.f32.gmra.mrb[252].mxu0 %v9335_v19  ;;  %5371 = vmatprep.mubr.f32.mxu1 %v13820_v58  ;;  %v4848_v62 = vadd.f32 %v4847_v11, %v11997_v39  ;;  %v6108_v12 = vadd.f32 %v5847_v63, %v5846_v7  ;;  %v12122_v60 = vpop.f32.mrb[130].mxu1  ;;  %v9343_v59 = vpop.eup %9342 }
 0x4d2   : > { %5167 = vmatprep.mubr.f32.mxu0 %v13820_v58  ;;  %v5848_v53 = vmul.f32 %v12005_v35, %v4846_v5  ;;  %v12129_v23 = vpop.f32.mrb[131].mxu1  ;;  %9352 = vtanh.f32 %v4422_v44 }
 0x4d3   : > { %v5849_v37 = vmul.f32 %v12013_v36, %v4848_v62  ;;  %v4851_v6 = vpop.f32.mrb[148].mxu0  ;;  %6109 = vadd.xlane.f32.xlu0 %v6108_v12  ;;  %v4252_v36 = vadd.f32 %v11920_v3, %v11780_v34  ;;  %v4427_v34 = vadd.f32 %v11920_v3, %v11936_v15 }
 0x4d4   : > { %5372 = vmatmul.mubr.f32.gmra.mrb[190].mxu1 %v9337_v29  ;;  %v4852_v35 = vadd.f32 %v4851_v6, %v11990_v2  ;;  %v4853_v7 = vpop.f32.mrb[149].mxu0  ;;  %v9345_v6 = vpop.eup %9344 }
 0x4d5   : > { %5168 = vmatmul.mubr.f32.gmra.mrb[254].mxu0 %v9339_v55  ;;  %5377 = vmatprep.mubr.f32.mxu1 %v13820_v58  ;;  %v4854_v19 = vadd.f32 %v4853_v7, %v11997_v39  ;;  %v6111_v63 = vadd.f32 %v5849_v37, %v5848_v53  ;;  %v12144_v5 = vpop.f32.mrb[132].mxu1  ;;  %9354 = vtanh.f32 %v4252_v36  ;;  %v4257_v53 = vadd.f32 %v11920_v3, %v11790_v8 }
 0x4d6   : > { %5173 = vmatprep.mubr.f32.mxu0 %v13820_v58  ;;  %v5850_v4 = vmul.f32 %v12127_v40, %v4852_v35  ;;  %v12147_v11 = vpop.f32.mrb[133].mxu1  ;;  %v9347_v35 = vpop.eup %9346  ;;  %v4432_v36 = vadd.f32 %v11920_v3, %v11934_v10  ;;  %9356 = vtanh.f32 %v4427_v34  ;;  %v4437_v34 = vadd.f32 %v11920_v3, %v11952_v20 }
 0x4d7   : > { %v5851_v62 = vmul.f32 %v12134_v27, %v4854_v19  ;;  %v4857_v12 = vpop.f32.mrb[150].mxu0  ;;  %6112 = vadd.xlane.f32.xlu1 %v6111_v63  ;;  %9358 = vtanh.f32 %v4257_v53  ;;  %v4442_v20 = vadd.f32 %v11920_v3, %v11950_v22  ;;  %v4447_v22 = vadd.f32 %v11920_v3, %v11962_v31 }
 0x4d8   : > { %5378 = vmatmul.mubr.f32.gmra.mrb[192].mxu1 %v9341_v48  ;;  %v4858_v38 = vadd.f32 %v4857_v12, %v11990_v2  ;;  %v4859_v29 = vpop.f32.mrb[151].mxu0  ;;  %9360 = vtanh.f32 %v4432_v36  ;;  %v4452_v31 = vadd.f32 %v11920_v3, %v11960_v9  ;;  %v5620_v9 = vcombine.high %v11985_v30, %v11985_v30 }
 0x4d9   : > { %5174 = vmatmul.mubr.f32.gmra.mrb[0].mxu0 %v9343_v59  ;;  %5383 = vmatprep.mubr.f32.mxu1 %v13820_v58  ;;  %v4860_v55 = vadd.f32 %v4859_v29, %v11997_v39  ;;  %v6114_v37 = vadd.f32 %v5851_v62, %v5850_v4  ;;  %v9349_v4 = vpop.eup %9348  ;;  %9362 = vtanh.f32 %v4437_v34 }
 0x4da   : > { %5179 = vmatprep.mubr.f32.mxu0 %v13820_v58  ;;  %v5852_v44 = vmul.f32 %v12127_v40, %v4858_v38  ;;  %v9351_v62 = vpop.eup %9350  ;;  %9364 = vtanh.f32 %v4442_v20  ;;  %v12208_v30 = vrot.slane %v5620_v9, %v13826_v49 }
 0x4db   : > { %v5853_v15 = vmul.f32 %v12134_v27, %v4860_v55  ;;  %v4863_v7 = vpop.f32.mrb[152].mxu0  ;;  %6115 = vadd.xlane.f32.xlu0 %v6114_v37  ;;  %9366 = vtanh.f32 %v4447_v22 }
 0x4dc   : > { %5384 = vmatmul.mubr.f32.gmra.mrb[194].mxu1 %v9345_v6  ;;  %v4864_v8 = vadd.f32 %v4863_v7, %v11990_v2  ;;  %v4865_v19 = vpop.f32.mrb[153].mxu0  ;;  %v9353_v37 = vpop.eup %9352  ;;  %9368 = vtanh.f32 %v4452_v31 }
 0x4dd   : > { %5180 = vmatmul.mubr.f32.gmra.mrb[2].mxu0 %v9347_v35  ;;  %5389 = vmatprep.mubr.f32.mxu1 %v13820_v58  ;;  %v4866_v63 = vadd.f32 %v4865_v19, %v11997_v39  ;;  %v6117_v48 = vadd.f32 %v5853_v15, %v5852_v44 }
 0x4de   : > { %5185 = vmatprep.mubr.f32.mxu0 %v13820_v58  ;;  %v5854_v59 = vmul.f32 %v12127_v40, %v4864_v8 }
 0x4df   : > { %v5855_v12 = vmul.f32 %v12134_v27, %v4866_v63  ;;  %v4869_v10 = vpop.f32.mrb[154].mxu0  ;;  %6118 = vadd.xlane.f32.xlu1 %v6117_v48  ;;  %v9355_v44 = vpop.eup %9354 }
 0x4e0   : > { %5390 = vmatmul.mubr.f32.gmra.mrb[196].mxu1 %v9349_v4  ;;  %v4870_v38 = vadd.f32 %v4869_v10, %v11990_v2  ;;  %v4871_v29 = vpop.f32.mrb[155].mxu0  ;;  %v9357_v63 = vpop.eup %9356 }
 0x4e1   : > { %5186 = vmatmul.mubr.f32.gmra.mrb[4].mxu0 %v9351_v62  ;;  %5395 = vmatprep.mubr.f32.mxu1 %v13820_v58  ;;  %v4872_v53 = vadd.f32 %v4871_v29, %v11997_v39  ;;  %v6120_v55 = vadd.f32 %v5855_v12, %v5854_v59  ;;  %v9359_v4 = vpop.eup %9358 }
 0x4e2   : > { %5191 = vmatprep.mubr.f32.mxu0 %v13820_v58  ;;  %v5856_v6 = vmul.f32 %v12127_v40, %v4870_v38  ;;  %v9361_v29 = vpop.eup %9360 }
 0x4e3   : > { %v5857_v35 = vmul.f32 %v12134_v27, %v4872_v53  ;;  %v4875_v15 = vpop.f32.mrb[156].mxu0  ;;  %6121 = vadd.xlane.f32.xlu0 %v6120_v55  ;;  %v9363_v20 = vpop.eup %9362 }
 0x4e4   : > { %5396 = vmatmul.mubr.f32.gmra.mrb[198].mxu1 %v9353_v37  ;;  %v4876_v7 = vadd.f32 %v4875_v15, %v11990_v2  ;;  %v4877_v36 = vpop.f32.mrb[157].mxu0 }
 0x4e5   : > { %5192 = vmatmul.mubr.f32.gmra.mrb[6].mxu0 %v9355_v44  ;;  %5401 = vmatprep.mubr.f32.mxu1 %v13820_v58  ;;  %v4878_v8 = vadd.f32 %v4877_v36, %v11997_v39  ;;  %v6123_v19 = vadd.f32 %v5857_v35, %v5856_v6 }
 0x4e6   : > { %5197 = vmatprep.mubr.f32.mxu0 %v13820_v58  ;;  %v5858_v48 = vmul.f32 %v12127_v40, %v4876_v7 }
 0x4e7   : > { %v5859_v59 = vmul.f32 %v12134_v27, %v4878_v8  ;;  %v4881_v62 = vpop.f32.mrb[158].mxu0  ;;  %6124 = vadd.xlane.f32.xlu1 %v6123_v19  ;;  %v4457_v19 = vadd.f32 %v11920_v3, %v11981_v46  ;;  %v4462_v46 = vadd.f32 %v11920_v3, %v11979_v33  ;;  %v4467_v33 = vadd.f32 %v11920_v3, %v12001_v47 }
 0x4e8   : > { %5402 = vmatmul.mubr.f32.gmra.mrb[200].mxu1 %v9357_v63  ;;  %v4882_v12 = vadd.f32 %v4881_v62, %v11990_v2  ;;  %v4883_v10 = vpop.f32.mrb[159].mxu0  ;;  %v9365_v62 = vpop.eup %9364 }
 0x4e9   : > { %5198 = vmatmul.mubr.f32.gmra.mrb[8].mxu0 %v9359_v4  ;;  %5407 = vmatprep.mubr.f32.mxu1 %v13820_v58  ;;  %v4884_v34 = vadd.f32 %v4883_v10, %v11997_v39  ;;  %v6126_v38 = vadd.f32 %v5859_v59, %v5858_v48  ;;  %9370 = vtanh.f32 %v4457_v19 }
 0x4ea   : > { %v5860_v53 = vmul.f32 %v12127_v40, %v4882_v12  ;;  %9372 = vtanh.f32 %v4462_v46 }
 0x4eb   : > { %v5861_v55 = vmul.f32 %v12134_v27, %v4884_v34  ;;  %v4887_v37 = vpop.f32.mrb[160].mxu0  ;;  %6127 = vadd.xlane.f32.xlu0 %v6126_v38  ;;  %9374 = vtanh.f32 %v4467_v33 }
 0x4ec   : > { %5408 = vmatmul.mubr.f32.gmra.mrb[202].mxu1 %v9361_v29  ;;  %v4888_v6 = vadd.f32 %v4887_v37, %v11990_v2  ;;  %v4889_v44 = vpop.f32.mrb[161].mxu0  ;;  %v12215_v29 = vrot.slane %v5620_v9, %v13827_v54  ;;  %v4472_v9 = vadd.f32 %v11920_v3, %v11999_v26  ;;  %v4477_v26 = vadd.f32 %v11920_v3, %v12022_v32 }
 0x4ed   : > { %5413 = vmatprep.mubr.f32.mxu1 %v13820_v58  ;;  %v4890_v35 = vadd.f32 %v4889_v44, %v11997_v39  ;;  %v6129_v15 = vadd.f32 %v5861_v55, %v5860_v53  ;;  %v9367_v53 = vpop.eup %9366 }
 0x4ee   : > { %v5862_v7 = vmul.f32 %v12127_v40, %v4888_v6  ;;  %9376 = vtanh.f32 %v4472_v9 }
 0x4ef   : > { %v5863_v36 = vmul.f32 %v12134_v27, %v4890_v35  ;;  %v4893_v8 = vpop.f32.mrb[162].mxu0  ;;  %6130 = vadd.xlane.f32.xlu1 %v6129_v15  ;;  %9378 = vtanh.f32 %v4477_v26 }
 0x4f0   : > { %5414 = vmatmul.mubr.f32.gmra.mrb[204].mxu1 %v9363_v20  ;;  %v4894_v63 = vadd.f32 %v4893_v8, %v11990_v2  ;;  %v4895_v48 = vpop.f32.mrb[163].mxu0  ;;  %v9369_v20 = vpop.eup %9368 }
 0x4f1   : > { %5419 = vmatprep.mubr.f32.mxu1 %v13820_v58  ;;  %v4896_v4 = vadd.f32 %v4895_v48, %v11997_v39  ;;  %v6132_v59 = vadd.f32 %v5863_v36, %v5862_v7 }
 0x4f2   : > { %v5864_v22 = vmul.f32 %v12127_v40, %v4894_v63 }
 0x4f3   : > { %v5865_v12 = vmul.f32 %v12134_v27, %v4896_v4  ;;  %v4899_v10 = vpop.f32.mrb[164].mxu0  ;;  %6133 = vadd.xlane.f32.xlu0 %v6132_v59  ;;  %v9371_v4 = vpop.eup %9370 }
 0x4f4   : > { %5420 = vmatmul.mubr.f32.gmra.mrb[206].mxu1 %v9365_v62  ;;  %v4900_v34 = vadd.f32 %v4899_v10, %v11990_v2  ;;  %v4901_v38 = vpop.f32.mrb[165].mxu0 }
 0x4f5   : > { %5425 = vmatprep.mubr.f32.mxu1 %v13820_v58  ;;  %v4902_v40 = vadd.f32 %v4901_v38, %v11997_v39  ;;  %v6135_v27 = vadd.f32 %v5865_v12, %v5864_v22  ;;  %v9373_v38 = vpop.eup %9372 }
 0x4f6   : > { %v5866_v55 = vmul.f32 %v12208_v30, %v4900_v34 }
 0x4f7   : > { %v5867_v37 = vmul.f32 %v12215_v29, %v4902_v40  ;;  %v4905_v31 = vpop.f32.mrb[166].mxu0  ;;  %6136 = vadd.xlane.f32.xlu1 %v6135_v27 }
 0x4f8   : > { %5426 = vmatmul.mubr.f32.gmra.mrb[208].mxu1 %v9367_v53  ;;  %v4906_v6 = vadd.f32 %v4905_v31, %v11990_v2  ;;  %v4907_v44 = vpop.f32.mrb[167].mxu0 }
 0x4f9   : > { %5431 = vmatprep.mubr.f32.mxu1 %v13820_v58  ;;  %v4908_v35 = vadd.f32 %v4907_v44, %v11997_v39  ;;  %v6138_v15 = vadd.f32 %v5867_v37, %v5866_v55  ;;  %v4482_v55 = vadd.f32 %v11920_v3, %v12019_v42  ;;  %v4487_v42 = vadd.f32 %v11920_v3, %v12036_v61 }
 0x4fa   : > { %v5868_v7 = vmul.f32 %v12208_v30, %v4906_v6  ;;  %v9375_v6 = vpop.eup %9374 }
 0x4fb   : > { %v5869_v36 = vmul.f32 %v12215_v29, %v4908_v35  ;;  %v4911_v8 = vpop.f32.mrb[168].mxu0  ;;  %6139 = vadd.xlane.f32.xlu0 %v6138_v15  ;;  %9380 = vtanh.f32 %v4482_v55  ;;  %v9377_v9 = vpop.eup %9376 }
 0x4fc   : > { %5432 = vmatmul.mubr.f32.gmra.mrb[210].mxu1 %v9369_v20  ;;  %v4912_v47 = vadd.f32 %v4911_v8, %v11990_v2  ;;  %v4913_v19 = vpop.f32.mrb[169].mxu0  ;;  %9382 = vtanh.f32 %v4487_v42 }
 0x4fd   : > { %5437 = vmatprep.mubr.f32.mxu1 %v13820_v58  ;;  %v4914_v63 = vadd.f32 %v4913_v19, %v11997_v39  ;;  %v6141_v48 = vadd.f32 %v5869_v36, %v5868_v7 }
 0x4fe   : > { %v5870_v59 = vmul.f32 %v12208_v30, %v4912_v47 }
 0x4ff   : > { %v5871_v62 = vmul.f32 %v12215_v29, %v4914_v63  ;;  %v4917_v22 = vpop.f32.mrb[170].mxu0  ;;  %6142 = vadd.xlane.f32.xlu1 %v6141_v48  ;;  %v4492_v48 = vadd.f32 %v11920_v3, %v12033_v57  ;;  %v5622_v57 = vcombine.high %v12109_v56, %v12109_v56 }
 0x500   : > { %5438 = vmatmul.mubr.f32.gmra.mrb[212].mxu1 %v9371_v4  ;;  %v4918_v12 = vadd.f32 %v4917_v22, %v11990_v2  ;;  %v4919_v10 = vpop.f32.mrb[171].mxu0  ;;  %v9379_v22 = vpop.eup %9378 }
 0x501   : > { %5443 = vmatprep.mubr.f32.mxu1 %v13820_v58  ;;  %v4920_v46 = vadd.f32 %v4919_v10, %v11997_v39  ;;  %v6144_v34 = vadd.f32 %v5871_v62, %v5870_v59  ;;  %9384 = vtanh.f32 %v4492_v48  ;;  %v12272_v56 = vrot.slane %v5622_v57, %v13826_v49 }
 0x502   : > { %v5872_v40 = vmul.f32 %v12208_v30, %v4918_v12 }
 0x503   : > { %v5873_v27 = vmul.f32 %v12215_v29, %v4920_v46  ;;  %v4923_v53 = vpop.f32.mrb[172].mxu0  ;;  %6145 = vadd.xlane.f32.xlu0 %v6144_v34  ;;  %v4497_v46 = vadd.f32 %v11920_v3, %v12050_v21  ;;  %v4502_v21 = vadd.f32 %v11920_v3, %v12047_v13  ;;  %v4507_v13 = vadd.f32 %v11920_v3, %v12064_v14  ;;  %v12294_v3 = vld [vmem:[%s13501_s16] ss:$0 sm:$0xff] }
 0x504   : > { %5444 = vmatmul.mubr.f32.gmra.mrb[214].mxu1 %v9373_v38  ;;  %v4924_v32 = vadd.f32 %v4923_v53, %v11990_v2  ;;  %v4925_v37 = vpop.f32.mrb[173].mxu0  ;;  %v4512_v14 = vadd.f32 %v12294_v3, %v12061_v16  ;;  %v4517_v16 = vadd.f32 %v12294_v3, %v12078_v18 }
 0x505   : > { %5449 = vmatprep.mubr.f32.mxu1 %v13820_v58  ;;  %v4926_v31 = vadd.f32 %v4925_v37, %v11997_v39  ;;  %v6147_v33 = vadd.f32 %v5873_v27, %v5872_v40  ;;  %v9381_v53 = vpop.eup %9380  ;;  %9386 = vtanh.f32 %v4497_v46 }
 0x506   : > { %v5874_v44 = vmul.f32 %v12208_v30, %v4924_v32  ;;  %9388 = vtanh.f32 %v4502_v21 }
 0x507   : > { %v5875_v35 = vmul.f32 %v12215_v29, %v4926_v31  ;;  %v4929_v15 = vpop.f32.mrb[174].mxu0  ;;  %6148 = vadd.xlane.f32.xlu1 %v6147_v33  ;;  %9390 = vtanh.f32 %v4507_v13 }
 0x508   : > { %5450 = vmatmul.mubr.f32.gmra.mrb[216].mxu1 %v9375_v6  ;;  %v4930_v20 = vadd.f32 %v4929_v15, %v11990_v2  ;;  %v4931_v7 = vpop.f32.mrb[175].mxu0  ;;  %v12279_v6 = vrot.slane %v5622_v57, %v13827_v54  ;;  %9392 = vtanh.f32 %v4512_v14 }
 0x509   : > { %5455 = vmatprep.mubr.f32.mxu1 %v13820_v58  ;;  %v4932_v36 = vadd.f32 %v4931_v7, %v11997_v39  ;;  %v6150_v8 = vadd.f32 %v5875_v35, %v5874_v44  ;;  %v9383_v44 = vpop.eup %9382  ;;  %9394 = vtanh.f32 %v4517_v16 }
 0x50a   : > { %v5876_v47 = vmul.f32 %v12208_v30, %v4930_v20 }
 0x50b   : > { %v5877_v19 = vmul.f32 %v12215_v29, %v4932_v36  ;;  %v4935_v63 = vpop.f32.mrb[176].mxu0  ;;  %6151 = vadd.xlane.f32.xlu0 %v6150_v8 }
 0x50c   : > { %5456 = vmatmul.mubr.f32.gmra.mrb[218].mxu1 %v9377_v9  ;;  %v4936_v61 = vadd.f32 %v4935_v63, %v11990_v2  ;;  %v4937_v4 = vpop.f32.mrb[177].mxu0  ;;  %v9385_v9 = vpop.eup %9384 }
 0x50d   : > { %5461 = vmatprep.mubr.f32.mxu1 %v13820_v58  ;;  %v4938_v59 = vadd.f32 %v4937_v4, %v11997_v39  ;;  %v6153_v62 = vadd.f32 %v5877_v19, %v5876_v47 }
 0x50e   : > { %v5878_v26 = vmul.f32 %v12208_v30, %v4936_v61 }
 0x50f   : > { %v5879_v12 = vmul.f32 %v12215_v29, %v4938_v59  ;;  %v4941_v10 = vpop.f32.mrb[178].mxu0  ;;  %6154 = vadd.xlane.f32.xlu1 %v6153_v62  ;;  %v9387_v62 = vpop.eup %9386 }
 0x510   : > { %5462 = vmatmul.mubr.f32.gmra.mrb[220].mxu1 %v9379_v22  ;;  %v4942_v34 = vadd.f32 %v4941_v10, %v11990_v2  ;;  %v4943_v38 = vpop.f32.mrb[179].mxu0 }
 0x511   : > { %5467 = vmatprep.mubr.f32.mxu1 %v13820_v58  ;;  %v4944_v40 = vadd.f32 %v4943_v38, %v11997_v39  ;;  %v6156_v27 = vadd.f32 %v5879_v12, %v5878_v26  ;;  %v9389_v38 = vpop.eup %9388 }
 0x512   : > { %v5880_v55 = vmul.f32 %v12208_v30, %v4942_v34 }
 0x513   : > { %v5881_v32 = vmul.f32 %v12215_v29, %v4944_v40  ;;  %v4947_v37 = vpop.f32.mrb[180].mxu0  ;;  %6157 = vadd.xlane.f32.xlu0 %v6156_v27 }
 0x514   : > { %5468 = vmatmul.mubr.f32.gmra.mrb[222].mxu1 %v9381_v53  ;;  %v4948_v31 = vadd.f32 %v4947_v37, %v11990_v2  ;;  %v4949_v33 = vpop.f32.mrb[181].mxu0 }
 0x515   : > { %5473 = vmatprep.mubr.f32.mxu1 %v13820_v58  ;;  %v4950_v30 = vadd.f32 %v4949_v33, %v11997_v39  ;;  %v6159_v29 = vadd.f32 %v5881_v32, %v5880_v55  ;;  %v4522_v55 = vadd.f32 %v12294_v3, %v12075_v1  ;;  %v4527_v1 = vadd.f32 %v12294_v3, %v12094_v51 }
 0x516   : > { %v5882_v35 = vmul.f32 %v12272_v56, %v4948_v31  ;;  %v9391_v31 = vpop.eup %9390 }
 0x517   : > { %v5883_v15 = vmul.f32 %v12279_v6, %v4950_v30  ;;  %v4953_v42 = vpop.f32.mrb[182].mxu0  ;;  %6160 = vadd.xlane.f32.xlu1 %v6159_v29  ;;  %9396 = vtanh.f32 %v4522_v55  ;;  %v9393_v13 = vpop.eup %9392 }
 0x518   : > { %5474 = vmatmul.mubr.f32.gmra.mrb[224].mxu1 %v9383_v44  ;;  %v4954_v20 = vadd.f32 %v4953_v42, %v11990_v2  ;;  %v4955_v7 = vpop.f32.mrb[183].mxu0  ;;  %9398 = vtanh.f32 %v4527_v1  ;;  %v4547_v1 = vadd.f32 %v12294_v3, %v12129_v23  ;;  %v4552_v23 = vadd.f32 %v12294_v3, %v12122_v60 }
 0x519   : > { %5479 = vmatprep.mubr.f32.mxu1 %v13820_v58  ;;  %v4956_v36 = vadd.f32 %v4955_v7, %v11997_v39  ;;  %v6162_v8 = vadd.f32 %v5883_v15, %v5882_v35 }
 0x51a   : > { %v5884_v47 = vmul.f32 %v12272_v56, %v4954_v20 }
 0x51b   : > { %v5885_v19 = vmul.f32 %v12279_v6, %v4956_v36  ;;  %v4959_v63 = vpop.f32.mrb[184].mxu0  ;;  %6163 = vadd.xlane.f32.xlu0 %v6162_v8  ;;  %v4532_v8 = vadd.f32 %v12294_v3, %v12089_v45  ;;  %v4537_v45 = vadd.f32 %v12294_v3, %v12111_v25  ;;  %v4542_v25 = vadd.f32 %v12294_v3, %v12105_v52 }
 0x51c   : > { %5480 = vmatmul.mubr.f32.gmra.mrb[226].mxu1 %v9385_v9  ;;  %v4960_v48 = vadd.f32 %v4959_v63, %v11990_v2  ;;  %v4961_v61 = vpop.f32.mrb[185].mxu0  ;;  %v9395_v63 = vpop.eup %9394 }
 0x51d   : > { %5485 = vmatprep.mubr.f32.mxu1 %v13820_v58  ;;  %v4962_v4 = vadd.f32 %v4961_v61, %v11997_v39  ;;  %v6165_v59 = vadd.f32 %v5885_v19, %v5884_v47  ;;  %9400 = vtanh.f32 %v4532_v8 }
 0x51e   : > { %v5886_v22 = vmul.f32 %v12272_v56, %v4960_v48  ;;  %9402 = vtanh.f32 %v4537_v45 }
 0x51f   : > { %v5887_v26 = vmul.f32 %v12279_v6, %v4962_v4  ;;  %v4965_v12 = vpop.f32.mrb[186].mxu0  ;;  %6166 = vadd.xlane.f32.xlu1 %v6165_v59  ;;  %9404 = vtanh.f32 %v4542_v25 }
 0x520   : > { %5486 = vmatmul.mubr.f32.gmra.mrb[228].mxu1 %v9387_v62  ;;  %v4966_v10 = vadd.f32 %v4965_v12, %v11990_v2  ;;  %v4967_v57 = vpop.f32.mrb[187].mxu0  ;;  %9406 = vtanh.f32 %v4547_v1 }
 0x521   : > { %5491 = vmatprep.mubr.f32.mxu1 %v13820_v58  ;;  %v4968_v46 = vadd.f32 %v4967_v57, %v11997_v39  ;;  %v6168_v34 = vadd.f32 %v5887_v26, %v5886_v22  ;;  %v9397_v26 = vpop.eup %9396  ;;  %v12340_v57 = vrot.slane %v11528_v41, %v13826_v49  ;;  %9408 = vtanh.f32 %v4552_v23 }
 0x522   : > { %v5888_v40 = vmul.f32 %v12272_v56, %v4966_v10 }
 0x523   : > { %v5889_v27 = vmul.f32 %v12279_v6, %v4968_v46  ;;  %v4971_v53 = vpop.f32.mrb[188].mxu0  ;;  %6169 = vadd.xlane.f32.xlu0 %v6168_v34 }
 0x524   : > { %5492 = vmatmul.mubr.f32.gmra.mrb[230].mxu1 %v9389_v38  ;;  %v4972_v18 = vadd.f32 %v4971_v53, %v11990_v2  ;;  %v4973_v32 = vpop.f32.mrb[189].mxu0  ;;  %v12353_v53 = vrot.slane %v11538_v17, %v13826_v49 }
 0x525   : > { %5497 = vmatprep.mubr.f32.mxu1 %v13820_v58  ;;  %v4974_v37 = vadd.f32 %v4973_v32, %v11997_v39  ;;  %v6171_v21 = vadd.f32 %v5889_v27, %v5888_v40  ;;  %v9399_v27 = vpop.eup %9398  ;;  %v12359_v32 = vrot.slane %v11538_v17, %v13827_v54 }
 0x526   : > { %v5890_v33 = vmul.f32 %v12272_v56, %v4972_v18 }
 0x527   : > { %v5891_v30 = vmul.f32 %v12279_v6, %v4974_v37  ;;  %v4977_v29 = vpop.f32.mrb[190].mxu0  ;;  %6172 = vadd.xlane.f32.xlu1 %v6171_v21 }
 0x528   : > { %5498 = vmatmul.mubr.f32.gmra.mrb[232].mxu1 %v9391_v31  ;;  %v4978_v44 = vadd.f32 %v4977_v29, %v11990_v2  ;;  %v4979_v35 = vpop.f32.mrb[191].mxu0 }
 0x529   : > { %5503 = vmatprep.mubr.f32.mxu1 %v13820_v58  ;;  %v4980_v15 = vadd.f32 %v4979_v35, %v11997_v39  ;;  %v6174_v42 = vadd.f32 %v5891_v30, %v5890_v33 }
 0x52a   : > { %v5892_v20 = vmul.f32 %v12272_v56, %v4978_v44 }
 0x52b   : > { %v5893_v7 = vmul.f32 %v12279_v6, %v4980_v15  ;;  %v4983_v36 = vpop.f32.mrb[192].mxu0  ;;  %6175 = vadd.xlane.f32.xlu0 %v6174_v42  ;;  %v9401_v42 = vpop.eup %9400 }
 0x52c   : > { %5504 = vmatmul.mubr.f32.gmra.mrb[234].mxu1 %v9393_v13  ;;  %v4984_v51 = vadd.f32 %v4983_v36, %v11990_v2  ;;  %v4985_v9 = vpop.f32.mrb[193].mxu0  ;;  %v9403_v45 = vpop.eup %9402 }
 0x52d   : > { %5509 = vmatprep.mubr.f32.mxu1 %v13820_v58  ;;  %v4986_v47 = vadd.f32 %v4985_v9, %v11997_v39  ;;  %v6177_v19 = vadd.f32 %v5893_v7, %v5892_v20 }
 0x52e   : > { %v5894_v14 = vmul.f32 %v12272_v56, %v4984_v51 }
 0x52f   : > { %v5895_v48 = vmul.f32 %v12279_v6, %v4986_v47  ;;  %v4989_v61 = vpop.f32.mrb[194].mxu0  ;;  %6178 = vadd.xlane.f32.xlu1 %v6177_v19 }
 0x530   : > { %5510 = vmatmul.mubr.f32.gmra.mrb[236].mxu1 %v9395_v63  ;;  %v4990_v4 = vadd.f32 %v4989_v61, %v11990_v2  ;;  %v4991_v59 = vpop.f32.mrb[195].mxu0 }
 0x531   : > { %5515 = vmatprep.mubr.f32.mxu1 %v13820_v58  ;;  %v4992_v62 = vadd.f32 %v4991_v59, %v11997_v39  ;;  %v6180_v22 = vadd.f32 %v5895_v48, %v5894_v14 }
 0x532   : > { %v5896_v12 = vmul.f32 %v12272_v56, %v4990_v4  ;;  %v12348_v56 = vrot.slane %v11528_v41, %v13827_v54 }
 0x533   : > { %v5897_v16 = vmul.f32 %v12279_v6, %v4992_v62  ;;  %v4995_v10 = vpop.f32.mrb[196].mxu0  ;;  %6181 = vadd.xlane.f32.xlu0 %v6180_v22 }
 0x534   : > { %5516 = vmatmul.mubr.f32.gmra.mrb[238].mxu1 %v9397_v26  ;;  %v4996_v46 = vadd.f32 %v4995_v10, %v11990_v2  ;;  %v4997_v34 = vpop.f32.mrb[197].mxu0 }
 0x535   : > { %5521 = vmatprep.mubr.f32.mxu1 %v13820_v58  ;;  %v4998_v6 = vadd.f32 %v4997_v34, %v11997_v39  ;;  %v6183_v40 = vadd.f32 %v5897_v16, %v5896_v12  ;;  %v4557_v34 = vadd.f32 %v12294_v3, %v12147_v11  ;;  %v4562_v11 = vadd.f32 %v12294_v3, %v12144_v5 }
 0x536   : > { %v5205_v38 = vpop.f32.mrb[134].mxu1  ;;  %v5898_v52 = vmul.f32 %v12340_v57, %v4996_v46 }
 0x537   : > { %v5206_v55 = vadd.f32 %v5205_v38, %v11990_v2  ;;  %v5207_v18 = vpop.f32.mrb[135].mxu1  ;;  %v5899_v37 = vmul.f32 %v12348_v56, %v4998_v6  ;;  %v5001_v21 = vpop.f32.mrb[198].mxu0  ;;  %6184 = vadd.xlane.f32.xlu1 %v6183_v40  ;;  %9410 = vtanh.f32 %v4557_v34 }
 0x538   : > { %v5208_v31 = vadd.f32 %v5207_v18, %v11997_v39  ;;  %5522 = vmatmul.mubr.f32.gmra.mrb[240].mxu1 %v9399_v27  ;;  %v5002_v30 = vadd.f32 %v5001_v21, %v11990_v2  ;;  %v5003_v29 = vpop.f32.mrb[199].mxu0  ;;  %v9405_v27 = vpop.eup %9404  ;;  %9412 = vtanh.f32 %v4562_v11 }
 0x539   : > { %v5968_v33 = vmul.f32 %v12353_v53, %v5206_v55  ;;  %5527 = vmatprep.mubr.f32.mxu1 %v13820_v58  ;;  %v5004_v35 = vadd.f32 %v5003_v29, %v11997_v39  ;;  %v6186_v15 = vadd.f32 %v5899_v37, %v5898_v52  ;;  %v9407_v5 = vpop.eup %9406 }
 0x53a   : > { %v5969_v44 = vmul.f32 %v12359_v32, %v5208_v31  ;;  %v5900_v13 = vmul.f32 %v12340_v57, %v5002_v30 }
 0x53b   : > { %v5211_v20 = vpop.f32.mrb[136].mxu1  ;;  %v5901_v7 = vmul.f32 %v12348_v56, %v5004_v35  ;;  %6187 = vadd.xlane.f32.xlu0 %v6186_v15 }
 0x53c   : > { %v5007_v36 = vpop.f32.mrb[200].mxu0  ;;  %v5212_v8 = vadd.f32 %v5211_v20, %v11990_v2  ;;  %v5213_v51 = vpop.f32.mrb[137].mxu1  ;;  %5528 = vmatmul.mubr.f32.gmra.mrb[242].mxu1 %v9401_v42  ;;  %v6291_v9 = vadd.f32 %v5969_v44, %v5968_v33 }
 0x53d   : > { %v5008_v47 = vadd.f32 %v5007_v36, %v11990_v2  ;;  %v5009_v19 = vpop.f32.mrb[201].mxu0  ;;  %v5214_v63 = vadd.f32 %v5213_v51, %v11997_v39  ;;  %5533 = vmatprep.mubr.f32.mxu1 %v13820_v58  ;;  %v6189_v61 = vadd.f32 %v5901_v7, %v5900_v13 }
 0x53e   : > { %v5970_v14 = vmul.f32 %v12353_v53, %v5212_v8  ;;  %v5010_v48 = vadd.f32 %v5009_v19, %v11997_v39  ;;  %6292 = vadd.xlane.f32.xlu1 %v6291_v9 }
 0x53f   : > { %v5902_v4 = vmul.f32 %v12340_v57, %v5008_v47  ;;  %v5971_v59 = vmul.f32 %v12359_v32, %v5214_v63  ;;  %v5217_v60 = vpop.f32.mrb[138].mxu1 }
 0x540   : > { %v5903_v62 = vmul.f32 %v12348_v56, %v5010_v48  ;;  %v5013_v22 = vpop.f32.mrb[202].mxu0  ;;  %v5218_v26 = vadd.f32 %v5217_v60, %v11990_v2  ;;  %v5219_v12 = vpop.f32.mrb[139].mxu1  ;;  %5534 = vmatmul.mubr.f32.gmra.mrb[244].mxu1 %v9403_v45  ;;  %v12415_v60 = vrot.slane %v11544_v0, %v13826_v49 }
 0x541   : > { %v5014_v16 = vadd.f32 %v5013_v22, %v11990_v2  ;;  %v5015_v10 = vpop.f32.mrb[203].mxu0  ;;  %v5220_v25 = vadd.f32 %v5219_v12, %v11997_v39  ;;  %5539 = vmatprep.mubr.f32.mxu1 %v13820_v58  ;;  %v6294_v46 = vadd.f32 %v5971_v59, %v5970_v14 }
 0x542   : > { %v5972_v6 = vmul.f32 %v12353_v53, %v5218_v26  ;;  %v5016_v38 = vadd.f32 %v5015_v10, %v11997_v39  ;;  %6190 = vadd.xlane.f32.xlu1 %v6189_v61  ;;  %v6192_v40 = vadd.f32 %v5903_v62, %v5902_v4  ;;  %v9409_v61 = vpop.eup %9408 }
 0x543   : > { %v5904_v52 = vmul.f32 %v12340_v57, %v5014_v16  ;;  %v5973_v55 = vmul.f32 %v12359_v32, %v5220_v25  ;;  %v5223_v18 = vpop.f32.mrb[140].mxu1  ;;  %v12421_v16 = vrot.slane %v11544_v0, %v13827_v54 }
 0x544   : > { %v5905_v37 = vmul.f32 %v12348_v56, %v5016_v38  ;;  %v5019_v21 = vpop.f32.mrb[204].mxu0  ;;  %v5224_v31 = vadd.f32 %v5223_v18, %v11990_v2  ;;  %6193 = vadd.xlane.f32.xlu0 %v6192_v40  ;;  %v5225_v33 = vpop.f32.mrb[141].mxu1  ;;  %5540 = vmatmul.mubr.f32.gmra.mrb[246].mxu1 %v9405_v27 }
 0x545   : > { %v5020_v30 = vadd.f32 %v5019_v21, %v11990_v2  ;;  %v5021_v29 = vpop.f32.mrb[205].mxu0  ;;  %v5226_v1 = vadd.f32 %v5225_v33, %v11997_v39  ;;  %5545 = vmatprep.mubr.f32.mxu1 %v13820_v58  ;;  %v6297_v44 = vadd.f32 %v5973_v55, %v5972_v6  ;;  %v9411_v18 = vpop.eup %9410 }
 0x546   : > { %v5974_v35 = vmul.f32 %v12353_v53, %v5224_v31  ;;  %v5022_v15 = vadd.f32 %v5021_v29, %v11997_v39  ;;  %v6195_v42 = vadd.f32 %v5905_v37, %v5904_v52 }
 0x547   : > { %v5906_v13 = vmul.f32 %v12340_v57, %v5020_v30  ;;  %v5975_v20 = vmul.f32 %v12359_v32, %v5226_v1  ;;  %v5229_v7 = vpop.f32.mrb[142].mxu1 }
 0x548   : > { %v5907_v3 = vmul.f32 %v12348_v56, %v5022_v15  ;;  %v5025_v36 = vpop.f32.mrb[206].mxu0  ;;  %v5230_v8 = vadd.f32 %v5229_v7, %v11990_v2  ;;  %6196 = vadd.xlane.f32.xlu1 %v6195_v42  ;;  %6295 = vadd.xlane.f32.xlu0 %v6294_v46  ;;  %v5231_v51 = vpop.f32.mrb[143].mxu1 }
 0x549   : > { %v5026_v9 = vadd.f32 %v5025_v36, %v11990_v2  ;;  %v5027_v23 = vpop.f32.mrb[207].mxu0  ;;  %v5232_v47 = vadd.f32 %v5231_v51, %v11997_v39  ;;  %5546 = vmatmul.mubr.f32.gmra.mrb[248].mxu1 %v9407_v5  ;;  %v6300_v19 = vadd.f32 %v5975_v20, %v5974_v35  ;;  %v9413_v7 = vpop.eup %9412  ;;  %v12441_v5 = vrot.slane %v11531_v43, %v13826_v49 }
 0x54a   : > { %v5976_v63 = vmul.f32 %v12353_v53, %v5230_v8  ;;  %v5028_v14 = vadd.f32 %v5027_v23, %v11997_v39  ;;  %5551 = vmatprep.mubr.f32.mxu1 %v13820_v58  ;;  %v6198_v48 = vadd.f32 %v5907_v3, %v5906_v13 }
 0x54b   : > { %v5908_v45 = vmul.f32 %v12340_v57, %v5026_v9  ;;  %v5977_v4 = vmul.f32 %v12359_v32, %v5232_v47  ;;  %v5235_v59 = vpop.f32.mrb[144].mxu1  ;;  %v12449_v47 = vrot.slane %v11531_v43, %v13827_v54 }
 0x54c   : > { %v5909_v62 = vmul.f32 %v12348_v56, %v5028_v14  ;;  %v5031_v22 = vpop.f32.mrb[208].mxu0  ;;  %v5236_v26 = vadd.f32 %v5235_v59, %v11990_v2  ;;  %6298 = vadd.xlane.f32.xlu1 %v6297_v44  ;;  %6199 = vadd.xlane.f32.xlu0 %v6198_v48  ;;  %v5237_v12 = vpop.f32.mrb[145].mxu1 }
 0x54d   : > { %v5032_v10 = vadd.f32 %v5031_v22, %v11990_v2  ;;  %v5033_v25 = vpop.f32.mrb[209].mxu0  ;;  %v5238_v46 = vadd.f32 %v5237_v12, %v11997_v39  ;;  %5552 = vmatmul.mubr.f32.gmra.mrb[250].mxu1 %v9409_v61  ;;  %v6303_v34 = vadd.f32 %v5977_v4, %v5976_v63 }
 0x54e   : > { %v5978_v6 = vmul.f32 %v12415_v60, %v5236_v26  ;;  %v5034_v38 = vadd.f32 %v5033_v25, %v11997_v39  ;;  %5557 = vmatprep.mubr.f32.mxu1 %v13820_v58  ;;  %v6201_v40 = vadd.f32 %v5909_v62, %v5908_v45 }
 0x54f   : > { %v5910_v27 = vmul.f32 %v12340_v57, %v5032_v10  ;;  %v5979_v52 = vmul.f32 %v12421_v16, %v5238_v46  ;;  %v5241_v55 = vpop.f32.mrb[146].mxu1 }
 0x550   : > { %v5911_v37 = vmul.f32 %v12348_v56, %v5034_v38  ;;  %v5037_v21 = vpop.f32.mrb[210].mxu0  ;;  %v5242_v31 = vadd.f32 %v5241_v55, %v11990_v2  ;;  %6202 = vadd.xlane.f32.xlu1 %v6201_v40  ;;  %6301 = vadd.xlane.f32.xlu0 %v6300_v19  ;;  %v5243_v33 = vpop.f32.mrb[147].mxu1 }
 0x551   : > { %v5038_v11 = vadd.f32 %v5037_v21, %v11990_v2  ;;  %v5039_v30 = vpop.f32.mrb[211].mxu0  ;;  %v5244_v29 = vadd.f32 %v5243_v33, %v11997_v39  ;;  %5558 = vmatmul.mubr.f32.gmra.mrb[252].mxu1 %v9411_v18  ;;  %v6306_v1 = vadd.f32 %v5979_v52, %v5978_v6 }
 0x552   : > { %v5980_v44 = vmul.f32 %v12415_v60, %v5242_v31  ;;  %v5040_v35 = vadd.f32 %v5039_v30, %v11997_v39  ;;  %5563 = vmatprep.mubr.f32.mxu1 %v13820_v58  ;;  %v6204_v20 = vadd.f32 %v5911_v37, %v5910_v27 }
 0x553   : > { %v5912_v15 = vmul.f32 %v12340_v57, %v5038_v11  ;;  %v5981_v42 = vmul.f32 %v12421_v16, %v5244_v29  ;;  %v5247_v13 = vpop.f32.mrb[148].mxu1 }
 0x554   : > { %v5913_v3 = vmul.f32 %v12348_v56, %v5040_v35  ;;  %v5043_v36 = vpop.f32.mrb[212].mxu0  ;;  %v5248_v8 = vadd.f32 %v5247_v13, %v11990_v2  ;;  %6304 = vadd.xlane.f32.xlu1 %v6303_v34  ;;  %v5249_v51 = vpop.f32.mrb[149].mxu1  ;;  %6205 = vadd.xlane.f32.xlu0 %v6204_v20 }
 0x555   : > { %v5044_v58 = vadd.f32 %v5043_v36, %v11990_v2  ;;  %v5045_v57 = vpop.f32.mrb[213].mxu0  ;;  %v5250_v9 = vadd.f32 %v5249_v51, %v11997_v39  ;;  %5564 = vmatmul.mubr.f32.gmra.mrb[254].mxu1 %v9413_v7  ;;  %v6309_v23 = vadd.f32 %v5981_v42, %v5980_v44 }
 0x556   : > { %v5982_v19 = vmul.f32 %v12415_v60, %v5248_v8  ;;  %v5046_v56 = vadd.f32 %v5045_v57, %v11997_v39  ;;  %v6207_v61 = vadd.f32 %v5913_v3, %v5912_v15 }
 0x557   : > { %v5914_v63 = vmul.f32 %v12441_v5, %v5044_v58  ;;  %v5983_v14 = vmul.f32 %v12421_v16, %v5250_v9  ;;  %v5253_v48 = vpop.f32.mrb[150].mxu1 }
 0x558   : > { %v5915_v45 = vmul.f32 %v12449_v47, %v5046_v56  ;;  %v5049_v4 = vpop.f32.mrb[214].mxu0  ;;  %v5254_v59 = vadd.f32 %v5253_v48, %v11990_v2  ;;  %v5255_v62 = vpop.f32.mrb[151].mxu1  ;;  %6208 = vadd.xlane.f32.xlu1 %v6207_v61  ;;  %6307 = vadd.xlane.f32.xlu0 %v6306_v1 }
 0x559   : > { %v5050_v22 = vadd.f32 %v5049_v4, %v11990_v2  ;;  %v5051_v26 = vpop.f32.mrb[215].mxu0  ;;  %v5256_v12 = vadd.f32 %v5255_v62, %v11997_v39  ;;  %v6312_v10 = vadd.f32 %v5983_v14, %v5982_v19 }
 0x55a   : > { %v5984_v25 = vmul.f32 %v12415_v60, %v5254_v59  ;;  %v5052_v46 = vadd.f32 %v5051_v26, %v11997_v39  ;;  %v6210_v40 = vadd.f32 %v5915_v45, %v5914_v63 }
 0x55b   : > { %v5916_v34 = vmul.f32 %v12441_v5, %v5050_v22  ;;  %v5985_v6 = vmul.f32 %v12421_v16, %v5256_v12  ;;  %v5259_v38 = vpop.f32.mrb[152].mxu1 }
 0x55c   : > { %v5917_v27 = vmul.f32 %v12449_v47, %v5052_v46  ;;  %v5055_v52 = vpop.f32.mrb[216].mxu0  ;;  %v5260_v55 = vadd.f32 %v5259_v38, %v11990_v2  ;;  %v5261_v18 = vpop.f32.mrb[153].mxu1  ;;  %6310 = vadd.xlane.f32.xlu1 %v6309_v23  ;;  %6211 = vadd.xlane.f32.xlu0 %v6210_v40  ;;  %v5670_v46 = vcombine.high %v11538_v17, %v11538_v17 }
 0x55d   : > { %v5056_v37 = vadd.f32 %v5055_v52, %v11990_v2  ;;  %v5057_v21 = vpop.f32.mrb[217].mxu0  ;;  %v5262_v31 = vadd.f32 %v5261_v18, %v11997_v39  ;;  %v6315_v33 = vadd.f32 %v5985_v6, %v5984_v25 }
 0x55e   : > { %v5986_v11 = vmul.f32 %v12415_v60, %v5260_v55  ;;  %v5058_v30 = vadd.f32 %v5057_v21, %v11997_v39  ;;  %v6213_v35 = vadd.f32 %v5917_v27, %v5916_v34 }
 0x55f   : > { %v5918_v29 = vmul.f32 %v12441_v5, %v5056_v37  ;;  %v5987_v1 = vmul.f32 %v12421_v16, %v5262_v31  ;;  %v5265_v44 = vpop.f32.mrb[154].mxu1 }
 0x560   : > { %v5919_v15 = vmul.f32 %v12449_v47, %v5058_v30  ;;  %v5061_v42 = vpop.f32.mrb[218].mxu0  ;;  %v5266_v13 = vadd.f32 %v5265_v44, %v11990_v2  ;;  %v5267_v20 = vpop.f32.mrb[155].mxu1  ;;  %6214 = vadd.xlane.f32.xlu1 %v6213_v35  ;;  %6313 = vadd.xlane.f32.xlu0 %v6312_v10  ;;  %v12498_v30 = vrot.slane %v5670_v46, %v13826_v49 }
 0x561   : > { %v5062_v7 = vadd.f32 %v5061_v42, %v11990_v2  ;;  %v5063_v3 = vpop.f32.mrb[219].mxu0  ;;  %v5268_v36 = vadd.f32 %v5267_v20, %v11997_v39  ;;  %v6318_v8 = vadd.f32 %v5987_v1, %v5986_v11 }
 0x562   : > { %v5988_v51 = vmul.f32 %v12415_v60, %v5266_v13  ;;  %v5064_v58 = vadd.f32 %v5063_v3, %v11997_v39  ;;  %v6216_v19 = vadd.f32 %v5919_v15, %v5918_v29  ;;  %v12501_v29 = vrot.slane %v5670_v46, %v13827_v54 }
 0x563   : > { %v5920_v57 = vmul.f32 %v12441_v5, %v5062_v7  ;;  %v5989_v9 = vmul.f32 %v12421_v16, %v5268_v36  ;;  %v5271_v23 = vpop.f32.mrb[156].mxu1 }
 0x564   : > { %v5921_v56 = vmul.f32 %v12449_v47, %v5064_v58  ;;  %v5067_v63 = vpop.f32.mrb[220].mxu0  ;;  %v5272_v14 = vadd.f32 %v5271_v23, %v11990_v2  ;;  %v5273_v48 = vpop.f32.mrb[157].mxu1  ;;  %6316 = vadd.xlane.f32.xlu1 %v6315_v33  ;;  %6217 = vadd.xlane.f32.xlu0 %v6216_v19  ;;  %v5621_v58 = vcombine.high %v11528_v41, %v11528_v41 }
 0x565   : > { %v5068_v61 = vadd.f32 %v5067_v63, %v11990_v2  ;;  %v5069_v45 = vpop.f32.mrb[221].mxu0  ;;  %v5274_v4 = vadd.f32 %v5273_v48, %v11997_v39  ;;  %v6321_v59 = vadd.f32 %v5989_v9, %v5988_v51 }
 0x566   : > { %v5990_v62 = vmul.f32 %v12415_v60, %v5272_v14  ;;  %v5070_v22 = vadd.f32 %v5069_v45, %v11997_v39  ;;  %v6219_v25 = vadd.f32 %v5921_v56, %v5920_v57 }
 0x567   : > { %v5922_v26 = vmul.f32 %v12441_v5, %v5068_v61  ;;  %v5991_v12 = vmul.f32 %v12421_v16, %v5274_v4  ;;  %v5277_v10 = vpop.f32.mrb[158].mxu1 }
 0x568   : > { %v5923_v34 = vmul.f32 %v12449_v47, %v5070_v22  ;;  %v5073_v6 = vpop.f32.mrb[222].mxu0  ;;  %v5278_v38 = vadd.f32 %v5277_v10, %v11990_v2  ;;  %v5279_v40 = vpop.f32.mrb[159].mxu1  ;;  %6220 = vadd.xlane.f32.xlu1 %v6219_v25  ;;  %6319 = vadd.xlane.f32.xlu0 %v6318_v8  ;;  %v12522_v22 = vrot.slane %v5621_v58, %v13826_v49 }
 0x569   : > { %v5074_v27 = vadd.f32 %v5073_v6, %v11990_v2  ;;  %v5075_v52 = vpop.f32.mrb[223].mxu0  ;;  %v5280_v55 = vadd.f32 %v5279_v40, %v11997_v39  ;;  %v6324_v18 = vadd.f32 %v5991_v12, %v5990_v62 }
 0x56a   : > { %v5992_v37 = vmul.f32 %v12415_v60, %v5278_v38  ;;  %v5076_v21 = vadd.f32 %v5075_v52, %v11997_v39  ;;  %v6222_v11 = vadd.f32 %v5923_v34, %v5922_v26  ;;  %v12529_v38 = vrot.slane %v5621_v58, %v13827_v54 }
 0x56b   : > { %v5924_v17 = vmul.f32 %v12441_v5, %v5074_v27  ;;  %v5993_v31 = vmul.f32 %v12421_v16, %v5280_v55  ;;  %v5283_v33 = vpop.f32.mrb[160].mxu1 }
 0x56c   : > { %v5925_v1 = vmul.f32 %v12449_v47, %v5076_v21  ;;  %v5079_v44 = vpop.f32.mrb[224].mxu0  ;;  %v5284_v35 = vadd.f32 %v5283_v33, %v11990_v2  ;;  %v5285_v60 = vpop.f32.mrb[161].mxu1  ;;  %6322 = vadd.xlane.f32.xlu1 %v6321_v59  ;;  %6223 = vadd.xlane.f32.xlu0 %v6222_v11 }
 0x56d   : > { %v5080_v15 = vadd.f32 %v5079_v44, %v11990_v2  ;;  %v5081_v42 = vpop.f32.mrb[225].mxu0  ;;  %v5286_v16 = vadd.f32 %v5285_v60, %v11997_v39  ;;  %v6327_v13 = vadd.f32 %v5993_v31, %v5992_v37 }
 0x56e   : > { %v5994_v20 = vmul.f32 %v12498_v30, %v5284_v35  ;;  %v5082_v7 = vadd.f32 %v5081_v42, %v11997_v39  ;;  %v6225_v3 = vadd.f32 %v5925_v1, %v5924_v17 }
 0x56f   : > { %v5926_v36 = vmul.f32 %v12441_v5, %v5080_v15  ;;  %v5995_v8 = vmul.f32 %v12501_v29, %v5286_v16  ;;  %v5289_v51 = vpop.f32.mrb[162].mxu1 }
 0x570   : > { %v5927_v57 = vmul.f32 %v12449_v47, %v5082_v7  ;;  %v5085_v9 = vpop.f32.mrb[226].mxu0  ;;  %v5290_v23 = vadd.f32 %v5289_v51, %v11990_v2  ;;  %v5291_v19 = vpop.f32.mrb[163].mxu1  ;;  %6226 = vadd.xlane.f32.xlu1 %v6225_v3  ;;  %6325 = vadd.xlane.f32.xlu0 %v6324_v18 }
 0x571   : > { %v5086_v56 = vadd.f32 %v5085_v9, %v11990_v2  ;;  %v5087_v63 = vpop.f32.mrb[227].mxu0  ;;  %v5292_v14 = vadd.f32 %v5291_v19, %v11997_v39  ;;  %v6330_v48 = vadd.f32 %v5995_v8, %v5994_v20 }
 0x572   : > { %v5996_v61 = vmul.f32 %v12498_v30, %v5290_v23  ;;  %v5088_v45 = vadd.f32 %v5087_v63, %v11997_v39  ;;  %v6228_v62 = vadd.f32 %v5927_v57, %v5926_v36 }
 0x573   : > { %v5928_v41 = vmul.f32 %v12441_v5, %v5086_v56  ;;  %v5997_v4 = vmul.f32 %v12501_v29, %v5292_v14  ;;  %v5295_v59 = vpop.f32.mrb[164].mxu1 }
 0x574   : > { %v5929_v26 = vmul.f32 %v12449_v47, %v5088_v45  ;;  %v5091_v12 = vpop.f32.mrb[228].mxu0  ;;  %v5296_v10 = vadd.f32 %v5295_v59, %v11990_v2  ;;  %v5297_v25 = vpop.f32.mrb[165].mxu1  ;;  %6328 = vadd.xlane.f32.xlu1 %v6327_v13  ;;  %6229 = vadd.xlane.f32.xlu0 %v6228_v62 }
 0x575   : > { %v5092_v46 = vadd.f32 %v5091_v12, %v11990_v2  ;;  %v5093_v34 = vpop.f32.mrb[229].mxu0  ;;  %v5298_v5 = vadd.f32 %v5297_v25, %v11997_v39  ;;  %v6333_v6 = vadd.f32 %v5997_v4, %v5996_v61  ;;  %v12553_v4 = vpop.xlane.xlu0 %6094 }
 0x576   : > { %v5998_v40 = vmul.f32 %v12498_v30, %v5296_v10  ;;  %v5094_v27 = vadd.f32 %v5093_v34, %v11997_v39  ;;  %v6231_v18 = vadd.f32 %v5929_v26, %v5928_v41 }
 0x577   : > { %v5930_v47 = vmul.f32 %v12522_v22, %v5092_v46  ;;  %v5999_v52 = vmul.f32 %v12501_v29, %v5298_v5  ;;  %v5301_v55 = vpop.f32.mrb[166].mxu1 }
 0x578   : > { %v5931_v37 = vmul.f32 %v12529_v38, %v5094_v27  ;;  %v5097_v21 = vpop.f32.mrb[230].mxu0  ;;  %v5302_v17 = vadd.f32 %v5301_v55, %v11990_v2  ;;  %v5303_v31 = vpop.f32.mrb[167].mxu1  ;;  %6232 = vadd.xlane.f32.xlu1 %v6231_v18  ;;  %6331 = vadd.xlane.f32.xlu0 %v6330_v48 }
 0x579   : > { %v5098_v33 = vadd.f32 %v5097_v21, %v11990_v2  ;;  %v5099_v11 = vpop.f32.mrb[231].mxu0  ;;  %v5304_v1 = vadd.f32 %v5303_v31, %v11997_v39  ;;  %v6336_v44 = vadd.f32 %v5999_v52, %v5998_v40  ;;  %v12563_v55 = vpop.xlane.xlu1 %6091 }
 0x57a   : > { %v6000_v35 = vmul.f32 %v12498_v30, %v5302_v17  ;;  %v5100_v60 = vadd.f32 %v5099_v11, %v11997_v39  ;;  %v6234_v13 = vadd.f32 %v5931_v37, %v5930_v47  ;;  %v12569_v11 = vpop.xlane.xlu0 %6097 }
 0x57b   : > { %v5932_v15 = vmul.f32 %v12522_v22, %v5098_v33  ;;  %v6001_v42 = vmul.f32 %v12501_v29, %v5304_v1  ;;  %v5307_v16 = vpop.f32.mrb[168].mxu1 }
 0x57c   : > { %v5933_v20 = vmul.f32 %v12529_v38, %v5100_v60  ;;  %v5103_v7 = vpop.f32.mrb[232].mxu0  ;;  %v5308_v3 = vadd.f32 %v5307_v16, %v11990_v2  ;;  %v5309_v36 = vpop.f32.mrb[169].mxu1  ;;  %6334 = vadd.xlane.f32.xlu1 %v6333_v6  ;;  %6235 = vadd.xlane.f32.xlu0 %v6234_v13 }
 0x57d   : > { %v5104_v8 = vadd.f32 %v5103_v7, %v11990_v2  ;;  %v5105_v51 = vpop.f32.mrb[233].mxu0  ;;  %v5310_v58 = vadd.f32 %v5309_v36, %v11997_v39  ;;  %v6339_v57 = vadd.f32 %v6001_v42, %v6000_v35  ;;  %v12577_v7 = vpop.xlane.xlu1 %6100 }
 0x57e   : > { %v6002_v9 = vmul.f32 %v12498_v30, %v5308_v3  ;;  %v5106_v23 = vadd.f32 %v5105_v51, %v11997_v39  ;;  %v6237_v14 = vadd.f32 %v5933_v20, %v5932_v15  ;;  %v5672_v15 = vcombine.high %v11544_v0, %v11544_v0 }
 0x57f   : > { %v5934_v19 = vmul.f32 %v12522_v22, %v5104_v8  ;;  %v6003_v56 = vmul.f32 %v12501_v29, %v5310_v58  ;;  %v5313_v63 = vpop.f32.mrb[170].mxu1 }
 0x580   : > { %v5935_v48 = vmul.f32 %v12529_v38, %v5106_v23  ;;  %v5109_v61 = vpop.f32.mrb[234].mxu0  ;;  %v5314_v45 = vadd.f32 %v5313_v63, %v11990_v2  ;;  %v5315_v41 = vpop.f32.mrb[171].mxu1  ;;  %6238 = vadd.xlane.f32.xlu1 %v6237_v14  ;;  %6337 = vadd.xlane.f32.xlu0 %v6336_v44  ;;  %v12588_v63 = vrot.slane %v5672_v15, %v13826_v49 }
 0x581   : > { %v5110_v59 = vadd.f32 %v5109_v61, %v11990_v2  ;;  %v5111_v62 = vpop.f32.mrb[235].mxu0  ;;  %v5316_v26 = vadd.f32 %v5315_v41, %v11997_v39  ;;  %v6342_v12 = vadd.f32 %v6003_v56, %v6002_v9  ;;  %v12591_v14 = vrot.slane %v5672_v15, %v13827_v54  ;;  %v12595_v41 = vpop.xlane.xlu1 %6106 }
 0x582   : > { %v6004_v10 = vmul.f32 %v12498_v30, %v5314_v45  ;;  %v5112_v25 = vadd.f32 %v5111_v62, %v11997_v39  ;;  %v6240_v6 = vadd.f32 %v5935_v48, %v5934_v19 }
 0x583   : > { %v5936_v46 = vmul.f32 %v12522_v22, %v5110_v59  ;;  %v6005_v34 = vmul.f32 %v12501_v29, %v5316_v26  ;;  %v5319_v5 = vpop.f32.mrb[172].mxu1 }
 0x584   : > { %v5937_v40 = vmul.f32 %v12529_v38, %v5112_v25  ;;  %v5115_v27 = vpop.f32.mrb[236].mxu0  ;;  %v5320_v47 = vadd.f32 %v5319_v5, %v11990_v2  ;;  %v5321_v52 = vpop.f32.mrb[173].mxu1  ;;  %6340 = vadd.xlane.f32.xlu1 %v6339_v57  ;;  %6241 = vadd.xlane.f32.xlu0 %v6240_v6 }
 0x585   : > { %v5116_v18 = vadd.f32 %v5115_v27, %v11990_v2  ;;  %v5117_v37 = vpop.f32.mrb[237].mxu0  ;;  %v5322_v21 = vadd.f32 %v5321_v52, %v11997_v39  ;;  %v6345_v17 = vadd.f32 %v6005_v34, %v6004_v10  ;;  %v12583_v57 = vpop.xlane.xlu0 %6103 }
 0x586   : > { %v6006_v31 = vmul.f32 %v12498_v30, %v5320_v47  ;;  %v5118_v33 = vadd.f32 %v5117_v37, %v11997_v39  ;;  %v6243_v60 = vadd.f32 %v5937_v40, %v5936_v46  ;;  %v5623_v40 = vcombine.high %v11531_v43, %v11531_v43  ;;  %v12609_v37 = vpop.xlane.xlu1 %6112 }
 0x587   : > { %v5938_v1 = vmul.f32 %v12522_v22, %v5116_v18  ;;  %v6007_v44 = vmul.f32 %v12501_v29, %v5322_v21  ;;  %v5325_v35 = vpop.f32.mrb[174].mxu1 }
 0x588   : > { %v5939_v42 = vmul.f32 %v12529_v38, %v5118_v33  ;;  %v5121_v16 = vpop.f32.mrb[238].mxu0  ;;  %v5326_v13 = vadd.f32 %v5325_v35, %v11990_v2  ;;  %v5327_v20 = vpop.f32.mrb[175].mxu1  ;;  %6343 = vadd.xlane.f32.xlu1 %v6342_v12  ;;  %6346 = vadd.xlane.f32.xlu0 %v6345_v17 }
 0x589   : > { %v5122_v3 = vadd.f32 %v5121_v16, %v11990_v2  ;;  %v5123_v36 = vpop.f32.mrb[239].mxu0  ;;  %v5328_v8 = vadd.f32 %v5327_v20, %v11997_v39  ;;  %v6348_v51 = vadd.f32 %v6007_v44, %v6006_v31  ;;  %v12601_v46 = vpop.xlane.xlu0 %6109  ;;  %v12620_v16 = vrot.slane %v5623_v40, %v13826_v49 }
 0x58a   : > { %v6008_v58 = vmul.f32 %v12498_v30, %v5326_v13  ;;  %v5124_v0 = vadd.f32 %v5123_v36, %v11997_v39  ;;  %v6246_v56 = vadd.f32 %v5939_v42, %v5938_v1 }
 0x58b   : > { %v5940_v9 = vmul.f32 %v12522_v22, %v5122_v3  ;;  %v6009_v23 = vmul.f32 %v12501_v29, %v5328_v8  ;;  %v5331_v19 = vpop.f32.mrb[176].mxu1  ;;  %v12624_v8 = vpop.xlane.xlu1 %6118 }
 0x58c   : > { %v5941_v48 = vmul.f32 %v12529_v38, %v5124_v0  ;;  %v5127_v61 = vpop.f32.mrb[240].mxu0  ;;  %v5332_v30 = vadd.f32 %v5331_v19, %v11990_v2  ;;  %v5333_v45 = vpop.f32.mrb[177].mxu1  ;;  %6244 = vadd.xlane.f32.xlu1 %v6243_v60  ;;  %6247 = vadd.xlane.f32.xlu0 %v6246_v56 }
 0x58d   : > { %v5128_v59 = vadd.f32 %v5127_v61, %v11990_v2  ;;  %v5129_v29 = vpop.f32.mrb[241].mxu0  ;;  %v5334_v62 = vadd.f32 %v5333_v45, %v11997_v39  ;;  %v6351_v26 = vadd.f32 %v6009_v23, %v6008_v58  ;;  %v12615_v44 = vpop.xlane.xlu0 %6115 }
 0x58e   : > { %v6010_v12 = vmul.f32 %v12588_v63, %v5332_v30  ;;  %v5130_v10 = vadd.f32 %v5129_v29, %v11997_v39  ;;  %v6249_v25 = vadd.f32 %v5941_v48, %v5940_v9  ;;  %v12629_v9 = vrot.slane %v5623_v40, %v13827_v54 }
 0x58f   : > { %v5942_v34 = vmul.f32 %v12522_v22, %v5128_v59  ;;  %v6011_v5 = vmul.f32 %v12591_v14, %v5334_v62  ;;  %v5337_v6 = vpop.f32.mrb[178].mxu1 }
 0x590   : > { %v5943_v27 = vmul.f32 %v12529_v38, %v5130_v10  ;;  %v5133_v47 = vpop.f32.mrb[242].mxu0  ;;  %v5338_v52 = vadd.f32 %v5337_v6, %v11990_v2  ;;  %v5339_v18 = vpop.f32.mrb[179].mxu1  ;;  %6250 = vadd.xlane.f32.xlu1 %v6249_v25  ;;  %6349 = vadd.xlane.f32.xlu0 %v6348_v51 }
 0x591   : > { %v5134_v21 = vadd.f32 %v5133_v47, %v11990_v2  ;;  %v5135_v17 = vpop.f32.mrb[243].mxu0  ;;  %v5340_v31 = vadd.f32 %v5339_v18, %v11997_v39  ;;  %v6354_v33 = vadd.f32 %v6011_v5, %v6010_v12  ;;  %v12633_v19 = vpop.xlane.xlu0 %6121 }
 0x592   : > { %v6012_v1 = vmul.f32 %v12588_v63, %v5338_v52  ;;  %v5136_v43 = vadd.f32 %v5135_v17, %v11997_v39  ;;  %v6252_v42 = vadd.f32 %v5943_v27, %v5942_v34 }
 0x593   : > { %v5944_v35 = vmul.f32 %v12522_v22, %v5134_v21  ;;  %v6013_v60 = vmul.f32 %v12591_v14, %v5340_v31  ;;  %v5343_v15 = vpop.f32.mrb[180].mxu1 }
 0x594   : > { %v5945_v13 = vmul.f32 %v12529_v38, %v5136_v43  ;;  %v5139_v20 = vpop.f32.mrb[244].mxu0  ;;  %v5344_v3 = vadd.f32 %v5343_v15, %v11990_v2  ;;  %v5345_v36 = vpop.f32.mrb[181].mxu1  ;;  %6352 = vadd.xlane.f32.xlu1 %v6351_v26  ;;  %6253 = vadd.xlane.f32.xlu0 %v6252_v42 }
 0x595   : > { %v5140_v51 = vadd.f32 %v5139_v20, %v11990_v2  ;;  %v5141_v22 = vpop.f32.mrb[245].mxu0  ;;  %v5346_v58 = vadd.f32 %v5345_v36, %v11997_v39  ;;  %v6357_v0 = vadd.f32 %v6013_v60, %v6012_v1  ;;  %v12639_v26 = vpop.xlane.xlu1 %6124 }
 0x596   : > { %v6014_v23 = vmul.f32 %v12588_v63, %v5344_v3  ;;  %v5142_v38 = vadd.f32 %v5141_v22, %v11997_v39  ;;  %v6255_v30 = vadd.f32 %v5945_v13, %v5944_v35  ;;  %v12645_v40 = vpop.xlane.xlu0 %6127 }
 0x597   : > { %v5946_v56 = vmul.f32 %v12620_v16, %v5140_v51  ;;  %v6015_v48 = vmul.f32 %v12591_v14, %v5346_v58  ;;  %v5349_v61 = vpop.f32.mrb[182].mxu1 }
 0x598   : > { %v5947_v45 = vmul.f32 %v12629_v9, %v5142_v38  ;;  %v5145_v59 = vpop.f32.mrb[246].mxu0  ;;  %v5350_v29 = vadd.f32 %v5349_v61, %v11990_v2  ;;  %v5351_v62 = vpop.f32.mrb[183].mxu1  ;;  %6256 = vadd.xlane.f32.xlu1 %v6255_v30  ;;  %6355 = vadd.xlane.f32.xlu0 %v6354_v33 }
 0x599   : > { %v5146_v12 = vadd.f32 %v5145_v59, %v11990_v2  ;;  %v5147_v10 = vpop.f32.mrb[247].mxu0  ;;  %v5352_v25 = vadd.f32 %v5351_v62, %v11997_v39  ;;  %v6360_v34 = vadd.f32 %v6015_v48, %v6014_v23  ;;  %v12651_v1 = vpop.xlane.xlu1 %6130 }
 0x59a   : > { %v6016_v5 = vmul.f32 %v12588_v63, %v5350_v29  ;;  %v5148_v6 = vadd.f32 %v5147_v10, %v11997_v39  ;;  %v6258_v18 = vadd.f32 %v5947_v45, %v5946_v56  ;;  %v12657_v20 = vpop.xlane.xlu0 %6133 }
 0x59b   : > { %v5948_v27 = vmul.f32 %v12620_v16, %v5146_v12  ;;  %v6017_v47 = vmul.f32 %v12591_v14, %v5352_v25  ;;  %v5355_v52 = vpop.f32.mrb[184].mxu1 }
 0x59c   : > { %v5949_v21 = vmul.f32 %v12629_v9, %v5148_v6  ;;  %v5151_v17 = vpop.f32.mrb[248].mxu0  ;;  %v5356_v31 = vadd.f32 %v5355_v52, %v11990_v2  ;;  %v5357_v33 = vpop.f32.mrb[185].mxu1  ;;  %6358 = vadd.xlane.f32.xlu1 %v6357_v0  ;;  %6259 = vadd.xlane.f32.xlu0 %v6258_v18 }
 0x59d   : > { %v5152_v43 = vadd.f32 %v5151_v17, %v11990_v2  ;;  %v5153_v35 = vpop.f32.mrb[249].mxu0  ;;  %v5358_v60 = vadd.f32 %v5357_v33, %v11997_v39  ;;  %v6363_v15 = vadd.f32 %v6017_v47, %v6016_v5  ;;  %v12663_v56 = vpop.xlane.xlu1 %6136 }
 0x59e   : > { %v6018_v42 = vmul.f32 %v12588_v63, %v5356_v31  ;;  %v5154_v13 = vadd.f32 %v5153_v35, %v11997_v39  ;;  %v6261_v22 = vadd.f32 %v5949_v21, %v5948_v27  ;;  %v12669_v62 = vpop.xlane.xlu0 %6139 }
 0x59f   : > { %v5950_v3 = vmul.f32 %v12620_v16, %v5152_v43  ;;  %v6019_v36 = vmul.f32 %v12591_v14, %v5358_v60  ;;  %v5361_v51 = vpop.f32.mrb[186].mxu1 }
 0x5a0   : > { %v5951_v58 = vmul.f32 %v12629_v9, %v5154_v13  ;;  %v5157_v0 = vpop.f32.mrb[250].mxu0  ;;  %v5362_v23 = vadd.f32 %v5361_v51, %v11990_v2  ;;  %v5363_v38 = vpop.f32.mrb[187].mxu1  ;;  %6262 = vadd.xlane.f32.xlu1 %v6261_v22  ;;  %6361 = vadd.xlane.f32.xlu0 %v6360_v34 }
 0x5a1   : > { %v5158_v48 = vadd.f32 %v5157_v0, %v11990_v2  ;;  %v5159_v61 = vpop.f32.mrb[251].mxu0  ;;  %v5364_v30 = vadd.f32 %v5363_v38, %v11997_v39  ;;  %v6366_v45 = vadd.f32 %v6019_v36, %v6018_v42  ;;  %v12675_v52 = vpop.xlane.xlu1 %6142  ;;  %v12687_v36 = vcombine.high %v11541_v24, %v11541_v24 }
 0x5a2   : > { %v6020_v59 = vmul.f32 %v12588_v63, %v5362_v23  ;;  %v5160_v29 = vadd.f32 %v5159_v61, %v11997_v39  ;;  %v6264_v5 = vadd.f32 %v5951_v58, %v5950_v3  ;;  %v12681_v35 = vpop.xlane.xlu0 %6145  ;;  %v13830_v0 = vlaneseq }
 0x5a3   : > { %v5952_v12 = vmul.f32 %v12620_v16, %v5158_v48  ;;  %v6021_v10 = vmul.f32 %v12591_v14, %v5364_v30  ;;  %v5367_v25 = vpop.f32.mrb[188].mxu1  ;;  %13829 = vst [vmem:[#allocation29_spill] sm:$0xff] %v12687_v36 }
 0x5a4   : > { %v5953_v6 = vmul.f32 %v12629_v9, %v5160_v29  ;;  %v5163_v27 = vpop.f32.mrb[252].mxu0  ;;  %v5368_v34 = vadd.f32 %v5367_v25, %v11990_v2  ;;  %v5369_v47 = vpop.f32.mrb[189].mxu1  ;;  %6367 = vadd.xlane.f32.xlu1 %v6366_v45  ;;  %6364 = vadd.xlane.f32.xlu0 %v6363_v15  ;;  %v12694_v23 = vand.u32 127, %v13830_v0  ;;  %v12706_v29 = vrot.slane %v11541_v24, %v13827_v54 }
 0x5a5   : > { %v5164_v18 = vadd.f32 %v5163_v27, %v11990_v2  ;;  %v5165_v21 = vpop.f32.mrb[253].mxu0  ;;  %v5370_v17 = vadd.f32 %v5369_v47, %v11997_v39  ;;  %v6369_v31 = vadd.f32 %v6021_v10, %v6020_v59  ;;  %v12696_v38 = vpop.xlane.xlu1 %6148  ;;  %v12702_v59 = vrot.slane %v11541_v24, %v13826_v49 }
 0x5a6   : > { %v6022_v33 = vmul.f32 %v12588_v63, %v5368_v34  ;;  %v5166_v43 = vadd.f32 %v5165_v21, %v11997_v39  ;;  %v6267_v3 = vadd.f32 %v5953_v6, %v5952_v12  ;;  %v6738_v25 = vadd.s32 4294967288, %v12694_v23  ;;  %v12711_v6 = vpop.xlane.xlu0 %6151 }
 0x5a7   : > { %v5954_v60 = vmul.f32 %v12620_v16, %v5164_v18  ;;  %v6023_v42 = vmul.f32 %v12591_v14, %v5370_v17  ;;  %v5373_v13 = vpop.f32.mrb[190].mxu1  ;;  %13831 = vst [vmem:[#allocation30_spill] sm:$0xff] %v12711_v6  ;;  %v6745_v18 = vadd.s32 4294967280, %v12694_v23  ;;  %v6752_v21 = vadd.s32 4294967272, %v12694_v23 }
 0x5a8   : > { %v5955_v15 = vmul.f32 %v12629_v9, %v5166_v43  ;;  %v5169_v51 = vpop.f32.mrb[254].mxu0  ;;  %v5374_v22 = vadd.f32 %v5373_v13, %v11990_v2  ;;  %v5375_v58 = vpop.f32.mrb[191].mxu1  ;;  %6268 = vadd.xlane.f32.xlu1 %v6267_v3  ;;  %6265 = vadd.xlane.f32.xlu0 %v6264_v5  ;;  %v6759_v3 = vadd.s32 4294967264, %v12694_v23  ;;  %v12731_v0 = vsub.s32 %v6738_v25, %v13828_v50 }
 0x5a9   : > { %v5170_v48 = vadd.f32 %v5169_v51, %v11990_v2  ;;  %v5171_v61 = vpop.f32.mrb[255].mxu0  ;;  %v5376_v30 = vadd.f32 %v5375_v58, %v11997_v39  ;;  %v6372_v45 = vadd.f32 %v6023_v42, %v6022_v33  ;;  %v12719_v43 = vpop.xlane.xlu1 %6154  ;;  %v12728_v58 = vsub.s32 %v12694_v23, %v13828_v50 }
 0x5aa   : > { %v6024_v12 = vmul.f32 %v12588_v63, %v5374_v22  ;;  %v5172_v10 = vadd.f32 %v5171_v61, %v11997_v39  ;;  %v6270_v47 = vadd.f32 %v5955_v15, %v5954_v60  ;;  %13832 = vst [vmem:[#allocation31_spill] sm:$0xff] %v12719_v43 }
 0x5ab   : > { %v5956_v5 = vmul.f32 %v12620_v16, %v5170_v48  ;;  %v6025_v27 = vmul.f32 %v12591_v14, %v5376_v30  ;;  %v5379_v34 = vpop.f32.mrb[192].mxu1 }
 0x5ac   : > { %v5957_v24 = vmul.f32 %v12629_v9, %v5172_v10  ;;  %v5175_v17 = vpop.f32.mrb[0].mxu0  ;;  %v5380_v63 = vadd.f32 %v5379_v34, %v11990_v2  ;;  %v5381_v33 = vpop.f32.mrb[193].mxu1  ;;  %6370 = vadd.xlane.f32.xlu1 %v6369_v31  ;;  %6271 = vadd.xlane.f32.xlu0 %v6270_v47  ;;  %v12741_v10 = vsub.s32 %v6752_v21, %v13828_v50  ;;  %v12746_v47 = vstv %s12691_s29  ;;  %s9425_s29 = scalar_lea.vmem %s9424_s20, 512 }
 0x5ad   : > { %v5176_v42 = vadd.f32 %v5175_v17, %v11990_v2  ;;  %v5177_v13 = vpop.f32.mrb[1].mxu0  ;;  %v5382_v14 = vadd.f32 %v5381_v33, %v11997_v39  ;;  %v6375_v60 = vadd.f32 %v6025_v27, %v6024_v12  ;;  %v12733_v31 = vpop.xlane.xlu0 %6157  ;;  %v12738_v12 = vsub.s32 %v6745_v18, %v13828_v50  ;;  %p9427_p2 = scmp.lt.s32.totalorder %s9425_s29, %s9419_s2 }
 0x5ae   : > { %v6026_v15 = vmul.f32 %v12702_v59, %v5380_v63  ;;  %v5178_v51 = vadd.f32 %v5177_v13, %v11997_v39  ;;  %v6273_v22 = vadd.f32 %v5957_v24, %v5956_v5  ;;  %13833 = vst [vmem:[#allocation32_spill] sm:$0xff] %v12733_v31  ;;  %v12748_v24 = vpop.xlane.xlu1 %6160  ;;  %v12753_v21 = vsub.s32 %v6759_v3, %v13828_v50 }
 0x5af   : > { %v5958_v48 = vmul.f32 %v12620_v16, %v5176_v42  ;;  %v6027_v61 = vmul.f32 %v12706_v29, %v5382_v14  ;;  %v5385_v30 = vpop.f32.mrb[194].mxu1  ;;  %13834 = vst [vmem:[#allocation33_spill] sm:$0xff] %v12748_v24  ;;  %v6766_v42 = vadd.s32 4294967256, %v12694_v23  ;;  %v6780_v3 = vadd.s32 4294967240, %v12694_v23  ;;  %p9428_p3 = por %p9427_p2, %p9426_p1 }
 0x5b0   : > { %v5959_v5 = vmul.f32 %v12629_v9, %v5178_v51  ;;  %v5181_v27 = vpop.f32.mrb[2].mxu0  ;;  %v5386_v34 = vadd.f32 %v5385_v30, %v11990_v2  ;;  %v5387_v25 = vpop.f32.mrb[195].mxu1  ;;  %6274 = vadd.xlane.f32.xlu1 %v6273_v22  ;;  %6373 = vadd.xlane.f32.xlu0 %v6372_v45  ;;  %v6773_v51 = vadd.s32 4294967248, %v12694_v23 }
 0x5b1   : > { %v5182_v17 = vadd.f32 %v5181_v27, %v11990_v2  ;;  %v5183_v63 = vpop.f32.mrb[3].mxu0  ;;  %v5388_v18 = vadd.f32 %v5387_v25, %v11997_v39  ;;  %v6378_v33 = vadd.f32 %v6027_v61, %v6026_v15  ;;  %v6164_v30 = vpop.xlane.xlu0 %6163  ;;  %v12763_v15 = vadd.f32 %v12746_v47, %v12563_v55  ;;  %p9429_p4 = pnand %p9428_p3, %p9422_p0 }
 0x5b2   : > { %v6028_v13 = vmul.f32 %v12702_v59, %v5386_v34  ;;  %v5184_v14 = vadd.f32 %v5183_v63, %v11997_v39  ;;  %v6276_v36 = vadd.f32 %v5959_v5, %v5958_v48  ;;  %v6167_v24 = vpop.xlane.xlu1 %6166  ;;  %v12772_v55 = vadd.f32 %v12746_v47, %v12553_v4 }
 0x5b3   : > { %v5960_v27 = vmul.f32 %v12620_v16, %v5182_v17  ;;  %v6029_v45 = vmul.f32 %v12706_v29, %v5388_v18  ;;  %v5391_v22 = vpop.f32.mrb[196].mxu1  ;;  %v12775_v23 = vsub.s32 %v6766_v42, %v13828_v50  ;;  %v12780_v18 = vsub.s32 %v6773_v51, %v13828_v50 }
 0x5b4   : > { %v5961_v61 = vmul.f32 %v12629_v9, %v5184_v14  ;;  %v5187_v34 = vpop.f32.mrb[4].mxu0  ;;  %v5392_v25 = vadd.f32 %v5391_v22, %v11990_v2  ;;  %v5393_v63 = vpop.f32.mrb[197].mxu1  ;;  %6376 = vadd.xlane.f32.xlu1 %v6375_v60  ;;  %6277 = vadd.xlane.f32.xlu0 %v6276_v36  ;;  %v12787_v42 = vsub.s32 %v6780_v3, %v13828_v50 }
 0x5b5   : > { %v5188_v31 = vadd.f32 %v5187_v34, %v11990_v2  ;;  %v5189_v16 = vpop.f32.mrb[5].mxu0  ;;  %v5394_v48 = vadd.f32 %v5393_v63, %v11997_v39  ;;  %v6381_v5 = vadd.f32 %v6029_v45, %v6028_v13  ;;  %v6170_v60 = vpop.xlane.xlu0 %6169  ;;  %v6501_v3 = vadd.f32 %v12746_v47, %v6167_v24 }
 0x5b6   : > { %v6030_v9 = vmul.f32 %v12702_v59, %v5392_v25  ;;  %v5190_v17 = vadd.f32 %v5189_v16, %v11997_v39  ;;  %v6279_v45 = vadd.f32 %v5961_v61, %v5960_v27  ;;  %v6173_v63 = vpop.xlane.xlu1 %6172  ;;  %v6502_v24 = vadd.f32 %v12746_v47, %v6170_v60 }
 0x5b7   : > { %v5962_v36 = vmul.f32 %v12353_v53, %v5188_v31  ;;  %v6031_v14 = vmul.f32 %v12706_v29, %v5394_v48  ;;  %v5397_v13 = vpop.f32.mrb[198].mxu1  ;;  %v6503_v60 = vadd.f32 %v12746_v47, %v6173_v63 }
 0x5b8   : > { %v5963_v22 = vmul.f32 %v12359_v32, %v5190_v17  ;;  %v5193_v34 = vpop.f32.mrb[6].mxu0  ;;  %v5398_v25 = vadd.f32 %v5397_v13, %v11990_v2  ;;  %v5399_v51 = vpop.f32.mrb[199].mxu1  ;;  %6379 = vadd.xlane.f32.xlu1 %v6378_v33  ;;  %6382 = vadd.xlane.f32.xlu0 %v6381_v5  ;;  %v12800_v13 = vadd.f32 %v12746_v47, %v12569_v11 }
 0x5b9   : > { %v5194_v16 = vadd.f32 %v5193_v34, %v11990_v2  ;;  %v5195_v31 = vpop.f32.mrb[7].mxu0  ;;  %v5400_v27 = vadd.f32 %v5399_v51, %v11997_v39  ;;  %v6384_v61 = vadd.f32 %v6031_v14, %v6030_v9  ;;  %v6176_v9 = vpop.xlane.xlu0 %6175  ;;  %v6500_v51 = vadd.f32 %v12746_v47, %v6164_v30 }
 0x5ba   : > { %v6032_v48 = vmul.f32 %v12702_v59, %v5398_v25  ;;  %v5196_v17 = vadd.f32 %v5195_v31, %v11997_v39  ;;  %v6282_v34 = vadd.f32 %v5963_v22, %v5962_v36  ;;  %v6872_v30 = vrot.slane %v6501_v3, %v12731_v0 }
 0x5bb   : > { %v5964_v33 = vmul.f32 %v12353_v53, %v5194_v16  ;;  %v6033_v5 = vmul.f32 %v12706_v29, %v5400_v27  ;;  %v5403_v14 = vpop.f32.mrb[200].mxu1 }
 0x5bc   : > { %v5965_v25 = vmul.f32 %v12359_v32, %v5196_v17  ;;  %v5199_v50 = vpop.f32.mrb[8].mxu0  ;;  %v5404_v31 = vadd.f32 %v5403_v14, %v11990_v2  ;;  %v5405_v4 = vpop.f32.mrb[201].mxu1  ;;  %6280 = vadd.xlane.f32.xlu1 %v6279_v45  ;;  %6283 = vadd.xlane.f32.xlu0 %v6282_v34  ;;  %v6504_v14 = vadd.f32 %v12746_v47, %v6176_v9 }
 0x5bd   : > { %v5200_v11 = vadd.f32 %v5199_v50, %v11990_v2  ;;  %v5201_v16 = vpop.f32.mrb[9].mxu0  ;;  %v5406_v27 = vadd.f32 %v5405_v4, %v11997_v39  ;;  %v6179_v43 = vpop.xlane.xlu1 %6178  ;;  %v6387_v36 = vadd.f32 %v6033_v5, %v6032_v48  ;;  %v6877_v4 = vrot.slane %v6502_v24, %v12738_v12 }
 0x5be   : > { %v6034_v22 = vmul.f32 %v12702_v59, %v5404_v31  ;;  %v5202_v17 = vadd.f32 %v5201_v16, %v11997_v39  ;;  %v6285_v6 = vadd.f32 %v5965_v25, %v5964_v33  ;;  %v6505_v3 = vadd.f32 %v12746_v47, %v6179_v43 }
 0x5bf   : > { %v5966_v50 = vmul.f32 %v12353_v53, %v5200_v11  ;;  %v6035_v45 = vmul.f32 %v12706_v29, %v5406_v27  ;;  %v5409_v34 = vpop.f32.mrb[202].mxu1  ;;  %v6868_v31 = vrot.slane %v6500_v51, %v12728_v58  ;;  %v6882_v33 = vrot.slane %v6503_v60, %v12741_v10 }
 0x5c0   : > { %v5967_v48 = vmul.f32 %v12359_v32, %v5202_v17  ;;  %v5410_v63 = vadd.f32 %v5409_v34, %v11990_v2  ;;  %v5411_v5 = vpop.f32.mrb[203].mxu1  ;;  %6385 = vadd.xlane.f32.xlu1 %v6384_v61  ;;  %6388 = vadd.xlane.f32.xlu0 %v6387_v36  ;;  %v6182_v9 = vpop.xlane.xlu0 %6181  ;;  %v6479_v43 = vadd.f32 %v12746_v47, %v12577_v7 }
 0x5c1   : > { %v5412_v53 = vadd.f32 %v5411_v5, %v11997_v39  ;;  %v6390_v11 = vadd.f32 %v6035_v45, %v6034_v22  ;;  %v6506_v32 = vadd.f32 %v12746_v47, %v6182_v9  ;;  %v6873_v16 = vsel %vm6743_vm1, %v6872_v30, %v6868_v31 }
 0x5c2   : > { %v6036_v24 = vmul.f32 %v12702_v59, %v5410_v63  ;;  %v6288_v25 = vadd.f32 %v5967_v48, %v5966_v50  ;;  %v6887_v51 = vrot.slane %v6504_v14, %v12753_v21  ;;  %v6480_v36 = vadd.f32 %v12746_v47, %v12583_v57 }
 0x5c3   : > { %v6037_v61 = vmul.f32 %v12706_v29, %v5412_v53  ;;  %v5415_v27 = vpop.f32.mrb[204].mxu1  ;;  %v6878_v60 = vsel %vm6750_vm2, %v6877_v4, %v6873_v16  ;;  %v6892_v22 = vrot.slane %v6505_v3, %v12775_v23  ;;  %v6897_v7 = vrot.slane %v6506_v32, %v12780_v18 }
 0x5c4   : > { %v5416_v17 = vadd.f32 %v5415_v27, %v11990_v2  ;;  %v5417_v50 = vpop.f32.mrb[205].mxu1  ;;  %6286 = vadd.xlane.f32.xlu1 %v6285_v6  ;;  %6289 = vadd.xlane.f32.xlu0 %v6288_v25  ;;  %v6185_v14 = vpop.xlane.xlu1 %6184  ;;  %v6481_v34 = vadd.f32 %v12746_v47, %v12595_v41  ;;  %v6883_v57 = vsel %vm6757_vm3, %v6882_v33, %v6878_v60 }
 0x5c5   : > { %v5418_v30 = vadd.f32 %v5417_v50, %v11997_v39  ;;  %v6393_v45 = vadd.f32 %v6037_v61, %v6036_v24  ;;  %v6507_v48 = vadd.f32 %v12746_v47, %v6185_v14  ;;  %v6749_v3 = vrot.slane %v12800_v13, %v12738_v12 }
 0x5c6   : > { %v6038_v4 = vmul.f32 %v12702_v59, %v5416_v17  ;;  %v6756_v63 = vrot.slane %v6479_v43, %v12741_v10  ;;  %v6888_v6 = vsel %vm6764_vm4, %v6887_v51, %v6883_v57  ;;  %v6763_v53 = vrot.slane %v6480_v36, %v12753_v21 }
 0x5c7   : > { %v6039_v5 = vmul.f32 %v12706_v29, %v5418_v30  ;;  %v5421_v31 = vpop.f32.mrb[206].mxu1  ;;  %v6893_v41 = vsel %vm6771_vm5, %v6892_v22, %v6888_v6  ;;  %v6902_v9 = vrot.slane %v6507_v48, %v12787_v42  ;;  %v13835_v43 = vrot.slane %v12763_v15, %v12728_v58 }
 0x5c8   : > { %v5422_v33 = vadd.f32 %v5421_v31, %v11990_v2  ;;  %v5423_v24 = vpop.f32.mrb[207].mxu1  ;;  %v6898_v32 = vsel %vm6778_vm6, %v6897_v7, %v6893_v41  ;;  %6394 = vadd.xlane.f32.xlu1 %v6393_v45  ;;  %6391 = vadd.xlane.f32.xlu0 %v6390_v11  ;;  %v13836_v16 = vrot.slane %v12772_v55, %v12731_v0  ;;  %v6188_v60 = vpop.xlane.xlu0 %6187 }
 0x5c9   : > { %v5424_v13 = vadd.f32 %v5423_v24, %v11997_v39  ;;  %v6396_v25 = vadd.f32 %v6039_v5, %v6038_v4  ;;  %v6770_v61 = vrot.slane %v6481_v34, %v12775_v23  ;;  %v12863_v27 = vsel %vm6785_vm7, %v6902_v9, %v6898_v32 }
 0x5ca   : > { %v6744_v51 = vsel %vm6743_vm1, %v13836_v16, %v13835_v43  ;;  %v6040_v36 = vmul.f32 %v12702_v59, %v5422_v33  ;;  %v6484_v22 = vadd.f32 %v12746_v47, %v12615_v44  ;;  %v6485_v15 = vadd.f32 %v12746_v47, %v12624_v8 }
 0x5cb   : > { %v6751_v11 = vsel %vm6750_vm2, %v6749_v3, %v6744_v51  ;;  %v6041_v55 = vmul.f32 %v12706_v29, %v5424_v13  ;;  %v5427_v17 = vpop.f32.mrb[208].mxu1  ;;  %v12872_v50 = vpop.xlane.xlu1 %6292  ;;  %v12876_v7 = vrot.slane %v11547_v28, %v13826_v49  ;;  %v6486_v30 = vadd.f32 %v12746_v47, %v12633_v19 }
 0x5cc   : > { %v6758_v59 = vsel %vm6757_vm3, %v6756_v63, %v6751_v11  ;;  %v5428_v14 = vadd.f32 %v5427_v17, %v11990_v2  ;;  %v5429_v44 = vpop.f32.mrb[209].mxu1  ;;  %v12884_v8 = vrot.slane %v11547_v28, %v13827_v54  ;;  %6397 = vadd.xlane.f32.xlu0 %v6396_v25  ;;  %v12893_v4 = vadd.f32 %v12746_v47, %v12601_v46 }
 0x5cd   : > { %v6765_v29 = vsel %vm6764_vm4, %v6763_v53, %v6758_v59  ;;  %v5430_v45 = vadd.f32 %v5429_v44, %v11997_v39  ;;  %v6399_v34 = vadd.f32 %v6041_v55, %v6040_v36  ;;  %v6508_v19 = vadd.f32 %v12746_v47, %v6188_v60 }
 0x5ce   : > { %v12889_v57 = vsel %vm6771_vm5, %v6770_v61, %v6765_v29  ;;  %v6042_v48 = vmul.f32 %v12876_v7, %v5428_v14  ;;  %v6790_v3 = vrot.slane %v6484_v22, %v12728_v58  ;;  %v6794_v63 = vrot.slane %v6485_v15, %v12731_v0 }
 0x5cf   : > { %v6487_v6 = vadd.f32 %v12746_v47, %v12639_v26  ;;  %v6043_v5 = vmul.f32 %v12884_v8, %v5430_v45  ;;  %v5433_v31 = vpop.f32.mrb[210].mxu1  ;;  %v6191_v53 = vpop.xlane.xlu1 %6190  ;;  %v6799_v41 = vrot.slane %v6486_v30, %v12738_v12  ;;  %v6488_v46 = vadd.f32 %v12746_v47, %v12645_v40 }
 0x5d0   : > { %v5434_v9 = vadd.f32 %v5433_v31, %v11990_v2  ;;  %v6509_v33 = vadd.f32 %v12746_v47, %v6191_v53  ;;  %v5435_v24 = vpop.f32.mrb[211].mxu1  ;;  %v6489_v32 = vadd.f32 %v12746_v47, %v12651_v1  ;;  %v6490_v26 = vadd.f32 %v12746_v47, %v12657_v20  ;;  %6400 = vadd.xlane.f32.xlu0 %v6399_v34 }
 0x5d1   : > { %v5436_v13 = vadd.f32 %v5435_v24, %v11997_v39  ;;  %v6194_v25 = vpop.xlane.xlu0 %6193  ;;  %v6402_v43 = vadd.f32 %v6043_v5, %v6042_v48  ;;  %v6907_v16 = vrot.slane %v6508_v19, %v12728_v58  ;;  %v12918_v36 = vadd.f32 %v12746_v47, %v12609_v37 }
 0x5d2   : > { %v6044_v40 = vmul.f32 %v12876_v7, %v5434_v9  ;;  %v6911_v51 = vrot.slane %v6509_v33, %v12731_v0  ;;  %v6510_v61 = vadd.f32 %v12746_v47, %v6194_v25  ;;  %v6795_v1 = vsel %vm6743_vm1, %v6794_v63, %v6790_v3 }
 0x5d3   : > { %v6804_v20 = vrot.slane %v6487_v6, %v12741_v10  ;;  %v6045_v60 = vmul.f32 %v12884_v8, %v5436_v13  ;;  %v5439_v11 = vpop.f32.mrb[212].mxu1  ;;  %v6809_v22 = vrot.slane %v6488_v46, %v12753_v21  ;;  %v6800_v30 = vsel %vm6750_vm2, %v6799_v41, %v6795_v1 }
 0x5d4   : > { %v6912_v15 = vsel %vm6743_vm1, %v6911_v51, %v6907_v16  ;;  %v6916_v55 = vrot.slane %v6510_v61, %v12738_v12  ;;  %v5440_v17 = vadd.f32 %v5439_v11, %v11990_v2  ;;  %v5441_v59 = vpop.f32.mrb[213].mxu1  ;;  %v6814_v37 = vrot.slane %v6489_v32, %v12775_v23  ;;  %6403 = vadd.xlane.f32.xlu0 %v6402_v43 }
 0x5d5   : > { %v5442_v14 = vadd.f32 %v5441_v59, %v11997_v39  ;;  %v6197_v44 = vpop.xlane.xlu1 %6196  ;;  %v12930_v29 = vpop.xlane.xlu0 %6295  ;;  %v6405_v45 = vadd.f32 %v6045_v60, %v6044_v40  ;;  %v6819_v34 = vrot.slane %v6490_v26, %v12780_v18  ;;  %v6777_v63 = vrot.slane %v12893_v4, %v12780_v18 }
 0x5d6   : > { %v6917_v19 = vsel %vm6750_vm2, %v6916_v55, %v6912_v15  ;;  %v6046_v48 = vmul.f32 %v12876_v7, %v5440_v17  ;;  %v6511_v3 = vadd.f32 %v12746_v47, %v6197_v44  ;;  %v6784_v6 = vrot.slane %v12918_v36, %v12787_v42  ;;  %v13837_v15 = vld [vmem:[#allocation30_spill] sm:$0xff] }
 0x5d7   : > { %v6805_v5 = vsel %vm6757_vm3, %v6804_v20, %v6800_v30  ;;  %v6047_v31 = vmul.f32 %v12884_v8, %v5442_v14  ;;  %v5445_v53 = vpop.f32.mrb[214].mxu1  ;;  %6406 = vadd.xlane.f32.xlu1 %v6405_v45  ;;  %v6493_v46 = vadd.f32 %v12746_v47, %v12675_v52  ;;  %v6494_v26 = vadd.f32 %v12746_v47, %v12681_v35  ;;  %v13838_v30 = vld [vmem:[#allocation31_spill] sm:$0xff] }
 0x5d8   : > { %v6810_v41 = vsel %vm6764_vm4, %v6809_v22, %v6805_v5  ;;  %v6921_v9 = vrot.slane %v6511_v3, %v12741_v10  ;;  %v5446_v33 = vadd.f32 %v5445_v53, %v11990_v2  ;;  %v5447_v24 = vpop.f32.mrb[215].mxu1  ;;  %v6491_v1 = vadd.f32 %v12746_v47, %v12663_v56 }
 0x5d9   : > { %v6815_v32 = vsel %vm6771_vm5, %v6814_v37, %v6810_v41  ;;  %v5448_v13 = vadd.f32 %v5447_v24, %v11997_v39  ;;  %v12951_v25 = vpop.xlane.xlu1 %6298  ;;  %v6200_v43 = vpop.xlane.xlu0 %6199  ;;  %v6408_v16 = vadd.f32 %v6047_v31, %v6046_v48  ;;  %v6492_v35 = vadd.f32 %v12746_v47, %v12669_v62  ;;  %v13840_v41 = vld [vmem:[#allocation33_spill] sm:$0xff] }
 0x5da   : > { %v6820_v40 = vsel %vm6778_vm6, %v6819_v34, %v6815_v32  ;;  %v6922_v52 = vsel %vm6757_vm3, %v6921_v9, %v6917_v19  ;;  %v6048_v51 = vmul.f32 %v12876_v7, %v5446_v33  ;;  %v6512_v61 = vadd.f32 %v12746_v47, %v6200_v43  ;;  %v13839_v34 = vld [vmem:[#allocation32_spill] sm:$0xff] }
 0x5db   : > { %v6495_v20 = vadd.f32 %v12746_v47, %v12696_v38  ;;  %v6049_v60 = vmul.f32 %v12884_v8, %v5448_v13  ;;  %v5451_v11 = vpop.f32.mrb[216].mxu1  ;;  %6409 = vadd.xlane.f32.xlu1 %v6408_v16  ;;  %v6833_v22 = vrot.slane %v6493_v46, %v12731_v0  ;;  %v6496_v55 = vadd.f32 %v12746_v47, %v13837_v15 }
 0x5dc   : > { %v6926_v17 = vrot.slane %v6512_v61, %v12753_v21  ;;  %v5452_v59 = vadd.f32 %v5451_v11, %v11990_v2  ;;  %v5453_v56 = vpop.f32.mrb[217].mxu1  ;;  %v6838_v62 = vrot.slane %v6494_v26, %v12738_v12  ;;  %v6497_v38 = vadd.f32 %v12746_v47, %v13838_v30 }
 0x5dd   : > { %v5454_v37 = vadd.f32 %v5453_v56, %v11997_v39  ;;  %v6203_v14 = vpop.xlane.xlu1 %6202  ;;  %v12973_v44 = vpop.xlane.xlu0 %6301  ;;  %v6411_v45 = vadd.f32 %v6049_v60, %v6048_v51  ;;  %v6498_v19 = vadd.f32 %v12746_v47, %v13839_v34  ;;  %v6829_v31 = vrot.slane %v6492_v35, %v12728_v58 }
 0x5de   : > { %v6927_v48 = vsel %vm6764_vm4, %v6926_v17, %v6922_v52  ;;  %v6050_v3 = vmul.f32 %v12876_v7, %v5452_v59  ;;  %v6513_v5 = vadd.f32 %v12746_v47, %v6203_v14  ;;  %v6843_v53 = vrot.slane %v6495_v20, %v12741_v10 }
 0x5df   : > { %v6499_v46 = vadd.f32 %v12746_v47, %v13840_v41  ;;  %v6051_v9 = vmul.f32 %v12884_v8, %v5454_v37  ;;  %v5457_v33 = vpop.f32.mrb[218].mxu1  ;;  %6412 = vadd.xlane.f32.xlu1 %v6411_v45  ;;  %v6824_v24 = vrot.slane %v6491_v1, %v12787_v42  ;;  %v6848_v32 = vrot.slane %v6496_v55, %v12753_v21 }
 0x5e0   : > { %v6931_v26 = vrot.slane %v6513_v5, %v12775_v23  ;;  %v5458_v13 = vadd.f32 %v5457_v33, %v11990_v2  ;;  %v5459_v43 = vpop.f32.mrb[219].mxu1  ;;  %v6834_v16 = vsel %vm6743_vm1, %v6833_v22, %v6829_v31  ;;  %v6853_v52 = vrot.slane %v6497_v38, %v12775_v23 }
 0x5e1   : > { %v5460_v51 = vadd.f32 %v5459_v43, %v11997_v39  ;;  %v12992_v61 = vpop.xlane.xlu1 %6304  ;;  %v6414_v35 = vadd.f32 %v6051_v9, %v6050_v3  ;;  %v6839_v20 = vsel %vm6750_vm2, %v6838_v62, %v6834_v16  ;;  %v6858_v1 = vrot.slane %v6498_v19, %v12780_v18  ;;  %v6206_v15 = vpop.xlane.xlu0 %6205 }
 0x5e2   : > { %v6932_v60 = vsel %vm6771_vm5, %v6931_v26, %v6927_v48  ;;  %v6052_v11 = vmul.f32 %v12876_v7, %v5458_v13  ;;  %v6844_v55 = vsel %vm6757_vm3, %v6843_v53, %v6839_v20  ;;  %v6863_v22 = vrot.slane %v6499_v46, %v12787_v42  ;;  %v13841_v13 = vld [vmem:[#allocation29_spill] sm:$0xff] }
 0x5e3   : > { %v6053_v17 = vmul.f32 %v12884_v8, %v5460_v51  ;;  %v6514_v59 = vadd.f32 %v12746_v47, %v6206_v15  ;;  %v5463_v56 = vpop.f32.mrb[220].mxu1  ;;  %6415 = vadd.xlane.f32.xlu0 %v6414_v35  ;;  %v6779_v62 = vsel %vm6778_vm6, %v6777_v63, %v12889_v57  ;;  %v6825_v30 = vsel %vm6785_vm7, %v6824_v24, %v6820_v40 }
 0x5e4   : > { %v6849_v38 = vsel %vm6764_vm4, %v6848_v32, %v6844_v55  ;;  %v5464_v37 = vadd.f32 %v5463_v56, %v11990_v2  ;;  %v5465_v14 = vpop.f32.mrb[221].mxu1  ;;  %v6786_v4 = vsel %vm6785_vm7, %v6784_v6, %v6779_v62  ;;  %v13030_v43 = vrot.slane %v13841_v13, %v13826_v49 }
 0x5e5   : > { %v6854_v45 = vsel %vm6771_vm5, %v6853_v52, %v6849_v38  ;;  %v6936_v34 = vrot.slane %v6514_v59, %v12780_v18  ;;  %v5466_v19 = vadd.f32 %v5465_v14, %v11997_v39  ;;  %v6417_v48 = vadd.f32 %v6053_v17, %v6052_v11  ;;  %v6209_v40 = vpop.xlane.xlu1 %6208  ;;  %v6308_v3 = vpop.xlane.xlu0 %6307 }
 0x5e6   : > { %v6859_v57 = vsel %vm6778_vm6, %v6858_v1, %v6854_v45  ;;  %v6054_v63 = vmul.f32 %v12876_v7, %v5464_v37  ;;  %v6515_v41 = vadd.f32 %v12746_v47, %v6209_v40  ;;  %v7373_v36 = vsel %vm7372_vm8, %v6825_v30, %v6786_v4 }
 0x5e7   : > { %v6864_v5 = vsel %vm6785_vm7, %v6863_v22, %v6859_v57  ;;  %v6937_v31 = vsel %vm6778_vm6, %v6936_v34, %v6932_v60  ;;  %v6055_v53 = vmul.f32 %v12884_v8, %v5466_v19  ;;  %v5469_v46 = vpop.f32.mrb[222].mxu1  ;;  %6418 = vadd.xlane.f32.xlu1 %v6417_v48  ;;  %v6548_v24 = vadd.f32 %v12746_v47, %v6308_v3 }
 0x5e8   : > { %v5470_v6 = vadd.f32 %v5469_v46, %v11990_v2  ;;  %v5471_v9 = vpop.f32.mrb[223].mxu1  ;;  %v6941_v33 = vrot.slane %v6515_v41, %v12787_v42  ;;  %v7375_v16 = vsel %vm7374_vm9, %v6864_v5, %v7373_v36  ;;  %v13041_v55 = vrot.slane %v13841_v13, %v13827_v54 }
 0x5e9   : > { %v5472_v32 = vadd.f32 %v5471_v9, %v11997_v39  ;;  %v6420_v26 = vadd.f32 %v6055_v53, %v6054_v63  ;;  %v6311_v51 = vpop.xlane.xlu1 %6310  ;;  %v6212_v35 = vpop.xlane.xlu0 %6211  ;;  %v7377_v20 = vsel %vm7376_vm10, %v12863_v27, %v7375_v16  ;;  %v7102_v59 = vrot.slane %v6548_v24, %v12728_v58 }
 0x5ea   : > { %v6056_v52 = vmul.f32 %v12876_v7, %v5470_v6  ;;  %v6942_v1 = vsel %vm6785_vm7, %v6941_v33, %v6937_v31  ;;  %v6549_v11 = vadd.f32 %v12746_v47, %v6311_v51  ;;  %v6516_v7 = vadd.f32 %v12746_v47, %v6212_v35 }
 0x5eb   : > { %v6057_v60 = vmul.f32 %v12884_v8, %v5472_v32  ;;  %v5475_v15 = vpop.f32.mrb[224].mxu1  ;;  %6421 = vadd.xlane.f32.xlu1 %v6420_v26  ;;  %v13044_v22 = vsel %vm7378_vm11, %v6942_v1, %v7377_v20 }
 0x5ec   : > { %v5476_v17 = vadd.f32 %v5475_v15, %v11990_v2  ;;  %v5477_v27 = vpop.f32.mrb[225].mxu1  ;;  %v7106_v8 = vrot.slane %v6549_v11, %v12731_v0  ;;  %v6946_v4 = vrot.slane %v6516_v7, %v12728_v58 }
 0x5ed   : > { %v5478_v56 = vadd.f32 %v5477_v27, %v11997_v39  ;;  %v6423_v62 = vadd.f32 %v6057_v60, %v6056_v52  ;;  %v6215_v38 = vpop.xlane.xlu1 %6214  ;;  %v6314_v37 = vpop.xlane.xlu0 %6313 }
 0x5ee   : > { %v6058_v30 = vmul.f32 %v13030_v43, %v5476_v17  ;;  %v7107_v14 = vsel %vm6743_vm1, %v7106_v8, %v7102_v59  ;;  %v6517_v34 = vadd.f32 %v12746_v47, %v6215_v38  ;;  %v6550_v19 = vadd.f32 %v12746_v47, %v6314_v37 }
 0x5ef   : > { %v6059_v45 = vmul.f32 %v13041_v55, %v5478_v56  ;;  %v5481_v48 = vpop.f32.mrb[226].mxu1  ;;  %6424 = vadd.xlane.f32.xlu0 %v6423_v62 }
 0x5f0   : > { %v5482_v57 = vadd.f32 %v5481_v48, %v11990_v2  ;;  %v5483_v63 = vpop.f32.mrb[227].mxu1  ;;  %v6950_v40 = vrot.slane %v6517_v34, %v12731_v0  ;;  %v7111_v3 = vrot.slane %v6550_v19, %v12738_v12 }
 0x5f1   : > { %v5484_v5 = vadd.f32 %v5483_v63, %v11997_v39  ;;  %v6426_v31 = vadd.f32 %v6059_v45, %v6058_v30  ;;  %v6317_v41 = vpop.xlane.xlu1 %6316  ;;  %v6218_v46 = vpop.xlane.xlu0 %6217 }
 0x5f2   : > { %v6060_v53 = vmul.f32 %v13030_v43, %v5482_v57  ;;  %v6951_v36 = vsel %vm6743_vm1, %v6950_v40, %v6946_v4  ;;  %v7112_v6 = vsel %vm6750_vm2, %v7111_v3, %v7107_v14  ;;  %v6551_v33 = vadd.f32 %v12746_v47, %v6317_v41 }
 0x5f3   : > { %v6061_v9 = vmul.f32 %v13041_v55, %v5484_v5  ;;  %v5487_v24 = vpop.f32.mrb[228].mxu1  ;;  %6427 = vadd.xlane.f32.xlu0 %v6426_v31  ;;  %v6518_v32 = vadd.f32 %v12746_v47, %v6218_v46 }
 0x5f4   : > { %v5488_v26 = vadd.f32 %v5487_v24, %v11990_v2  ;;  %v5489_v13 = vpop.f32.mrb[229].mxu1  ;;  %v7116_v16 = vrot.slane %v6551_v33, %v12741_v10 }
 0x5f5   : > { %v5490_v52 = vadd.f32 %v5489_v13, %v11997_v39  ;;  %v6429_v51 = vadd.f32 %v6061_v9, %v6060_v53  ;;  %v6955_v35 = vrot.slane %v6518_v32, %v12738_v12  ;;  %v6221_v1 = vpop.xlane.xlu1 %6220  ;;  %v6320_v60 = vpop.xlane.xlu0 %6319 }
 0x5f6   : > { %v6062_v20 = vmul.f32 %v13030_v43, %v5488_v26  ;;  %v7117_v11 = vsel %vm6757_vm3, %v7116_v16, %v7112_v6  ;;  %v6519_v7 = vadd.f32 %v12746_v47, %v6221_v1  ;;  %v6552_v17 = vadd.f32 %v12746_v47, %v6320_v60 }
 0x5f7   : > { %v6063_v15 = vmul.f32 %v13041_v55, %v5490_v52  ;;  %v5493_v27 = vpop.f32.mrb[230].mxu1  ;;  %6430 = vadd.xlane.f32.xlu1 %v6429_v51  ;;  %v6956_v59 = vsel %vm6750_vm2, %v6955_v35, %v6951_v36 }
 0x5f8   : > { %v5494_v8 = vadd.f32 %v5493_v27, %v11990_v2  ;;  %v5495_v56 = vpop.f32.mrb[231].mxu1  ;;  %v6960_v62 = vrot.slane %v6519_v7, %v12741_v10  ;;  %v7121_v30 = vrot.slane %v6552_v17, %v12753_v21 }
 0x5f9   : > { %v5496_v38 = vadd.f32 %v5495_v56, %v11997_v39  ;;  %v6432_v37 = vadd.f32 %v6063_v15, %v6062_v20  ;;  %v6323_v45 = vpop.xlane.xlu1 %6322  ;;  %v6224_v34 = vpop.xlane.xlu0 %6223 }
 0x5fa   : > { %v6064_v14 = vmul.f32 %v13030_v43, %v5494_v8  ;;  %v6961_v19 = vsel %vm6757_vm3, %v6960_v62, %v6956_v59  ;;  %v7122_v48 = vsel %vm6764_vm4, %v7121_v30, %v7117_v11  ;;  %v6553_v57 = vadd.f32 %v12746_v47, %v6323_v45 }
 0x5fb   : > { %v6065_v4 = vmul.f32 %v13041_v55, %v5496_v38  ;;  %v5499_v63 = vpop.f32.mrb[232].mxu1  ;;  %6433 = vadd.xlane.f32.xlu0 %v6432_v37  ;;  %v6520_v40 = vadd.f32 %v12746_v47, %v6224_v34 }
 0x5fc   : > { %v5500_v3 = vadd.f32 %v5499_v63, %v11990_v2  ;;  %v5501_v5 = vpop.f32.mrb[233].mxu1  ;;  %v7126_v31 = vrot.slane %v6553_v57, %v12775_v23 }
 0x5fd   : > { %v5502_v53 = vadd.f32 %v5501_v5, %v11997_v39  ;;  %v6435_v41 = vadd.f32 %v6065_v4, %v6064_v14  ;;  %v6965_v46 = vrot.slane %v6520_v40, %v12753_v21  ;;  %v6227_v6 = vpop.xlane.xlu1 %6226  ;;  %v6326_v9 = vpop.xlane.xlu0 %6325  ;;  %v5673_v5 = vcombine.high %v11547_v28, %v11547_v28 }
 0x5fe   : > { %v6066_v36 = vmul.f32 %v13030_v43, %v5500_v3  ;;  %v7127_v33 = vsel %vm6771_vm5, %v7126_v31, %v7122_v48  ;;  %v6521_v32 = vadd.f32 %v12746_v47, %v6227_v6  ;;  %v6554_v26 = vadd.f32 %v12746_v47, %v6326_v9 }
 0x5ff   : > { %v6067_v24 = vmul.f32 %v13041_v55, %v5502_v53  ;;  %v5505_v13 = vpop.f32.mrb[234].mxu1  ;;  %6436 = vadd.xlane.f32.xlu1 %v6435_v41  ;;  %v6966_v16 = vsel %vm6764_vm4, %v6965_v46, %v6961_v19 }
 0x600   : > { %v5506_v52 = vadd.f32 %v5505_v13, %v11990_v2  ;;  %v5507_v51 = vpop.f32.mrb[235].mxu1  ;;  %v6970_v35 = vrot.slane %v6521_v32, %v12775_v23  ;;  %v7131_v20 = vrot.slane %v6554_v26, %v12780_v18 }
 0x601   : > { %v5508_v1 = vadd.f32 %v5507_v51, %v11997_v39  ;;  %v6438_v60 = vadd.f32 %v6067_v24, %v6066_v36  ;;  %v6329_v15 = vpop.xlane.xlu1 %6328  ;;  %v6230_v7 = vpop.xlane.xlu0 %6229  ;;  %v13134_v51 = vrot.slane %v5673_v5, %v13827_v54 }
 0x602   : > { %v6068_v11 = vmul.f32 %v13030_v43, %v5506_v52  ;;  %v6971_v17 = vsel %vm6771_vm5, %v6970_v35, %v6966_v16  ;;  %v7132_v27 = vsel %vm6778_vm6, %v7131_v20, %v7127_v33  ;;  %v6555_v8 = vadd.f32 %v12746_v47, %v6329_v15 }
 0x603   : > { %v6069_v59 = vmul.f32 %v13041_v55, %v5508_v1  ;;  %v5511_v56 = vpop.f32.mrb[236].mxu1  ;;  %6439 = vadd.xlane.f32.xlu0 %v6438_v60  ;;  %v6522_v62 = vadd.f32 %v12746_v47, %v6230_v7  ;;  %v13131_v52 = vrot.slane %v5673_v5, %v13826_v49 }
 0x604   : > { %v5512_v30 = vadd.f32 %v5511_v56, %v11990_v2  ;;  %v5513_v38 = vpop.f32.mrb[237].mxu1  ;;  %v7136_v37 = vrot.slane %v6555_v8, %v12787_v42 }
 0x605   : > { %v5514_v14 = vadd.f32 %v5513_v38, %v11997_v39  ;;  %v6441_v45 = vadd.f32 %v6069_v59, %v6068_v11  ;;  %v6975_v34 = vrot.slane %v6522_v62, %v12780_v18  ;;  %v6233_v48 = vpop.xlane.xlu1 %6232  ;;  %v6332_v4 = vpop.xlane.xlu0 %6331 }
 0x606   : > { %v6070_v19 = vmul.f32 %v13030_v43, %v5512_v30  ;;  %v13113_v57 = vsel %vm6785_vm7, %v7136_v37, %v7132_v27  ;;  %v6523_v40 = vadd.f32 %v12746_v47, %v6233_v48  ;;  %v6556_v46 = vadd.f32 %v12746_v47, %v6332_v4 }
 0x607   : > { %v6071_v63 = vmul.f32 %v13041_v55, %v5514_v14  ;;  %v5517_v3 = vpop.f32.mrb[238].mxu1  ;;  %6442 = vadd.xlane.f32.xlu0 %v6441_v45  ;;  %v6976_v9 = vsel %vm6778_vm6, %v6975_v34, %v6971_v17 }
 0x608   : > { %v5518_v31 = vadd.f32 %v5517_v3, %v11990_v2  ;;  %v5519_v53 = vpop.f32.mrb[239].mxu1  ;;  %v6980_v41 = vrot.slane %v6523_v40, %v12787_v42  ;;  %v7141_v1 = vrot.slane %v6556_v46, %v12728_v58 }
 0x609   : > { %v5520_v36 = vadd.f32 %v5519_v53, %v11997_v39  ;;  %v6444_v6 = vadd.f32 %v6071_v63, %v6070_v19  ;;  %v6335_v24 = vpop.xlane.xlu1 %6334  ;;  %v13125_v32 = vpop.xlane.xlu0 %6235 }
 0x60a   : > { %v6072_v33 = vmul.f32 %v13030_v43, %v5518_v31  ;;  %v6981_v28 = vsel %vm6785_vm7, %v6980_v41, %v6976_v9  ;;  %v6557_v13 = vadd.f32 %v12746_v47, %v6335_v24 }
 0x60b   : > { %v6073_v26 = vmul.f32 %v13041_v55, %v5520_v36  ;;  %v5523_v16 = vpop.f32.mrb[240].mxu1  ;;  %6445 = vadd.xlane.f32.xlu1 %v6444_v6  ;;  %v13138_v43 = vsel %vm7380_vm12, %v6981_v28, %v13044_v22 }
 0x60c   : > { %v5524_v35 = vadd.f32 %v5523_v16, %v11990_v2  ;;  %v5525_v20 = vpop.f32.mrb[241].mxu1  ;;  %v7145_v55 = vrot.slane %v6557_v13, %v12731_v0 }
 0x60d   : > { %v5526_v60 = vadd.f32 %v5525_v20, %v11997_v39  ;;  %v6447_v11 = vadd.f32 %v6073_v26, %v6072_v33  ;;  %v13145_v15 = vpop.xlane.xlu1 %6238  ;;  %v6338_v54 = vpop.xlane.xlu0 %6337 }
 0x60e   : > { %v6074_v49 = vmul.f32 %v13131_v52, %v5524_v35  ;;  %v7146_v7 = vsel %vm6743_vm1, %v7145_v55, %v7141_v1  ;;  %v6558_v17 = vadd.f32 %v12746_v47, %v6338_v54 }
 0x60f   : > { %v6075_v22 = vmul.f32 %v13134_v51, %v5526_v60  ;;  %v5529_v27 = vpop.f32.mrb[242].mxu1  ;;  %6448 = vadd.xlane.f32.xlu1 %v6447_v11 }
 0x610   : > { %v5530_v59 = vadd.f32 %v5529_v27, %v11990_v2  ;;  %v5531_v8 = vpop.f32.mrb[243].mxu1  ;;  %v7150_v56 = vrot.slane %v6558_v17, %v12738_v12 }
 0x611   : > { %v5532_v62 = vadd.f32 %v5531_v8, %v11997_v39  ;;  %v6450_v30 = vadd.f32 %v6075_v22, %v6074_v49  ;;  %v6341_v37 = vpop.xlane.xlu1 %6340  ;;  %v13154_v14 = vpop.xlane.xlu0 %6241 }
 0x612   : > { %v6076_v38 = vmul.f32 %v13131_v52, %v5530_v59  ;;  %v7151_v45 = vsel %vm6750_vm2, %v7150_v56, %v7146_v7  ;;  %v6559_v19 = vadd.f32 %v12746_v47, %v6341_v37 }
 0x613   : > { %v6077_v34 = vmul.f32 %v13134_v51, %v5532_v62  ;;  %v5535_v48 = vpop.f32.mrb[244].mxu1  ;;  %6451 = vadd.xlane.f32.xlu1 %v6450_v30 }
 0x614   : > { %v5536_v4 = vadd.f32 %v5535_v48, %v11990_v2  ;;  %v5537_v63 = vpop.f32.mrb[245].mxu1  ;;  %v7155_v40 = vrot.slane %v6559_v19, %v12741_v10 }
 0x615   : > { %v5538_v3 = vadd.f32 %v5537_v63, %v11997_v39  ;;  %v6453_v5 = vadd.f32 %v6077_v34, %v6076_v38  ;;  %v6344_v53 = vpop.xlane.xlu1 %6343  ;;  %v6347_v41 = vpop.xlane.xlu0 %6346 }
 0x616   : > { %v6078_v31 = vmul.f32 %v13131_v52, %v5536_v4  ;;  %v7156_v46 = vsel %vm6757_vm3, %v7155_v40, %v7151_v45  ;;  %v6560_v6 = vadd.f32 %v12746_v47, %v6344_v53  ;;  %v6561_v9 = vadd.f32 %v12746_v47, %v6347_v41 }
 0x617   : > { %v6079_v36 = vmul.f32 %v13134_v51, %v5538_v3  ;;  %v5541_v33 = vpop.f32.mrb[246].mxu1  ;;  %6454 = vadd.xlane.f32.xlu0 %v6453_v5 }
 0x618   : > { %v5542_v24 = vadd.f32 %v5541_v33, %v11990_v2  ;;  %v5543_v28 = vpop.f32.mrb[247].mxu1  ;;  %v7160_v26 = vrot.slane %v6560_v6, %v12753_v21  ;;  %v7165_v13 = vrot.slane %v6561_v9, %v12775_v23 }
 0x619   : > { %v5544_v16 = vadd.f32 %v5543_v28, %v11997_v39  ;;  %v6456_v35 = vadd.f32 %v6079_v36, %v6078_v31  ;;  %v13172_v1 = vpop.xlane.xlu1 %6244  ;;  %v13174_v55 = vpop.xlane.xlu0 %6247 }
 0x61a   : > { %v6080_v20 = vmul.f32 %v13131_v52, %v5542_v24  ;;  %v7161_v60 = vsel %vm6764_vm4, %v7160_v26, %v7156_v46 }
 0x61b   : > { %v6081_v11 = vmul.f32 %v13134_v51, %v5544_v16  ;;  %6457 = vadd.xlane.f32.xlu0 %v6456_v35  ;;  %v7166_v49 = vsel %vm6771_vm5, %v7165_v13, %v7161_v60 }
 0x61c   : > { %v5547_v54 = vpop.f32.mrb[248].mxu1 }
 0x61d   : > { %v5548_v7 = vadd.f32 %v5547_v54, %v11990_v2  ;;  %v5549_v22 = vpop.f32.mrb[249].mxu1  ;;  %v6459_v17 = vadd.f32 %v6081_v11, %v6080_v20  ;;  %v13181_v59 = vpop.xlane.xlu1 %6250 }
 0x61e   : > { %v5550_v27 = vadd.f32 %v5549_v22, %v11997_v39  ;;  %v6350_v8 = vpop.xlane.xlu0 %6349 }
 0x61f   : > { %v6082_v56 = vmul.f32 %v13131_v52, %v5548_v7  ;;  %v6562_v62 = vadd.f32 %v12746_v47, %v6350_v8  ;;  %6460 = vadd.xlane.f32.xlu1 %v6459_v17 }
 0x620   : > { %v6083_v30 = vmul.f32 %v13134_v51, %v5550_v27  ;;  %v5553_v38 = vpop.f32.mrb[250].mxu1 }
 0x621   : > { %v7170_v37 = vrot.slane %v6562_v62, %v12780_v18  ;;  %v5554_v45 = vadd.f32 %v5553_v38, %v11990_v2  ;;  %v5555_v34 = vpop.f32.mrb[251].mxu1  ;;  %v6353_v48 = vpop.xlane.xlu1 %6352 }
 0x622   : > { %v5556_v19 = vadd.f32 %v5555_v34, %v11997_v39  ;;  %v13189_v4 = vpop.xlane.xlu0 %6253  ;;  %v6462_v63 = vadd.f32 %v6083_v30, %v6082_v56  ;;  %v6563_v5 = vadd.f32 %v12746_v47, %v6353_v48 }
 0x623   : > { %v7171_v40 = vsel %vm6778_vm6, %v7170_v37, %v7166_v49  ;;  %v6084_v3 = vmul.f32 %v13131_v52, %v5554_v45 }
 0x624   : > { %v6085_v31 = vmul.f32 %v13134_v51, %v5556_v19  ;;  %v5559_v53 = vpop.f32.mrb[252].mxu1  ;;  %6463 = vadd.xlane.f32.xlu1 %v6462_v63  ;;  %v7175_v41 = vrot.slane %v6563_v5, %v12787_v42 }
 0x625   : > { %v5560_v46 = vadd.f32 %v5559_v53, %v11990_v2  ;;  %v5561_v36 = vpop.f32.mrb[253].mxu1  ;;  %v13198_v9 = vpop.xlane.xlu1 %6256  ;;  %v6525_v53 = vadd.f32 %v12746_v47, %v13145_v15 }
 0x626   : > { %v5562_v6 = vadd.f32 %v5561_v36, %v11997_v39  ;;  %v6356_v33 = vpop.xlane.xlu0 %6355  ;;  %v6465_v24 = vadd.f32 %v6085_v31, %v6084_v3  ;;  %v13201_v28 = vsel %vm6785_vm7, %v7175_v41, %v7171_v40 }
 0x627   : > { %v6086_v26 = vmul.f32 %v13131_v52, %v5560_v46  ;;  %v6564_v35 = vadd.f32 %v12746_v47, %v6356_v33  ;;  %v6526_v33 = vadd.f32 %v12746_v47, %v13154_v14 }
 0x628   : > { %v6087_v13 = vmul.f32 %v13134_v51, %v5562_v6  ;;  %v5565_v16 = vpop.f32.mrb[254].mxu1  ;;  %6466 = vadd.xlane.f32.xlu0 %v6465_v24  ;;  %v6524_v6 = vadd.f32 %v12746_v47, %v13125_v32 }
 0x629   : > { %v5566_v20 = vadd.f32 %v5565_v16, %v11990_v2  ;;  %v5567_v60 = vpop.f32.mrb[255].mxu1  ;;  %v6359_v49 = vpop.xlane.xlu1 %6358  ;;  %v7180_v8 = vrot.slane %v6564_v35, %v12728_v58 }
 0x62a   : > { %v5568_v11 = vadd.f32 %v5567_v60, %v11997_v39  ;;  %v6260_v54 = vpop.xlane.xlu0 %6259  ;;  %v6468_v7 = vadd.f32 %v6087_v13, %v6086_v26  ;;  %v6565_v17 = vadd.f32 %v12746_v47, %v6359_v49  ;;  %v6989_v26 = vrot.slane %v6525_v53, %v12731_v0 }
 0x62b   : > { %v6088_v22 = vmul.f32 %v13131_v52, %v5566_v20  ;;  %v6527_v13 = vadd.f32 %v12746_v47, %v13172_v1  ;;  %v6985_v32 = vrot.slane %v6524_v6, %v12728_v58  ;;  %v6528_v49 = vadd.f32 %v12746_v47, %v13174_v55 }
 0x62c   : > { %v6089_v27 = vmul.f32 %v13134_v51, %v5568_v11  ;;  %6469 = vadd.xlane.f32.xlu0 %v6468_v7  ;;  %v7184_v56 = vrot.slane %v6565_v17, %v12731_v0  ;;  %v6994_v11 = vrot.slane %v6526_v33, %v12738_v12  ;;  %v6532_v7 = vadd.f32 %v12746_v47, %v6260_v54 }
 0x62d   : > { %v6263_v62 = vpop.xlane.xlu1 %6262  ;;  %v6999_v17 = vrot.slane %v6527_v13, %v12741_v10 }
 0x62e   : > { %v6362_v30 = vpop.xlane.xlu0 %6361  ;;  %v6471_v2 = vadd.f32 %v6089_v27, %v6088_v22  ;;  %v7185_v38 = vsel %vm6743_vm1, %v7184_v56, %v7180_v8  ;;  %v6533_v15 = vadd.f32 %v12746_v47, %v6263_v62  ;;  %v6990_v22 = vsel %vm6743_vm1, %v6989_v26, %v6985_v32 }
 0x62f   : > { %v6566_v39 = vadd.f32 %v12746_v47, %v6362_v30  ;;  %v6529_v27 = vadd.f32 %v12746_v47, %v13181_v59  ;;  %v6530_v8 = vadd.f32 %v12746_v47, %v13189_v4  ;;  %v7004_v4 = vrot.slane %v6528_v49, %v12753_v21 }
 0x630   : > { %6472 = vadd.xlane.f32.xlu1 %v6471_v2  ;;  %v7028_v30 = vrot.slane %v6533_v15, %v12731_v0 }
 0x631   : > { %v7189_v37 = vrot.slane %v6566_v39, %v12738_v12  ;;  %v6368_v52 = vpop.xlane.xlu1 %6367  ;;  %v6531_v39 = vadd.f32 %v12746_v47, %v13198_v9 }
 0x632   : > { %v6365_v45 = vpop.xlane.xlu0 %6364  ;;  %v6568_v51 = vadd.f32 %v12746_v47, %v6368_v52  ;;  %v7024_v52 = vrot.slane %v6532_v7, %v12728_v58 }
 0x633   : > { %v7190_v34 = vsel %vm6750_vm2, %v7189_v37, %v7185_v38  ;;  %v6567_v19 = vadd.f32 %v12746_v47, %v6365_v45  ;;  %v6995_v38 = vsel %vm6750_vm2, %v6994_v11, %v6990_v22  ;;  %v7019_v53 = vrot.slane %v6531_v39, %v12787_v42 }
 0x634   : > { %v7199_v48 = vrot.slane %v6568_v51, %v12753_v21  ;;  %v7000_v51 = vsel %vm6757_vm3, %v6999_v17, %v6995_v38  ;;  %v6544_v38 = vadd.f32 %v12746_v47, %v12930_v29  ;;  %v6545_v39 = vadd.f32 %v12746_v47, %v12951_v25 }
 0x635   : > { %v7194_v63 = vrot.slane %v6567_v19, %v12741_v10  ;;  %v6269_v40 = vpop.xlane.xlu1 %6268  ;;  %v7009_v19 = vrot.slane %v6529_v27, %v12775_v23 }
 0x636   : > { %v6266_v3 = vpop.xlane.xlu0 %6265  ;;  %v6535_v55 = vadd.f32 %v12746_v47, %v6269_v40  ;;  %v7014_v40 = vrot.slane %v6530_v8, %v12780_v18 }
 0x637   : > { %v7195_v5 = vsel %vm6757_vm3, %v7194_v63, %v7190_v34  ;;  %v6534_v14 = vadd.f32 %v12746_v47, %v6266_v3  ;;  %v7029_v3 = vsel %vm6743_vm1, %v7028_v30, %v7024_v52 }
 0x638   : > { %v7200_v31 = vsel %vm6764_vm4, %v7199_v48, %v7195_v5  ;;  %v7038_v5 = vrot.slane %v6535_v55, %v12741_v10 }
 0x639   : > { %v6371_v41 = vpop.xlane.xlu1 %6370  ;;  %v7033_v59 = vrot.slane %v6534_v14, %v12738_v12 }
 0x63a   : > { %v6272_v46 = vpop.xlane.xlu0 %6271  ;;  %v6569_v36 = vadd.f32 %v12746_v47, %v6371_v41 }
 0x63b   : > { %v6536_v37 = vadd.f32 %v12746_v47, %v6272_v46  ;;  %v7034_v41 = vsel %vm6750_vm2, %v7033_v59, %v7029_v3  ;;  %v7087_v3 = vrot.slane %v6545_v39, %v12775_v23 }
 0x63c   : > { %v7204_v24 = vrot.slane %v6569_v36, %v12775_v23  ;;  %v7005_v36 = vsel %vm6764_vm4, %v7004_v4, %v7000_v51 }
 0x63d   : > { %v6275_v16 = vpop.xlane.xlu1 %6274  ;;  %v7043_v46 = vrot.slane %v6536_v37, %v12753_v21  ;;  %v7010_v33 = vsel %vm6771_vm5, %v7009_v19, %v7005_v36 }
 0x63e   : > { %v6374_v35 = vpop.xlane.xlu0 %6373  ;;  %v7205_v20 = vsel %vm6771_vm5, %v7204_v24, %v7200_v31  ;;  %v6537_v45 = vadd.f32 %v12746_v47, %v6275_v16  ;;  %v7015_v16 = vsel %vm6778_vm6, %v7014_v40, %v7010_v33  ;;  %v7082_v40 = vrot.slane %v6544_v38, %v12753_v21 }
 0x63f   : > { %v6570_v60 = vadd.f32 %v12746_v47, %v6374_v35  ;;  %v7039_v35 = vsel %vm6757_vm3, %v7038_v5, %v7034_v41 }
 0x640   : > { %v7048_v6 = vrot.slane %v6537_v45, %v12775_v23 }
 0x641   : > { %v7209_v1 = vrot.slane %v6570_v60, %v12780_v18  ;;  %v6377_v56 = vpop.xlane.xlu1 %6376  ;;  %v7044_v60 = vsel %vm6764_vm4, %v7043_v46, %v7039_v35 }
 0x642   : > { %v6278_v62 = vpop.xlane.xlu0 %6277  ;;  %v6571_v2 = vadd.f32 %v12746_v47, %v6377_v56  ;;  %v7049_v32 = vsel %vm6771_vm5, %v7048_v6, %v7044_v60 }
 0x643   : > { %v7210_v54 = vsel %vm6778_vm6, %v7209_v1, %v7205_v20  ;;  %v6538_v48 = vadd.f32 %v12746_v47, %v6278_v62  ;;  %v7020_v20 = vsel %vm6785_vm7, %v7019_v53, %v7015_v16 }
 0x644   : > { %v7214_v34 = vrot.slane %v6571_v2, %v12787_v42  ;;  %v7383_v1 = vsel %vm7382_vm13, %v7020_v20, %v13138_v43  ;;  %v6543_v43 = vadd.f32 %v12746_v47, %v12872_v50 }
 0x645   : > { %v6380_v9 = vpop.xlane.xlu1 %6379  ;;  %v7053_v24 = vrot.slane %v6538_v48, %v12780_v18  ;;  %v6547_v48 = vadd.f32 %v12746_v47, %v12992_v61 }
 0x646   : > { %v6383_v63 = vpop.xlane.xlu0 %6382  ;;  %v13270_v31 = vsel %vm6785_vm7, %v7214_v34, %v7210_v54  ;;  %v6572_v17 = vadd.f32 %v12746_v47, %v6380_v9  ;;  %v6546_v34 = vadd.f32 %v12746_v47, %v12973_v44  ;;  %v7077_v25 = vrot.slane %v6543_v43, %v12741_v10 }
 0x647   : > { %v7054_v14 = vsel %vm6778_vm6, %v7053_v24, %v7049_v32  ;;  %v6573_v27 = vadd.f32 %v12746_v47, %v6383_v63 }
 0x648   : > { %v7219_v59 = vrot.slane %v6572_v17, %v12728_v58  ;;  %v7092_v61 = vrot.slane %v6546_v34, %v12780_v18 }
 0x649   : > { %v6281_v26 = vpop.xlane.xlu1 %6280  ;;  %v7223_v37 = vrot.slane %v6573_v27, %v12731_v0 }
 0x64a   : > { %v6284_v13 = vpop.xlane.xlu0 %6283  ;;  %v6539_v15 = vadd.f32 %v12746_v47, %v6281_v26  ;;  %v7097_v26 = vrot.slane %v6547_v48, %v12787_v42 }
 0x64b   : > { %v6540_v56 = vadd.f32 %v12746_v47, %v6284_v13  ;;  %v7224_v44 = vsel %vm6743_vm1, %v7223_v37, %v7219_v59 }
 0x64c   : > { %v7058_v11 = vrot.slane %v6539_v15, %v12787_v42 }
 0x64d   : > { %v6386_v49 = vpop.xlane.xlu1 %6385  ;;  %v7063_v4 = vrot.slane %v6540_v56, %v12728_v58 }
 0x64e   : > { %v6389_v7 = vpop.xlane.xlu0 %6388  ;;  %v7059_v22 = vsel %vm6785_vm7, %v7058_v11, %v7054_v14  ;;  %v6574_v62 = vadd.f32 %v12746_v47, %v6386_v49 }
 0x64f   : > { %v7385_v8 = vsel %vm7384_vm14, %v7059_v22, %v7383_v1  ;;  %v6575_v52 = vadd.f32 %v12746_v47, %v6389_v7 }
 0x650   : > { %7396 = vst.msk [vmem:[%s13296_s3] sm:$0xff] %vm7395_vm15, %v7385_v8  ;;  %v7228_v29 = vrot.slane %v6574_v62, %v12738_v12 }
 0x651   : > { %v6287_v30 = vpop.xlane.xlu1 %6286  ;;  %v7233_v53 = vrot.slane %v6575_v52, %v12741_v10 }
 0x652   : > { %v6290_v55 = vpop.xlane.xlu0 %6289  ;;  %v6541_v54 = vadd.f32 %v12746_v47, %v6287_v30  ;;  %v7229_v36 = vsel %vm6750_vm2, %v7228_v29, %v7224_v44 }
 0x653   : > { %v6542_v2 = vadd.f32 %v12746_v47, %v6290_v55  ;;  %v7234_v15 = vsel %vm6757_vm3, %v7233_v53, %v7229_v36 }
 0x654   : > { %v7067_v50 = vrot.slane %v6541_v54, %v12731_v0 }
 0x655   : > { %v7072_v45 = vrot.slane %v6542_v2, %v12738_v12  ;;  %v6395_v51 = vpop.xlane.xlu1 %6394 }
 0x656   : > { %v6392_v19 = vpop.xlane.xlu0 %6391  ;;  %v7068_v9 = vsel %vm6743_vm1, %v7067_v50, %v7063_v4  ;;  %v6577_v46 = vadd.f32 %v12746_v47, %v6395_v51 }
 0x657   : > { %v6576_v63 = vadd.f32 %v12746_v47, %v6392_v19  ;;  %v7073_v5 = vsel %vm6750_vm2, %v7072_v45, %v7068_v9 }
 0x658   : > { %v7078_v41 = vsel %vm6757_vm3, %v7077_v25, %v7073_v5  ;;  %v7243_v20 = vrot.slane %v6577_v46, %v12775_v23 }
 0x659   : > { %v7083_v6 = vsel %vm6764_vm4, %v7082_v40, %v7078_v41  ;;  %v7238_v33 = vrot.slane %v6576_v63, %v12753_v21 }
 0x65a   : > { %v6398_v24 = vpop.xlane.xlu0 %6397  ;;  %v7088_v13 = vsel %vm6771_vm5, %v7087_v3, %v7083_v6 }
 0x65b   : > { %v6578_v16 = vadd.f32 %v12746_v47, %v6398_v24  ;;  %v7093_v35 = vsel %vm6778_vm6, %v7092_v61, %v7088_v13  ;;  %v7239_v32 = vsel %vm6764_vm4, %v7238_v33, %v7234_v15 }
 0x65c   : > { %v7098_v60 = vsel %vm6785_vm7, %v7097_v26, %v7093_v35  ;;  %v7244_v17 = vsel %vm6771_vm5, %v7243_v20, %v7239_v32 }
 0x65d   : > { %v7248_v11 = vrot.slane %v6578_v16, %v12780_v18  ;;  %v7386_v14 = vsel %vm7372_vm8, %v13113_v57, %v7098_v60 }
 0x65e   : > { %v6401_v49 = vpop.xlane.xlu0 %6400  ;;  %v7387_v7 = vsel %vm7374_vm9, %v13201_v28, %v7386_v14 }
 0x65f   : > { %v6579_v1 = vadd.f32 %v12746_v47, %v6401_v49  ;;  %v7388_v22 = vsel %vm7376_vm10, %v13270_v31, %v7387_v7  ;;  %v7249_v8 = vsel %vm6778_vm6, %v7248_v11, %v7244_v17 }
 0x661   : > { %v7253_v27 = vrot.slane %v6579_v1, %v12787_v42 }
 0x662   : > { %v6404_v28 = vpop.xlane.xlu0 %6403 }
 0x663   : > { %v7254_v56 = vsel %vm6785_vm7, %v7253_v27, %v7249_v8  ;;  %v6580_v19 = vadd.f32 %v12746_v47, %v6404_v28 }
 0x664   : > { %v13356_v62 = vsel %vm7378_vm11, %v7254_v56, %v7388_v22  ;;  %v6407_v57 = vpop.xlane.xlu1 %6406 }
 0x665   : > { %v6581_v34 = vadd.f32 %v12746_v47, %v6407_v57  ;;  %v7258_v3 = vrot.slane %v6580_v19, %v12728_v58 }
 0x667   : > { %v7262_v9 = vrot.slane %v6581_v34, %v12731_v0 }
 0x668   : > { %v6410_v30 = vpop.xlane.xlu1 %6409 }
 0x669   : > { %v6582_v29 = vadd.f32 %v12746_v47, %v6410_v30  ;;  %v7263_v46 = vsel %vm6743_vm1, %v7262_v9, %v7258_v3 }
 0x66b   : > { %v7267_v63 = vrot.slane %v6582_v29, %v12738_v12 }
 0x66c   : > { %v6413_v55 = vpop.xlane.xlu1 %6412 }
 0x66d   : > { %v6583_v25 = vadd.f32 %v12746_v47, %v6413_v55  ;;  %v7268_v6 = vsel %vm6750_vm2, %v7267_v63, %v7263_v46 }
 0x66f   : > { %v7272_v5 = vrot.slane %v6583_v25, %v12741_v10 }
 0x670   : > { %v6416_v54 = vpop.xlane.xlu0 %6415 }
 0x671   : > { %v6584_v44 = vadd.f32 %v12746_v47, %v6416_v54  ;;  %v7273_v24 = vsel %vm6757_vm3, %v7272_v5, %v7268_v6 }
 0x673   : > { %v7277_v26 = vrot.slane %v6584_v44, %v12753_v21 }
 0x674   : > { %v6419_v43 = vpop.xlane.xlu1 %6418 }
 0x675   : > { %v6585_v53 = vadd.f32 %v12746_v47, %v6419_v43 }
 0x677   : > { %v7282_v35 = vrot.slane %v6585_v53, %v12775_v23 }
 0x678   : > { %v6422_v2 = vpop.xlane.xlu1 %6421 }
 0x679   : > { %v6586_v13 = vadd.f32 %v12746_v47, %v6422_v2 }
 0x67b   : > { %v7287_v56 = vrot.slane %v6586_v13, %v12780_v18 }
 0x67c   : > { %v6425_v38 = vpop.xlane.xlu0 %6424 }
 0x67d   : > { %v6587_v11 = vadd.f32 %v12746_v47, %v6425_v38 }
 0x67f   : > { %v7292_v38 = vrot.slane %v6587_v11, %v12787_v42 }
 0x680   : > { %v6428_v39 = vpop.xlane.xlu0 %6427 }
 0x681   : > { %v6588_v33 = vadd.f32 %v12746_v47, %v6428_v39 }
 0x683   : > { %v7297_v22 = vrot.slane %v6588_v33, %v12728_v58 }
 0x684   : > { %v6431_v31 = vpop.xlane.xlu1 %6430 }
 0x685   : > { %v6589_v41 = vadd.f32 %v12746_v47, %v6431_v31 }
 0x687   : > { %v7301_v15 = vrot.slane %v6589_v41, %v12731_v0 }
 0x688   : > { %v6434_v37 = vpop.xlane.xlu0 %6433 }
 0x689   : > { %v6590_v61 = vadd.f32 %v12746_v47, %v6434_v37  ;;  %v7302_v28 = vsel %vm6743_vm1, %v7301_v15, %v7297_v22 }
 0x68b   : > { %v7306_v14 = vrot.slane %v6590_v61, %v12738_v12 }
 0x68c   : > { %v6437_v59 = vpop.xlane.xlu1 %6436 }
 0x68d   : > { %v6591_v16 = vadd.f32 %v12746_v47, %v6437_v59  ;;  %v7307_v31 = vsel %vm6750_vm2, %v7306_v14, %v7302_v28 }
 0x68f   : > { %v7311_v57 = vrot.slane %v6591_v16, %v12741_v10 }
 0x690   : > { %v6440_v52 = vpop.xlane.xlu0 %6439 }
 0x691   : > { %v6592_v20 = vadd.f32 %v12746_v47, %v6440_v52  ;;  %v7312_v34 = vsel %vm6757_vm3, %v7311_v57, %v7307_v31 }
 0x693   : > { %v7316_v43 = vrot.slane %v6592_v20, %v12753_v21 }
 0x694   : > { %v6443_v45 = vpop.xlane.xlu0 %6442 }
 0x695   : > { %v6593_v49 = vadd.f32 %v12746_v47, %v6443_v45  ;;  %v7317_v19 = vsel %vm6764_vm4, %v7316_v43, %v7312_v34 }
 0x697   : > { %v7321_v39 = vrot.slane %v6593_v49, %v12775_v23 }
 0x698   : > { %v6446_v4 = vpop.xlane.xlu1 %6445 }
 0x699   : > { %v6594_v17 = vadd.f32 %v12746_v47, %v6446_v4 }
 0x69b   : > { %v7326_v4 = vrot.slane %v6594_v17, %v12780_v18 }
 0x69c   : > { %v6449_v50 = vpop.xlane.xlu1 %6448 }
 0x69d   : > { %v6595_v30 = vadd.f32 %v12746_v47, %v6449_v50 }
 0x69f   : > { %v7331_v29 = vrot.slane %v6595_v30, %v12787_v42 }
 0x6a0   : > { %v6452_v51 = vpop.xlane.xlu1 %6451 }
 0x6a1   : > { %v6596_v27 = vadd.f32 %v12746_v47, %v6452_v51 }
 0x6a3   : > { %v7336_v52 = vrot.slane %v6596_v27, %v12728_v58 }
 0x6a4   : > { %v6455_v48 = vpop.xlane.xlu0 %6454 }
 0x6a5   : > { %v6597_v60 = vadd.f32 %v12746_v47, %v6455_v48  ;;  %v7322_v48 = vsel %vm6771_vm5, %v7321_v39, %v7317_v19 }
 0x6a7   : > { %v7340_v54 = vrot.slane %v6597_v60, %v12731_v0  ;;  %v7278_v0 = vsel %vm6764_vm4, %v7277_v26, %v7273_v24 }
 0x6a8   : > { %v6458_v36 = vpop.xlane.xlu0 %6457 }
 0x6a9   : > { %v6598_v7 = vadd.f32 %v12746_v47, %v6458_v36  ;;  %v7341_v58 = vsel %vm6743_vm1, %v7340_v54, %v7336_v52 }
 0x6ab   : > { %v7345_v59 = vrot.slane %v6598_v7, %v12738_v12  ;;  %v7283_v12 = vsel %vm6771_vm5, %v7282_v35, %v7278_v0 }
 0x6ac   : > { %v6461_v40 = vpop.xlane.xlu1 %6460  ;;  %v7288_v25 = vsel %vm6778_vm6, %v7287_v56, %v7283_v12 }
 0x6ad   : > { %v6599_v8 = vadd.f32 %v12746_v47, %v6461_v40  ;;  %v7346_v9 = vsel %vm6750_vm2, %v7345_v59, %v7341_v58  ;;  %v7293_v3 = vsel %vm6785_vm7, %v7292_v38, %v7288_v25 }
 0x6ae   : > { %v7390_v46 = vsel %vm7380_vm12, %v7293_v3, %v13356_v62 }
 0x6af   : > { %v7350_v50 = vrot.slane %v6599_v8, %v12741_v10 }
 0x6b1   : > { %v6464_v32 = vpop.xlane.xlu1 %6463  ;;  %v7351_v5 = vsel %vm6757_vm3, %v7350_v50, %v7346_v9 }
 0x6b2   : > { %v6600_v55 = vadd.f32 %v12746_v47, %v6464_v32 }
 0x6b4   : > { %v7355_v51 = vrot.slane %v6600_v55, %v12753_v21  ;;  %v7327_v21 = vsel %vm6778_vm6, %v7326_v4, %v7322_v48 }
 0x6b5   : > { %v6467_v1 = vpop.xlane.xlu0 %6466 }
 0x6b6   : > { %v6601_v2 = vadd.f32 %v12746_v47, %v6467_v1  ;;  %v7356_v53 = vsel %vm6764_vm4, %v7355_v51, %v7351_v5 }
 0x6b8   : > { %v7360_v10 = vrot.slane %v6601_v2, %v12775_v23  ;;  %v7332_v23 = vsel %vm6785_vm7, %v7331_v29, %v7327_v21 }
 0x6b9   : > { %v6470_v37 = vpop.xlane.xlu0 %6469 }
 0x6ba   : > { %v6602_v45 = vadd.f32 %v12746_v47, %v6470_v37 }
 0x6bc   : > { %v7365_v63 = vrot.slane %v6602_v45, %v12780_v18  ;;  %v7361_v18 = vsel %vm6771_vm5, %v7360_v10, %v7356_v53 }
 0x6bd   : > { %v6473_v40 = vpop.xlane.xlu1 %6472 }
 0x6be   : > { %v6603_v44 = vadd.f32 %v12746_v47, %v6473_v40  ;;  %v7366_v61 = vsel %vm6778_vm6, %v7365_v63, %v7361_v18  ;;  %v7391_v47 = vsel %vm7382_vm13, %v7332_v23, %v7390_v46 }
 0x6c0   : > { %v7370_v41 = vrot.slane %v6603_v44, %v12787_v42 }
 0x6c2   : > { %v7371_v36 = vsel %vm6785_vm7, %v7370_v41, %v7366_v61 }
 0x6c3   : > { %v7392_v42 = vsel %vm7384_vm14, %v7371_v36, %v7391_v47 }
 0x6c4   : > { %7397 = vst.msk [vmem:[%s13296_s3 + $0x8] sm:$0xff] %vm7395_vm15, %v7392_v42 }
 0x6c5   : > { %9432 = shalt.err (!%p9429_p4)
}
 0x6c6   : > { %s9433_s27 = scalar_lea.hbm %s13433_s22, 256  ;;  %s9437_s26 = scalar_lea.hbm %s13504_s19, 512 }
 0x6c7   : > { %p9434_p7 = scmp.ne.s32.totalorder %s13433_s22, %s9433_s27  ;;  %p9438_p10 = scmp.lt.u32.totalorder %s13433_s22, %s13504_s19 }
 0x6c8   : > { %p9439_p11 = scmp.lt.u32.totalorder %s9437_s26, %s9433_s27  ;;  %p9441_p13 = scmp.lt.u32.totalorder %s9433_s27, %s13433_s22 }
 0x6c9   : > { %p9435_p8 = pnand %p9434_p7, %p9631_p5 }
 0x6ca   : > { %p9440_p12 = por %p9439_p11, %p9438_p10 }
 0x6cb   : > { %p9436_p9 = pneg %p9435_p8 }
 0x6cc   : > { %p9442_p0 = por %p9441_p13, %p9440_p12 }
 0x6ce   : > { %p9443_p1 = pnand %p9442_p0, %p9436_p9 }
 0x6d0   : > { %9446 = shalt.err (!%p9443_p1)
}
 0x6d1   : > { %s9488_s2 = smov 128   ;;  %s9489_s25 = smov 8  }
 0x6d2   : > { %8584 = dma.vmem_to_hbm [thread:$0]  (%p9631_p5), %s13435_s0, 256, %s13433_s22, %s13444_s23, %s9488_s2, %s9488_s2, %s9489_s25  }
 0x6d3 PF: > { %s13842_s20 = sld [smem:[#allocation8_spill]]  ;;  %s13843_s29 = sld [smem:[#allocation6_spill]] }
 0x6d9   : > { %p8590_p2 = scmp.ge.s32.totalorder %s13842_s20, 2  ;;  %s7427_s3 = sand.u32 1, %s13843_s29  }
 0x6da   : > { %s7428_s27 = scalar_lea.sflag [#allocation4], %s7427_s3 }
 0x6db   : > { %p8587_p3 = pnand %p8590_p2, %p9635_p6 }
 0x6dd   : > { %9464 = dma.done.wait (!%p8587_p3), %s7428_s27, 256  }
 0x6de   : > { %9466 = vsyncadd (!%p8587_p3), %s7428_s27, 4294967040  ;;  %s13845_s2 = sld [smem:[#allocation9_spill]]  ;;  %s13846_s26 = sld [smem:[#allocation7_spill]] }
 0x6df   : > { %s13847_s22 = sld [smem:[#allocation10_spill]]  ;;  %s13848_s21 = smov %s9473_s1 }
 0x6e4   : > { %p30_p4 = scmp.ge.s32.totalorder %s13845_s2, 4   ;;  %s13849_s1 = smov %s13846_s26 }
 0x6e6   :  { %32 = sbr.rel (!%p30_p4) target bundleno = 14 (0xe), region = 134 }
 0x6ed   :  { %7433 = vsyncpa [#allocation4], 1 }
 0x6ee   :  { %7435 = vsyncpa [#allocation4 + $0x1], 1 }

</bundles_post_ra>
